<compile_context>
chip_gen: v7x
topology: tpu7x:2x2x1
jax: 0.10.0
libtpu: 0.0.40
codegen_flags: <defaults>
</compile_context>

<pallas_src>
import functools

import numpy as np
import jax
import jax.numpy as jnp
from jax import lax
from jax.experimental import pallas as pl
from jax.experimental.pallas import tpu as pltpu


_CORNERS = ((0, 0), (0, 1), (1, 0), (1, 1))


# ----------------------------------------------------------------------------
# Host-side constant builders (run once in prepare_params, never per forward).
# ----------------------------------------------------------------------------

def _sel_matrices(h_in, w_in, pooled):
    """0/1 selection tensors implementing in-kernel im2col as exact matmuls.

    For tap t=(ky,kx): (act (C, h_in*w_in) @ s[t]) gathers, for every output
    column, the input pixel that tap contributes.  Columns are corner-major
    (d*Hp*Wp + pi*Wp + pj) when `pooled` (2x2 maxpool fused as a 4-block max),
    else natural conv order (ho*Wo + wo).
    """
    ho, wo = h_in - 2, w_in - 2
    if pooled:
        hp, wp = ho // 2, wo // 2
        ncol = 4 * hp * wp
    else:
        ncol = ho * wo
    s = np.zeros((9, h_in * w_in, ncol), np.float32)
    for ky in range(3):
        for kx in range(3):
            t = ky * 3 + kx
            if pooled:
                for d, (dy, dx) in enumerate(_CORNERS):
                    for pi in range(hp):
                        for pj in range(wp):
                            col = d * hp * wp + pi * wp + pj
                            row = (2 * pi + dy + ky) * w_in + (2 * pj + dx + kx)
                            s[t, row, col] = 1.0
            else:
                for oi in range(ho):
                    for oj in range(wo):
                        s[t, (oi + ky) * w_in + (oj + kx), oi * wo + oj] = 1.0
    return jnp.asarray(s)


def _flatten_helpers(chs, q):
    """Constants turning an in-kernel (chs, q) activation into an NCHW-flattened
    (chs*q, 1) column:  feat_col = sum_lanes((repl @ act) * mask)."""
    repl = np.zeros((chs * q, chs), np.float32)
    mask = np.zeros((chs * q, q), np.float32)
    for c in range(chs):
        for s in range(q):
            repl[c * q + s, c] = 1.0
            mask[c * q + s, s] = 1.0
    return jnp.asarray(repl), jnp.asarray(mask)


# ----------------------------------------------------------------------------
# Wrapper-side im2col for the FIRST conv only (input lives in HBM anyway).
# ----------------------------------------------------------------------------

def _im2col_l0_pooled(x_nchw):
    """(N, Cin, H, W) -> (N, 9*Cin, 4*Hp*Wp): transposed im2col patches of the
    first conv, columns grouped corner-major so the 2x2 maxpool fuses in-kernel."""
    N, C, H, W = x_nchw.shape
    Ho, Wo = H - 2, W - 2
    Hp, Wp = Ho // 2, Wo // 2
    taps = []
    for ky in range(3):
        for kx in range(3):
            slab = x_nchw[:, :, ky:ky + Ho, kx:kx + Wo]          # (N, C, Ho, Wo)
            corners = [slab[:, :, dy:Ho:2, dx:Wo:2].reshape(N, C, Hp * Wp)
                       for dy, dx in _CORNERS]
            taps.append(jnp.concatenate(corners, axis=2))        # (N, C, 4*Hp*Wp)
    return jnp.concatenate(taps, axis=1)                         # (N, 9C, 4*Hp*Wp)


# ----------------------------------------------------------------------------
# The fused kernel (built once per static architecture config).
# ----------------------------------------------------------------------------

def _build_kernel(cfg):
    rc, nc = cfg["rc"], cfg["nc"]
    tc = rc + nc
    q0p, q1p, q2 = cfg["q0_pool"], cfg["q1_pool"], cfg["q2"]
    last_w = cfg["last_w"]
    nm_pool_cols = [dy * last_w + dx for dy, dx in _CORNERS]     # e.g. [0, 1, 3, 4]

    def _in_relu(acc, nref):
        prm = nref[...]
        b, g, bt = prm[:, 0:1], prm[:, 1:2], prm[:, 2:3]
        acc = acc + b
        mean = jnp.mean(acc, axis=1, keepdims=True)                     # per channel
        var = jnp.mean((acc - mean) ** 2, axis=1, keepdims=True)        # two-pass
        return jnp.maximum((acc - mean) * (g * lax.rsqrt(var + 1e-5)) + bt, 0.0)

    def _pool4(y, q):
        # corner-major columns -> 2x2 maxpool is a 4-block elementwise max
        return jnp.maximum(jnp.maximum(y[:, 0:q], y[:, q:2 * q]),
                           jnp.maximum(y[:, 2 * q:3 * q], y[:, 3 * q:4 * q]))

    def _conv_select(act, ws_ref, s_ref):
        # conv = sum over 9 taps of (blockdiag tap weight @ act) @ selection
        out = None
        for t in range(9):
            yt = jnp.dot(ws_ref[t], act, preferred_element_type=jnp.float32)
            c = jnp.dot(yt, s_ref[t], preferred_element_type=jnp.float32)
            out = c if out is None else out + c
        return out

    def kernel(p0_ref, w0_ref, n0_ref, w1_ref, s1_ref, n1_ref,
               w2_ref, s2_ref, n2_ref, repl_ref, mask_ref,
               wnm_ref, bnm_ref, wp1_ref, wp2_ref, bp_ref, o_ref):
        # --- block 0: one matmul for both streams over wrapper im2col patches ---
        y0 = jnp.dot(w0_ref[...], p0_ref[...], preferred_element_type=jnp.float32)
        act1 = _pool4(_in_relu(y0, n0_ref), q0p)                 # (tc, q0_pool)

        # --- block 1: in-kernel im2col via selection matmuls, fused 2x2 maxpool ---
        y1 = _conv_select(act1, w1_ref, s1_ref)                  # (tc, 4*q1_pool)
        act2 = _pool4(_in_relu(y1, n1_ref), q1p)                 # (tc, q1_pool)

        # --- block 2: conv; RLN keeps 3x3 spatial, NM pools to 1x1 below ---
        y2 = _conv_select(act2, w2_ref, s2_ref)                  # (tc, q2)
        act3 = _in_relu(y2, n2_ref)

        rln = act3[0:rc, :]                                      # (rc, q2)
        nm = act3[rc:tc, :]                                      # (nc, q2)
        nm_col = jnp.maximum(
            jnp.maximum(nm[:, nm_pool_cols[0]:nm_pool_cols[0] + 1],
                        nm[:, nm_pool_cols[1]:nm_pool_cols[1] + 1]),
            jnp.maximum(nm[:, nm_pool_cols[2]:nm_pool_cols[2] + 1],
                        nm[:, nm_pool_cols[3]:nm_pool_cols[3] + 1]))   # (nc, 1)

        # --- FC tail, all in column form (no reshape/transpose needed) ---
        # NCHW flatten of rln via replicate + diagonal mask + lane reduction.
        feat_col = jnp.sum(
            jnp.dot(repl_ref[...], rln, preferred_element_type=jnp.float32) * mask_ref[...],
            axis=1, keepdims=True)                               # (rc*q2, 1)
        z = jnp.dot(wnm_ref[...], nm_col, preferred_element_type=jnp.float32) + bnm_ref[...]
        cond_col = 1.0 / (1.0 + jnp.exp(-z))                     # sigmoid, (feat, 1)
        o_ref[...] = (jnp.dot(wp1_ref[...], feat_col, preferred_element_type=jnp.float32)
                      + jnp.dot(wp2_ref[...], cond_col, preferred_element_type=jnp.float32)
                      + bp_ref[...])                             # (ncls, 1)

    return kernel


# ----------------------------------------------------------------------------
# Model construction / parameter preparation.
# ----------------------------------------------------------------------------

def init_nonml_params(key, input_shape, rln_chs, nm_chs, num_classes, num_conv_blocks=3,
                      pool_rln_output=False):
    cin0, H, W = input_shape
    rln_pools = [True] * num_conv_blocks
    rln_pools[-1] = pool_rln_output
    nm_pools = [True] * num_conv_blocks          # NM: pool_at_end defaults to True

    def conv_out_hw(h, w, pool):
        h, w = h - 2, w - 2
        if pool:
            h, w = h // 2, w // 2
        return h, w

    def make_encoder(key, cin, hidden, pools, h, w):
        blocks = []
        for pool in pools:
            key, kw, kb = jax.random.split(key, 3)
            fan_in = cin * 9
            wgt = jax.random.normal(kw, (hidden, cin, 3, 3), jnp.float32) * (2.0 / fan_in) ** 0.5
            bnd = 1.0 / (fan_in ** 0.5)
            bias = jax.random.uniform(kb, (hidden,), jnp.float32, -bnd, bnd)
            blocks.append((wgt, bias, jnp.ones((hidden,), jnp.float32),
                           jnp.zeros((hidden,), jnp.float32)))
            cin = hidden
            h, w = conv_out_hw(h, w, pool)
        return key, blocks, h, w

    key, rln_blocks, hr, wr = make_encoder(key, cin0, rln_chs, rln_pools, H, W)
    feature_size = rln_chs * hr * wr
    key, nm_blocks, hn, wn = make_encoder(key, cin0, nm_chs, nm_pools, H, W)
    nm_feat = nm_chs * hn * wn

    def make_linear(key, fin, fout):
        key, kw, kb = jax.random.split(key, 3)
        bnd = 1.0 / (fin ** 0.5)
        return (key, jax.random.uniform(kw, (fout, fin), jnp.float32, -bnd, bnd),
                jax.random.uniform(kb, (fout,), jnp.float32, -bnd, bnd))

    key, nm_fc_w, nm_fc_b = make_linear(key, nm_feat, feature_size)
    # TODO(synk): the reference forward calls self.pln, which is undefined in the
    # given module (self.fc has in_features=feature_size).  We implement pln as
    # Linear(2*feature_size, num_classes), matching the intended concat design.
    key, pln_w, pln_b = make_linear(key, 2 * feature_size, num_classes)

    params = dict(rln=rln_blocks, nm=nm_blocks, nm_fc_w=nm_fc_w, nm_fc_b=nm_fc_b,
                  pln_w=pln_w, pln_b=pln_b)
    arch = dict(input_shape=input_shape, rln_chs=rln_chs, nm_chs=nm_chs,
                num_classes=num_classes, rln_pools=rln_pools, nm_pools=nm_pools,
                feature_size=feature_size, nm_feat=nm_feat,
                rln_out=(rln_chs, hr, wr), nm_out=(nm_chs, hn, wn))
    return params, arch


def prepare_params(params, arch):
    """One-time layout prep: everything in the exact shapes the fused kernel uses."""
    cin, H, W = arch["input_shape"]
    rc, nc = arch["rln_chs"], arch["nm_chs"]
    tc = rc + nc
    rln, nm = params["rln"], params["nm"]
    # TODO(synk): the fused kernel is specialized to the module defaults
    # (3 conv blocks, RLN pool_at_end=False, NM pool_at_end=True -> 1x1).
    assert len(rln) == 3 and len(nm) == 3
    assert arch["rln_pools"] == [True, True, False]
    assert arch["nm_pools"] == [True, True, True]

    c0h, c0w = H - 2, W - 2
    assert c0h % 2 == 0 and c0w % 2 == 0, "layer-0 conv output must be even"
    h1, w1 = c0h // 2, c0w // 2
    c1h, c1w = h1 - 2, w1 - 2
    assert c1h % 2 == 0 and c1w % 2 == 0, "layer-1 conv output must be even"
    h2, w2 = c1h // 2, c1w // 2
    c2h, c2w = h2 - 2, w2 - 2
    assert c2h // 2 == 1 and c2w // 2 == 1, "NM final pool must produce 1x1"

    def flat_w(w):  # OIHW -> (O, 9*I), column = (ky*3+kx)*I + ci
        o, i = w.shape[0], w.shape[1]
        return jnp.transpose(w, (0, 2, 3, 1)).reshape(o, 9 * i)

    def pack_norm(blk_r, blk_n):  # (tc, 3) columns = [bias | gamma | beta]
        cols = [jnp.concatenate([blk_r[k], blk_n[k]]).reshape(tc, 1) for k in (1, 2, 3)]
        return jnp.concatenate(cols, axis=1)

    def stacked_blockdiag(w_r, w_n):  # (9, tc, tc), per-tap blockdiag(RLN, NM)
        mats = np.zeros((9, tc, tc), np.float32)
        wr, wn = np.asarray(w_r), np.asarray(w_n)
        for ky in range(3):
            for kx in range(3):
                t = ky * 3 + kx
                mats[t, :rc, :rc] = wr[:, :, ky, kx]
                mats[t, rc:, rc:] = wn[:, :, ky, kx]
        return jnp.asarray(mats)

    w0 = jnp.concatenate([flat_w(rln[0][0]), flat_w(nm[0][0])], axis=0)   # (tc, 9*cin)
    n0 = pack_norm(rln[0], nm[0])
    w1s = stacked_blockdiag(rln[1][0], nm[1][0])
    s1 = _sel_matrices(h1, w1, pooled=True)                               # (9, h1*w1, 4*h2*w2)
    n1 = pack_norm(rln[1], nm[1])
    w2s = stacked_blockdiag(rln[2][0], nm[2][0])
    s2 = _sel_matrices(h2, w2, pooled=False)                              # (9, h2*w2, c2h*c2w)
    n2 = pack_norm(rln[2], nm[2])

    q2 = c2h * c2w
    feat = rc * q2
    repl, maskm = _flatten_helpers(rc, q2)
    wnm = params["nm_fc_w"]                                               # (feat, nm_feat)
    bnm = params["nm_fc_b"].reshape(feat, 1)
    wp1 = params["pln_w"][:, :feat]                                       # (ncls, feat)
    wp2 = params["pln_w"][:, feat:]
    bp = params["pln_b"].reshape(-1, 1)

    args = [w0, n0, w1s, s1, n1, w2s, s2, n2, repl, maskm, wnm, bnm, wp1, wp2, bp]
    cfg = dict(rc=rc, nc=nc, ncls=arch["num_classes"],
               q0_pool=h1 * w1, q1_pool=h2 * w2, q2=q2, last_w=c2w)
    return dict(args=args, cfg=cfg)


# ----------------------------------------------------------------------------
# Forward pass: one pallas_call for the whole network.
# ----------------------------------------------------------------------------

def nonml_forward(prepped, x_nchw):
    cfg = prepped["cfg"]
    args = prepped["args"]
    x = x_nchw.astype(jnp.float32)
    N = x.shape[0]
    patches0 = _im2col_l0_pooled(x)                   # (N, 9*Cin, 4*q0_pool)
    ncls = cfg["ncls"]

    def _const_map(nd):
        idx = (0,) * nd
        return lambda n, _idx=idx: _idx

    in_specs = [pl.BlockSpec((None,) + patches0.shape[1:], lambda n: (n, 0, 0))]
    in_specs += [pl.BlockSpec(a.shape, _const_map(a.ndim)) for a in args]

    out = pl.pallas_call(
        _build_kernel(cfg),
        out_shape=jax.ShapeDtypeStruct((N, ncls, 1), jnp.float32),
        grid=(N,),
        in_specs=in_specs,
        out_specs=pl.BlockSpec((None, ncls, 1), lambda n: (n, 0, 0)),
        compiler_params=pltpu.CompilerParams(dimension_semantics=("parallel",)),
    )(patches0, *args)
    return out.reshape(N, ncls)


# ----------------------------------------------------------------------------
# Pure-JAX reference (matches the PyTorch module semantics).
# ----------------------------------------------------------------------------

def _ref_conv_block(x, w, b, gamma, beta, pool):
    y = lax.conv_general_dilated(x, w, (1, 1), "VALID",
                                 dimension_numbers=("NCHW", "OIHW", "NCHW"))
    y = y + b[None, :, None, None]
    mean = jnp.mean(y, axis=(2, 3), keepdims=True)
    var = jnp.mean((y - mean) ** 2, axis=(2, 3), keepdims=True)
    y = (y - mean) / jnp.sqrt(var + 1e-5)
    y = y * gamma[None, :, None, None] + beta[None, :, None, None]
    y = jnp.maximum(y, 0.0)
    if pool:
        n, c, hh, ww = y.shape
        hp, wp = hh // 2, ww // 2
        y = y[:, :, :2 * hp, :2 * wp].reshape(n, c, hp, 2, wp, 2).max(axis=(3, 5))
    return y


def nonml_forward_ref(params, arch, x):
    x = x.astype(jnp.float32)
    n = x.shape[0]
    h = x
    for (w, b, g, bt), pool in zip(params["rln"], arch["rln_pools"]):
        h = _ref_conv_block(h, w, b, g, bt, pool)
    features = h.reshape(n, -1)
    m = x
    for (w, b, g, bt), pool in zip(params["nm"], arch["nm_pools"]):
        m = _ref_conv_block(m, w, b, g, bt, pool)
    nm_flat = m.reshape(n, -1)
    cond = jax.nn.sigmoid(nm_flat @ params["nm_fc_w"].T + params["nm_fc_b"])
    cat = jnp.concatenate([features, cond], axis=1)
    return cat @ params["pln_w"].T + params["pln_b"]


# ----------------------------------------------------------------------------
# Main.
# ----------------------------------------------------------------------------

if __name__ == "__main__":
    # Full f32 matmul precision everywhere so the Pallas path and the pure-JAX
    # reference agree to ~1e-5.
    jax.config.update("jax_default_matmul_precision", "highest")

    key = jax.random.PRNGKey(0)
    N, Cin, H, W = 2, 3, 26, 26                 # input_shape = (3, 26, 26), batch = 2
    rln_chs, nm_chs, num_classes = 8, 8, 10

    key, kparams, kx = jax.random.split(key, 3)
    params, arch = init_nonml_params(kparams, (Cin, H, W), rln_chs, nm_chs, num_classes)
    prepped = prepare_params(params, arch)
    x = jax.random.normal(kx, (N, Cin, H, W), jnp.float32)

    fwd = jax.jit(functools.partial(nonml_forward, prepped))
    out = jax.block_until_ready(fwd(x))

    ref_fn = jax.jit(functools.partial(nonml_forward_ref, params, arch))
    ref = jax.block_until_ready(ref_fn(x))

    assert out.shape == (N, num_classes), out.shape
    max_err = float(jnp.max(jnp.abs(out - ref)))
    assert max_err < 1e-2, f"mismatch vs reference: max abs err = {max_err}"

    print("KERNEL_OK")
</pallas_src>

<mosaic_0001>
module attributes {stable_mosaic.version = 11 : i64} {
  func.func @kernel(%arg0: i32, %arg1: memref<1x27x576xf32, #tpu.memory_space<vmem>>, %arg2: memref<16x27xf32, #tpu.memory_space<vmem>>, %arg3: memref<16x3xf32, #tpu.memory_space<vmem>>, %arg4: memref<9x16x16xf32, #tpu.memory_space<vmem>>, %arg5: memref<9x144x100xf32, #tpu.memory_space<vmem>>, %arg6: memref<16x3xf32, #tpu.memory_space<vmem>>, %arg7: memref<9x16x16xf32, #tpu.memory_space<vmem>>, %arg8: memref<9x25x9xf32, #tpu.memory_space<vmem>>, %arg9: memref<16x3xf32, #tpu.memory_space<vmem>>, %arg10: memref<72x8xf32, #tpu.memory_space<vmem>>, %arg11: memref<72x9xf32, #tpu.memory_space<vmem>>, %arg12: memref<72x8xf32, #tpu.memory_space<vmem>>, %arg13: memref<72x1xf32, #tpu.memory_space<vmem>>, %arg14: memref<10x72xf32, #tpu.memory_space<vmem>>, %arg15: memref<10x72xf32, #tpu.memory_space<vmem>>, %arg16: memref<10x1xf32, #tpu.memory_space<vmem>>, %arg17: memref<1x10x1xf32, #tpu.memory_space<vmem>>) attributes {dimension_semantics = [#tpu.dimension_semantics<parallel>], iteration_bounds = array<i64: 2>, scalar_prefetch = 0 : i64, scratch_operands = 0 : i64, tpu.core_type = #tpu.core_type<tc>, window_params = [{transform_indices = @transform_0, window_bounds = array<i64: 1, 27, 576>}, {pipeline_mode = #tpu.pipeline_mode<synchronous>, transform_indices = @transform_1, window_bounds = array<i64: 16, 27>}, {pipeline_mode = #tpu.pipeline_mode<synchronous>, transform_indices = @transform_2, window_bounds = array<i64: 16, 3>}, {pipeline_mode = #tpu.pipeline_mode<synchronous>, transform_indices = @transform_3, window_bounds = array<i64: 9, 16, 16>}, {pipeline_mode = #tpu.pipeline_mode<synchronous>, transform_indices = @transform_4, window_bounds = array<i64: 9, 144, 100>}, {pipeline_mode = #tpu.pipeline_mode<synchronous>, transform_indices = @transform_5, window_bounds = array<i64: 16, 3>}, {pipeline_mode = #tpu.pipeline_mode<synchronous>, transform_indices = @transform_6, window_bounds = array<i64: 9, 16, 16>}, {pipeline_mode = #tpu.pipeline_mode<synchronous>, transform_indices = @transform_7, window_bounds = array<i64: 9, 25, 9>}, {pipeline_mode = #tpu.pipeline_mode<synchronous>, transform_indices = @transform_8, window_bounds = array<i64: 16, 3>}, {pipeline_mode = #tpu.pipeline_mode<synchronous>, transform_indices = @transform_9, window_bounds = array<i64: 72, 8>}, {pipeline_mode = #tpu.pipeline_mode<synchronous>, transform_indices = @transform_10, window_bounds = array<i64: 72, 9>}, {pipeline_mode = #tpu.pipeline_mode<synchronous>, transform_indices = @transform_11, window_bounds = array<i64: 72, 8>}, {pipeline_mode = #tpu.pipeline_mode<synchronous>, transform_indices = @transform_12, window_bounds = array<i64: 72, 1>}, {pipeline_mode = #tpu.pipeline_mode<synchronous>, transform_indices = @transform_13, window_bounds = array<i64: 10, 72>}, {pipeline_mode = #tpu.pipeline_mode<synchronous>, transform_indices = @transform_14, window_bounds = array<i64: 10, 72>}, {pipeline_mode = #tpu.pipeline_mode<synchronous>, transform_indices = @transform_15, window_bounds = array<i64: 10, 1>}, {transform_indices = @transform_16, window_bounds = array<i64: 1, 10, 1>}]} {
    %c0 = arith.constant 0 : index
    %c0_0 = arith.constant 0 : index
    %0 = vector.load %arg2[%c0, %c0_0] : memref<16x27xf32, #tpu.memory_space<vmem>>, vector<16x27xf32>
    %c0_1 = arith.constant 0 : index
    %c0_2 = arith.constant 0 : index
    %c0_3 = arith.constant 0 : index
    %1 = vector.load %arg1[%c0_1, %c0_2, %c0_3] : memref<1x27x576xf32, #tpu.memory_space<vmem>>, vector<1x27x576xf32>
    %2 = vector.shape_cast %1 : vector<1x27x576xf32> to vector<27x576xf32>
    %cst = arith.constant dense<0.000000e+00> : vector<16x576xf32>
    %3 = tpu.matmul %0, %2, %cst {dimension_numbers = #tpu.dot_dimension_numbers<[1], [0], [0], [1], [0, 0, 1, 1], [], []>, precision = #tpu.contract_precision<fp32>} : vector<16x27xf32>, vector<27x576xf32>, vector<16x576xf32> -> vector<16x576xf32>
    %c0_4 = arith.constant 0 : index
    %c0_5 = arith.constant 0 : index
    %4 = vector.load %arg3[%c0_4, %c0_5] : memref<16x3xf32, #tpu.memory_space<vmem>>, vector<16x3xf32>
    %5 = vector.extract_strided_slice %4 {offsets = [0, 0], sizes = [16, 1], strides = [1, 1]} : vector<16x3xf32> to vector<16x1xf32>
    %6 = vector.extract_strided_slice %4 {offsets = [0, 1], sizes = [16, 1], strides = [1, 1]} : vector<16x3xf32> to vector<16x1xf32>
    %7 = vector.extract_strided_slice %4 {offsets = [0, 2], sizes = [16, 1], strides = [1, 1]} : vector<16x3xf32> to vector<16x1xf32>
    %8 = vector.broadcast %5 : vector<16x1xf32> to vector<16x576xf32>
    %9 = arith.addf %3, %8 : vector<16x576xf32>
    %cst_6 = arith.constant dense<0.000000e+00> : vector<16xf32>
    %10 = vector.multi_reduction <add>, %9, %cst_6 [1] : vector<16x576xf32> to vector<16xf32>
    %11 = vector.shape_cast %10 : vector<16xf32> to vector<16x1xf32>
    %cst_7 = arith.constant 5.760000e+02 : f32
    %12 = vector.broadcast %cst_7 : f32 to vector<16x1xf32>
    %13 = arith.divf %11, %12 : vector<16x1xf32>
    %14 = vector.broadcast %13 : vector<16x1xf32> to vector<16x576xf32>
    %15 = arith.subf %9, %14 : vector<16x576xf32>
    %16 = arith.mulf %15, %15 : vector<16x576xf32>
    %cst_8 = arith.constant dense<0.000000e+00> : vector<16xf32>
    %17 = vector.multi_reduction <add>, %16, %cst_8 [1] : vector<16x576xf32> to vector<16xf32>
    %18 = vector.shape_cast %17 : vector<16xf32> to vector<16x1xf32>
    %cst_9 = arith.constant 5.760000e+02 : f32
    %19 = vector.broadcast %cst_9 : f32 to vector<16x1xf32>
    %20 = arith.divf %18, %19 : vector<16x1xf32>
    %21 = vector.broadcast %13 : vector<16x1xf32> to vector<16x576xf32>
    %22 = arith.subf %9, %21 : vector<16x576xf32>
    %cst_10 = arith.constant 9.99999974E-6 : f32
    %23 = vector.broadcast %cst_10 : f32 to vector<16x1xf32>
    %24 = arith.addf %20, %23 : vector<16x1xf32>
    %25 = math.rsqrt %24 : vector<16x1xf32>
    %26 = arith.mulf %6, %25 : vector<16x1xf32>
    %27 = vector.broadcast %26 : vector<16x1xf32> to vector<16x576xf32>
    %28 = arith.mulf %22, %27 : vector<16x576xf32>
    %29 = vector.broadcast %7 : vector<16x1xf32> to vector<16x576xf32>
    %30 = arith.addf %28, %29 : vector<16x576xf32>
    %cst_11 = arith.constant 0.000000e+00 : f32
    %31 = vector.broadcast %cst_11 : f32 to vector<16x576xf32>
    %32 = arith.maximumf %30, %31 : vector<16x576xf32>
    %33 = vector.extract_strided_slice %32 {offsets = [0, 0], sizes = [16, 144], strides = [1, 1]} : vector<16x576xf32> to vector<16x144xf32>
    %34 = vector.extract_strided_slice %32 {offsets = [0, 144], sizes = [16, 144], strides = [1, 1]} : vector<16x576xf32> to vector<16x144xf32>
    %35 = arith.maximumf %33, %34 : vector<16x144xf32>
    %36 = vector.extract_strided_slice %32 {offsets = [0, 288], sizes = [16, 144], strides = [1, 1]} : vector<16x576xf32> to vector<16x144xf32>
    %37 = vector.extract_strided_slice %32 {offsets = [0, 432], sizes = [16, 144], strides = [1, 1]} : vector<16x576xf32> to vector<16x144xf32>
    %38 = arith.maximumf %36, %37 : vector<16x144xf32>
    %39 = arith.maximumf %35, %38 : vector<16x144xf32>
    %c0_12 = arith.constant 0 : index
    %c0_13 = arith.constant 0 : index
    %c0_14 = arith.constant 0 : index
    %40 = vector.load %arg4[%c0_12, %c0_13, %c0_14] : memref<9x16x16xf32, #tpu.memory_space<vmem>>, vector<1x16x16xf32>
    %41 = vector.shape_cast %40 : vector<1x16x16xf32> to vector<16x16xf32>
    %cst_15 = arith.constant dense<0.000000e+00> : vector<16x144xf32>
    %42 = tpu.matmul %41, %39, %cst_15 {dimension_numbers = #tpu.dot_dimension_numbers<[1], [0], [0], [1], [0, 0, 1, 1], [], []>, precision = #tpu.contract_precision<fp32>} : vector<16x16xf32>, vector<16x144xf32>, vector<16x144xf32> -> vector<16x144xf32>
    %c0_16 = arith.constant 0 : index
    %c0_17 = arith.constant 0 : index
    %c0_18 = arith.constant 0 : index
    %43 = vector.load %arg5[%c0_16, %c0_17, %c0_18] : memref<9x144x100xf32, #tpu.memory_space<vmem>>, vector<1x144x100xf32>
    %44 = vector.shape_cast %43 : vector<1x144x100xf32> to vector<144x100xf32>
    %cst_19 = arith.constant dense<0.000000e+00> : vector<16x100xf32>
    %45 = tpu.matmul %42, %44, %cst_19 {dimension_numbers = #tpu.dot_dimension_numbers<[1], [0], [0], [1], [0, 0, 1, 1], [], []>, precision = #tpu.contract_precision<fp32>} : vector<16x144xf32>, vector<144x100xf32>, vector<16x100xf32> -> vector<16x100xf32>
    %c1 = arith.constant 1 : index
    %c0_20 = arith.constant 0 : index
    %c0_21 = arith.constant 0 : index
    %46 = vector.load %arg4[%c1, %c0_20, %c0_21] : memref<9x16x16xf32, #tpu.memory_space<vmem>>, vector<1x16x16xf32>
    %47 = vector.shape_cast %46 : vector<1x16x16xf32> to vector<16x16xf32>
    %cst_22 = arith.constant dense<0.000000e+00> : vector<16x144xf32>
    %48 = tpu.matmul %47, %39, %cst_22 {dimension_numbers = #tpu.dot_dimension_numbers<[1], [0], [0], [1], [0, 0, 1, 1], [], []>, precision = #tpu.contract_precision<fp32>} : vector<16x16xf32>, vector<16x144xf32>, vector<16x144xf32> -> vector<16x144xf32>
    %c1_23 = arith.constant 1 : index
    %c0_24 = arith.constant 0 : index
    %c0_25 = arith.constant 0 : index
    %49 = vector.load %arg5[%c1_23, %c0_24, %c0_25] : memref<9x144x100xf32, #tpu.memory_space<vmem>>, vector<1x144x100xf32>
    %50 = vector.shape_cast %49 : vector<1x144x100xf32> to vector<144x100xf32>
    %cst_26 = arith.constant dense<0.000000e+00> : vector<16x100xf32>
    %51 = tpu.matmul %48, %50, %cst_26 {dimension_numbers = #tpu.dot_dimension_numbers<[1], [0], [0], [1], [0, 0, 1, 1], [], []>, precision = #tpu.contract_precision<fp32>} : vector<16x144xf32>, vector<144x100xf32>, vector<16x100xf32> -> vector<16x100xf32>
    %52 = arith.addf %45, %51 : vector<16x100xf32>
    %c2 = arith.constant 2 : index
    %c0_27 = arith.constant 0 : index
    %c0_28 = arith.constant 0 : index
    %53 = vector.load %arg4[%c2, %c0_27, %c0_28] : memref<9x16x16xf32, #tpu.memory_space<vmem>>, vector<1x16x16xf32>
    %54 = vector.shape_cast %53 : vector<1x16x16xf32> to vector<16x16xf32>
    %cst_29 = arith.constant dense<0.000000e+00> : vector<16x144xf32>
    %55 = tpu.matmul %54, %39, %cst_29 {dimension_numbers = #tpu.dot_dimension_numbers<[1], [0], [0], [1], [0, 0, 1, 1], [], []>, precision = #tpu.contract_precision<fp32>} : vector<16x16xf32>, vector<16x144xf32>, vector<16x144xf32> -> vector<16x144xf32>
    %c2_30 = arith.constant 2 : index
    %c0_31 = arith.constant 0 : index
    %c0_32 = arith.constant 0 : index
    %56 = vector.load %arg5[%c2_30, %c0_31, %c0_32] : memref<9x144x100xf32, #tpu.memory_space<vmem>>, vector<1x144x100xf32>
    %57 = vector.shape_cast %56 : vector<1x144x100xf32> to vector<144x100xf32>
    %cst_33 = arith.constant dense<0.000000e+00> : vector<16x100xf32>
    %58 = tpu.matmul %55, %57, %cst_33 {dimension_numbers = #tpu.dot_dimension_numbers<[1], [0], [0], [1], [0, 0, 1, 1], [], []>, precision = #tpu.contract_precision<fp32>} : vector<16x144xf32>, vector<144x100xf32>, vector<16x100xf32> -> vector<16x100xf32>
    %59 = arith.addf %52, %58 : vector<16x100xf32>
    %c3 = arith.constant 3 : index
    %c0_34 = arith.constant 0 : index
    %c0_35 = arith.constant 0 : index
    %60 = vector.load %arg4[%c3, %c0_34, %c0_35] : memref<9x16x16xf32, #tpu.memory_space<vmem>>, vector<1x16x16xf32>
    %61 = vector.shape_cast %60 : vector<1x16x16xf32> to vector<16x16xf32>
    %cst_36 = arith.constant dense<0.000000e+00> : vector<16x144xf32>
    %62 = tpu.matmul %61, %39, %cst_36 {dimension_numbers = #tpu.dot_dimension_numbers<[1], [0], [0], [1], [0, 0, 1, 1], [], []>, precision = #tpu.contract_precision<fp32>} : vector<16x16xf32>, vector<16x144xf32>, vector<16x144xf32> -> vector<16x144xf32>
    %c3_37 = arith.constant 3 : index
    %c0_38 = arith.constant 0 : index
    %c0_39 = arith.constant 0 : index
    %63 = vector.load %arg5[%c3_37, %c0_38, %c0_39] : memref<9x144x100xf32, #tpu.memory_space<vmem>>, vector<1x144x100xf32>
    %64 = vector.shape_cast %63 : vector<1x144x100xf32> to vector<144x100xf32>
    %cst_40 = arith.constant dense<0.000000e+00> : vector<16x100xf32>
    %65 = tpu.matmul %62, %64, %cst_40 {dimension_numbers = #tpu.dot_dimension_numbers<[1], [0], [0], [1], [0, 0, 1, 1], [], []>, precision = #tpu.contract_precision<fp32>} : vector<16x144xf32>, vector<144x100xf32>, vector<16x100xf32> -> vector<16x100xf32>
    %66 = arith.addf %59, %65 : vector<16x100xf32>
    %c4 = arith.constant 4 : index
    %c0_41 = arith.constant 0 : index
    %c0_42 = arith.constant 0 : index
    %67 = vector.load %arg4[%c4, %c0_41, %c0_42] : memref<9x16x16xf32, #tpu.memory_space<vmem>>, vector<1x16x16xf32>
    %68 = vector.shape_cast %67 : vector<1x16x16xf32> to vector<16x16xf32>
    %cst_43 = arith.constant dense<0.000000e+00> : vector<16x144xf32>
    %69 = tpu.matmul %68, %39, %cst_43 {dimension_numbers = #tpu.dot_dimension_numbers<[1], [0], [0], [1], [0, 0, 1, 1], [], []>, precision = #tpu.contract_precision<fp32>} : vector<16x16xf32>, vector<16x144xf32>, vector<16x144xf32> -> vector<16x144xf32>
    %c4_44 = arith.constant 4 : index
    %c0_45 = arith.constant 0 : index
    %c0_46 = arith.constant 0 : index
    %70 = vector.load %arg5[%c4_44, %c0_45, %c0_46] : memref<9x144x100xf32, #tpu.memory_space<vmem>>, vector<1x144x100xf32>
    %71 = vector.shape_cast %70 : vector<1x144x100xf32> to vector<144x100xf32>
    %cst_47 = arith.constant dense<0.000000e+00> : vector<16x100xf32>
    %72 = tpu.matmul %69, %71, %cst_47 {dimension_numbers = #tpu.dot_dimension_numbers<[1], [0], [0], [1], [0, 0, 1, 1], [], []>, precision = #tpu.contract_precision<fp32>} : vector<16x144xf32>, vector<144x100xf32>, vector<16x100xf32> -> vector<16x100xf32>
    %73 = arith.addf %66, %72 : vector<16x100xf32>
    %c5 = arith.constant 5 : index
    %c0_48 = arith.constant 0 : index
    %c0_49 = arith.constant 0 : index
    %74 = vector.load %arg4[%c5, %c0_48, %c0_49] : memref<9x16x16xf32, #tpu.memory_space<vmem>>, vector<1x16x16xf32>
    %75 = vector.shape_cast %74 : vector<1x16x16xf32> to vector<16x16xf32>
    %cst_50 = arith.constant dense<0.000000e+00> : vector<16x144xf32>
    %76 = tpu.matmul %75, %39, %cst_50 {dimension_numbers = #tpu.dot_dimension_numbers<[1], [0], [0], [1], [0, 0, 1, 1], [], []>, precision = #tpu.contract_precision<fp32>} : vector<16x16xf32>, vector<16x144xf32>, vector<16x144xf32> -> vector<16x144xf32>
    %c5_51 = arith.constant 5 : index
    %c0_52 = arith.constant 0 : index
    %c0_53 = arith.constant 0 : index
    %77 = vector.load %arg5[%c5_51, %c0_52, %c0_53] : memref<9x144x100xf32, #tpu.memory_space<vmem>>, vector<1x144x100xf32>
    %78 = vector.shape_cast %77 : vector<1x144x100xf32> to vector<144x100xf32>
    %cst_54 = arith.constant dense<0.000000e+00> : vector<16x100xf32>
    %79 = tpu.matmul %76, %78, %cst_54 {dimension_numbers = #tpu.dot_dimension_numbers<[1], [0], [0], [1], [0, 0, 1, 1], [], []>, precision = #tpu.contract_precision<fp32>} : vector<16x144xf32>, vector<144x100xf32>, vector<16x100xf32> -> vector<16x100xf32>
    %80 = arith.addf %73, %79 : vector<16x100xf32>
    %c6 = arith.constant 6 : index
    %c0_55 = arith.constant 0 : index
    %c0_56 = arith.constant 0 : index
    %81 = vector.load %arg4[%c6, %c0_55, %c0_56] : memref<9x16x16xf32, #tpu.memory_space<vmem>>, vector<1x16x16xf32>
    %82 = vector.shape_cast %81 : vector<1x16x16xf32> to vector<16x16xf32>
    %cst_57 = arith.constant dense<0.000000e+00> : vector<16x144xf32>
    %83 = tpu.matmul %82, %39, %cst_57 {dimension_numbers = #tpu.dot_dimension_numbers<[1], [0], [0], [1], [0, 0, 1, 1], [], []>, precision = #tpu.contract_precision<fp32>} : vector<16x16xf32>, vector<16x144xf32>, vector<16x144xf32> -> vector<16x144xf32>
    %c6_58 = arith.constant 6 : index
    %c0_59 = arith.constant 0 : index
    %c0_60 = arith.constant 0 : index
    %84 = vector.load %arg5[%c6_58, %c0_59, %c0_60] : memref<9x144x100xf32, #tpu.memory_space<vmem>>, vector<1x144x100xf32>
    %85 = vector.shape_cast %84 : vector<1x144x100xf32> to vector<144x100xf32>
    %cst_61 = arith.constant dense<0.000000e+00> : vector<16x100xf32>
    %86 = tpu.matmul %83, %85, %cst_61 {dimension_numbers = #tpu.dot_dimension_numbers<[1], [0], [0], [1], [0, 0, 1, 1], [], []>, precision = #tpu.contract_precision<fp32>} : vector<16x144xf32>, vector<144x100xf32>, vector<16x100xf32> -> vector<16x100xf32>
    %87 = arith.addf %80, %86 : vector<16x100xf32>
    %c7 = arith.constant 7 : index
    %c0_62 = arith.constant 0 : index
    %c0_63 = arith.constant 0 : index
    %88 = vector.load %arg4[%c7, %c0_62, %c0_63] : memref<9x16x16xf32, #tpu.memory_space<vmem>>, vector<1x16x16xf32>
    %89 = vector.shape_cast %88 : vector<1x16x16xf32> to vector<16x16xf32>
    %cst_64 = arith.constant dense<0.000000e+00> : vector<16x144xf32>
    %90 = tpu.matmul %89, %39, %cst_64 {dimension_numbers = #tpu.dot_dimension_numbers<[1], [0], [0], [1], [0, 0, 1, 1], [], []>, precision = #tpu.contract_precision<fp32>} : vector<16x16xf32>, vector<16x144xf32>, vector<16x144xf32> -> vector<16x144xf32>
    %c7_65 = arith.constant 7 : index
    %c0_66 = arith.constant 0 : index
    %c0_67 = arith.constant 0 : index
    %91 = vector.load %arg5[%c7_65, %c0_66, %c0_67] : memref<9x144x100xf32, #tpu.memory_space<vmem>>, vector<1x144x100xf32>
    %92 = vector.shape_cast %91 : vector<1x144x100xf32> to vector<144x100xf32>
    %cst_68 = arith.constant dense<0.000000e+00> : vector<16x100xf32>
    %93 = tpu.matmul %90, %92, %cst_68 {dimension_numbers = #tpu.dot_dimension_numbers<[1], [0], [0], [1], [0, 0, 1, 1], [], []>, precision = #tpu.contract_precision<fp32>} : vector<16x144xf32>, vector<144x100xf32>, vector<16x100xf32> -> vector<16x100xf32>
    %94 = arith.addf %87, %93 : vector<16x100xf32>
    %c8 = arith.constant 8 : index
    %c0_69 = arith.constant 0 : index
    %c0_70 = arith.constant 0 : index
    %95 = vector.load %arg4[%c8, %c0_69, %c0_70] : memref<9x16x16xf32, #tpu.memory_space<vmem>>, vector<1x16x16xf32>
    %96 = vector.shape_cast %95 : vector<1x16x16xf32> to vector<16x16xf32>
    %cst_71 = arith.constant dense<0.000000e+00> : vector<16x144xf32>
    %97 = tpu.matmul %96, %39, %cst_71 {dimension_numbers = #tpu.dot_dimension_numbers<[1], [0], [0], [1], [0, 0, 1, 1], [], []>, precision = #tpu.contract_precision<fp32>} : vector<16x16xf32>, vector<16x144xf32>, vector<16x144xf32> -> vector<16x144xf32>
    %c8_72 = arith.constant 8 : index
    %c0_73 = arith.constant 0 : index
    %c0_74 = arith.constant 0 : index
    %98 = vector.load %arg5[%c8_72, %c0_73, %c0_74] : memref<9x144x100xf32, #tpu.memory_space<vmem>>, vector<1x144x100xf32>
    %99 = vector.shape_cast %98 : vector<1x144x100xf32> to vector<144x100xf32>
    %cst_75 = arith.constant dense<0.000000e+00> : vector<16x100xf32>
    %100 = tpu.matmul %97, %99, %cst_75 {dimension_numbers = #tpu.dot_dimension_numbers<[1], [0], [0], [1], [0, 0, 1, 1], [], []>, precision = #tpu.contract_precision<fp32>} : vector<16x144xf32>, vector<144x100xf32>, vector<16x100xf32> -> vector<16x100xf32>
    %101 = arith.addf %94, %100 : vector<16x100xf32>
    %c0_76 = arith.constant 0 : index
    %c0_77 = arith.constant 0 : index
    %102 = vector.load %arg6[%c0_76, %c0_77] : memref<16x3xf32, #tpu.memory_space<vmem>>, vector<16x3xf32>
    %103 = vector.extract_strided_slice %102 {offsets = [0, 0], sizes = [16, 1], strides = [1, 1]} : vector<16x3xf32> to vector<16x1xf32>
    %104 = vector.extract_strided_slice %102 {offsets = [0, 1], sizes = [16, 1], strides = [1, 1]} : vector<16x3xf32> to vector<16x1xf32>
    %105 = vector.extract_strided_slice %102 {offsets = [0, 2], sizes = [16, 1], strides = [1, 1]} : vector<16x3xf32> to vector<16x1xf32>
    %106 = vector.broadcast %103 : vector<16x1xf32> to vector<16x100xf32>
    %107 = arith.addf %101, %106 : vector<16x100xf32>
    %cst_78 = arith.constant dense<0.000000e+00> : vector<16xf32>
    %108 = vector.multi_reduction <add>, %107, %cst_78 [1] : vector<16x100xf32> to vector<16xf32>
    %109 = vector.shape_cast %108 : vector<16xf32> to vector<16x1xf32>
    %cst_79 = arith.constant 1.000000e+02 : f32
    %110 = vector.broadcast %cst_79 : f32 to vector<16x1xf32>
    %111 = arith.divf %109, %110 : vector<16x1xf32>
    %112 = vector.broadcast %111 : vector<16x1xf32> to vector<16x100xf32>
    %113 = arith.subf %107, %112 : vector<16x100xf32>
    %114 = arith.mulf %113, %113 : vector<16x100xf32>
    %cst_80 = arith.constant dense<0.000000e+00> : vector<16xf32>
    %115 = vector.multi_reduction <add>, %114, %cst_80 [1] : vector<16x100xf32> to vector<16xf32>
    %116 = vector.shape_cast %115 : vector<16xf32> to vector<16x1xf32>
    %cst_81 = arith.constant 1.000000e+02 : f32
    %117 = vector.broadcast %cst_81 : f32 to vector<16x1xf32>
    %118 = arith.divf %116, %117 : vector<16x1xf32>
    %119 = vector.broadcast %111 : vector<16x1xf32> to vector<16x100xf32>
    %120 = arith.subf %107, %119 : vector<16x100xf32>
    %cst_82 = arith.constant 9.99999974E-6 : f32
    %121 = vector.broadcast %cst_82 : f32 to vector<16x1xf32>
    %122 = arith.addf %118, %121 : vector<16x1xf32>
    %123 = math.rsqrt %122 : vector<16x1xf32>
    %124 = arith.mulf %104, %123 : vector<16x1xf32>
    %125 = vector.broadcast %124 : vector<16x1xf32> to vector<16x100xf32>
    %126 = arith.mulf %120, %125 : vector<16x100xf32>
    %127 = vector.broadcast %105 : vector<16x1xf32> to vector<16x100xf32>
    %128 = arith.addf %126, %127 : vector<16x100xf32>
    %cst_83 = arith.constant 0.000000e+00 : f32
    %129 = vector.broadcast %cst_83 : f32 to vector<16x100xf32>
    %130 = arith.maximumf %128, %129 : vector<16x100xf32>
    %131 = vector.extract_strided_slice %130 {offsets = [0, 0], sizes = [16, 25], strides = [1, 1]} : vector<16x100xf32> to vector<16x25xf32>
    %132 = vector.extract_strided_slice %130 {offsets = [0, 25], sizes = [16, 25], strides = [1, 1]} : vector<16x100xf32> to vector<16x25xf32>
    %133 = arith.maximumf %131, %132 : vector<16x25xf32>
    %134 = vector.extract_strided_slice %130 {offsets = [0, 50], sizes = [16, 25], strides = [1, 1]} : vector<16x100xf32> to vector<16x25xf32>
    %135 = vector.extract_strided_slice %130 {offsets = [0, 75], sizes = [16, 25], strides = [1, 1]} : vector<16x100xf32> to vector<16x25xf32>
    %136 = arith.maximumf %134, %135 : vector<16x25xf32>
    %137 = arith.maximumf %133, %136 : vector<16x25xf32>
    %c0_84 = arith.constant 0 : index
    %c0_85 = arith.constant 0 : index
    %c0_86 = arith.constant 0 : index
    %138 = vector.load %arg7[%c0_84, %c0_85, %c0_86] : memref<9x16x16xf32, #tpu.memory_space<vmem>>, vector<1x16x16xf32>
    %139 = vector.shape_cast %138 : vector<1x16x16xf32> to vector<16x16xf32>
    %cst_87 = arith.constant dense<0.000000e+00> : vector<16x25xf32>
    %140 = tpu.matmul %139, %137, %cst_87 {dimension_numbers = #tpu.dot_dimension_numbers<[1], [0], [0], [1], [0, 0, 1, 1], [], []>, precision = #tpu.contract_precision<fp32>} : vector<16x16xf32>, vector<16x25xf32>, vector<16x25xf32> -> vector<16x25xf32>
    %c0_88 = arith.constant 0 : index
    %c0_89 = arith.constant 0 : index
    %c0_90 = arith.constant 0 : index
    %141 = vector.load %arg8[%c0_88, %c0_89, %c0_90] : memref<9x25x9xf32, #tpu.memory_space<vmem>>, vector<1x25x9xf32>
    %142 = vector.shape_cast %141 : vector<1x25x9xf32> to vector<25x9xf32>
    %cst_91 = arith.constant dense<0.000000e+00> : vector<16x9xf32>
    %143 = tpu.matmul %140, %142, %cst_91 {dimension_numbers = #tpu.dot_dimension_numbers<[1], [0], [0], [1], [0, 0, 1, 1], [], []>, precision = #tpu.contract_precision<fp32>} : vector<16x25xf32>, vector<25x9xf32>, vector<16x9xf32> -> vector<16x9xf32>
    %c1_92 = arith.constant 1 : index
    %c0_93 = arith.constant 0 : index
    %c0_94 = arith.constant 0 : index
    %144 = vector.load %arg7[%c1_92, %c0_93, %c0_94] : memref<9x16x16xf32, #tpu.memory_space<vmem>>, vector<1x16x16xf32>
    %145 = vector.shape_cast %144 : vector<1x16x16xf32> to vector<16x16xf32>
    %cst_95 = arith.constant dense<0.000000e+00> : vector<16x25xf32>
    %146 = tpu.matmul %145, %137, %cst_95 {dimension_numbers = #tpu.dot_dimension_numbers<[1], [0], [0], [1], [0, 0, 1, 1], [], []>, precision = #tpu.contract_precision<fp32>} : vector<16x16xf32>, vector<16x25xf32>, vector<16x25xf32> -> vector<16x25xf32>
    %c1_96 = arith.constant 1 : index
    %c0_97 = arith.constant 0 : index
    %c0_98 = arith.constant 0 : index
    %147 = vector.load %arg8[%c1_96, %c0_97, %c0_98] : memref<9x25x9xf32, #tpu.memory_space<vmem>>, vector<1x25x9xf32>
    %148 = vector.shape_cast %147 : vector<1x25x9xf32> to vector<25x9xf32>
    %cst_99 = arith.constant dense<0.000000e+00> : vector<16x9xf32>
    %149 = tpu.matmul %146, %148, %cst_99 {dimension_numbers = #tpu.dot_dimension_numbers<[1], [0], [0], [1], [0, 0, 1, 1], [], []>, precision = #tpu.contract_precision<fp32>} : vector<16x25xf32>, vector<25x9xf32>, vector<16x9xf32> -> vector<16x9xf32>
    %150 = arith.addf %143, %149 : vector<16x9xf32>
    %c2_100 = arith.constant 2 : index
    %c0_101 = arith.constant 0 : index
    %c0_102 = arith.constant 0 : index
    %151 = vector.load %arg7[%c2_100, %c0_101, %c0_102] : memref<9x16x16xf32, #tpu.memory_space<vmem>>, vector<1x16x16xf32>
    %152 = vector.shape_cast %151 : vector<1x16x16xf32> to vector<16x16xf32>
    %cst_103 = arith.constant dense<0.000000e+00> : vector<16x25xf32>
    %153 = tpu.matmul %152, %137, %cst_103 {dimension_numbers = #tpu.dot_dimension_numbers<[1], [0], [0], [1], [0, 0, 1, 1], [], []>, precision = #tpu.contract_precision<fp32>} : vector<16x16xf32>, vector<16x25xf32>, vector<16x25xf32> -> vector<16x25xf32>
    %c2_104 = arith.constant 2 : index
    %c0_105 = arith.constant 0 : index
    %c0_106 = arith.constant 0 : index
    %154 = vector.load %arg8[%c2_104, %c0_105, %c0_106] : memref<9x25x9xf32, #tpu.memory_space<vmem>>, vector<1x25x9xf32>
    %155 = vector.shape_cast %154 : vector<1x25x9xf32> to vector<25x9xf32>
    %cst_107 = arith.constant dense<0.000000e+00> : vector<16x9xf32>
    %156 = tpu.matmul %153, %155, %cst_107 {dimension_numbers = #tpu.dot_dimension_numbers<[1], [0], [0], [1], [0, 0, 1, 1], [], []>, precision = #tpu.contract_precision<fp32>} : vector<16x25xf32>, vector<25x9xf32>, vector<16x9xf32> -> vector<16x9xf32>
    %157 = arith.addf %150, %156 : vector<16x9xf32>
    %c3_108 = arith.constant 3 : index
    %c0_109 = arith.constant 0 : index
    %c0_110 = arith.constant 0 : index
    %158 = vector.load %arg7[%c3_108, %c0_109, %c0_110] : memref<9x16x16xf32, #tpu.memory_space<vmem>>, vector<1x16x16xf32>
    %159 = vector.shape_cast %158 : vector<1x16x16xf32> to vector<16x16xf32>
    %cst_111 = arith.constant dense<0.000000e+00> : vector<16x25xf32>
    %160 = tpu.matmul %159, %137, %cst_111 {dimension_numbers = #tpu.dot_dimension_numbers<[1], [0], [0], [1], [0, 0, 1, 1], [], []>, precision = #tpu.contract_precision<fp32>} : vector<16x16xf32>, vector<16x25xf32>, vector<16x25xf32> -> vector<16x25xf32>
    %c3_112 = arith.constant 3 : index
    %c0_113 = arith.constant 0 : index
    %c0_114 = arith.constant 0 : index
    %161 = vector.load %arg8[%c3_112, %c0_113, %c0_114] : memref<9x25x9xf32, #tpu.memory_space<vmem>>, vector<1x25x9xf32>
    %162 = vector.shape_cast %161 : vector<1x25x9xf32> to vector<25x9xf32>
    %cst_115 = arith.constant dense<0.000000e+00> : vector<16x9xf32>
    %163 = tpu.matmul %160, %162, %cst_115 {dimension_numbers = #tpu.dot_dimension_numbers<[1], [0], [0], [1], [0, 0, 1, 1], [], []>, precision = #tpu.contract_precision<fp32>} : vector<16x25xf32>, vector<25x9xf32>, vector<16x9xf32> -> vector<16x9xf32>
    %164 = arith.addf %157, %163 : vector<16x9xf32>
    %c4_116 = arith.constant 4 : index
    %c0_117 = arith.constant 0 : index
    %c0_118 = arith.constant 0 : index
    %165 = vector.load %arg7[%c4_116, %c0_117, %c0_118] : memref<9x16x16xf32, #tpu.memory_space<vmem>>, vector<1x16x16xf32>
    %166 = vector.shape_cast %165 : vector<1x16x16xf32> to vector<16x16xf32>
    %cst_119 = arith.constant dense<0.000000e+00> : vector<16x25xf32>
    %167 = tpu.matmul %166, %137, %cst_119 {dimension_numbers = #tpu.dot_dimension_numbers<[1], [0], [0], [1], [0, 0, 1, 1], [], []>, precision = #tpu.contract_precision<fp32>} : vector<16x16xf32>, vector<16x25xf32>, vector<16x25xf32> -> vector<16x25xf32>
    %c4_120 = arith.constant 4 : index
    %c0_121 = arith.constant 0 : index
    %c0_122 = arith.constant 0 : index
    %168 = vector.load %arg8[%c4_120, %c0_121, %c0_122] : memref<9x25x9xf32, #tpu.memory_space<vmem>>, vector<1x25x9xf32>
    %169 = vector.shape_cast %168 : vector<1x25x9xf32> to vector<25x9xf32>
    %cst_123 = arith.constant dense<0.000000e+00> : vector<16x9xf32>
    %170 = tpu.matmul %167, %169, %cst_123 {dimension_numbers = #tpu.dot_dimension_numbers<[1], [0], [0], [1], [0, 0, 1, 1], [], []>, precision = #tpu.contract_precision<fp32>} : vector<16x25xf32>, vector<25x9xf32>, vector<16x9xf32> -> vector<16x9xf32>
    %171 = arith.addf %164, %170 : vector<16x9xf32>
    %c5_124 = arith.constant 5 : index
    %c0_125 = arith.constant 0 : index
    %c0_126 = arith.constant 0 : index
    %172 = vector.load %arg7[%c5_124, %c0_125, %c0_126] : memref<9x16x16xf32, #tpu.memory_space<vmem>>, vector<1x16x16xf32>
    %173 = vector.shape_cast %172 : vector<1x16x16xf32> to vector<16x16xf32>
    %cst_127 = arith.constant dense<0.000000e+00> : vector<16x25xf32>
    %174 = tpu.matmul %173, %137, %cst_127 {dimension_numbers = #tpu.dot_dimension_numbers<[1], [0], [0], [1], [0, 0, 1, 1], [], []>, precision = #tpu.contract_precision<fp32>} : vector<16x16xf32>, vector<16x25xf32>, vector<16x25xf32> -> vector<16x25xf32>
    %c5_128 = arith.constant 5 : index
    %c0_129 = arith.constant 0 : index
    %c0_130 = arith.constant 0 : index
    %175 = vector.load %arg8[%c5_128, %c0_129, %c0_130] : memref<9x25x9xf32, #tpu.memory_space<vmem>>, vector<1x25x9xf32>
    %176 = vector.shape_cast %175 : vector<1x25x9xf32> to vector<25x9xf32>
    %cst_131 = arith.constant dense<0.000000e+00> : vector<16x9xf32>
    %177 = tpu.matmul %174, %176, %cst_131 {dimension_numbers = #tpu.dot_dimension_numbers<[1], [0], [0], [1], [0, 0, 1, 1], [], []>, precision = #tpu.contract_precision<fp32>} : vector<16x25xf32>, vector<25x9xf32>, vector<16x9xf32> -> vector<16x9xf32>
    %178 = arith.addf %171, %177 : vector<16x9xf32>
    %c6_132 = arith.constant 6 : index
    %c0_133 = arith.constant 0 : index
    %c0_134 = arith.constant 0 : index
    %179 = vector.load %arg7[%c6_132, %c0_133, %c0_134] : memref<9x16x16xf32, #tpu.memory_space<vmem>>, vector<1x16x16xf32>
    %180 = vector.shape_cast %179 : vector<1x16x16xf32> to vector<16x16xf32>
    %cst_135 = arith.constant dense<0.000000e+00> : vector<16x25xf32>
    %181 = tpu.matmul %180, %137, %cst_135 {dimension_numbers = #tpu.dot_dimension_numbers<[1], [0], [0], [1], [0, 0, 1, 1], [], []>, precision = #tpu.contract_precision<fp32>} : vector<16x16xf32>, vector<16x25xf32>, vector<16x25xf32> -> vector<16x25xf32>
    %c6_136 = arith.constant 6 : index
    %c0_137 = arith.constant 0 : index
    %c0_138 = arith.constant 0 : index
    %182 = vector.load %arg8[%c6_136, %c0_137, %c0_138] : memref<9x25x9xf32, #tpu.memory_space<vmem>>, vector<1x25x9xf32>
    %183 = vector.shape_cast %182 : vector<1x25x9xf32> to vector<25x9xf32>
    %cst_139 = arith.constant dense<0.000000e+00> : vector<16x9xf32>
    %184 = tpu.matmul %181, %183, %cst_139 {dimension_numbers = #tpu.dot_dimension_numbers<[1], [0], [0], [1], [0, 0, 1, 1], [], []>, precision = #tpu.contract_precision<fp32>} : vector<16x25xf32>, vector<25x9xf32>, vector<16x9xf32> -> vector<16x9xf32>
    %185 = arith.addf %178, %184 : vector<16x9xf32>
    %c7_140 = arith.constant 7 : index
    %c0_141 = arith.constant 0 : index
    %c0_142 = arith.constant 0 : index
    %186 = vector.load %arg7[%c7_140, %c0_141, %c0_142] : memref<9x16x16xf32, #tpu.memory_space<vmem>>, vector<1x16x16xf32>
    %187 = vector.shape_cast %186 : vector<1x16x16xf32> to vector<16x16xf32>
    %cst_143 = arith.constant dense<0.000000e+00> : vector<16x25xf32>
    %188 = tpu.matmul %187, %137, %cst_143 {dimension_numbers = #tpu.dot_dimension_numbers<[1], [0], [0], [1], [0, 0, 1, 1], [], []>, precision = #tpu.contract_precision<fp32>} : vector<16x16xf32>, vector<16x25xf32>, vector<16x25xf32> -> vector<16x25xf32>
    %c7_144 = arith.constant 7 : index
    %c0_145 = arith.constant 0 : index
    %c0_146 = arith.constant 0 : index
    %189 = vector.load %arg8[%c7_144, %c0_145, %c0_146] : memref<9x25x9xf32, #tpu.memory_space<vmem>>, vector<1x25x9xf32>
    %190 = vector.shape_cast %189 : vector<1x25x9xf32> to vector<25x9xf32>
    %cst_147 = arith.constant dense<0.000000e+00> : vector<16x9xf32>
    %191 = tpu.matmul %188, %190, %cst_147 {dimension_numbers = #tpu.dot_dimension_numbers<[1], [0], [0], [1], [0, 0, 1, 1], [], []>, precision = #tpu.contract_precision<fp32>} : vector<16x25xf32>, vector<25x9xf32>, vector<16x9xf32> -> vector<16x9xf32>
    %192 = arith.addf %185, %191 : vector<16x9xf32>
    %c8_148 = arith.constant 8 : index
    %c0_149 = arith.constant 0 : index
    %c0_150 = arith.constant 0 : index
    %193 = vector.load %arg7[%c8_148, %c0_149, %c0_150] : memref<9x16x16xf32, #tpu.memory_space<vmem>>, vector<1x16x16xf32>
    %194 = vector.shape_cast %193 : vector<1x16x16xf32> to vector<16x16xf32>
    %cst_151 = arith.constant dense<0.000000e+00> : vector<16x25xf32>
    %195 = tpu.matmul %194, %137, %cst_151 {dimension_numbers = #tpu.dot_dimension_numbers<[1], [0], [0], [1], [0, 0, 1, 1], [], []>, precision = #tpu.contract_precision<fp32>} : vector<16x16xf32>, vector<16x25xf32>, vector<16x25xf32> -> vector<16x25xf32>
    %c8_152 = arith.constant 8 : index
    %c0_153 = arith.constant 0 : index
    %c0_154 = arith.constant 0 : index
    %196 = vector.load %arg8[%c8_152, %c0_153, %c0_154] : memref<9x25x9xf32, #tpu.memory_space<vmem>>, vector<1x25x9xf32>
    %197 = vector.shape_cast %196 : vector<1x25x9xf32> to vector<25x9xf32>
    %cst_155 = arith.constant dense<0.000000e+00> : vector<16x9xf32>
    %198 = tpu.matmul %195, %197, %cst_155 {dimension_numbers = #tpu.dot_dimension_numbers<[1], [0], [0], [1], [0, 0, 1, 1], [], []>, precision = #tpu.contract_precision<fp32>} : vector<16x25xf32>, vector<25x9xf32>, vector<16x9xf32> -> vector<16x9xf32>
    %199 = arith.addf %192, %198 : vector<16x9xf32>
    %c0_156 = arith.constant 0 : index
    %c0_157 = arith.constant 0 : index
    %200 = vector.load %arg9[%c0_156, %c0_157] : memref<16x3xf32, #tpu.memory_space<vmem>>, vector<16x3xf32>
    %201 = vector.extract_strided_slice %200 {offsets = [0, 0], sizes = [16, 1], strides = [1, 1]} : vector<16x3xf32> to vector<16x1xf32>
    %202 = vector.extract_strided_slice %200 {offsets = [0, 1], sizes = [16, 1], strides = [1, 1]} : vector<16x3xf32> to vector<16x1xf32>
    %203 = vector.extract_strided_slice %200 {offsets = [0, 2], sizes = [16, 1], strides = [1, 1]} : vector<16x3xf32> to vector<16x1xf32>
    %204 = vector.broadcast %201 : vector<16x1xf32> to vector<16x9xf32>
    %205 = arith.addf %199, %204 : vector<16x9xf32>
    %cst_158 = arith.constant dense<0.000000e+00> : vector<16xf32>
    %206 = vector.multi_reduction <add>, %205, %cst_158 [1] : vector<16x9xf32> to vector<16xf32>
    %207 = vector.shape_cast %206 : vector<16xf32> to vector<16x1xf32>
    %cst_159 = arith.constant 9.000000e+00 : f32
    %208 = vector.broadcast %cst_159 : f32 to vector<16x1xf32>
    %209 = arith.divf %207, %208 : vector<16x1xf32>
    %210 = vector.broadcast %209 : vector<16x1xf32> to vector<16x9xf32>
    %211 = arith.subf %205, %210 : vector<16x9xf32>
    %212 = arith.mulf %211, %211 : vector<16x9xf32>
    %cst_160 = arith.constant dense<0.000000e+00> : vector<16xf32>
    %213 = vector.multi_reduction <add>, %212, %cst_160 [1] : vector<16x9xf32> to vector<16xf32>
    %214 = vector.shape_cast %213 : vector<16xf32> to vector<16x1xf32>
    %cst_161 = arith.constant 9.000000e+00 : f32
    %215 = vector.broadcast %cst_161 : f32 to vector<16x1xf32>
    %216 = arith.divf %214, %215 : vector<16x1xf32>
    %217 = vector.broadcast %209 : vector<16x1xf32> to vector<16x9xf32>
    %218 = arith.subf %205, %217 : vector<16x9xf32>
    %cst_162 = arith.constant 9.99999974E-6 : f32
    %219 = vector.broadcast %cst_162 : f32 to vector<16x1xf32>
    %220 = arith.addf %216, %219 : vector<16x1xf32>
    %221 = math.rsqrt %220 : vector<16x1xf32>
    %222 = arith.mulf %202, %221 : vector<16x1xf32>
    %223 = vector.broadcast %222 : vector<16x1xf32> to vector<16x9xf32>
    %224 = arith.mulf %218, %223 : vector<16x9xf32>
    %225 = vector.broadcast %203 : vector<16x1xf32> to vector<16x9xf32>
    %226 = arith.addf %224, %225 : vector<16x9xf32>
    %cst_163 = arith.constant 0.000000e+00 : f32
    %227 = vector.broadcast %cst_163 : f32 to vector<16x9xf32>
    %228 = arith.maximumf %226, %227 : vector<16x9xf32>
    %229 = vector.extract_strided_slice %228 {offsets = [0, 0], sizes = [8, 9], strides = [1, 1]} : vector<16x9xf32> to vector<8x9xf32>
    %230 = vector.extract_strided_slice %228 {offsets = [8, 0], sizes = [8, 9], strides = [1, 1]} : vector<16x9xf32> to vector<8x9xf32>
    %231 = vector.extract_strided_slice %230 {offsets = [0, 0], sizes = [8, 1], strides = [1, 1]} : vector<8x9xf32> to vector<8x1xf32>
    %232 = vector.extract_strided_slice %230 {offsets = [0, 1], sizes = [8, 1], strides = [1, 1]} : vector<8x9xf32> to vector<8x1xf32>
    %233 = arith.maximumf %231, %232 : vector<8x1xf32>
    %234 = vector.extract_strided_slice %230 {offsets = [0, 3], sizes = [8, 1], strides = [1, 1]} : vector<8x9xf32> to vector<8x1xf32>
    %235 = vector.extract_strided_slice %230 {offsets = [0, 4], sizes = [8, 1], strides = [1, 1]} : vector<8x9xf32> to vector<8x1xf32>
    %236 = arith.maximumf %234, %235 : vector<8x1xf32>
    %237 = arith.maximumf %233, %236 : vector<8x1xf32>
    %c0_164 = arith.constant 0 : index
    %c0_165 = arith.constant 0 : index
    %238 = vector.load %arg10[%c0_164, %c0_165] : memref<72x8xf32, #tpu.memory_space<vmem>>, vector<72x8xf32>
    %cst_166 = arith.constant dense<0.000000e+00> : vector<72x9xf32>
    %239 = tpu.matmul %238, %229, %cst_166 {dimension_numbers = #tpu.dot_dimension_numbers<[1], [0], [0], [1], [0, 0, 1, 1], [], []>, precision = #tpu.contract_precision<fp32>} : vector<72x8xf32>, vector<8x9xf32>, vector<72x9xf32> -> vector<72x9xf32>
    %c0_167 = arith.constant 0 : index
    %c0_168 = arith.constant 0 : index
    %240 = vector.load %arg11[%c0_167, %c0_168] : memref<72x9xf32, #tpu.memory_space<vmem>>, vector<72x9xf32>
    %241 = arith.mulf %239, %240 : vector<72x9xf32>
    %cst_169 = arith.constant dense<0.000000e+00> : vector<72xf32>
    %242 = vector.multi_reduction <add>, %241, %cst_169 [1] : vector<72x9xf32> to vector<72xf32>
    %243 = vector.shape_cast %242 : vector<72xf32> to vector<72x1xf32>
    %c0_170 = arith.constant 0 : index
    %c0_171 = arith.constant 0 : index
    %244 = vector.load %arg12[%c0_170, %c0_171] : memref<72x8xf32, #tpu.memory_space<vmem>>, vector<72x8xf32>
    %cst_172 = arith.constant dense<0.000000e+00> : vector<72x1xf32>
    %245 = tpu.matmul %244, %237, %cst_172 {dimension_numbers = #tpu.dot_dimension_numbers<[1], [0], [0], [1], [0, 0, 1, 1], [], []>, precision = #tpu.contract_precision<fp32>} : vector<72x8xf32>, vector<8x1xf32>, vector<72x1xf32> -> vector<72x1xf32>
    %c0_173 = arith.constant 0 : index
    %c0_174 = arith.constant 0 : index
    %246 = vector.load %arg13[%c0_173, %c0_174] : memref<72x1xf32, #tpu.memory_space<vmem>>, vector<72x1xf32>
    %247 = arith.addf %245, %246 : vector<72x1xf32>
    %cst_175 = arith.constant 0.000000e+00 : f32
    %248 = vector.broadcast %cst_175 : f32 to vector<72x1xf32>
    %249 = arith.subf %248, %247 : vector<72x1xf32>
    %250 = math.exp %249 : vector<72x1xf32>
    %cst_176 = arith.constant 1.000000e+00 : f32
    %251 = vector.broadcast %cst_176 : f32 to vector<72x1xf32>
    %252 = arith.addf %251, %250 : vector<72x1xf32>
    %cst_177 = arith.constant 1.000000e+00 : f32
    %253 = vector.broadcast %cst_177 : f32 to vector<72x1xf32>
    %254 = arith.divf %253, %252 : vector<72x1xf32>
    %c0_178 = arith.constant 0 : index
    %c0_179 = arith.constant 0 : index
    %255 = vector.load %arg14[%c0_178, %c0_179] : memref<10x72xf32, #tpu.memory_space<vmem>>, vector<10x72xf32>
    %cst_180 = arith.constant dense<0.000000e+00> : vector<10x1xf32>
    %256 = tpu.matmul %255, %243, %cst_180 {dimension_numbers = #tpu.dot_dimension_numbers<[1], [0], [0], [1], [0, 0, 1, 1], [], []>, precision = #tpu.contract_precision<fp32>} : vector<10x72xf32>, vector<72x1xf32>, vector<10x1xf32> -> vector<10x1xf32>
    %c0_181 = arith.constant 0 : index
    %c0_182 = arith.constant 0 : index
    %257 = vector.load %arg15[%c0_181, %c0_182] : memref<10x72xf32, #tpu.memory_space<vmem>>, vector<10x72xf32>
    %cst_183 = arith.constant dense<0.000000e+00> : vector<10x1xf32>
    %258 = tpu.matmul %257, %254, %cst_183 {dimension_numbers = #tpu.dot_dimension_numbers<[1], [0], [0], [1], [0, 0, 1, 1], [], []>, precision = #tpu.contract_precision<fp32>} : vector<10x72xf32>, vector<72x1xf32>, vector<10x1xf32> -> vector<10x1xf32>
    %259 = arith.addf %256, %258 : vector<10x1xf32>
    %c0_184 = arith.constant 0 : index
    %c0_185 = arith.constant 0 : index
    %260 = vector.load %arg16[%c0_184, %c0_185] : memref<10x1xf32, #tpu.memory_space<vmem>>, vector<10x1xf32>
    %261 = arith.addf %259, %260 : vector<10x1xf32>
    %c0_186 = arith.constant 0 : index
    %c0_187 = arith.constant 0 : index
    %c0_188 = arith.constant 0 : index
    %262 = vector.load %arg17[%c0_186, %c0_187, %c0_188] : memref<1x10x1xf32, #tpu.memory_space<vmem>>, vector<1x10x1xf32>
    %263 = vector.shape_cast %262 : vector<1x10x1xf32> to vector<10x1xf32>
    %264 = vector.shape_cast %261 : vector<10x1xf32> to vector<1x10x1xf32>
    tpu.vector_store %arg17[%c0_186, %c0_187, %c0_188], %264 {strides = array<i32>} : memref<1x10x1xf32, #tpu.memory_space<vmem>>, vector<1x10x1xf32>,
    return
  }
  func.func @transform_0(%arg0: i32) -> (i32, i32, i32) {
    %c0_i32 = arith.constant 0 : i32
    %c0_i32_0 = arith.constant 0 : i32
    %c0_i32_1 = arith.constant 0 : i32
    return %arg0, %c0_i32, %c0_i32_0 : i32, i32, i32
  }
  func.func @transform_1(%arg0: i32) -> (i32, i32) {
    %c0_i32 = arith.constant 0 : i32
    %c0_i32_0 = arith.constant 0 : i32
    %c0_i32_1 = arith.constant 0 : i32
    return %c0_i32, %c0_i32_0 : i32, i32
  }
  func.func @transform_2(%arg0: i32) -> (i32, i32) {
    %c0_i32 = arith.constant 0 : i32
    %c0_i32_0 = arith.constant 0 : i32
    %c0_i32_1 = arith.constant 0 : i32
    return %c0_i32, %c0_i32_0 : i32, i32
  }
  func.func @transform_3(%arg0: i32) -> (i32, i32, i32) {
    %c0_i32 = arith.constant 0 : i32
    %c0_i32_0 = arith.constant 0 : i32
    %c0_i32_1 = arith.constant 0 : i32
    %c0_i32_2 = arith.constant 0 : i32
    return %c0_i32, %c0_i32_0, %c0_i32_1 : i32, i32, i32
  }
  func.func @transform_4(%arg0: i32) -> (i32, i32, i32) {
    %c0_i32 = arith.constant 0 : i32
    %c0_i32_0 = arith.constant 0 : i32
    %c0_i32_1 = arith.constant 0 : i32
    %c0_i32_2 = arith.constant 0 : i32
    return %c0_i32, %c0_i32_0, %c0_i32_1 : i32, i32, i32
  }
  func.func @transform_5(%arg0: i32) -> (i32, i32) {
    %c0_i32 = arith.constant 0 : i32
    %c0_i32_0 = arith.constant 0 : i32
    %c0_i32_1 = arith.constant 0 : i32
    return %c0_i32, %c0_i32_0 : i32, i32
  }
  func.func @transform_6(%arg0: i32) -> (i32, i32, i32) {
    %c0_i32 = arith.constant 0 : i32
    %c0_i32_0 = arith.constant 0 : i32
    %c0_i32_1 = arith.constant 0 : i32
    %c0_i32_2 = arith.constant 0 : i32
    return %c0_i32, %c0_i32_0, %c0_i32_1 : i32, i32, i32
  }
  func.func @transform_7(%arg0: i32) -> (i32, i32, i32) {
    %c0_i32 = arith.constant 0 : i32
    %c0_i32_0 = arith.constant 0 : i32
    %c0_i32_1 = arith.constant 0 : i32
    %c0_i32_2 = arith.constant 0 : i32
    return %c0_i32, %c0_i32_0, %c0_i32_1 : i32, i32, i32
  }
  func.func @transform_8(%arg0: i32) -> (i32, i32) {
    %c0_i32 = arith.constant 0 : i32
    %c0_i32_0 = arith.constant 0 : i32
    %c0_i32_1 = arith.constant 0 : i32
    return %c0_i32, %c0_i32_0 : i32, i32
  }
  func.func @transform_9(%arg0: i32) -> (i32, i32) {
    %c0_i32 = arith.constant 0 : i32
    %c0_i32_0 = arith.constant 0 : i32
    %c0_i32_1 = arith.constant 0 : i32
    return %c0_i32, %c0_i32_0 : i32, i32
  }
  func.func @transform_10(%arg0: i32) -> (i32, i32) {
    %c0_i32 = arith.constant 0 : i32
    %c0_i32_0 = arith.constant 0 : i32
    %c0_i32_1 = arith.constant 0 : i32
    return %c0_i32, %c0_i32_0 : i32, i32
  }
  func.func @transform_11(%arg0: i32) -> (i32, i32) {
    %c0_i32 = arith.constant 0 : i32
    %c0_i32_0 = arith.constant 0 : i32
    %c0_i32_1 = arith.constant 0 : i32
    return %c0_i32, %c0_i32_0 : i32, i32
  }
  func.func @transform_12(%arg0: i32) -> (i32, i32) {
    %c0_i32 = arith.constant 0 : i32
    %c0_i32_0 = arith.constant 0 : i32
    %c0_i32_1 = arith.constant 0 : i32
    return %c0_i32, %c0_i32_0 : i32, i32
  }
  func.func @transform_13(%arg0: i32) -> (i32, i32) {
    %c0_i32 = arith.constant 0 : i32
    %c0_i32_0 = arith.constant 0 : i32
    %c0_i32_1 = arith.constant 0 : i32
    return %c0_i32, %c0_i32_0 : i32, i32
  }
  func.func @transform_14(%arg0: i32) -> (i32, i32) {
    %c0_i32 = arith.constant 0 : i32
    %c0_i32_0 = arith.constant 0 : i32
    %c0_i32_1 = arith.constant 0 : i32
    return %c0_i32, %c0_i32_0 : i32, i32
  }
  func.func @transform_15(%arg0: i32) -> (i32, i32) {
    %c0_i32 = arith.constant 0 : i32
    %c0_i32_0 = arith.constant 0 : i32
    %c0_i32_1 = arith.constant 0 : i32
    return %c0_i32, %c0_i32_0 : i32, i32
  }
  func.func @transform_16(%arg0: i32) -> (i32, i32, i32) {
    %c0_i32 = arith.constant 0 : i32
    %c0_i32_0 = arith.constant 0 : i32
    %c0_i32_1 = arith.constant 0 : i32
    return %arg0, %c0_i32, %c0_i32_0 : i32, i32, i32
  }
}

</mosaic_0001>

<bundles_post_ra>
// kernel: nonml_forward.1
= control target key start
LH: loop header
LB: loop body
LE: loop exit
PB: predicated region body
PF: predicated region fallthrough
CT: control target
= control target key end

     0   :  { %s33131_s21 = smov 0   ;;  %s39575_s0 = inlined_call_operand.vmem [shape: f32[2,27,576], index: 0, kind: input, shape index: {}]   ;;  %s39576_s1 = inlined_call_operand.vmem [shape: f32[16,27], index: 1, kind: input, shape index: {}]   ;;  %s39577_s2 = inlined_call_operand.vmem [shape: f32[16,3], index: 2, kind: input, shape index: {}]   ;;  %s39578_s3 = inlined_call_operand.vmem [shape: f32[9,16,16], index: 3, kind: input, shape index: {}]   ;;  %s39579_s4 = inlined_call_operand.vmem [shape: f32[9,144,100], index: 4, kind: input, shape index: {}]   ;;  %s39580_s5 = inlined_call_operand.vmem [shape: f32[16,3], index: 5, kind: input, shape index: {}]   ;;  %s39581_s6 = inlined_call_operand.vmem [shape: f32[9,16,16], index: 6, kind: input, shape index: {}]   ;;  %s39582_s7 = inlined_call_operand.vmem [shape: f32[9,25,9], index: 7, kind: input, shape index: {}]   ;;  %s39583_s8 = inlined_call_operand.vmem [shape: f32[16,3], index: 8, kind: input, shape index: {}]   ;;  %s39584_s9 = inlined_call_operand.vmem [shape: f32[72,8], index: 9, kind: input, shape index: {}]   ;;  %s39585_s10 = inlined_call_operand.vmem [shape: f32[72,9], index: 10, kind: input, shape index: {}]   ;;  %s39586_s11 = inlined_call_operand.vmem [shape: f32[72,8], index: 11, kind: input, shape index: {}]   ;;  %s39587_s12 = inlined_call_operand.vmem [shape: f32[72,1], index: 12, kind: input, shape index: {}]   ;;  %s39588_s13 = inlined_call_operand.vmem [shape: f32[10,72], index: 13, kind: input, shape index: {}]   ;;  %s39589_s14 = inlined_call_operand.vmem [shape: f32[10,72], index: 14, kind: input, shape index: {}]   ;;  %s39590_s15 = inlined_call_operand.vmem [shape: f32[10,1], index: 15, kind: input, shape index: {}]   ;;  %s39591_s16 = inlined_call_operand.vmem [shape: f32[2,10,1], index: 16, kind: output, shape index: {}]  }
   0x1   :  { %39764 = sst [smem:[#allocation9_spill]] %s39575_s0 }
   0x2 LB: > { %s26950_s22 = sadd.s32 4294967295, %s33032_s21   ;;  %p26954_p0 = scmp.ge.s32.totalorder %s33032_s21, 1  ;;  %s33032_s21 = sphi %s33131_s21, %s26_s21  }
   0x3   : > { %p462_p1 = scmp.lt.s32.totalorder %s33032_s21, 3 }
   0x5   : > { %p463_p2 = pnand %p26954_p0, %p462_p1 }
   0x7   : > { %466 = sbr.rel (%p463_p2) target bundleno = 7444 (0x1d14), region = 84 }
   0xe   : > { %p512_p3 = scmp.lt.s32.totalorder %s26950_s22, 1  ;;  %v522_v0 = vld [vmem:[%s39576_s1] sm:$0xff]  ;;  %vm556_vm0 = vcmask 220160   ;;  %v523_v1 = vld [vmem:[%s39576_s1 + $0x8] sm:$0xff]  ;;  %v39602_v2 = vmov 0.0   ;;  %v39592_v8 = vmov 0  }
   0xf   : > { %651 = vmatprep.mubr.f32.mxu0 %v39602_v2  ;;  %v558_v3 = vsel %vm556_vm0, %v522_v0, 0  ;;  %1243 = vmatprep.mubr.f32.mxu1 %v39602_v2  ;;  %v561_v4 = vsel %vm556_vm0, %v523_v1, 0  ;;  %v33150_v5 = vld [vmem:[%s39577_s2] sm:$0xff]  ;;  %v33170_v11 = vld [vmem:[%s39577_s2 + $0x8] sm:$0xff]  ;;  %s39765_s19 = sld [smem:[#allocation9_spill]]  ;;  %vm563_vm1 = vcmask 1042432  }
  0x10   : > { %s39982_s22 = smov (!%p512_p3, %s26950_s22), 1  ;;  %v33154_v6 = vand.u32 4294901760, %v558_v3  ;;  %v33156_v7 = vand.u32 4294901760, %v561_v4  ;;  %32963 = vset.pattern.permute.xlu0 %v39592_v8  ;;  %vm2294_vm2 = vcmask 523264   ;;  %s33038_s23 = smov 112   ;;  %vm2411_vm3 = vcmask 916480  }
  0x11   : > { %548 = vperm.xlu0 %32963, %v33150_v5   ;;  %s32942_s29 = smul.u32 160, %s39982_s22  ;;  %s33039_s24 = smov 96   ;;  %vm2469_vm4 = vcmask 130048   ;;  %vm2456_vm5 = vcmask 785408   ;;  %vm14284_vm6 = vcmask 818176   ;;  %vm15393_vm7 = vcmask 1040384  }
  0x12   : > { %v33162_v9 = vsub.f32 %v558_v3, %v33154_v6  ;;  %v33165_v10 = vsub.f32 %v561_v4, %v33156_v7  ;;  %s33041_s27 = smov 103   ;;  %s33042_s17 = smov 78   ;;  %vm15386_vm8 = vcmask 203776   ;;  %vm23861_vm9 = vcmask 72704  }
  0x13   : > { %vm33043_vm10 = vmmov 0   ;;  %vm23932_vm11 = vcmask 64512   ;;  %s33045_s30 = smov 125   ;;  %vm25688_vm12 = vcmask 588800   ;;  %s27168_s28 = sshll.u32 %s39982_s22, 4  ;;  %vm26893_vm13 = vcmask 1024  }
  0x14   : > { %v33178_v12 = vand.u32 4294901760, %v33162_v9  ;;  %v33181_v13 = vand.u32 4294901760, %v33165_v10  ;;  %vm26891_vm14 = vcmask 7168  }
  0x15   : > { %s33175_s20 = scalar_lea.vmem %s39765_s19, %s32942_s29  ;;  %553 = vperm.xlu0 %32963, %v33170_v11   ;;  %s33044_s29 = smov 127  }
  0x16   : > { %v525_v14 = vld [vmem:[%s33175_s20 + $0x8] sm:$0xff]  ;;  %v530_v15 = vld [vmem:[%s33175_s20 + $0x30] sm:$0xff]  ;;  %v524_v16 = vld [vmem:[%s33175_s20] sm:$0xff]  ;;  %v655_v28 = vsub.f32 %v33162_v9, %v33178_v12  ;;  %v666_v34 = vsub.f32 %v33165_v10, %v33181_v13 }
  0x17   : > { %v579_v17 = vand.u32 4294901760, %v525_v14  ;;  %v583_v18 = vand.u32 4294901760, %v530_v15  ;;  %v529_v19 = vld [vmem:[%s33175_s20 + $0x28] sm:$0xff]  ;;  %v581_v20 = vand.u32 4294901760, %v524_v16  ;;  %v527_v21 = vld [vmem:[%s33175_s20 + $0x18] sm:$0xff]  ;;  %v532_v22 = vld [vmem:[%s33175_s20 + $0x40] sm:$0xff] }
  0x18   : > { %v585_v23 = vand.u32 4294901760, %v529_v19  ;;  %v1171_v24 = vand.u32 4294901760, %v527_v21  ;;  %v1175_v25 = vand.u32 4294901760, %v532_v22  ;;  %v535_v26 = vld [vmem:[%s33175_s20 + $0x58] sm:$0xff]  ;;  %v540_v27 = vld [vmem:[%s33175_s20 + $0x80] sm:$0x7] }
  0x19   : > { %v33194_v29 = vpack.c.bf16 %v583_v18, %v579_v17  ;;  %v33196_v30 = vsub.f32 %v525_v14, %v579_v17  ;;  %v33198_v31 = vsub.f32 %v530_v15, %v583_v18  ;;  %v526_v32 = vld [vmem:[%s33175_s20 + $0x10] sm:$0xff]  ;;  %v531_v33 = vld [vmem:[%s33175_s20 + $0x38] sm:$0xff]  ;;  %v33206_v36 = vsub.f32 %v524_v16, %v581_v20  ;;  %v537_v53 = vld [vmem:[%s33175_s20 + $0x68] sm:$0xff] }
  0x1a   : > { %v33204_v35 = vpack.c.bf16 %v585_v23, %v581_v20  ;;  %v33208_v37 = vsub.f32 %v529_v19, %v585_v23  ;;  %v33210_v38 = vpack.c.bf16 %v1175_v25, %v1171_v24  ;;  %v534_v39 = vld [vmem:[%s33175_s20 + $0x50] sm:$0xff]  ;;  %v539_v40 = vld [vmem:[%s33175_s20 + $0x78] sm:$0x7]  ;;  %v33215_v41 = vsub.f32 %v527_v21, %v1171_v24  ;;  %v536_v59 = vld [vmem:[%s33175_s20 + $0x60] sm:$0xff] }
  0x1b   : > { %29636 = vmatprep.subr.bf16.mxu0 %v33194_v29  ;;  %v33217_v42 = vsub.f32 %v532_v22, %v1175_v25  ;;  %v568_v43 = vsel %vm563_vm1, %v540_v27, 0  ;;  %v587_v44 = vand.u32 4294901760, %v535_v26  ;;  %v542_v45 = vld [vmem:[%s33175_s20 + $0x90] sm:$0x7]  ;;  %v1173_v47 = vand.u32 4294901760, %v526_v32 }
  0x1c   : > { %29638 = vmatpush1.bf16.msra.mxu0 %v33204_v35  ;;  %29684 = vmatprep.subr.bf16.mxu1 %v33210_v38  ;;  %v591_v46 = vand.u32 4294901760, %v568_v43  ;;  %v1177_v48 = vand.u32 4294901760, %v531_v33  ;;  %v565_v49 = vsel %vm563_vm1, %v539_v40, 0  ;;  %v589_v51 = vand.u32 4294901760, %v534_v39  ;;  %v541_v60 = vld [vmem:[%s33175_s20 + $0x88] sm:$0x7] }
  0x1d   : > { %v33224_v50 = vsub.f32 %v535_v26, %v587_v44  ;;  %v593_v52 = vand.u32 4294901760, %v565_v49  ;;  %v574_v54 = vsel %vm563_vm1, %v542_v45, 0  ;;  %v33234_v58 = vsub.f32 %v526_v32, %v1173_v47 }
  0x1e   : > { %v33228_v55 = vpack.c.bf16 %v591_v46, %v587_v44  ;;  %v33230_v56 = vsub.f32 %v568_v43, %v591_v46  ;;  %v33232_v57 = vpack.c.bf16 %v1177_v48, %v1173_v47  ;;  %v33238_v61 = vsub.f32 %v531_v33, %v1177_v48 }
  0x1f   : > { %v33240_v62 = vpack.c.bf16 %v593_v52, %v589_v51  ;;  %v33242_v63 = vsub.f32 %v534_v39, %v589_v51  ;;  %v33244_v0 = vsub.f32 %v565_v49, %v593_v52  ;;  %v1179_v1 = vand.u32 4294901760, %v537_v53 }
  0x20   : > { %29640 = vmatprep.subr.bf16.mxu0 %v33228_v55  ;;  %29686 = vmatpush1.bf16.msra.mxu1 %v33232_v57  ;;  %v1183_v3 = vand.u32 4294901760, %v574_v54  ;;  %v33248_v4 = vand.u32 4294901760, %v655_v28  ;;  %v676_v14 = vand.u32 4294901760, %v33196_v30  ;;  %v688_v15 = vand.u32 4294901760, %v33198_v31 }
  0x21   : > { %29642 = vmatpush1.bf16.msra.mxu0 %v33240_v62  ;;  %v571_v16 = vsel %vm563_vm1, %v541_v60, 0  ;;  %v1181_v17 = vand.u32 4294901760, %v536_v59  ;;  %v682_v18 = vand.u32 4294901760, %v33206_v36  ;;  %v33257_v20 = vsub.f32 %v537_v53, %v1179_v1 }
  0x22   : > { %v33255_v19 = vpack.c.bf16 %v1183_v3, %v1179_v1  ;;  %v33259_v21 = vsub.f32 %v574_v54, %v1183_v3  ;;  %v677_v22 = vsub.f32 %v33196_v30, %v676_v14  ;;  %v689_v23 = vsub.f32 %v33198_v31, %v688_v15 }
  0x23   : > { %v1185_v24 = vand.u32 4294901760, %v571_v16  ;;  %v33267_v25 = vsub.f32 %v536_v59, %v1181_v17  ;;  %v683_v26 = vsub.f32 %v33206_v36, %v682_v18  ;;  %v694_v28 = vand.u32 4294901760, %v33208_v37 }
  0x24   : > { %29688 = vmatprep.subr.bf16.mxu1 %v33255_v19  ;;  %657 = vmatmul.mubr.f32.vlgmr.msra.gmra.mrb[0].mxu0 %v33248_v4  ;;  %v678_v27 = vand.u32 4294901760, %v677_v22  ;;  %v1268_v32 = vand.u32 4294901760, %v33215_v41  ;;  %v1280_v33 = vand.u32 4294901760, %v33217_v42  ;;  %v690_v39 = vand.u32 4294901760, %v689_v23 }
  0x25   : > { %v33277_v40 = vpack.c.bf16 %v1185_v24, %v1181_v17  ;;  %v33279_v43 = vsub.f32 %v571_v16, %v1185_v24  ;;  %v684_v44 = vand.u32 4294901760, %v683_v26  ;;  %662 = vmatprep.mubr.f32.mxu0 %v39602_v2  ;;  %v695_v45 = vsub.f32 %v33208_v37, %v694_v28 }
  0x26   : > { %v1269_v46 = vsub.f32 %v33215_v41, %v1268_v32  ;;  %v1281_v47 = vsub.f32 %v33217_v42, %v1280_v33  ;;  %v33294_v48 = vand.u32 4294901760, %v666_v34  ;;  %v29643_v49 = vpack.c.bf16 %v690_v39, %v678_v27 }
  0x27   : > { %29690 = vmatpush1.bf16.msra.mxu1 %v33277_v40  ;;  %v700_v51 = vand.u32 4294901760, %v33224_v50  ;;  %v712_v52 = vand.u32 4294901760, %v33230_v56  ;;  %v1274_v53 = vand.u32 4294901760, %v33234_v58  ;;  %v696_v54 = vand.u32 4294901760, %v695_v45 }
  0x28   : > { %v1270_v59 = vand.u32 4294901760, %v1269_v46  ;;  %v1282_v60 = vand.u32 4294901760, %v1281_v47  ;;  %668 = vmatmul.mubr.f32.gmra.mrb[2].mxu0 %v33294_v48  ;;  %v1286_v1 = vand.u32 4294901760, %v33238_v61  ;;  %29644 = vmatprep.subr.bf16.mxu0 %v29643_v49  ;;  %v706_v17 = vand.u32 4294901760, %v33242_v63 }
  0x29   : > { %v701_v34 = vsub.f32 %v33224_v50, %v700_v51  ;;  %v713_v3 = vsub.f32 %v33230_v56, %v712_v52  ;;  %v1275_v16 = vsub.f32 %v33234_v58, %v1274_v53  ;;  %778 = vmatprep.mubr.f32.mxu0 %v39602_v2  ;;  %v29645_v22 = vpack.c.bf16 %v696_v54, %v684_v44 }
  0x2a   : > { %1249 = vmatmul.mubr.f32.vlgmr.msra.gmra.mrb[0].mxu1 %v33248_v4  ;;  %v29691_v23 = vpack.c.bf16 %v1282_v60, %v1270_v59  ;;  %v1287_v24 = vsub.f32 %v33238_v61, %v1286_v1  ;;  %v718_v26 = vand.u32 4294901760, %v33244_v0  ;;  %v707_v46 = vsub.f32 %v33242_v63, %v706_v17 }
  0x2b   : > { %v702_v27 = vand.u32 4294901760, %v701_v34  ;;  %v714_v39 = vand.u32 4294901760, %v713_v3  ;;  %v1276_v45 = vand.u32 4294901760, %v1275_v16  ;;  %1254 = vmatprep.mubr.f32.mxu1 %v39602_v2  ;;  %29646 = vmatpush1.bf16.msra.mxu0 %v29645_v22  ;;  %v39596_v49 = vand.u32 4294901760, %v33257_v20 }
  0x2c   : > { %29692 = vmatprep.subr.bf16.mxu1 %v29691_v23  ;;  %v1288_v44 = vand.u32 4294901760, %v1287_v24  ;;  %v719_v47 = vsub.f32 %v33244_v0, %v718_v26  ;;  %v39594_v54 = vand.u32 4294901760, %v33259_v21  ;;  %v708_v60 = vand.u32 4294901760, %v707_v46 }
  0x2d   : > { %v29647_v59 = vpack.c.bf16 %v714_v39, %v702_v27  ;;  %v39595_v34 = vand.u32 4294901760, %v33267_v25  ;;  %v1293_v22 = vsub.f32 %v33257_v20, %v39596_v49  ;;  %v29651_v24 = vpack.c.bf16 %v33198_v31, %v33196_v30 }
  0x2e   : > { %v29693_v3 = vpack.c.bf16 %v1288_v44, %v1276_v45  ;;  %v720_v16 = vand.u32 4294901760, %v719_v47  ;;  %1260 = vmatmul.mubr.f32.gmra.mrb[2].mxu1 %v33294_v48  ;;  %v1305_v23 = vsub.f32 %v33259_v21, %v39594_v54  ;;  %v1310_v39 = vand.u32 4294901760, %v33279_v43 }
  0x2f   : > { %29648 = vmatprep.subr.bf16.mxu0 %v29647_v59  ;;  %v1299_v27 = vsub.f32 %v33267_v25, %v39595_v34  ;;  %1370 = vmatprep.mubr.f32.mxu1 %v39602_v2  ;;  %v1294_v46 = vand.u32 4294901760, %v1293_v22  ;;  %v29653_v54 = vpack.c.bf16 %v33208_v37, %v33206_v36  ;;  %v29655_v49 = vpack.c.bf16 %v33230_v56, %v33224_v50 }
  0x30   : > { %29694 = vmatpush1.bf16.msra.mxu1 %v29693_v3  ;;  %v29649_v45 = vpack.c.bf16 %v720_v16, %v708_v60  ;;  %v1306_v44 = vand.u32 4294901760, %v1305_v23  ;;  %v1311_v59 = vsub.f32 %v33279_v43, %v1310_v39  ;;  %v29699_v60 = vpack.c.bf16 %v33217_v42, %v33215_v41  ;;  %v528_v23 = vld [vmem:[%s33175_s20 + $0x20] sm:$0xff] }
  0x31   : > { %v1300_v47 = vand.u32 4294901760, %v1299_v27  ;;  %v29657_v16 = vpack.c.bf16 %v33244_v0, %v33242_v63  ;;  %v29701_v22 = vpack.c.bf16 %v33238_v61, %v33234_v58  ;;  %v29669_v27 = vpack.c.bf16 %v694_v28, %v682_v18 }
  0x32   : > { %29650 = vmatpush1.bf16.msra.mxu0 %v29649_v45  ;;  %v29695_v8 = vpack.c.bf16 %v1306_v44, %v1294_v46  ;;  %v1312_v34 = vand.u32 4294901760, %v1311_v59  ;;  %v29715_v31 = vpack.c.bf16 %v1280_v33, %v1268_v32  ;;  %v29671_v37 = vpack.c.bf16 %v712_v52, %v700_v51 }
  0x33   : > { %29652 = vmatprep.subr.bf16.mxu0 %v29651_v24  ;;  %v533_v24 = vld [vmem:[%s33175_s20 + $0x48] sm:$0xff]  ;;  %v29673_v41 = vpack.c.bf16 %v718_v26, %v706_v17  ;;  %v29717_v42 = vpack.c.bf16 %v1286_v1, %v1274_v53  ;;  %v39766_v18 = vand.u32 4294901760, %v33257_v20  ;;  %v39767_v63 = vand.u32 4294901760, %v33259_v21 }
  0x34   : > { %29696 = vmatprep.subr.bf16.mxu1 %v29695_v8  ;;  %v29697_v3 = vpack.c.bf16 %v1312_v34, %v1300_v47  ;;  %v29703_v8 = vpack.c.bf16 %v33259_v21, %v33257_v20  ;;  %v29667_v34 = vpack.c.bf16 %v688_v15, %v676_v14  ;;  %v1764_v14 = vand.u32 4294901760, %v528_v23  ;;  %v538_v15 = vld [vmem:[%s33175_s20 + $0x70] sm:$0xff] }
  0x35   : > { %780 = vmatmul.mubr.f32.vlgmr.msra.gmra.mrb[0].mxu0 %v33154_v6  ;;  %v1767_v36 = vand.u32 4294901760, %v533_v24  ;;  %v1770_v50 = vand.u32 4294901760, %v538_v15  ;;  %v29719_v0 = vpack.c.bf16 %v39767_v63, %v39766_v18  ;;  %v39768_v58 = vand.u32 4294901760, %v33267_v25 }
  0x36   : > { %29654 = vmatpush1.bf16.msra.mxu0 %v29653_v54  ;;  %785 = vmatprep.mubr.f32.mxu0 %v39602_v2  ;;  %v543_v54 = vld [vmem:[%s33175_s20 + $0x98] sm:$0x7]  ;;  %v33418_v28 = vsub.f32 %v528_v23, %v1764_v14  ;;  %s521_s20 = scalar_lea.vmem %s39591_s16, %s27168_s28 }
  0x37   : > { %29698 = vmatpush1.bf16.msra.mxu1 %v29697_v3  ;;  %29656 = vmatprep.subr.bf16.mxu0 %v29655_v49  ;;  %v29705_v49 = vpack.c.bf16 %v33279_v43, %v33267_v25  ;;  %v577_v30 = vsel %vm563_vm1, %v543_v54, 0  ;;  %v33420_v32 = vsub.f32 %v533_v24, %v1767_v36  ;;  %v29721_v61 = vpack.c.bf16 %v1310_v39, %v39768_v58 }
  0x38   : > { %29700 = vmatprep.subr.bf16.mxu1 %v29699_v60  ;;  %v1773_v56 = vand.u32 4294901760, %v577_v30  ;;  %v33429_v20 = vsub.f32 %v538_v15, %v1770_v50  ;;  %v1855_v33 = vand.u32 4294901760, %v33418_v28 }
  0x39   : > { %787 = vmatmul.mubr.f32.gmra.mrb[2].mxu0 %v33156_v7  ;;  %v1862_v51 = vand.u32 4294901760, %v33420_v32 }
  0x3a   : > { %1372 = vmatmul.mubr.f32.vlgmr.msra.gmra.mrb[0].mxu1 %v33154_v6  ;;  %29658 = vmatpush1.bf16.msra.mxu0 %v29657_v16  ;;  %v33431_v21 = vsub.f32 %v577_v30, %v1773_v56  ;;  %v1869_v25 = vand.u32 4294901760, %v33429_v20  ;;  %v1856_v52 = vsub.f32 %v33418_v28, %v1855_v33  ;;  %v29735_v1 = vpack.c.bf16 %v1773_v56, %v1770_v50 }
  0x3b   : > { %29702 = vmatpush1.bf16.msra.mxu1 %v29701_v22  ;;  %1377 = vmatprep.mubr.f32.mxu1 %v39602_v2 }
  0x3c   : > { %873 = vmatprep.mubr.f32.mxu0 %v39602_v2  ;;  %29704 = vmatprep.subr.bf16.mxu1 %v29703_v8  ;;  %v1876_v43 = vand.u32 4294901760, %v33431_v21  ;;  %v1857_v17 = vand.u32 4294901760, %v1856_v52 }
  0x3d   : > { %876 = vmatmul.mubr.f32.vlgmr.msra.gmra.mrb[0].mxu0 %v33162_v9  ;;  %29660 = vmatprep.subr.bf16.mxu0 %v33194_v29 }
  0x3e   : > { %1379 = vmatmul.mubr.f32.gmra.mrb[2].mxu1 %v33156_v7  ;;  %29662 = vmatpush1.bf16.msra.mxu0 %v33204_v35  ;;  %v1877_v53 = vsub.f32 %v33431_v21, %v1876_v43  ;;  %v29767_v39 = vpack.c.bf16 %v1876_v43, %v1869_v25 }
  0x3f   : > { %29706 = vmatpush1.bf16.msra.mxu1 %v29705_v49  ;;  %1465 = vmatprep.mubr.f32.mxu1 %v39602_v2 }
  0x40   : > { %881 = vmatprep.mubr.f32.mxu0 %v39602_v2  ;;  %29708 = vmatprep.subr.bf16.mxu1 %v33210_v38 }
  0x41   : > { %884 = vmatmul.mubr.f32.gmra.mrb[2].mxu0 %v33165_v10  ;;  %29664 = vmatprep.subr.bf16.mxu0 %v33228_v55 }
  0x42   : > { %1468 = vmatmul.mubr.f32.vlgmr.msra.gmra.mrb[0].mxu1 %v33162_v9  ;;  %29666 = vmatpush1.bf16.msra.mxu0 %v33240_v62 }
  0x43   : > { %29710 = vmatpush1.bf16.msra.mxu1 %v33232_v57  ;;  %1473 = vmatprep.mubr.f32.mxu1 %v39602_v2 }
  0x44   : > { %962 = vmatprep.mubr.f32.mxu0 %v39602_v2  ;;  %29712 = vmatprep.subr.bf16.mxu1 %v33255_v19 }
  0x45   : > { %966 = vmatmul.mubr.f32.vlgmr.msra.gmra.mrb[0].mxu0 %v33178_v12  ;;  %29668 = vmatprep.subr.bf16.mxu0 %v29667_v34 }
  0x46   : > { %1476 = vmatmul.mubr.f32.gmra.mrb[2].mxu1 %v33165_v10  ;;  %29670 = vmatpush1.bf16.msra.mxu0 %v29669_v27 }
  0x47   : > { %29714 = vmatpush1.bf16.msra.mxu1 %v33277_v40  ;;  %1554 = vmatprep.mubr.f32.mxu1 %v39602_v2 }
  0x48   : > { %971 = vmatprep.mubr.f32.mxu0 %v39602_v2  ;;  %29716 = vmatprep.subr.bf16.mxu1 %v29715_v31 }
  0x49   : > { %975 = vmatmul.mubr.f32.gmra.mrb[2].mxu0 %v33181_v13  ;;  %29672 = vmatprep.subr.bf16.mxu0 %v29671_v37 }
  0x4a   : > { %1558 = vmatmul.mubr.f32.vlgmr.msra.gmra.mrb[0].mxu1 %v33178_v12  ;;  %29674 = vmatpush1.bf16.msra.mxu0 %v29673_v41 }
  0x4b   : > { %29718 = vmatpush1.bf16.msra.mxu1 %v29717_v42  ;;  %1563 = vmatprep.mubr.f32.mxu1 %v39602_v2 }
  0x4c   : > { %1069 = vmatprep.mubr.f32.mxu0 %v39602_v2  ;;  %29720 = vmatprep.subr.bf16.mxu1 %v29719_v0 }
  0x4d   : > { %1071 = vmatmul.mubr.f32.vlgmr.msra.gmra.mrb[0].mxu0 %v33154_v6  ;;  %29676 = vmatprep.subr.bf16.mxu0 %v33194_v29  ;;  %v1863_v29 = vsub.f32 %v33420_v32, %v1862_v51 }
  0x4e   : > { %1567 = vmatmul.mubr.f32.gmra.mrb[2].mxu1 %v33181_v13  ;;  %29678 = vmatpush1.bf16.msra.mxu0 %v33204_v35  ;;  %v29731_v35 = vpack.c.bf16 %v1767_v36, %v1764_v14 }
  0x4f   : > { %29722 = vmatpush1.bf16.msra.mxu1 %v29721_v61  ;;  %1661 = vmatprep.mubr.f32.mxu1 %v39602_v2 }
  0x50   : > { %1076 = vmatprep.mubr.f32.mxu0 %v39602_v2  ;;  %29724 = vmatprep.subr.bf16.mxu1 %v33210_v38  ;;  %v1870_v38 = vsub.f32 %v33429_v20, %v1869_v25 }
  0x51   : > { %1078 = vmatmul.mubr.f32.gmra.mrb[2].mxu0 %v33156_v7  ;;  %29680 = vmatprep.subr.bf16.mxu0 %v33228_v55  ;;  %v1864_v55 = vand.u32 4294901760, %v1863_v29 }
  0x52   : > { %1663 = vmatmul.mubr.f32.vlgmr.msra.gmra.mrb[0].mxu1 %v33154_v6  ;;  %29682 = vmatpush1.bf16.msra.mxu0 %v33240_v62  ;;  %v1878_v62 = vand.u32 4294901760, %v1877_v53 }
  0x53   : > { %29726 = vmatpush1.bf16.msra.mxu1 %v33232_v57  ;;  %1668 = vmatprep.mubr.f32.mxu1 %v39602_v2  ;;  %v1871_v57 = vand.u32 4294901760, %v1870_v38  ;;  %v29739_v26 = vpack.c.bf16 %v1864_v55, %v1857_v17 }
  0x54   : > { %1156 = vmatprep.mubr.f32.mxu0 %v39602_v2  ;;  %29728 = vmatprep.subr.bf16.mxu1 %v33255_v19 }
  0x55   : > { %1158 = vmatmul.mubr.f32.vlgmr.msra.gmra.mrb[0].mxu0 %v33154_v6  ;;  %29732 = vmatprep.subr.bf16.mxu0 %v29731_v35  ;;  %v29743_v19 = vpack.c.bf16 %v1878_v62, %v1871_v57 }
  0x56   : > { %1670 = vmatmul.mubr.f32.gmra.mrb[2].mxu1 %v33156_v7  ;;  %29734 = vmatpush3.bf16.msra.mxu0 %v29731_v35 }
  0x57   : > { %29730 = vmatpush1.bf16.msra.mxu1 %v33277_v40  ;;  %1748 = vmatprep.mubr.f32.mxu1 %v39602_v2  ;;  %v29747_v40 = vpack.c.bf16 %v33420_v32, %v33418_v28 }
  0x58   : > { %1163 = vmatprep.mubr.f32.mxu0 %v39602_v2  ;;  %29736 = vmatprep.subr.bf16.mxu0 %v29735_v1 }
  0x59   : > { %1165 = vmatmul.mubr.f32.gmra.mrb[2].mxu0 %v33156_v7 }
  0x5a   : > { %1750 = vmatmul.mubr.f32.vlgmr.msra.gmra.mrb[0].mxu1 %v33154_v6  ;;  %29738 = vmatpush3.bf16.msra.mxu0 %v29735_v1 }
  0x5b   : > { %1755 = vmatprep.mubr.f32.mxu1 %v39602_v2  ;;  %28005 = vmatprep.mubr.f32.mxu0 %v33248_v4  ;;  %v29751_v4 = vpack.c.bf16 %v33431_v21, %v33429_v20 }
  0x5c   : > { %29740 = vmatprep.subr.bf16.mxu0 %v29739_v26 }
  0x5d   : > { %28006 = vmatmul.mubr.f32.vlgmr.msra.gmra.mrb[4].mxu0 %v33294_v48  ;;  %v29763_v48 = vpack.c.bf16 %v1862_v51, %v1855_v33 }
  0x5e   : > { %1757 = vmatmul.mubr.f32.gmra.mrb[2].mxu1 %v33156_v7  ;;  %29742 = vmatpush3.bf16.msra.mxu0 %v29739_v26 }
  0x5f   : > { %29744 = vmatprep.subr.bf16.mxu0 %v29743_v19  ;;  %28016 = vmatprep.mubr.f32.mxu0 %v33154_v6 }
  0x60   : > { %2555 = vmatprep.mubr.f32.mxu1 %v39602_v2 }
  0x62   : > { %29746 = vmatpush3.bf16.msra.mxu0 %v29743_v19 }
  0x63   : > { %29748 = vmatprep.subr.bf16.mxu0 %v29747_v40 }
  0x65   : > { %28017 = vmatmul.mubr.f32.vlgmr.msra.gmra.mrb[4].mxu0 %v33156_v7 }
  0x66   : > { %29750 = vmatpush3.bf16.msra.mxu0 %v29747_v40  ;;  %28027 = vmatprep.mubr.f32.mxu0 %v33162_v9 }
  0x67   : > { %29752 = vmatprep.subr.bf16.mxu0 %v29751_v4 }
  0x6a   : > { %29754 = vmatpush3.bf16.msra.mxu0 %v29751_v4 }
  0x6b   : > { %29756 = vmatprep.subr.bf16.mxu0 %v29731_v35 }
  0x6d   : > { %28028 = vmatmul.mubr.f32.vlgmr.msra.gmra.mrb[4].mxu0 %v33165_v10 }
  0x6e   : > { %29758 = vmatpush3.bf16.msra.mxu0 %v29731_v35  ;;  %28038 = vmatprep.mubr.f32.mxu0 %v33178_v12 }
  0x6f   : > { %29760 = vmatprep.subr.bf16.mxu0 %v29735_v1 }
  0x72   : > { %29762 = vmatpush3.bf16.msra.mxu0 %v29735_v1 }
  0x73   : > { %29764 = vmatprep.subr.bf16.mxu0 %v29763_v48 }
  0x75   : > { %28039 = vmatmul.mubr.f32.vlgmr.msra.gmra.mrb[4].mxu0 %v33181_v13 }
  0x76   : > { %29766 = vmatpush3.bf16.msra.mxu0 %v29763_v48  ;;  %28049 = vmatprep.mubr.f32.mxu0 %v33154_v6 }
  0x77   : > { %29768 = vmatprep.subr.bf16.mxu0 %v29767_v39 }
  0x7a   : > { %29770 = vmatpush3.bf16.msra.mxu0 %v29767_v39 }
  0x7b   : > { %29772 = vmatprep.subr.bf16.mxu0 %v29731_v35 }
  0x7d   : > { %28050 = vmatmul.mubr.f32.vlgmr.msra.gmra.mrb[4].mxu0 %v33156_v7 }
  0x7e   : > { %29774 = vmatpush3.bf16.msra.mxu0 %v29731_v35  ;;  %28060 = vmatprep.mubr.f32.mxu0 %v33154_v6 }
  0x7f   : > { %29776 = vmatprep.subr.bf16.mxu0 %v29735_v1 }
  0x82   : > { %29778 = vmatpush3.bf16.msra.mxu0 %v29735_v1 }
  0x85   : > { %28061 = vmatmul.mubr.f32.vlgmr.msra.gmra.mrb[4].mxu0 %v33156_v7 }
  0x86   : > { %2544 = vmatprep.mubr.f32.mxu0 %v39602_v2 }
  0x90   : > { %v549_v59 = vpop.permute.xlu0 %548 }
  0x94   : > { %v554_v16 = vpop.permute.xlu0 %553 }
 0x128   : > { %v1159_v9 = vpop.f32.mrb[0].mxu0 }
 0x129   : > { %v1161_v10 = vpop.f32.mrb[1].mxu0  ;;  %v32295_v60 = vadd.f32 %v1159_v9, %v549_v59 }
 0x12a   : > { %v32296_v3 = vadd.f32 %v1161_v10, %v549_v59 }
 0x12c   : > { %v1166_v12 = vpop.f32.mrb[2].mxu0  ;;  %v2291_v22 = vadd.f32 %v32296_v3, %v32295_v60 }
 0x12d   : > { %v1751_v13 = vpop.f32.mrb[0].mxu1  ;;  %v1168_v45 = vpop.f32.mrb[3].mxu0  ;;  %v32297_v8 = vadd.f32 %v1166_v12, %v554_v16 }
 0x12e   : > { %v1753_v46 = vpop.f32.mrb[1].mxu1  ;;  %v32299_v6 = vadd.f32 %v1751_v13, %v549_v59  ;;  %v32298_v49 = vadd.f32 %v1168_v45, %v554_v16 }
 0x12f   : > { %v32300_v34 = vadd.f32 %v1753_v46, %v549_v59  ;;  %v39597_v46 = vmov 2  }
 0x130   : > { %v2292_v54 = vadd.f32 %v32299_v6, %v2291_v22  ;;  %v2299_v7 = vadd.f32 %v32298_v49, %v32297_v8  ;;  %32964 = vset.pattern.permute.xlu1 %v39597_v46 }
 0x131   : > { %v1758_v44 = vpop.f32.mrb[2].mxu1 }
 0x132   : > { %v1760_v47 = vpop.f32.mrb[3].mxu1  ;;  %v32301_v23 = vadd.f32 %v1758_v44, %v554_v16  ;;  %v2293_v15 = vadd.f32 %v32300_v34, %v2292_v54  ;;  %v39599_v44 = vmov 1  }
 0x133   : > { %v32302_v36 = vadd.f32 %v1760_v47, %v554_v16 }
 0x134   : > { %v2300_v14 = vadd.f32 %v32301_v23, %v2299_v7  ;;  %v39769_v7 = vmov 0  }
 0x136   : > { %v2301_v50 = vadd.f32 %v32302_v36, %v2300_v14 }
 0x158   : > { %v28062_v24 = vpop.f32.mrb[4].mxu0 }
 0x159   : > { %v2281_v27 = vpop.f32.mrb[5].mxu0  ;;  %v32303_v30 = vadd.f32 %v28062_v24, %v554_v16 }
 0x15a   : > { %v32304_v31 = vadd.f32 %v2281_v27, %v549_v59 }
 0x15b   : > { %v2302_v42 = vsel %vm2294_vm2, %v32303_v30, 0.0 }
 0x15c   : > { %v2295_v37 = vsel %vm2294_vm2, %v32304_v31, 0.0  ;;  %v2303_v56 = vadd.f32 %v2302_v42, %v2301_v50 }
 0x15d   : > { %v2296_v41 = vadd.f32 %v2295_v37, %v2293_v15 }
 0x15f   : > { %2297 = vadd.xlane.f32.xlu1 %v2296_v41 }
 0x163   : > { %2304 = vadd.xlane.f32.xlu1 %v2303_v56 }
 0x1ec   : > { %v2298_v18 = vpop.xlane.xlu1 %2297 }
 0x1ed   : > { %v2307_v63 = vmul.f32 0.0017361111, %v2298_v18 }
 0x1ef   : > { %v2309_v0 = vsub.f32 %v32295_v60, %v2307_v63  ;;  %v33494_v28 = vsub.f32 %v32296_v3, %v2307_v63  ;;  %v33496_v32 = vsub.f32 %v32299_v6, %v2307_v63  ;;  %v2312_v61 = vsub.f32 %v32300_v34, %v2307_v63 }
 0x1f0   : > { %v2305_v58 = vpop.xlane.xlu1 %2304  ;;  %v2313_v20 = vsub.f32 %v32304_v31, %v2307_v63 }
 0x1f1   : > { %v2308_v21 = vmul.f32 0.0017361111, %v2305_v58  ;;  %v2319_v33 = vmul.f32 %v2309_v0, %v2309_v0  ;;  %v2320_v51 = vmul.f32 %v33494_v28, %v33494_v28  ;;  %v2321_v25 = vmul.f32 %v33496_v32, %v33496_v32 }
 0x1f2   : > { %v2322_v38 = vmul.f32 %v2312_v61, %v2312_v61  ;;  %v2323_v53 = vmul.f32 %v2313_v20, %v2313_v20 }
 0x1f3   : > { %v2329_v43 = vadd.f32 %v2320_v51, %v2319_v33  ;;  %v33502_v52 = vsub.f32 %v32297_v8, %v2308_v21  ;;  %v2315_v29 = vsub.f32 %v32298_v49, %v2308_v21  ;;  %v33504_v35 = vsub.f32 %v32301_v23, %v2308_v21 }
 0x1f4   : > { %v2318_v1 = vsub.f32 %v32303_v30, %v2308_v21  ;;  %v2317_v55 = vsub.f32 %v32302_v36, %v2308_v21  ;;  %v2332_v4 = vsel %vm2294_vm2, %v2323_v53, 0.0 }
 0x1f5   : > { %v2330_v17 = vadd.f32 %v2329_v43, %v2321_v25  ;;  %v2324_v57 = vmul.f32 %v33502_v52, %v33502_v52  ;;  %v2325_v62 = vmul.f32 %v2315_v29, %v2315_v29  ;;  %v2326_v19 = vmul.f32 %v33504_v35, %v33504_v35 }
 0x1f6   : > { %v2328_v48 = vmul.f32 %v2318_v1, %v2318_v1  ;;  %v2327_v9 = vmul.f32 %v2317_v55, %v2317_v55 }
 0x1f7   : > { %v2331_v26 = vadd.f32 %v2330_v17, %v2322_v38  ;;  %v2336_v40 = vadd.f32 %v2325_v62, %v2324_v57 }
 0x1f8   : > { %v2339_v13 = vsel %vm2294_vm2, %v2328_v48, 0.0 }
 0x1f9   : > { %v2333_v39 = vadd.f32 %v2332_v4, %v2331_v26  ;;  %v2337_v10 = vadd.f32 %v2336_v40, %v2326_v19 }
 0x1fb   : > { %2334 = vadd.xlane.f32.xlu0 %v2333_v39  ;;  %v2338_v12 = vadd.f32 %v2337_v10, %v2327_v9 }
 0x1fd   : > { %v2340_v45 = vadd.f32 %v2339_v13, %v2338_v12 }
 0x1ff   : > { %2341 = vadd.xlane.f32.xlu1 %v2340_v45 }
 0x210   : > { %2372 = vperm.xlu1 %32964, %v33150_v5  }
 0x214   : > { %32965 = vset.pattern.permute.xlu1 %v39599_v44 }
 0x288   : > { %v2335_v47 = vpop.xlane.xlu0 %2334 }
 0x289   : > { %v2343_v59 = vmul.f32 0.0017361111, %v2335_v47 }
 0x28b   : > { %v2345_v16 = vadd.f32 1e-05, %v2343_v59 }
 0x28c   : > { %v2342_v60 = vpop.xlane.xlu1 %2341 }
 0x28d   : > { %v2344_v3 = vmul.f32 0.0017361111, %v2342_v60 }
 0x28f   : > { %v2346_v22 = vadd.f32 1e-05, %v2344_v3  ;;  %v2467_v3 = vld [vmem:[%s39578_s3] sm:$0xff] }
 0x290   : > { %v2373_v34 = vpop.permute.xlu1 %2372 }
 0x291   : > { %32977 = vrsqrt.f32 %v2346_v22  ;;  %v2471_v22 = vsel %vm2469_vm4, %v2467_v3, 0 }
 0x292   : > { %32979 = vrsqrt.f32 %v2345_v16  ;;  %v2468_v16 = vld [vmem:[%s39578_s3 + $0x8] sm:$0xff] }
 0x29b   : > { %v32978_v6 = vpop.eup %32977 }
 0x29c   : > { %v2350_v8 = vmul.f32 %v32978_v6, %v33170_v11  ;;  %v32980_v49 = vpop.eup %32979  ;;  %v2474_v6 = vsel %vm2469_vm4, %v2468_v16, 0 }
 0x29d   : > { %v2349_v54 = vmul.f32 %v32980_v49, %v33150_v5  ;;  %v33548_v49 = vand.u32 4294901760, %v2471_v22 }
 0x29e   : > { %2358 = vperm.xlu1 %32965, %v2350_v8   ;;  %v26958_v8 = vld [vmem:[%s39578_s3 + $0x10] sm:$0xff] }
 0x2a2   : > { %2353 = vperm.xlu1 %32965, %v2349_v54   ;;  %v33550_v54 = vand.u32 4294901760, %v2474_v6 }
 0x2a6   : > { %32966 = vset.pattern.permute.xlu1 %v39597_v46  ;;  %v34114_v46 = vld [vmem:[%s39579_s4 + $0x50] sm:$0xff] }
 0x2a7   : > { %2376 = vperm.xlu1 %32966, %v33170_v11  }
 0x2ab   : > { %32967 = vset.pattern.permute.xlu1 %v39769_v7 }
 0x31d   : > { %v2359_v23 = vpop.permute.xlu1 %2358 }
 0x31e   : > { %v2369_v14 = vmul.f32 %v2359_v23, %v2317_v55  ;;  %v2367_v36 = vmul.f32 %v2359_v23, %v2315_v29  ;;  %v2370_v63 = vmul.f32 %v2359_v23, %v2318_v1 }
 0x321   : > { %v2354_v24 = vpop.permute.xlu1 %2353 }
 0x322   : > { %v2364_v27 = vmul.f32 %v2354_v24, %v2312_v61  ;;  %v2361_v30 = vmul.f32 %v2354_v24, %v2309_v0  ;;  %v2365_v15 = vmul.f32 %v2354_v24, %v2313_v20  ;;  %v2368_v61 = vmul.f32 %v2359_v23, %v33504_v35 }
 0x323   : > { %v2362_v33 = vmul.f32 %v2354_v24, %v33494_v28  ;;  %v2363_v43 = vmul.f32 %v2354_v24, %v33496_v32  ;;  %v2366_v28 = vmul.f32 %v2359_v23, %v33502_v52  ;;  %v14270_v52 = vld [vmem:[%s39580_s5] sm:$0xff]  ;;  %v26959_v24 = vld [vmem:[%s39578_s3 + $0x18] sm:$0xff] }
 0x324   : > { %v2382_v31 = vadd.f32 %v2373_v34, %v2364_v27  ;;  %v2379_v37 = vadd.f32 %v2373_v34, %v2361_v30  ;;  %v2383_v18 = vadd.f32 %v2373_v34, %v2365_v15  ;;  %v33557_v30 = vsub.f32 %v2471_v22, %v33548_v49 }
 0x325   : > { %v2380_v25 = vadd.f32 %v2373_v34, %v2362_v33  ;;  %v2381_v38 = vadd.f32 %v2373_v34, %v2363_v43  ;;  %v3038_v34 = vsel %vm2469_vm4, %v26958_v8, 0 }
 0x326   : > { %v2377_v41 = vpop.permute.xlu1 %2376  ;;  %v2392_v42 = vmax.f32 %v2382_v31, 0.0  ;;  %v2393_v0 = vmax.f32 %v2383_v18, 0.0  ;;  %v2389_v45 = vmax.f32 %v2379_v37, 0.0  ;;  %v33560_v31 = vsub.f32 %v2474_v6, %v33550_v54 }
 0x327   : > { %v2387_v5 = vadd.f32 %v2377_v41, %v2369_v14  ;;  %v33520_v50 = vadd.f32 %v2377_v41, %v2367_v36  ;;  %v2388_v58 = vadd.f32 %v2377_v41, %v2370_v63  ;;  %v2386_v21 = vadd.f32 %v2377_v41, %v2368_v61 }
 0x328   : > { %2426 = vrot.lane.b32.xlu0 %v2392_v42, %s33038_s23  ;;  %v2390_v29 = vmax.f32 %v2380_v25, 0.0  ;;  %v2391_v53 = vmax.f32 %v2381_v38, 0.0  ;;  %v2384_v32 = vadd.f32 %v2377_v41, %v2366_v28  ;;  %v33562_v14 = vand.u32 4294901760, %v3038_v34 }
 0x329   : > { %v2397_v11 = vmax.f32 %v2387_v5, 0.0  ;;  %v2395_v56 = vmax.f32 %v33520_v50, 0.0  ;;  %v2398_v20 = vmax.f32 %v2388_v58, 0.0  ;;  %v2396_v51 = vmax.f32 %v2386_v21, 0.0 }
 0x32a   : > { %v2394_v9 = vmax.f32 %v2384_v32, 0.0  ;;  %v3041_v41 = vsel %vm2469_vm4, %v26959_v24, 0  ;;  %v2547_v63 = vand.u32 4294901760, %v33557_v30  ;;  %v33571_v58 = vsub.f32 %v3038_v34, %v33562_v14 }
 0x32b   : > { %2430 = vrot.lane.b32.xlu1 %v2397_v11, %s33038_s23 }
 0x32c   : > { %2407 = vrot.lane.b32.xlu0 %v2395_v56, %s33038_s23  ;;  %v2548_v38 = vsub.f32 %v33557_v30, %v2547_v63 }
 0x32f   : > { %2428 = vrot.lane.b32.xlu1 %v2393_v0, %s33038_s23  ;;  %v2558_v0 = vand.u32 4294901760, %v33560_v31 }
 0x333   : > { %2432 = vrot.lane.b32.xlu1 %v2398_v20, %s33038_s23 }
 0x337   : > { %2409 = vrot.lane.b32.xlu1 %v2396_v51, %s33038_s23 }
 0x33b   : > { %2403 = vrot.lane.b32.xlu1 %v2390_v29, %s33038_s23 }
 0x33f   : > { %2405 = vrot.lane.b32.xlu1 %v2391_v53, %s33038_s23 }
 0x39a   : > { %v2427_v17 = vpop.permute.xlu0 %2426 }
 0x39d   : > { %v2431_v1 = vpop.permute.xlu1 %2430 }
 0x39e   : > { %v2408_v48 = vpop.permute.xlu0 %2407 }
 0x3a1   : > { %v2429_v55 = vpop.permute.xlu1 %2428 }
 0x3a2   : > { %v2434_v35 = vsel %vm2411_vm3, %v2427_v17, %v2429_v55  ;;  %v2441_v57 = vmax.f32 %v2392_v42, %v2429_v55  ;;  %v2559_v55 = vsub.f32 %v33560_v31, %v2558_v0 }
 0x3a3   : > { %v2440_v62 = vmax.f32 %v2391_v53, %v2434_v35  ;;  %v3114_v53 = vand.u32 4294901760, %v33571_v58 }
 0x3a4   : > { %2450 = vrot.lane.b32.xlu1 %v2441_v57, %s33039_s24 }
 0x3a5   : > { %v2433_v26 = vpop.permute.xlu1 %2432  ;;  %2448 = vrot.lane.b32.xlu0 %v2440_v62, %s33039_s24 }
 0x3a6   : > { %v2435_v19 = vsel %vm2411_vm3, %v2431_v1, %v2433_v26  ;;  %v2443_v40 = vmax.f32 %v2397_v11, %v2433_v26 }
 0x3a7   : > { %v2442_v4 = vmax.f32 %v2396_v51, %v2435_v19  ;;  %v33575_v51 = vand.u32 4294901760, %v3041_v41 }
 0x3a8   : > { %2454 = vrot.lane.b32.xlu1 %v2443_v40, %s33039_s24  ;;  %v2549_v40 = vand.u32 4294901760, %v2548_v38  ;;  %v26968_v38 = vld [vmem:[%s39579_s4 + $0xd0] sm:$0xff] }
 0x3a9   : > { %v2410_v39 = vpop.permute.xlu1 %2409  ;;  %2452 = vrot.lane.b32.xlu0 %v2442_v4, %s33039_s24  ;;  %v33589_v35 = vsub.f32 %v3041_v41, %v33575_v51  ;;  %v26965_v41 = vld [vmem:[%s39579_s4 + $0xb8] sm:$0xff] }
 0x3aa   : > { %v2413_v10 = vsel %vm2411_vm3, %v2408_v48, %v2410_v39  ;;  %v2421_v42 = vmax.f32 %v2395_v56, %v2410_v39  ;;  %v2560_v48 = vand.u32 4294901760, %v2559_v55  ;;  %v3115_v39 = vsub.f32 %v33571_v58, %v3114_v53 }
 0x3ab   : > { %v2420_v12 = vmax.f32 %v2394_v9, %v2413_v10  ;;  %v3125_v9 = vand.u32 4294901760, %v33589_v35 }
 0x3ac   : > { %v3116_v3 = vand.u32 4294901760, %v3115_v39 }
 0x3ad   : > { %v2404_v13 = vpop.permute.xlu1 %2403  ;;  %14274 = vperm.xlu0 %32963, %v14270_v52   ;;  %v3126_v16 = vsub.f32 %v33589_v35, %v3125_v9 }
 0x3b1   : > { %v2406_v47 = vpop.permute.xlu1 %2405  ;;  %32969 = vset.pattern.permute.xlu0 %v39599_v44  ;;  %v34119_v44 = vld [vmem:[%s39579_s4 + $0x58] sm:$0xff] }
 0x3b2   : > { %v2412_v59 = vsel %vm2411_vm3, %v2404_v13, %v2406_v47  ;;  %v2419_v23 = vmax.f32 %v2390_v29, %v2406_v47 }
 0x3b3   : > { %v2418_v60 = vmax.f32 %v2389_v45, %v2412_v59 }
 0x416   : > { %v2451_v27 = vpop.permute.xlu1 %2450 }
 0x417   : > { %v2464_v36 = vmax.f32 %v2419_v23, %v2451_v27  ;;  %v2449_v15 = vpop.permute.xlu0 %2448  ;;  %v3127_v23 = vand.u32 4294901760, %v3126_v16  ;;  %v26972_v16 = vld [vmem:[%s39579_s4 + $0xf0] sm:$0xff] }
 0x418   : > { %v2457_v37 = vsel %vm2456_vm5, %v2449_v15, %v2451_v27  ;;  %v26960_v27 = vld [vmem:[%s39579_s4 + $0x90] sm:$0xff] }
 0x419   : > { %v2476_v5 = vand.u32 4294901760, %v2464_v36  ;;  %v2463_v11 = vmax.f32 %v2418_v60, %v2457_v37  ;;  %v26964_v37 = vld [vmem:[%s39579_s4 + $0xb0] sm:$0xff] }
 0x41a   : > { %v2455_v18 = vpop.permute.xlu1 %2454 }
 0x41b   : > { %v33573_v61 = vsub.f32 %v2464_v36, %v2476_v5  ;;  %v2478_v20 = vand.u32 4294901760, %v2463_v11  ;;  %v2466_v21 = vmax.f32 %v2421_v42, %v2455_v18  ;;  %v2453_v33 = vpop.permute.xlu0 %2452  ;;  %v26963_v36 = vld [vmem:[%s39579_s4 + $0xa8] sm:$0xff] }
 0x41c   : > { %v2458_v50 = vsel %vm2456_vm5, %v2453_v33, %v2455_v18  ;;  %v3618_v42 = vand.u32 4294901760, %v26963_v36 }
 0x41d   : > { %v2569_v56 = vand.u32 4294901760, %v33573_v61  ;;  %v2574_v25 = vsub.f32 %v2463_v11, %v2478_v20  ;;  %v2480_v43 = vand.u32 4294901760, %v2466_v21  ;;  %v2465_v29 = vmax.f32 %v2420_v12, %v2458_v50 }
 0x41e   : > { %v3624_v11 = vand.u32 4294901760, %v26965_v41 }
 0x41f   : > { %v33583_v1 = vpack.c.bf16 %v2480_v43, %v2476_v5  ;;  %v2580_v17 = vsub.f32 %v2466_v21, %v2480_v43  ;;  %v2575_v57 = vand.u32 4294901760, %v2574_v25  ;;  %v2482_v62 = vand.u32 4294901760, %v2465_v29  ;;  %v26967_v21 = vld [vmem:[%s39579_s4 + $0xc8] sm:$0xff] }
 0x420   : > { %v2570_v28 = vsub.f32 %v33573_v61, %v2569_v56  ;;  %v3621_v5 = vand.u32 4294901760, %v26964_v37 }
 0x421   : > { %v2581_v26 = vand.u32 4294901760, %v2580_v17  ;;  %29780 = vmatprep.subr.bf16.mxu0 %v33583_v1  ;;  %32293 = vmatprep.subr.bf16.mxu1 %v33583_v1  ;;  %v33596_v32 = vpack.c.bf16 %v2482_v62, %v2478_v20  ;;  %v2586_v19 = vsub.f32 %v2465_v29, %v2482_v62  ;;  %v2576_v10 = vsub.f32 %v2574_v25, %v2575_v57  ;;  %v26966_v20 = vld [vmem:[%s39579_s4 + $0xc0] sm:$0xff] }
 0x422   : > { %v2571_v13 = vand.u32 4294901760, %v2570_v28  ;;  %v33622_v34 = vpack.c.bf16 %v2580_v17, %v33573_v61  ;;  %v33718_v61 = vsub.f32 %v26963_v36, %v3618_v42  ;;  %v33731_v50 = vsub.f32 %v26964_v37, %v3621_v5 }
 0x423   : > { %v2582_v4 = vsub.f32 %v2580_v17, %v2581_v26  ;;  %v2587_v52 = vand.u32 4294901760, %v2586_v19  ;;  %v33602_v12 = vpack.c.bf16 %v2586_v19, %v2574_v25  ;;  %29782 = vmatpush1.bf16.msra.mxu0 %v33596_v32  ;;  %32294 = vmatpush1.bf16.msra.mxu1 %v33596_v32  ;;  %v2577_v22 = vand.u32 4294901760, %v2576_v10 }
 0x424   : > { %29804 = vmatprep.subr.bf16.mxu0 %v33583_v1  ;;  %v33642_v24 = vpack.c.bf16 %v2581_v26, %v2569_v56  ;;  %v33733_v56 = vsub.f32 %v26965_v41, %v3624_v11  ;;  %v3627_v43 = vand.u32 4294901760, %v26966_v20  ;;  %v3630_v29 = vand.u32 4294901760, %v26967_v21  ;;  %v26970_v26 = vld [vmem:[%s39579_s4 + $0xe0] sm:$0xff] }
 0x425   : > { %v2583_v45 = vand.u32 4294901760, %v2582_v4  ;;  %v2588_v47 = vsub.f32 %v2586_v19, %v2587_v52  ;;  %v33607_v59 = vpack.c.bf16 %v2587_v52, %v2575_v57  ;;  %v33746_v17 = vpack.c.bf16 %v3624_v11, %v3621_v5  ;;  %v26971_v19 = vld [vmem:[%s39579_s4 + $0xe8] sm:$0xff]  ;;  %v26976_v5 = vld [vmem:[%s39579_s4 + $0x110] sm:$0xff]  ;;  %v26977_v11 = vld [vmem:[%s39579_s4 + $0x118] sm:$0xff] }
 0x426   : > { %2550 = vmatmul.mubr.f32.vlgmr.msra.gmra.mrb[6].mxu0 %v2549_v40  ;;  %2561 = vmatmul.mubr.f32.vlgmr.msra.gmra.mrb[4].mxu1 %v2560_v48  ;;  %39771 = vst [vmem:[#allocation3_spill] sm:$0xff] %v33642_v24  ;;  %v29888_v55 = vpack.c.bf16 %v33733_v56, %v33731_v50  ;;  %v33753_v57 = vsub.f32 %v26967_v21, %v3630_v29  ;;  %v3633_v62 = vand.u32 4294901760, %v26968_v38  ;;  %v3639_v4 = vand.u32 4294901760, %v26970_v26 }
 0x427   : > { %39770 = vst [vmem:[#allocation2_spill] sm:$0xff] %v33607_v59  ;;  %v33609_v60 = vpack.c.bf16 %v2583_v45, %v2571_v13  ;;  %v2589_v6 = vand.u32 4294901760, %v2588_v47  ;;  %29806 = vmatpush1.bf16.msra.mxu0 %v33596_v32  ;;  %3111 = vmatprep.mubr.f32.mxu0 %v39602_v2  ;;  %v33763_v40 = vpack.c.bf16 %v3630_v29, %v3627_v43  ;;  %v3642_v10 = vand.u32 4294901760, %v26971_v19 }
 0x428   : > { %2651 = vmatprep.mubr.f32.mxu1 %v39602_v2  ;;  %v33768_v39 = vsub.f32 %v26968_v38, %v3633_v62  ;;  %v33779_v45 = vsub.f32 %v26970_v26, %v3639_v4  ;;  %v3657_v21 = vand.u32 4294901760, %v26976_v5 }
 0x429   : > { %29784 = vmatprep.subr.bf16.mxu1 %v33609_v60  ;;  %29808 = vmatprep.subr.bf16.mxu0 %v33609_v60  ;;  %v33618_v8 = vpack.c.bf16 %v2589_v6, %v2577_v22  ;;  %v33781_v47 = vsub.f32 %v26971_v19, %v3642_v10  ;;  %v26973_v22 = vld [vmem:[%s39579_s4 + $0xf8] sm:$0xff]  ;;  %v3645_v6 = vand.u32 4294901760, %v26972_v16  ;;  %v33808_v37 = vpack.c.bf16 %v3642_v10, %v3639_v4 }
 0x42a   : > { %3117 = vmatmul.mubr.f32.vlgmr.msra.gmra.mrb[8].mxu0 %v3116_v3  ;;  %v3745_v4 = vand.u32 4294901760, %v33718_v61 }
 0x42b   : > { %29786 = vmatpush1.bf16.msra.mxu1 %v33618_v8  ;;  %29810 = vmatpush1.bf16.msra.mxu0 %v33618_v8  ;;  %v29897_v3 = vpack.c.bf16 %v33781_v47, %v33779_v45 }
 0x42c   : > { %29788 = vmatprep.subr.bf16.mxu1 %v33622_v34  ;;  %29812 = vmatprep.subr.bf16.mxu0 %v33622_v34 }
 0x42d   : > { %3122 = vmatprep.mubr.f32.mxu0 %v39602_v2 }
 0x42e   : > { %2653 = vmatmul.mubr.f32.vlgmr.msra.gmra.mrb[6].mxu1 %v33548_v49  ;;  %3128 = vmatmul.mubr.f32.gmra.mrb[10].mxu0 %v3127_v23  ;;  %v3648_v23 = vand.u32 4294901760, %v26973_v22 }
 0x42f   : > { %29790 = vmatpush1.bf16.msra.mxu1 %v33602_v12  ;;  %2658 = vmatprep.mubr.f32.mxu1 %v39602_v2 }
 0x430   : > { %29792 = vmatprep.subr.bf16.mxu1 %v33583_v1  ;;  %3218 = vmatprep.mubr.f32.mxu0 %v39602_v2 }
 0x432   : > { %2660 = vmatmul.mubr.f32.gmra.mrb[4].mxu1 %v33550_v54  ;;  %3220 = vmatmul.mubr.f32.vlgmr.msra.gmra.mrb[8].mxu0 %v33562_v14 }
 0x433   : > { %29814 = vmatpush1.bf16.msra.mxu0 %v33602_v12  ;;  %2738 = vmatprep.mubr.f32.mxu1 %v39602_v2 }
 0x434   : > { %29816 = vmatprep.subr.bf16.mxu0 %v33583_v1  ;;  %3225 = vmatprep.mubr.f32.mxu0 %v39602_v2 }
 0x436   : > { %2741 = vmatmul.mubr.f32.vlgmr.msra.gmra.mrb[6].mxu1 %v33557_v30  ;;  %3227 = vmatmul.mubr.f32.gmra.mrb[10].mxu0 %v33575_v51  ;;  %v26962_v30 = vld [vmem:[%s39579_s4 + $0xa0] sm:$0xff] }
 0x437   : > { %29794 = vmatpush1.bf16.msra.mxu1 %v33596_v32  ;;  %2746 = vmatprep.mubr.f32.mxu1 %v39602_v2  ;;  %v3615_v15 = vand.u32 4294901760, %v26962_v30 }
 0x438   : > { %29796 = vmatprep.subr.bf16.mxu1 %v33642_v24  ;;  %3305 = vmatprep.mubr.f32.mxu0 %v39602_v2 }
 0x43a   : > { %2749 = vmatmul.mubr.f32.gmra.mrb[4].mxu1 %v33560_v31  ;;  %3308 = vmatmul.mubr.f32.vlgmr.msra.gmra.mrb[8].mxu0 %v33571_v58  ;;  %v39627_v31 = vmov 0.0|0.0  }
 0x43b   : > { %29818 = vmatpush1.bf16.msra.mxu0 %v33596_v32  ;;  %2823 = vmatprep.mubr.f32.mxu1 %v39602_v2 }
 0x43c   : > { %29820 = vmatprep.subr.bf16.mxu0 %v33642_v24  ;;  %3313 = vmatprep.mubr.f32.mxu0 %v39602_v2 }
 0x43e   : > { %2827 = vmatmul.mubr.f32.vlgmr.msra.gmra.mrb[6].mxu1 %v2547_v63  ;;  %3316 = vmatmul.mubr.f32.gmra.mrb[10].mxu0 %v33589_v35  ;;  %v33751_v35 = vsub.f32 %v26966_v20, %v3627_v43  ;;  %v33827_v43 = vsub.f32 %v26976_v5, %v3657_v21 }
 0x43f   : > { %29798 = vmatpush1.bf16.msra.mxu1 %v33607_v59  ;;  %2832 = vmatprep.mubr.f32.mxu1 %v39602_v2 }
 0x440   : > { %29800 = vmatprep.subr.bf16.mxu1 %v33583_v1  ;;  %3390 = vmatprep.mubr.f32.mxu0 %v39602_v2  ;;  %v29891_v48 = vpack.c.bf16 %v33753_v57, %v33751_v35 }
 0x442   : > { %2836 = vmatmul.mubr.f32.gmra.mrb[4].mxu1 %v2558_v0  ;;  %3394 = vmatmul.mubr.f32.vlgmr.msra.gmra.mrb[8].mxu0 %v3114_v53  ;;  %v33714_v0 = vsub.f32 %v26962_v30, %v3615_v15  ;;  %v26969_v53 = vld [vmem:[%s39579_s4 + $0xd8] sm:$0xff]  ;;  %v26974_v30 = vld [vmem:[%s39579_s4 + $0x100] sm:$0xff] }
 0x443   : > { %29822 = vmatpush1.bf16.msra.mxu0 %v33607_v59  ;;  %2918 = vmatprep.mubr.f32.mxu1 %v39602_v2  ;;  %v3636_v28 = vand.u32 4294901760, %v26969_v53  ;;  %v3651_v36 = vand.u32 4294901760, %v26974_v30 }
 0x444   : > { %29824 = vmatprep.subr.bf16.mxu0 %v33583_v1  ;;  %3399 = vmatprep.mubr.f32.mxu0 %v39602_v2  ;;  %v29885_v25 = vpack.c.bf16 %v33718_v61, %v33714_v0  ;;  %v3738_v19 = vand.u32 4294901760, %v33714_v0 }
 0x445   : > { %v33774_v52 = vpack.c.bf16 %v3636_v28, %v3633_v62  ;;  %v33810_v41 = vsub.f32 %v26974_v30, %v3651_v36 }
 0x446   : > { %2920 = vmatmul.mubr.f32.vlgmr.msra.gmra.mrb[6].mxu1 %v33548_v49  ;;  %3403 = vmatmul.mubr.f32.gmra.mrb[10].mxu0 %v3125_v9  ;;  %v33770_v9 = vsub.f32 %v26969_v53, %v3636_v28  ;;  %v3739_v30 = vsub.f32 %v33714_v0, %v3738_v19 }
 0x447   : > { %29802 = vmatpush1.bf16.msra.mxu1 %v33596_v32  ;;  %2925 = vmatprep.mubr.f32.mxu1 %v39602_v2 }
 0x448   : > { %3485 = vmatprep.mubr.f32.mxu0 %v39602_v2  ;;  %29827 = vmatprep.subr.bf16.mxu1 %v39627_v31  ;;  %v29894_v13 = vpack.c.bf16 %v33770_v9, %v33768_v39 }
 0x44a   : > { %2927 = vmatmul.mubr.f32.gmra.mrb[4].mxu1 %v33550_v54  ;;  %3487 = vmatmul.mubr.f32.vlgmr.msra.gmra.mrb[8].mxu0 %v33562_v14 }
 0x44b   : > { %29826 = vmatpush1.bf16.msra.mxu0 %v33596_v32  ;;  %3001 = vmatprep.mubr.f32.mxu1 %v39602_v2 }
 0x44c   : > { %3492 = vmatprep.mubr.f32.mxu0 %v39602_v2  ;;  %29881 = vmatprep.subr.bf16.mxu0 %v39627_v31 }
 0x44e   : > { %3003 = vmatmul.mubr.f32.vlgmr.msra.gmra.mrb[6].mxu1 %v33548_v49  ;;  %3494 = vmatmul.mubr.f32.gmra.mrb[10].mxu0 %v33575_v51  ;;  %v26961_v49 = vld [vmem:[%s39579_s4 + $0x98] sm:$0xff] }
 0x44f   : > { %3568 = vmatprep.mubr.f32.mxu0 %v39602_v2  ;;  %3008 = vmatprep.mubr.f32.mxu1 %v39602_v2 }
 0x452   : > { %3570 = vmatmul.mubr.f32.vlgmr.msra.gmra.mrb[8].mxu0 %v33562_v14  ;;  %3010 = vmatmul.mubr.f32.gmra.mrb[4].mxu1 %v33550_v54  ;;  %v3609_v54 = vand.u32 4294901760, %v26960_v27  ;;  %v3612_v14 = vand.u32 4294901760, %v26961_v49 }
 0x453   : > { %3575 = vmatprep.mubr.f32.mxu0 %v39602_v2  ;;  %v39612_v2 = vand.u32 4294901760, %v34114_v46 }
 0x454   : > { %v33710_v18 = vsub.f32 %v26960_v27, %v3609_v54  ;;  %v33712_v63 = vsub.f32 %v26961_v49, %v3612_v14  ;;  %v33716_v58 = vpack.c.bf16 %v3612_v14, %v3609_v54  ;;  %v33796_v27 = vsub.f32 %v26972_v16, %v3645_v6  ;;  %v26975_v54 = vld [vmem:[%s39579_s4 + $0x108] sm:$0xff] }
 0x455   : > { %v33798_v49 = vsub.f32 %v26973_v22, %v3648_v23 }
 0x456   : > { %3577 = vmatmul.mubr.f32.gmra.mrb[10].mxu0 %v33575_v51  ;;  %v29882_v33 = vpack.c.bf16 %v33712_v63, %v33710_v18  ;;  %29829 = vmatpush1.bf16.msra.mxu1 %v33716_v58  ;;  %v33729_v51 = vpack.c.bf16 %v3618_v42, %v3615_v15  ;;  %v3654_v15 = vand.u32 4294901760, %v26975_v54  ;;  %v3731_v62 = vand.u32 4294901760, %v33712_v63 }
 0x457   : > { %29830 = vmatprep.subr.bf16.mxu1 %v39627_v31  ;;  %v29900_v14 = vpack.c.bf16 %v33798_v49, %v33796_v27 }
 0x458   : > { %29883 = vmatpush1.bf16.msra.mxu0 %v29882_v33  ;;  %v33812_v42 = vsub.f32 %v26975_v54, %v3654_v15  ;;  %v3660_v33 = vand.u32 4294901760, %v26977_v11  ;;  %v33836_v53 = vpack.c.bf16 %v3654_v15, %v3651_v36  ;;  %v3732_v10 = vsub.f32 %v33712_v63, %v3731_v62 }
 0x459   : > { %29884 = vmatprep.subr.bf16.mxu0 %v39627_v31  ;;  %v3740_v63 = vand.u32 4294901760, %v3739_v30  ;;  %v3766_v36 = vand.u32 4294901760, %v33751_v35  ;;  %v3773_v15 = vand.u32 4294901760, %v33753_v57 }
 0x45a   : > { %29832 = vmatpush1.bf16.msra.mxu1 %v33729_v51  ;;  %v29903_v20 = vpack.c.bf16 %v33812_v42, %v33810_v41  ;;  %v33829_v29 = vsub.f32 %v26977_v11, %v3660_v33  ;;  %v33845_v26 = vpack.c.bf16 %v3660_v33, %v3657_v21  ;;  %v3733_v16 = vand.u32 4294901760, %v3732_v10 }
 0x45b   : > { %29833 = vmatprep.subr.bf16.mxu1 %v39627_v31  ;;  %v33869_v21 = vpack.c.bf16 %v3773_v15, %v3766_v36  ;;  %v3801_v10 = vand.u32 4294901760, %v33781_v47 }
 0x45c   : > { %29886 = vmatpush1.bf16.msra.mxu0 %v29885_v25  ;;  %v33825_v25 = vpack.c.bf16 %v3648_v23, %v3645_v6  ;;  %v29906_v38 = vpack.c.bf16 %v33829_v29, %v33827_v43  ;;  %v3752_v6 = vand.u32 4294901760, %v33731_v50  ;;  %v3759_v23 = vand.u32 4294901760, %v33733_v56 }
 0x45d   : > { %29887 = vmatprep.subr.bf16.mxu0 %v39627_v31 }
 0x45e   : > { %29835 = vmatpush1.bf16.msra.mxu1 %v33746_v17  ;;  %v33861_v54 = vpack.c.bf16 %v3759_v23, %v3752_v6  ;;  %v3753_v5 = vsub.f32 %v33731_v50, %v3752_v6  ;;  %v3760_v11 = vsub.f32 %v33733_v56, %v3759_v23 }
 0x45f   : > { %29836 = vmatprep.subr.bf16.mxu1 %v39627_v31 }
 0x460   : > { %29889 = vmatpush1.bf16.msra.mxu0 %v29888_v55  ;;  %v3724_v55 = vand.u32 4294901760, %v33710_v18  ;;  %v3754_v33 = vand.u32 4294901760, %v3753_v5  ;;  %v3761_v0 = vand.u32 4294901760, %v3760_v11  ;;  %v3822_v5 = vand.u32 4294901760, %v33810_v41 }
 0x461   : > { %29890 = vmatprep.subr.bf16.mxu0 %v39627_v31  ;;  %v3829_v11 = vand.u32 4294901760, %v33812_v42 }
 0x462   : > { %29838 = vmatpush1.bf16.msra.mxu1 %v33763_v40  ;;  %v33842_v28 = vpack.c.bf16 %v3731_v62, %v3724_v55  ;;  %v3767_v62 = vsub.f32 %v33751_v35, %v3766_v36  ;;  %v3802_v36 = vsub.f32 %v33781_v47, %v3801_v10  ;;  %v3836_v47 = vand.u32 4294901760, %v33827_v43 }
 0x463   : > { %29839 = vmatprep.subr.bf16.mxu1 %v39627_v31 }
 0x464   : > { %29892 = vmatpush1.bf16.msra.mxu0 %v29891_v48  ;;  %v3725_v48 = vsub.f32 %v33710_v18, %v3724_v55  ;;  %v3746_v18 = vsub.f32 %v33718_v61, %v3745_v4  ;;  %v3780_v61 = vand.u32 4294901760, %v33768_v39  ;;  %v3787_v55 = vand.u32 4294901760, %v33770_v9 }
 0x465   : > { %29893 = vmatprep.subr.bf16.mxu0 %v39627_v31  ;;  %v3768_v50 = vand.u32 4294901760, %v3767_v62 }
 0x466   : > { %29841 = vmatpush1.bf16.msra.mxu1 %v33774_v52 }
 0x467   : > { %29842 = vmatprep.subr.bf16.mxu1 %v39627_v31 }
 0x468   : > { %29895 = vmatpush1.bf16.msra.mxu0 %v29894_v13  ;;  %v33852_v13 = vpack.c.bf16 %v3745_v4, %v3738_v19  ;;  %v3774_v19 = vsub.f32 %v33753_v57, %v3773_v15  ;;  %v33877_v4 = vpack.c.bf16 %v3787_v55, %v3780_v61  ;;  %v3808_v57 = vand.u32 4294901760, %v33796_v27 }
 0x469   : > { %29896 = vmatprep.subr.bf16.mxu0 %v39627_v31 }
 0x46a   : > { %29844 = vmatpush1.bf16.msra.mxu1 %v33808_v37  ;;  %v3775_v56 = vand.u32 4294901760, %v3774_v19 }
 0x46b   : > { %29845 = vmatprep.subr.bf16.mxu1 %v39627_v31 }
 0x46c   : > { %29898 = vmatpush1.bf16.msra.mxu0 %v29897_v3  ;;  %v3726_v3 = vand.u32 4294901760, %v3725_v48  ;;  %v3794_v48 = vand.u32 4294901760, %v33779_v45  ;;  %v33883_v6 = vpack.c.bf16 %v3775_v56, %v3768_v50  ;;  %v3843_v50 = vand.u32 4294901760, %v33829_v29 }
 0x46d   : > { %29899 = vmatprep.subr.bf16.mxu0 %v39627_v31  ;;  %v3823_v56 = vsub.f32 %v33810_v41, %v3822_v5 }
 0x46e   : > { %29847 = vmatpush1.bf16.msra.mxu1 %v33825_v25  ;;  %v33855_v22 = vpack.c.bf16 %v3733_v16, %v3726_v3  ;;  %v3781_v3 = vsub.f32 %v33768_v39, %v3780_v61  ;;  %v3788_v16 = vsub.f32 %v33770_v9, %v3787_v55  ;;  %v33885_v23 = vpack.c.bf16 %v3801_v10, %v3794_v48 }
 0x46f   : > { %29848 = vmatprep.subr.bf16.mxu1 %v39627_v31  ;;  %v3803_v9 = vand.u32 4294901760, %v3802_v36  ;;  %v33901_v55 = vpack.c.bf16 %v3829_v11, %v3822_v5  ;;  %v33909_v10 = vpack.c.bf16 %v3843_v50, %v3836_v47 }
 0x470   : > { %29901 = vmatpush1.bf16.msra.mxu0 %v29900_v14  ;;  %v3747_v14 = vand.u32 4294901760, %v3746_v18  ;;  %v3782_v30 = vand.u32 4294901760, %v3781_v3  ;;  %v3789_v35 = vand.u32 4294901760, %v3788_v16  ;;  %v3837_v3 = vsub.f32 %v33827_v43, %v3836_v47 }
 0x471   : > { %29902 = vmatprep.subr.bf16.mxu0 %v39627_v31  ;;  %v3844_v16 = vsub.f32 %v33829_v29, %v3843_v50 }
 0x472   : > { %29850 = vmatpush1.bf16.msra.mxu1 %v33836_v53  ;;  %v33887_v18 = vpack.c.bf16 %v3789_v35, %v3782_v30  ;;  %v3838_v35 = vand.u32 4294901760, %v3837_v3 }
 0x473   : > { %29851 = vmatprep.subr.bf16.mxu1 %v39627_v31 }
 0x474   : > { %29904 = vmatpush1.bf16.msra.mxu0 %v29903_v20  ;;  %v33867_v20 = vpack.c.bf16 %v3747_v14, %v3740_v63  ;;  %v3815_v63 = vand.u32 4294901760, %v33798_v49  ;;  %v3795_v14 = vsub.f32 %v33779_v45, %v3794_v48  ;;  %v3830_v48 = vsub.f32 %v33812_v42, %v3829_v11 }
 0x475   : > { %29905 = vmatprep.subr.bf16.mxu0 %v39627_v31 }
 0x476   : > { %29853 = vmatpush1.bf16.msra.mxu1 %v33845_v26  ;;  %v33893_v15 = vpack.c.bf16 %v3815_v63, %v3808_v57  ;;  %v3796_v39 = vand.u32 4294901760, %v3795_v14 }
 0x477   : > { %29854 = vmatprep.subr.bf16.mxu1 %v39627_v31 }
 0x478   : > { %29907 = vmatpush1.bf16.msra.mxu0 %v29906_v38  ;;  %v33871_v38 = vpack.c.bf16 %v3761_v0, %v3754_v33  ;;  %v3809_v33 = vsub.f32 %v33796_v27, %v3808_v57  ;;  %v3816_v0 = vsub.f32 %v33798_v49, %v3815_v63  ;;  %v33899_v61 = vpack.c.bf16 %v3803_v9, %v3796_v39 }
 0x479   : > { %29935 = vmatprep.subr.bf16.mxu0 %v39627_v31  ;;  %v3824_v27 = vand.u32 4294901760, %v3823_v56  ;;  %v3831_v49 = vand.u32 4294901760, %v3830_v48  ;;  %v3845_v57 = vand.u32 4294901760, %v3844_v16 }
 0x47a   : > { %v3810_v62 = vand.u32 4294901760, %v3809_v33  ;;  %v3817_v45 = vand.u32 4294901760, %v3816_v0 }
 0x47b   : > { %v33913_v30 = vpack.c.bf16 %v3831_v49, %v3824_v27  ;;  %v33915_v63 = vpack.c.bf16 %v3845_v57, %v3838_v35 }
 0x47c   : > { %v33903_v19 = vpack.c.bf16 %v3817_v45, %v3810_v62 }
 0x4f9   : > { %v2551_v14 = vpop.f32.mrb[6].mxu0 }
 0x4fa   : > { %v2553_v36 = vpop.f32.mrb[7].mxu0 }
 0x521   : > { %v3004_v39 = vpop.f32.mrb[6].mxu1 }
 0x522   : > { %v33917_v41 = vadd.f32 %v3004_v39, %v2551_v14  ;;  %v3006_v42 = vpop.f32.mrb[7].mxu1 }
 0x523   : > { %v32306_v9 = vadd.f32 %v3006_v42, %v2553_v36 }
 0x525   : > { %v3571_v5 = vpop.f32.mrb[8].mxu0  ;;  %v33919_v11 = vpop.f32.mrb[4].mxu1 }
 0x526   : > { %v33921_v33 = vand.u32 4294901760, %v3571_v5  ;;  %v3573_v43 = vpop.f32.mrb[9].mxu0  ;;  %v33923_v29 = vpop.f32.mrb[5].mxu1 }
 0x527   : > { %v3603_v0 = vsel %vm2469_vm4, %v3573_v43, 0 }
 0x528   : > { %v33927_v62 = vsub.f32 %v3571_v5, %v33921_v33  ;;  %v33929_v45 = vand.u32 4294901760, %v3603_v0 }
 0x529   : > { %v3578_v47 = vpop.f32.mrb[10].mxu0 }
 0x52a   : > { %v39608_v50 = vand.u32 4294901760, %v33927_v62  ;;  %v33933_v56 = vsub.f32 %v3603_v0, %v33929_v45  ;;  %v33935_v48 = vand.u32 4294901760, %v3578_v47  ;;  %v3580_v27 = vpop.f32.mrb[11].mxu0 }
 0x52b   : > { %v3606_v49 = vsel %vm2469_vm4, %v3580_v27, 0 }
 0x52c   : > { %v3692_v3 = vand.u32 4294901760, %v33933_v56  ;;  %v33940_v16 = vsub.f32 %v3578_v47, %v33935_v48  ;;  %3992 = vmatprep.mubr.f32.mxu0 %v33933_v56  ;;  %v33943_v35 = vand.u32 4294901760, %v3606_v49  ;;  %v3699_v57 = vsub.f32 %v33927_v62, %v39608_v50 }
 0x52d   : > { %3995 = vmatmul.mubr.f32.vlgmr.msra.gmra.mrb[12].mxu0 %v33927_v62 }
 0x52e   : > { %v39604_v14 = vand.u32 4294901760, %v33940_v16  ;;  %29937 = vmatpush1.bf16.msra.mxu0 %v33842_v28  ;;  %v3693_v36 = vsub.f32 %v33933_v56, %v3692_v3  ;;  %v33955_v39 = vsub.f32 %v3606_v49, %v33943_v35  ;;  %v3700_v43 = vand.u32 4294901760, %v3699_v57  ;;  %v34138_v56 = vld [vmem:[%s39579_s4 + $0x60] sm:$0xff] }
 0x52f   : > { %29938 = vmatprep.subr.bf16.mxu0 %v39627_v31 }
 0x530   : > { %v3694_v42 = vand.u32 4294901760, %v3693_v36  ;;  %v39607_v5 = vand.u32 4294901760, %v33955_v39  ;;  %4001 = vmatprep.mubr.f32.mxu0 %v33955_v39  ;;  %v3714_v28 = vsub.f32 %v33940_v16, %v39604_v14  ;;  %v34066_v36 = vld [vmem:[%s39579_s4 + $0x30] sm:$0xff]  ;;  %v39611_v14 = vand.u32 4294901760, %v34119_v44 }
 0x531   : > { %4004 = vmatmul.mubr.f32.gmra.mrb[14].mxu0 %v33940_v16 }
 0x532   : > { %3695 = vmatprep.mubr.f32.mxu1 %v3694_v42  ;;  %29940 = vmatpush1.bf16.msra.mxu0 %v33852_v13  ;;  %v3708_v0 = vsub.f32 %v33955_v39, %v39607_v5  ;;  %v3715_v27 = vand.u32 4294901760, %v3714_v28  ;;  %v4345_v13 = vsel %vm2469_vm4, %v32306_v9, 0  ;;  %v34071_v42 = vld [vmem:[%s39579_s4 + $0x38] sm:$0xff]  ;;  %v39619_v5 = vand.u32 4294901760, %v34138_v56 }
 0x533   : > { %4233 = vmatprep.mubr.f32.mxu0 %v33929_v45  ;;  %3701 = vmatmul.mubr.f32.vlgmr.msra.gmra.mrb[8].mxu1 %v3700_v43 }
 0x534   : > { %29941 = vmatprep.subr.bf16.mxu0 %v39627_v31  ;;  %29856 = vmatpush1.bf16.msra.mxu1 %v33855_v22  ;;  %v3709_v47 = vand.u32 4294901760, %v3708_v0  ;;  %v33988_v22 = vand.u32 4294901760, %v4345_v13  ;;  %v39610_v0 = vand.u32 4294901760, %v34066_v36 }
 0x535   : > { %29857 = vmatprep.subr.bf16.mxu1 %v39627_v31 }
 0x536   : > { %29943 = vmatpush1.bf16.msra.mxu0 %v33861_v54  ;;  %3710 = vmatprep.mubr.f32.mxu1 %v3709_v47  ;;  %v33997_v54 = vld [vmem:[%s39579_s4] sm:$0xff]  ;;  %v39609_v47 = vand.u32 4294901760, %v34071_v42 }
 0x537   : > { %3716 = vmatmul.mubr.f32.gmra.mrb[10].mxu1 %v3715_v27  ;;  %29944 = vmatprep.subr.bf16.mxu0 %v39627_v31  ;;  %v34095_v27 = vld [vmem:[%s39579_s4 + $0x48] sm:$0xff] }
 0x538   : > { %29859 = vmatpush1.bf16.msra.mxu1 %v33867_v20  ;;  %3876 = vmatprep.mubr.f32.mxu1 %v33929_v45  ;;  %v34002_v20 = vld [vmem:[%s39579_s4 + $0x8] sm:$0xff] }
 0x539   : > { %29860 = vmatprep.subr.bf16.mxu1 %v39627_v31  ;;  %v39777_v7 = vand.u32 4294901760, %v34002_v20 }
 0x53a   : > { %29946 = vmatpush1.bf16.msra.mxu0 %v33869_v21  ;;  %v34005_v21 = vsub.f32 %v4345_v13, %v33988_v22  ;;  %v34105_v13 = vpack.c.bf16 %v39609_v47, %v39610_v0  ;;  %v34159_v47 = vand.u32 4294901760, %v33917_v41  ;;  %v34170_v0 = vld [vmem:[%s39579_s4 + $0x78] sm:$0xff] }
 0x53b   : > { %29947 = vmatprep.subr.bf16.mxu0 %v39627_v31  ;;  %v34234_v59 = vsub.f32 %v34002_v20, %v39777_v7 }
 0x53c   : > { %29862 = vmatpush1.bf16.msra.mxu1 %v33871_v38  ;;  %v39620_v38 = vand.u32 4294901760, %v33997_v54 }
 0x53d   : > { %29863 = vmatprep.subr.bf16.mxu1 %v39627_v31 }
 0x53e   : > { %29949 = vmatpush1.bf16.msra.mxu0 %v33877_v4  ;;  %v39617_v4 = vand.u32 4294901760, %v34002_v20 }
 0x53f   : > { %29950 = vmatprep.subr.bf16.mxu0 %v39627_v31 }
 0x540   : > { %29865 = vmatpush1.bf16.msra.mxu1 %v33883_v6  ;;  %v34016_v6 = vld [vmem:[%s39579_s4 + $0x10] sm:$0xff] }
 0x541   : > { %29866 = vmatprep.subr.bf16.mxu1 %v39627_v31 }
 0x542   : > { %29952 = vmatpush1.bf16.msra.mxu0 %v33885_v23  ;;  %v34021_v23 = vld [vmem:[%s39579_s4 + $0x18] sm:$0xff] }
 0x543   : > { %29953 = vmatprep.subr.bf16.mxu0 %v39627_v31 }
 0x544   : > { %29868 = vmatpush1.bf16.msra.mxu1 %v33887_v18  ;;  %v39601_v18 = vand.u32 4294901760, %v34005_v21 }
 0x545   : > { %29869 = vmatprep.subr.bf16.mxu1 %v39627_v31 }
 0x546   : > { %29955 = vmatpush1.bf16.msra.mxu0 %v33893_v15  ;;  %v34031_v15 = vpack.c.bf16 %v39617_v4, %v39620_v38  ;;  %v4435_v9 = vsub.f32 %v34005_v21, %v39601_v18  ;;  %v34196_v4 = vld [vmem:[%s39579_s4 + $0x80] sm:$0xff] }
 0x547   : > { %29956 = vmatprep.subr.bf16.mxu0 %v39627_v31  ;;  %v39633_v38 = vand.u32 4294901760, %v34196_v4 }
 0x548   : > { %29871 = vmatpush1.bf16.msra.mxu1 %v33899_v61  ;;  %v39616_v61 = vand.u32 4294901760, %v34016_v6  ;;  %v4436_v43 = vand.u32 4294901760, %v4435_v9 }
 0x549   : > { %29872 = vmatprep.subr.bf16.mxu1 %v39627_v31 }
 0x54a   : > { %29958 = vmatpush1.bf16.msra.mxu0 %v33901_v55  ;;  %v39615_v55 = vand.u32 4294901760, %v34021_v23 }
 0x54b   : > { %29959 = vmatprep.subr.bf16.mxu0 %v39627_v31 }
 0x54c   : > { %29874 = vmatpush1.bf16.msra.mxu1 %v33903_v19  ;;  %v34039_v19 = vld [vmem:[%s39579_s4 + $0x20] sm:$0xff]  ;;  %v34058_v49 = vpack.c.bf16 %v39615_v55, %v39616_v61  ;;  %v34187_v55 = vsub.f32 %v33917_v41, %v34159_v47  ;;  %v34190_v61 = vand.u32 4294901760, %v33919_v11 }
 0x54d   : > { %29875 = vmatprep.subr.bf16.mxu1 %v39627_v31 }
 0x54e   : > { %29961 = vmatpush1.bf16.msra.mxu0 %v33909_v10  ;;  %v34044_v10 = vld [vmem:[%s39579_s4 + $0x28] sm:$0xff] }
 0x54f   : > { %29989 = vmatprep.subr.bf16.mxu0 %v39627_v31  ;;  %v39613_v57 = vand.u32 4294901760, %v34044_v10 }
 0x550   : > { %29877 = vmatpush1.bf16.msra.mxu1 %v33913_v30  ;;  %v39614_v30 = vand.u32 4294901760, %v34039_v19 }
 0x551   : > { %4235 = vmatmul.mubr.f32.vlgmr.msra.gmra.mrb[16].mxu0 %v33921_v33  ;;  %29878 = vmatprep.subr.bf16.mxu1 %v39627_v31 }
 0x552   : > { %4240 = vmatprep.mubr.f32.mxu0 %v33943_v35  ;;  %29991 = vmatpush1.bf16.msra.mxu0 %v34031_v15  ;;  %v34081_v28 = vpack.c.bf16 %v39613_v57, %v39614_v30  ;;  %v39625_v30 = vand.u32 4294901760, %v34170_v0 }
 0x553   : > { %29992 = vmatprep.subr.bf16.mxu0 %v39627_v31 }
 0x554   : > { %29880 = vmatpush1.bf16.msra.mxu1 %v33915_v63  ;;  %v34090_v63 = vld [vmem:[%s39579_s4 + $0x40] sm:$0xff] }
 0x555   : > { %4242 = vmatmul.mubr.f32.gmra.mrb[18].mxu0 %v33935_v48  ;;  %29908 = vmatprep.subr.bf16.mxu1 %v39627_v31  ;;  %v39606_v9 = vand.u32 4294901760, %v34090_v63 }
 0x556   : > { %29994 = vmatpush1.bf16.msra.mxu0 %v34058_v49  ;;  %4437 = vmatprep.mubr.f32.mxu0 %v4436_v43  ;;  %v39605_v43 = vand.u32 4294901760, %v34095_v27 }
 0x557   : > { %3878 = vmatmul.mubr.f32.vlgmr.msra.gmra.mrb[12].mxu1 %v33921_v33  ;;  %29995 = vmatprep.subr.bf16.mxu0 %v39627_v31 }
 0x558   : > { %3883 = vmatprep.mubr.f32.mxu1 %v33943_v35  ;;  %29910 = vmatpush1.bf16.msra.mxu1 %v33716_v58  ;;  %v34130_v18 = vpack.c.bf16 %v39605_v43, %v39606_v9  ;;  %v4348_v43 = vsel %vm2469_vm4, %v33923_v29, 0  ;;  %v34154_v9 = vpack.c.bf16 %v39611_v14, %v39612_v2  ;;  %v34165_v29 = vld [vmem:[%s39579_s4 + $0x70] sm:$0xff] }
 0x559   : > { %29911 = vmatprep.subr.bf16.mxu1 %v39627_v31  ;;  %v34172_v14 = vand.u32 4294901760, %v4348_v43  ;;  %v39626_v57 = vand.u32 4294901760, %v34165_v29 }
 0x55a   : > { %29997 = vmatpush1.bf16.msra.mxu0 %v34081_v28  ;;  %39772 = vst [vmem:[#allocation4_spill] sm:$0xff] %v34130_v18  ;;  %39773 = vst [vmem:[#allocation5_spill] sm:$0xff] %v34154_v9 }
 0x55b   : > { %3885 = vmatmul.mubr.f32.gmra.mrb[14].mxu1 %v33935_v48  ;;  %29998 = vmatprep.subr.bf16.mxu0 %v39627_v31  ;;  %v34213_v41 = vpack.c.bf16 %v39625_v30, %v39626_v57  ;;  %v39776_v30 = vand.u32 4294901760, %v33997_v54 }
 0x55c   : > { %29913 = vmatpush1.bf16.msra.mxu1 %v33729_v51  ;;  %4094 = vmatprep.mubr.f32.mxu1 %v3692_v3  ;;  %v34143_v3 = vld [vmem:[%s39579_s4 + $0x68] sm:$0xff] }
 0x55d   : > { %29914 = vmatprep.subr.bf16.mxu1 %v39627_v31  ;;  %v39618_v50 = vand.u32 4294901760, %v34143_v3  ;;  %39775 = vst [vmem:[#allocation7_spill] sm:$0xff] %v34213_v41  ;;  %v34229_v57 = vsub.f32 %v33997_v54, %v39776_v30  ;;  %v39781_v30 = vmov 0.0|0.0  }
 0x55e   : > { %30000 = vmatpush1.bf16.msra.mxu0 %v34105_v13 }
 0x55f   : > { %30001 = vmatprep.subr.bf16.mxu0 %v39627_v31  ;;  %v34181_v2 = vpack.c.bf16 %v39618_v50, %v39619_v5  ;;  %v34201_v50 = vld [vmem:[%s39579_s4 + $0x88] sm:$0xff]  ;;  %v34204_v5 = vsub.f32 %v4348_v43, %v34172_v14  ;;  %v34220_v43 = vsub.f32 %v33919_v11, %v34190_v61  ;;  %v30044_v54 = vpack.c.bf16 %v34234_v59, %v34229_v57 }
 0x560   : > { %29916 = vmatpush1.bf16.msra.mxu1 %v33746_v17  ;;  %v39778_v11 = vand.u32 4294901760, %v34201_v50 }
 0x561   : > { %29917 = vmatprep.subr.bf16.mxu1 %v39627_v31  ;;  %39774 = vst [vmem:[#allocation6_spill] sm:$0xff] %v34181_v2  ;;  %v39782_v7 = vand.u32 4294901760, %v34204_v5 }
 0x562   : > { %30003 = vmatpush1.bf16.msra.mxu0 %v34130_v18 }
 0x563   : > { %30004 = vmatprep.subr.bf16.mxu0 %v39627_v31  ;;  %v4450_v20 = vsub.f32 %v34204_v5, %v39782_v7  ;;  %v39785_v7 = vand.u32 4294901760, %v34220_v43 }
 0x564   : > { %29919 = vmatpush1.bf16.msra.mxu1 %v33763_v40 }
 0x565   : > { %29920 = vmatprep.subr.bf16.mxu1 %v39627_v31  ;;  %v4456_v18 = vsub.f32 %v34220_v43, %v39785_v7 }
 0x566   : > { %30006 = vmatpush1.bf16.msra.mxu0 %v34154_v9 }
 0x567   : > { %30007 = vmatprep.subr.bf16.mxu0 %v39627_v31 }
 0x568   : > { %29922 = vmatpush1.bf16.msra.mxu1 %v33774_v52 }
 0x569   : > { %29923 = vmatprep.subr.bf16.mxu1 %v39627_v31 }
 0x56a   : > { %30009 = vmatpush1.bf16.msra.mxu0 %v34181_v2  ;;  %v34241_v2 = vpack.c.bf16 %v39778_v11, %v39633_v38  ;;  %v39784_v38 = vand.u32 4294901760, %v34021_v23 }
 0x56b   : > { %30010 = vmatprep.subr.bf16.mxu0 %v39627_v31 }
 0x56c   : > { %29925 = vmatpush1.bf16.msra.mxu1 %v33808_v37  ;;  %39779 = vst [vmem:[#allocation8_spill] sm:$0xff] %v34241_v2 }
 0x56d   : > { %29926 = vmatprep.subr.bf16.mxu1 %v39627_v31  ;;  %v39780_v31 = vand.u32 4294901760, %v34187_v55 }
 0x56e   : > { %30012 = vmatpush1.bf16.msra.mxu0 %v34213_v41  ;;  %v39783_v41 = vand.u32 4294901760, %v34016_v6 }
 0x56f   : > { %v4441_v9 = vsub.f32 %v34187_v55, %v39780_v31  ;;  %30013 = vmatprep.subr.bf16.mxu0 %v39781_v30  ;;  %v34261_v31 = vsub.f32 %v34021_v23, %v39784_v38  ;;  %v39786_v38 = vand.u32 4294901760, %v34039_v19 }
 0x570   : > { %29928 = vmatpush1.bf16.msra.mxu1 %v33825_v25  ;;  %v34256_v11 = vsub.f32 %v34016_v6, %v39783_v41  ;;  %v4451_v6 = vand.u32 4294901760, %v4450_v20  ;;  %v39787_v41 = vand.u32 4294901760, %v34044_v10  ;;  %v39791_v20 = vand.u32 4294901760, %v33955_v39 }
 0x571   : > { %29929 = vmatprep.subr.bf16.mxu1 %v39781_v30  ;;  %v4442_v24 = vand.u32 4294901760, %v4441_v9  ;;  %v34275_v23 = vsub.f32 %v34039_v19, %v39786_v38  ;;  %v39794_v39 = vand.u32 4294901760, %v33940_v16 }
 0x572   : > { %30015 = vmatpush1.bf16.msra.mxu0 %v34241_v2  ;;  %v34280_v9 = vsub.f32 %v34044_v10, %v39787_v41  ;;  %v30047_v7 = vpack.c.bf16 %v34261_v31, %v34256_v11  ;;  %v4457_v2 = vand.u32 4294901760, %v4456_v18  ;;  %v39789_v10 = vand.u32 4294901760, %v34071_v42 }
 0x573   : > { %30043 = vmatprep.subr.bf16.mxu0 %v39781_v30 }
 0x574   : > { %29931 = vmatpush1.bf16.msra.mxu1 %v33836_v53  ;;  %v30050_v18 = vpack.c.bf16 %v34280_v9, %v34275_v23 }
 0x575   : > { %4443 = vmatmul.mubr.f32.vlgmr.msra.gmra.mrb[20].mxu0 %v4442_v24  ;;  %29932 = vmatprep.subr.bf16.mxu1 %v39781_v30  ;;  %v39788_v24 = vand.u32 4294901760, %v34066_v36 }
 0x576   : > { %4452 = vmatprep.mubr.f32.mxu0 %v4451_v6  ;;  %30045 = vmatpush1.bf16.msra.mxu0 %v30044_v54  ;;  %v34295_v54 = vsub.f32 %v34071_v42, %v39789_v10  ;;  %v39793_v6 = vand.u32 4294901760, %v34095_v27 }
 0x577   : > { %30046 = vmatprep.subr.bf16.mxu0 %v39781_v30  ;;  %v34290_v19 = vsub.f32 %v34066_v36, %v39788_v24  ;;  %v39792_v36 = vand.u32 4294901760, %v34090_v63  ;;  %v39800_v24 = vand.u32 4294901760, %v34170_v0 }
 0x578   : > { %29934 = vmatpush1.bf16.msra.mxu1 %v33845_v26  ;;  %v34315_v38 = vsub.f32 %v34095_v27, %v39793_v6  ;;  %v39796_v27 = vand.u32 4294901760, %v34119_v44  ;;  %v4480_v6 = vand.u32 4294901760, %v34256_v11 }
 0x579   : > { %4458 = vmatmul.mubr.f32.gmra.mrb[22].mxu0 %v4457_v2  ;;  %29962 = vmatprep.subr.bf16.mxu1 %v39781_v30  ;;  %v39790_v2 = vand.u32 4294901760, %v33927_v62  ;;  %v34310_v42 = vsub.f32 %v34090_v63, %v39792_v36  ;;  %v30053_v62 = vpack.c.bf16 %v34295_v54, %v34290_v19 }
 0x57a   : > { %30048 = vmatpush1.bf16.msra.mxu0 %v30047_v7  ;;  %4734 = vmatprep.mubr.f32.mxu0 %v34005_v21  ;;  %v34333_v41 = vsub.f32 %v34119_v44, %v39796_v27  ;;  %v4501_v27 = vand.u32 4294901760, %v34280_v9 }
 0x57b   : > { %4098 = vmatmul.mubr.f32.vlgmr.msra.gmra.mrb[16].mxu1 %v39790_v2  ;;  %30049 = vmatprep.subr.bf16.mxu0 %v39781_v30  ;;  %v30056_v16 = vpack.c.bf16 %v34315_v38, %v34310_v42 }
 0x57c   : > { %4105 = vmatprep.mubr.f32.mxu1 %v39791_v20  ;;  %29964 = vmatpush1.bf16.msra.mxu1 %v33716_v58  ;;  %v39795_v58 = vand.u32 4294901760, %v34114_v46  ;;  %v4473_v20 = vand.u32 4294901760, %v34234_v59 }
 0x57d   : > { %29965 = vmatprep.subr.bf16.mxu1 %v39781_v30 }
 0x57e   : > { %30051 = vmatpush1.bf16.msra.mxu0 %v30050_v18  ;;  %v34328_v63 = vsub.f32 %v34114_v46, %v39795_v58  ;;  %v39802_v18 = vand.u32 4294901760, %v34201_v50  ;;  %v4474_v36 = vsub.f32 %v34234_v59, %v4473_v20  ;;  %v4494_v59 = vand.u32 4294901760, %v34275_v23 }
 0x57f   : > { %4109 = vmatmul.mubr.f32.gmra.mrb[18].mxu1 %v39794_v39  ;;  %30052 = vmatprep.subr.bf16.mxu0 %v39781_v30 }
 0x580   : > { %29967 = vmatpush1.bf16.msra.mxu1 %v33729_v51  ;;  %4330 = vmatprep.mubr.f32.mxu1 %v33929_v45  ;;  %v39797_v51 = vand.u32 4294901760, %v34138_v56  ;;  %v39798_v45 = vand.u32 4294901760, %v34143_v3  ;;  %v30059_v7 = vpack.c.bf16 %v34333_v41, %v34328_v63  ;;  %v4475_v58 = vand.u32 4294901760, %v4474_v36 }
 0x581   : > { %29968 = vmatprep.subr.bf16.mxu1 %v39781_v30 }
 0x582   : > { %30054 = vmatpush1.bf16.msra.mxu0 %v30053_v62  ;;  %v34343_v46 = vsub.f32 %v34138_v56, %v39797_v51  ;;  %v34348_v44 = vsub.f32 %v34143_v3, %v39798_v45  ;;  %v34363_v3 = vsub.f32 %v34170_v0, %v39800_v24  ;;  %v34378_v0 = vsub.f32 %v34201_v50, %v39802_v18 }
 0x583   : > { %30055 = vmatprep.subr.bf16.mxu0 %v39781_v30  ;;  %v4487_v62 = vand.u32 4294901760, %v34261_v31  ;;  %v4515_v24 = vand.u32 4294901760, %v34295_v54 }
 0x584   : > { %29970 = vmatpush1.bf16.msra.mxu1 %v33746_v17  ;;  %v39799_v17 = vand.u32 4294901760, %v34165_v29  ;;  %v30062_v10 = vpack.c.bf16 %v34348_v44, %v34343_v46 }
 0x585   : > { %29971 = vmatprep.subr.bf16.mxu1 %v39781_v30 }
 0x586   : > { %30057 = vmatpush1.bf16.msra.mxu0 %v30056_v16  ;;  %v34358_v56 = vsub.f32 %v34165_v29, %v39799_v17  ;;  %v30101_v16 = vpack.c.bf16 %v4487_v62, %v4480_v6  ;;  %v4508_v17 = vand.u32 4294901760, %v34290_v19 }
 0x587   : > { %30058 = vmatprep.subr.bf16.mxu0 %v39781_v30 }
 0x588   : > { %29973 = vmatpush1.bf16.msra.mxu1 %v33763_v40  ;;  %v39801_v40 = vand.u32 4294901760, %v34196_v4  ;;  %v30065_v2 = vpack.c.bf16 %v34363_v3, %v34358_v56  ;;  %v30107_v18 = vpack.c.bf16 %v4515_v24, %v4508_v17 }
 0x589   : > { %29974 = vmatprep.subr.bf16.mxu1 %v39781_v30 }
 0x58a   : > { %30060 = vmatpush1.bf16.msra.mxu0 %v30059_v7  ;;  %v34373_v29 = vsub.f32 %v34196_v4, %v39801_v40  ;;  %v4466_v4 = vand.u32 4294901760, %v34229_v57  ;;  %v30104_v7 = vpack.c.bf16 %v4501_v27, %v4494_v59  ;;  %v4516_v40 = vsub.f32 %v34295_v54, %v4515_v24 }
 0x58b   : > { %30061 = vmatprep.subr.bf16.mxu0 %v39781_v30 }
 0x58c   : > { %29976 = vmatpush1.bf16.msra.mxu1 %v33774_v52  ;;  %v30068_v52 = vpack.c.bf16 %v34378_v0, %v34373_v29  ;;  %v4467_v50 = vsub.f32 %v34229_v57, %v4466_v4  ;;  %v4488_v57 = vsub.f32 %v34261_v31, %v4487_v62 }
 0x58d   : > { %29977 = vmatprep.subr.bf16.mxu1 %v39781_v30 }
 0x58e   : > { %30063 = vmatpush1.bf16.msra.mxu0 %v30062_v10  ;;  %v4468_v39 = vand.u32 4294901760, %v4467_v50  ;;  %v4489_v45 = vand.u32 4294901760, %v4488_v57  ;;  %v4509_v10 = vsub.f32 %v34290_v19, %v4508_v17  ;;  %v4517_v19 = vand.u32 4294901760, %v4516_v40 }
 0x58f   : > { %30064 = vmatprep.subr.bf16.mxu0 %v39781_v30 }
 0x590   : > { %29979 = vmatpush1.bf16.msra.mxu1 %v33808_v37  ;;  %v30098_v37 = vpack.c.bf16 %v4473_v20, %v4466_v4  ;;  %v30017_v31 = vpack.c.bf16 %v4475_v58, %v4468_v39  ;;  %v4536_v20 = vand.u32 4294901760, %v34328_v63  ;;  %v4550_v39 = vand.u32 4294901760, %v34343_v46 }
 0x591   : > { %29980 = vmatprep.subr.bf16.mxu1 %v39781_v30  ;;  %v4557_v58 = vand.u32 4294901760, %v34348_v44 }
 0x592   : > { %30066 = vmatpush1.bf16.msra.mxu0 %v30065_v2  ;;  %v4522_v2 = vand.u32 4294901760, %v34310_v42  ;;  %v4537_v36 = vsub.f32 %v34328_v63, %v4536_v20  ;;  %v26978_v63 = vld [vmem:[%s39578_s3 + $0x20] sm:$0xff] }
 0x593   : > { %30067 = vmatprep.subr.bf16.mxu0 %v39781_v30 }
 0x594   : > { %29982 = vmatpush1.bf16.msra.mxu1 %v33825_v25  ;;  %v4481_v25 = vsub.f32 %v34256_v11, %v4480_v6  ;;  %v4502_v11 = vsub.f32 %v34280_v9, %v4501_v27  ;;  %v4523_v54 = vsub.f32 %v34310_v42, %v4522_v2  ;;  %v4558_v27 = vsub.f32 %v34348_v44, %v4557_v58 }
 0x595   : > { %29983 = vmatprep.subr.bf16.mxu1 %v39781_v30 }
 0x596   : > { %30069 = vmatpush1.bf16.msra.mxu0 %v30068_v52  ;;  %v4482_v51 = vand.u32 4294901760, %v4481_v25  ;;  %v4524_v6 = vand.u32 4294901760, %v4523_v54  ;;  %v4538_v25 = vand.u32 4294901760, %v4537_v36 }
 0x597   : > { %30097 = vmatprep.subr.bf16.mxu0 %v39781_v30 }
 0x598   : > { %29985 = vmatpush1.bf16.msra.mxu1 %v33836_v53  ;;  %v4495_v53 = vsub.f32 %v34275_v23, %v4494_v59  ;;  %v4503_v23 = vand.u32 4294901760, %v4502_v11  ;;  %v30020_v9 = vpack.c.bf16 %v4489_v45, %v4482_v51  ;;  %v4571_v11 = vand.u32 4294901760, %v34363_v3 }
 0x599   : > { %4737 = vmatmul.mubr.f32.vlgmr.msra.gmra.mrb[24].mxu0 %v34187_v55  ;;  %29986 = vmatprep.subr.bf16.mxu1 %v39781_v30 }
 0x59a   : > { %4743 = vmatprep.mubr.f32.mxu0 %v34204_v5  ;;  %30099 = vmatpush1.bf16.msra.mxu0 %v30098_v37  ;;  %v4572_v17 = vsub.f32 %v34363_v3, %v4571_v11 }
 0x59b   : > { %30100 = vmatprep.subr.bf16.mxu0 %v39781_v30 }
 0x59c   : > { %29988 = vmatpush1.bf16.msra.mxu1 %v33845_v26  ;;  %v4496_v26 = vand.u32 4294901760, %v4495_v53  ;;  %v30116_v53 = vpack.c.bf16 %v4557_v58, %v4550_v39  ;;  %v39808_v58 = vld [vmem:[#allocation6_spill] sm:$0xff] }
 0x59d   : > { %4746 = vmatmul.mubr.f32.gmra.mrb[26].mxu0 %v34220_v43  ;;  %30016 = vmatprep.subr.bf16.mxu1 %v39781_v30 }
 0x59e   : > { %30102 = vmatpush1.bf16.msra.mxu0 %v30101_v16  ;;  %4975 = vmatprep.mubr.f32.mxu0 %v33988_v22  ;;  %v30023_v52 = vpack.c.bf16 %v4503_v23, %v4496_v26  ;;  %v4564_v16 = vand.u32 4294901760, %v34358_v56  ;;  %v4578_v23 = vand.u32 4294901760, %v34373_v29 }
 0x59f   : > { %4332 = vmatmul.mubr.f32.vlgmr.msra.gmra.mrb[20].mxu1 %v33921_v33  ;;  %30103 = vmatprep.subr.bf16.mxu0 %v39781_v30  ;;  %v4529_v33 = vand.u32 4294901760, %v34315_v38 }
 0x5a0   : > { %4337 = vmatprep.mubr.f32.mxu1 %v33943_v35  ;;  %30018 = vmatpush1.bf16.msra.mxu1 %v30017_v31  ;;  %v4510_v35 = vand.u32 4294901760, %v4509_v10  ;;  %v5090_v31 = vsel %vm2469_vm4, %v26978_v63, 0  ;;  %v4565_v51 = vsub.f32 %v34358_v56, %v4564_v16  ;;  %v30119_v26 = vpack.c.bf16 %v4571_v11, %v4564_v16  ;;  %v39810_v63 = vld [vmem:[#allocation7_spill] sm:$0xff]  ;;  %v26980_v16 = vld [vmem:[%s39579_s4 + $0x120] sm:$0xff] }
 0x5a1   : > { %30019 = vmatprep.subr.bf16.mxu1 %v39781_v30  ;;  %v4530_v4 = vsub.f32 %v34315_v38, %v4529_v33  ;;  %v30110_v50 = vpack.c.bf16 %v4529_v33, %v4522_v2  ;;  %v34453_v24 = vand.u32 4294901760, %v5090_v31  ;;  %v4585_v56 = vand.u32 4294901760, %v34378_v0 }
 0x5a2   : > { %30105 = vmatpush1.bf16.msra.mxu0 %v30104_v7  ;;  %v30026_v37 = vpack.c.bf16 %v4517_v19, %v4510_v35  ;;  %v4559_v7 = vand.u32 4294901760, %v4558_v27  ;;  %v4566_v10 = vand.u32 4294901760, %v4565_v51  ;;  %v4579_v3 = vsub.f32 %v34373_v29, %v4578_v23 }
 0x5a3   : > { %4339 = vmatmul.mubr.f32.gmra.mrb[22].mxu1 %v33935_v48  ;;  %30106 = vmatprep.subr.bf16.mxu0 %v39781_v30  ;;  %v4543_v48 = vand.u32 4294901760, %v34333_v41  ;;  %v4531_v62 = vand.u32 4294901760, %v4530_v4  ;;  %v4586_v2 = vsub.f32 %v34378_v0, %v4585_v56  ;;  %v34463_v33 = vsub.f32 %v5090_v31, %v34453_v24 }
 0x5a4   : > { %30021 = vmatpush1.bf16.msra.mxu1 %v30020_v9  ;;  %4618 = vmatprep.mubr.f32.mxu1 %v33988_v22  ;;  %v30122_v35 = vpack.c.bf16 %v4585_v56, %v4578_v23  ;;  %v4580_v54 = vand.u32 4294901760, %v4579_v3  ;;  %v39814_v27 = vand.u32 4294901760, %v34220_v43  ;;  %v5661_v11 = vand.u32 4294901760, %v26980_v16 }
 0x5a5   : > { %30022 = vmatprep.subr.bf16.mxu1 %v39781_v30  ;;  %v4544_v42 = vsub.f32 %v34333_v41, %v4543_v48  ;;  %v30113_v38 = vpack.c.bf16 %v4543_v48, %v4536_v20  ;;  %v30029_v57 = vpack.c.bf16 %v4531_v62, %v4524_v6  ;;  %v4551_v41 = vsub.f32 %v34343_v46, %v4550_v39  ;;  %v26979_v46 = vld [vmem:[%s39578_s3 + $0x28] sm:$0xff]  ;;  %v39807_v39 = vld [vmem:[#allocation5_spill] sm:$0xff] }
 0x5a6   : > { %30108 = vmatpush1.bf16.msra.mxu0 %v30107_v18  ;;  %v5093_v9 = vsel %vm2469_vm4, %v26979_v46, 0  ;;  %v4573_v18 = vand.u32 4294901760, %v4572_v17  ;;  %v4587_v4 = vand.u32 4294901760, %v4586_v2  ;;  %v5166_v29 = vand.u32 4294901760, %v34463_v33  ;;  %v26984_v17 = vld [vmem:[%s39579_s4 + $0x140] sm:$0xff]  ;;  %v26987_v2 = vld [vmem:[%s39579_s4 + $0x158] sm:$0xff] }
 0x5a7   : > { %30109 = vmatprep.subr.bf16.mxu0 %v39781_v30  ;;  %v4545_v59 = vand.u32 4294901760, %v4544_v42  ;;  %v4552_v45 = vand.u32 4294901760, %v4551_v41  ;;  %v39803_v6 = vmov 0.0   ;;  %v39804_v42 = vand.u32 4294901760, %v34005_v21  ;;  %v39805_v21 = vld [vmem:[#allocation4_spill] sm:$0xff] }
 0x5a8   : > { %30024 = vmatpush1.bf16.msra.mxu1 %v30023_v52  ;;  %v34465_v52 = vand.u32 4294901760, %v5093_v9  ;;  %v30038_v19 = vpack.c.bf16 %v4573_v18, %v4566_v10  ;;  %v30041_v20 = vpack.c.bf16 %v4587_v4, %v4580_v54  ;;  %v39813_v41 = vand.u32 4294901760, %v34204_v5 }
 0x5a9   : > { %30025 = vmatprep.subr.bf16.mxu1 %v39781_v30  ;;  %v30032_v44 = vpack.c.bf16 %v4545_v59, %v4538_v25  ;;  %v30035_v40 = vpack.c.bf16 %v4559_v7, %v4552_v45  ;;  %v39809_v25 = vld [vmem:[#allocation2_spill] sm:$0xff]  ;;  %v39812_v59 = vand.u32 4294901760, %v34187_v55  ;;  %v34574_v51 = vsub.f32 %v26980_v16, %v5661_v11 }
 0x5aa   : > { %30111 = vmatpush1.bf16.msra.mxu0 %v30110_v50  ;;  %v5176_v0 = vsub.f32 %v5093_v9, %v34465_v52  ;;  %v5167_v50 = vsub.f32 %v34463_v33, %v5166_v29  ;;  %v5673_v23 = vand.u32 4294901760, %v26984_v17  ;;  %v26986_v9 = vld [vmem:[%s39579_s4 + $0x150] sm:$0xff] }
 0x5ab   : > { %30112 = vmatprep.subr.bf16.mxu0 %v39781_v30 }
 0x5ac   : > { %30027 = vmatpush1.bf16.msra.mxu1 %v30026_v37  ;;  %v5177_v48 = vand.u32 4294901760, %v5176_v0  ;;  %v5168_v36 = vand.u32 4294901760, %v5167_v50 }
 0x5ad   : > { %30028 = vmatprep.subr.bf16.mxu1 %v39781_v30 }
 0x5ae   : > { %30114 = vmatpush1.bf16.msra.mxu0 %v30113_v38  ;;  %v5178_v37 = vsub.f32 %v5176_v0, %v5177_v48  ;;  %v39806_v38 = vld [vmem:[#allocation3_spill] sm:$0xff] }
 0x5af   : > { %30115 = vmatprep.subr.bf16.mxu0 %v39781_v30 }
 0x5b0   : > { %30030 = vmatpush1.bf16.msra.mxu1 %v30029_v57  ;;  %v5179_v62 = vand.u32 4294901760, %v5178_v37  ;;  %v39811_v57 = vld [vmem:[#allocation8_spill] sm:$0xff]  ;;  %v34627_v37 = vld [vmem:[%s39579_s4 + $0x160] sm:$0xff] }
 0x5b1   : > { %30031 = vmatprep.subr.bf16.mxu1 %v39781_v30 }
 0x5b2   : > { %30117 = vmatpush1.bf16.msra.mxu0 %v30116_v53  ;;  %v26981_v53 = vld [vmem:[%s39579_s4 + $0x128] sm:$0xff] }
 0x5b3   : > { %30118 = vmatprep.subr.bf16.mxu0 %v39781_v30  ;;  %v5664_v31 = vand.u32 4294901760, %v26981_v53 }
 0x5b4   : > { %30033 = vmatpush1.bf16.msra.mxu1 %v30032_v44 }
 0x5b5   : > { %30034 = vmatprep.subr.bf16.mxu1 %v39781_v30  ;;  %v34576_v46 = vsub.f32 %v26981_v53, %v5664_v31 }
 0x5b6   : > { %30120 = vmatpush1.bf16.msra.mxu0 %v30119_v26  ;;  %v34592_v26 = vpack.c.bf16 %v5664_v31, %v5661_v11 }
 0x5b7   : > { %30121 = vmatprep.subr.bf16.mxu0 %v39781_v30  ;;  %v39656_v44 = vand.u32 4294901760, %v34576_v46 }
 0x5b8   : > { %30036 = vmatpush1.bf16.msra.mxu1 %v30035_v40 }
 0x5b9   : > { %30037 = vmatprep.subr.bf16.mxu1 %v39781_v30  ;;  %v5784_v40 = vsub.f32 %v34576_v46, %v39656_v44 }
 0x5ba   : > { %30123 = vmatpush1.bf16.msra.mxu0 %v30122_v35 }
 0x5bb   : > { %30152 = vmatprep.subr.bf16.mxu0 %v33583_v1  ;;  %v5785_v4 = vand.u32 4294901760, %v5784_v40 }
 0x5bc   : > { %30039 = vmatpush1.bf16.msra.mxu1 %v30038_v19  ;;  %v5679_v19 = vand.u32 4294901760, %v26986_v9 }
 0x5bd   : > { %4977 = vmatmul.mubr.f32.vlgmr.msra.gmra.mrb[28].mxu0 %v34159_v47  ;;  %30040 = vmatprep.subr.bf16.mxu1 %v39781_v30 }
 0x5be   : > { %4982 = vmatprep.mubr.f32.mxu0 %v34172_v14  ;;  %30154 = vmatpush1.bf16.msra.mxu0 %v33596_v32 }
 0x5bf   : > { %30156 = vmatprep.subr.bf16.mxu0 %v33609_v60 }
 0x5c0   : > { %30042 = vmatpush1.bf16.msra.mxu1 %v30041_v20 }
 0x5c1   : > { %4984 = vmatmul.mubr.f32.gmra.mrb[30].mxu0 %v34190_v61  ;;  %30070 = vmatprep.subr.bf16.mxu1 %v39781_v30 }
 0x5c2   : > { %5163 = vmatprep.mubr.f32.mxu0 %v39803_v6 }
 0x5c3   : > { %4620 = vmatmul.mubr.f32.vlgmr.msra.gmra.mrb[24].mxu1 %v34159_v47 }
 0x5c4   : > { %4625 = vmatprep.mubr.f32.mxu1 %v34172_v14  ;;  %30072 = vmatpush1.bf16.msra.mxu1 %v34031_v15 }
 0x5c5   : > { %5169 = vmatmul.mubr.f32.vlgmr.msra.gmra.mrb[32].mxu0 %v5168_v36  ;;  %30073 = vmatprep.subr.bf16.mxu1 %v39781_v30  ;;  %v34622_v36 = vsub.f32 %v26986_v9, %v5679_v19 }
 0x5c6   : > { %30158 = vmatpush1.bf16.msra.mxu0 %v33618_v8  ;;  %5174 = vmatprep.mubr.f32.mxu0 %v39803_v6 }
 0x5c7   : > { %30160 = vmatprep.subr.bf16.mxu0 %v33622_v34  ;;  %4627 = vmatmul.mubr.f32.gmra.mrb[26].mxu1 %v34190_v61 }
 0x5c8   : > { %30075 = vmatpush1.bf16.msra.mxu1 %v34058_v49  ;;  %4836 = vmatprep.mubr.f32.mxu1 %v39804_v42 }
 0x5c9   : > { %5180 = vmatmul.mubr.f32.gmra.mrb[34].mxu0 %v5179_v62  ;;  %30076 = vmatprep.subr.bf16.mxu1 %v39781_v30  ;;  %v34632_v62 = vld [vmem:[%s39579_s4 + $0x168] sm:$0xff] }
 0x5ca   : > { %5270 = vmatprep.mubr.f32.mxu0 %v39803_v6 }
 0x5cc   : > { %30078 = vmatpush1.bf16.msra.mxu1 %v34081_v28 }
 0x5cd   : > { %5272 = vmatmul.mubr.f32.vlgmr.msra.gmra.mrb[32].mxu0 %v34453_v24  ;;  %30079 = vmatprep.subr.bf16.mxu1 %v39781_v30 }
 0x5ce   : > { %30162 = vmatpush1.bf16.msra.mxu0 %v33602_v12  ;;  %5277 = vmatprep.mubr.f32.mxu0 %v39803_v6 }
 0x5cf   : > { %30164 = vmatprep.subr.bf16.mxu0 %v33583_v1 }
 0x5d0   : > { %30081 = vmatpush1.bf16.msra.mxu1 %v34105_v13 }
 0x5d1   : > { %5279 = vmatmul.mubr.f32.gmra.mrb[34].mxu0 %v34465_v52  ;;  %30082 = vmatprep.subr.bf16.mxu1 %v39781_v30 }
 0x5d2   : > { %5357 = vmatprep.mubr.f32.mxu0 %v39803_v6 }
 0x5d4   : > { %30084 = vmatpush1.bf16.msra.mxu1 %v39805_v21 }
 0x5d5   : > { %5360 = vmatmul.mubr.f32.vlgmr.msra.gmra.mrb[32].mxu0 %v34463_v33  ;;  %30085 = vmatprep.subr.bf16.mxu1 %v39781_v30  ;;  %v34611_v33 = vsub.f32 %v26984_v17, %v5673_v23 }
 0x5d6   : > { %30166 = vmatpush1.bf16.msra.mxu0 %v33596_v32  ;;  %5365 = vmatprep.mubr.f32.mxu0 %v39803_v6 }
 0x5d7   : > { %30168 = vmatprep.subr.bf16.mxu0 %v39806_v38  ;;  %v39649_v20 = vand.u32 4294901760, %v34611_v33 }
 0x5d8   : > { %30087 = vmatpush1.bf16.msra.mxu1 %v39807_v39 }
 0x5d9   : > { %5368 = vmatmul.mubr.f32.gmra.mrb[34].mxu0 %v5176_v0  ;;  %30088 = vmatprep.subr.bf16.mxu1 %v39781_v30 }
 0x5da   : > { %5442 = vmatprep.mubr.f32.mxu0 %v39803_v6 }
 0x5dc   : > { %30090 = vmatpush1.bf16.msra.mxu1 %v39808_v58 }
 0x5dd   : > { %5446 = vmatmul.mubr.f32.vlgmr.msra.gmra.mrb[32].mxu0 %v5166_v29  ;;  %30091 = vmatprep.subr.bf16.mxu1 %v39781_v30 }
 0x5de   : > { %30170 = vmatpush1.bf16.msra.mxu0 %v39809_v25  ;;  %5451 = vmatprep.mubr.f32.mxu0 %v39803_v6 }
 0x5df   : > { %30172 = vmatprep.subr.bf16.mxu0 %v33583_v1 }
 0x5e0   : > { %30093 = vmatpush1.bf16.msra.mxu1 %v39810_v63 }
 0x5e1   : > { %5455 = vmatmul.mubr.f32.gmra.mrb[34].mxu0 %v5177_v48  ;;  %30094 = vmatprep.subr.bf16.mxu1 %v39781_v30  ;;  %v5682_v48 = vand.u32 4294901760, %v26987_v2 }
 0x5e2   : > { %5537 = vmatprep.mubr.f32.mxu0 %v39803_v6 }
 0x5e3   : > { %v34686_v9 = vpack.c.bf16 %v5682_v48, %v5679_v19 }
 0x5e4   : > { %30096 = vmatpush1.bf16.msra.mxu1 %v39811_v57 }
 0x5e5   : > { %5539 = vmatmul.mubr.f32.vlgmr.msra.gmra.mrb[32].mxu0 %v34453_v24  ;;  %30124 = vmatprep.subr.bf16.mxu1 %v39781_v30 }
 0x5e6   : > { %30174 = vmatpush1.bf16.msra.mxu0 %v33596_v32  ;;  %5544 = vmatprep.mubr.f32.mxu0 %v39803_v6 }
 0x5e7   : > { %4840 = vmatmul.mubr.f32.vlgmr.msra.gmra.mrb[28].mxu1 %v39812_v59  ;;  %30202 = vmatprep.subr.bf16.mxu0 %v39781_v30  ;;  %v39646_v59 = vand.u32 4294901760, %v34622_v36 }
 0x5e8   : > { %4847 = vmatprep.mubr.f32.mxu1 %v39813_v41  ;;  %30126 = vmatpush1.bf16.msra.mxu1 %v34031_v15  ;;  %v34650_v41 = vsub.f32 %v26987_v2, %v5682_v48 }
 0x5e9   : > { %5546 = vmatmul.mubr.f32.gmra.mrb[34].mxu0 %v34465_v52  ;;  %30127 = vmatprep.subr.bf16.mxu1 %v39781_v30  ;;  %v5819_v31 = vsub.f32 %v34622_v36, %v39646_v59 }
 0x5ea   : > { %5620 = vmatprep.mubr.f32.mxu0 %v39803_v6 }
 0x5eb   : > { %4851 = vmatmul.mubr.f32.gmra.mrb[30].mxu1 %v39814_v27 }
 0x5ec   : > { %30129 = vmatpush1.bf16.msra.mxu1 %v34058_v49  ;;  %5072 = vmatprep.mubr.f32.mxu1 %v33988_v22 }
 0x5ed   : > { %5622 = vmatmul.mubr.f32.vlgmr.msra.gmra.mrb[32].mxu0 %v34453_v24  ;;  %30130 = vmatprep.subr.bf16.mxu1 %v39781_v30  ;;  %v26985_v24 = vld [vmem:[%s39579_s4 + $0x148] sm:$0xff] }
 0x5ee   : > { %5627 = vmatprep.mubr.f32.mxu0 %v39803_v6  ;;  %v5676_v56 = vand.u32 4294901760, %v26985_v24 }
 0x5f0   : > { %30132 = vmatpush1.bf16.msra.mxu1 %v34081_v28 }
 0x5f1   : > { %5629 = vmatmul.mubr.f32.gmra.mrb[34].mxu0 %v34465_v52  ;;  %30133 = vmatprep.subr.bf16.mxu1 %v39781_v30  ;;  %v34613_v52 = vsub.f32 %v26985_v24, %v5676_v56 }
 0x5f3   : > { %v39648_v50 = vand.u32 4294901760, %v34613_v52 }
 0x5f4   : > { %30135 = vmatpush1.bf16.msra.mxu1 %v34105_v13 }
 0x5f5   : > { %30136 = vmatprep.subr.bf16.mxu1 %v39781_v30 }
 0x5f8   : > { %30138 = vmatpush1.bf16.msra.mxu1 %v39805_v21 }
 0x5f9   : > { %30139 = vmatprep.subr.bf16.mxu1 %v39781_v30 }
 0x5fc   : > { %30141 = vmatpush1.bf16.msra.mxu1 %v39807_v39 }
 0x5fd   : > { %30142 = vmatprep.subr.bf16.mxu1 %v39781_v30 }
 0x600   : > { %v34551_v5 = vpop.f32.mrb[12].mxu0  ;;  %30144 = vmatpush1.bf16.msra.mxu1 %v39808_v58  ;;  %v34640_v58 = vpack.c.bf16 %v5676_v56, %v5673_v23  ;;  %v5820_v23 = vand.u32 4294901760, %v5819_v31 }
 0x601   : > { %v3998_v22 = vpop.f32.mrb[13].mxu0  ;;  %30145 = vmatprep.subr.bf16.mxu1 %v39781_v30 }
 0x604   : > { %30147 = vmatpush1.bf16.msra.mxu1 %v39810_v63  ;;  %v34556_v15 = vpop.f32.mrb[14].mxu0  ;;  %v5805_v63 = vsub.f32 %v34611_v33, %v39649_v20 }
 0x605   : > { %v4007_v55 = vpop.f32.mrb[15].mxu0  ;;  %30148 = vmatprep.subr.bf16.mxu1 %v39781_v30 }
 0x606   : > { %v34559_v49 = vpop.f32.mrb[8].mxu1  ;;  %v5685_v55 = vand.u32 4294901760, %v34627_v37  ;;  %v5806_v53 = vand.u32 4294901760, %v5805_v63 }
 0x607   : > { %v3704_v28 = vpop.f32.mrb[9].mxu1 }
 0x608   : > { %30150 = vmatpush1.bf16.msra.mxu1 %v39811_v57  ;;  %v5812_v57 = vsub.f32 %v34613_v52, %v39648_v50  ;;  %v5688_v28 = vand.u32 4294901760, %v34632_v62  ;;  %v34675_v17 = vsub.f32 %v34627_v37, %v5685_v55 }
 0x609   : > { %30175 = vmatprep.subr.bf16.mxu1 %v39781_v30 }
 0x60a   : > { %v34563_v13 = vpop.f32.mrb[10].mxu1  ;;  %v5813_v11 = vand.u32 4294901760, %v5812_v57  ;;  %v34680_v24 = vsub.f32 %v34632_v62, %v5688_v28  ;;  %v39643_v2 = vand.u32 4294901760, %v34675_v17 }
 0x60b   : > { %5074 = vmatmul.mubr.f32.vlgmr.msra.gmra.mrb[32].mxu1 %v34159_v47  ;;  %v3719_v43 = vpop.f32.mrb[11].mxu1  ;;  %v39657_v47 = vand.u32 4294901760, %v34574_v51 }
 0x60c   : > { %5079 = vmatprep.mubr.f32.mxu1 %v34172_v14  ;;  %v26982_v14 = vld [vmem:[%s39579_s4 + $0x130] sm:$0xff]  ;;  %30177 = vmatpush1.bf16.msra.mxu1 %v34592_v26  ;;  %v30209_v40 = vpack.c.bf16 %v5813_v11, %v5806_v53 }
 0x60d   : > { %v5667_v45 = vand.u32 4294901760, %v26982_v14  ;;  %v5777_v10 = vsub.f32 %v34574_v51, %v39657_v47  ;;  %30178 = vmatprep.subr.bf16.mxu1 %v39781_v30  ;;  %v34658_v43 = vld [vmem:[%s39579_s4 + $0x170] sm:$0xff] }
 0x60f   : > { %5081 = vmatmul.mubr.f32.gmra.mrb[34].mxu1 %v34190_v61  ;;  %v26983_v61 = vld [vmem:[%s39579_s4 + $0x138] sm:$0xff]  ;;  %v34603_v18 = vsub.f32 %v26982_v14, %v5667_v45  ;;  %v5778_v54 = vand.u32 4294901760, %v5777_v10  ;;  %v39644_v14 = vand.u32 4294901760, %v34650_v41  ;;  %v5691_v10 = vand.u32 4294901760, %v34658_v43 }
 0x610   : > { %v5670_v7 = vand.u32 4294901760, %v26983_v61 }
 0x611   : > { %v39655_v29 = vand.u32 4294901760, %v34603_v18  ;;  %v30203_v42 = vpack.c.bf16 %v5785_v4, %v5778_v54  ;;  %v5826_v56 = vsub.f32 %v34650_v41, %v39644_v14  ;;  %v39641_v54 = vand.u32 4294901760, %v34680_v24 }
 0x612   : > { %v34605_v3 = vsub.f32 %v26983_v61, %v5670_v7  ;;  %v34615_v35 = vpack.c.bf16 %v5670_v7, %v5667_v45  ;;  %v34670_v61 = vld [vmem:[%s39579_s4 + $0x178] sm:$0xff]  ;;  %v34699_v19 = vsub.f32 %v34658_v43, %v5691_v10 }
 0x613   : > { %v5791_v21 = vsub.f32 %v34603_v18, %v39655_v29  ;;  %30204 = vmatpush1.bf16.msra.mxu0 %v30203_v42  ;;  %v5694_v4 = vand.u32 4294901760, %v34670_v61  ;;  %v5840_v63 = vsub.f32 %v34680_v24, %v39641_v54 }
 0x614   : > { %v39654_v0 = vand.u32 4294901760, %v34605_v3  ;;  %30180 = vmatpush1.bf16.msra.mxu1 %v34615_v35  ;;  %30205 = vmatprep.subr.bf16.mxu0 %v39781_v30  ;;  %v39640_v53 = vand.u32 4294901760, %v34699_v19 }
 0x615   : > { %v5792_v27 = vand.u32 4294901760, %v5791_v21  ;;  %30181 = vmatprep.subr.bf16.mxu1 %v39781_v30  ;;  %v5827_v21 = vand.u32 4294901760, %v5826_v56  ;;  %v34710_v57 = vsub.f32 %v34670_v61, %v5694_v4 }
 0x616   : > { %v5798_v39 = vsub.f32 %v34605_v3, %v39654_v0 }
 0x617   : > { %v39642_v56 = vand.u32 4294901760, %v34710_v57 }
 0x618   : > { %v5799_v22 = vand.u32 4294901760, %v5798_v39  ;;  %30183 = vmatpush1.bf16.msra.mxu1 %v34640_v58  ;;  %v5833_v39 = vsub.f32 %v34675_v17, %v39643_v2  ;;  %v26994_v2 = vld [vmem:[%s39579_s4 + $0x190] sm:$0xff] }
 0x619   : > { %30184 = vmatprep.subr.bf16.mxu1 %v39781_v30 }
 0x61a   : > { %v30206_v7 = vpack.c.bf16 %v5799_v22, %v5792_v27  ;;  %v30212_v22 = vpack.c.bf16 %v5827_v21, %v5820_v23  ;;  %v5847_v23 = vsub.f32 %v34699_v19, %v39640_v53 }
 0x61c   : > { %30207 = vmatpush1.bf16.msra.mxu0 %v30206_v7  ;;  %30186 = vmatpush1.bf16.msra.mxu1 %v34686_v9  ;;  %v5841_v7 = vand.u32 4294901760, %v5840_v63  ;;  %v26992_v63 = vld [vmem:[%s39579_s4 + $0x180] sm:$0xff] }
 0x61d   : > { %30208 = vmatprep.subr.bf16.mxu0 %v39781_v30  ;;  %30187 = vmatprep.subr.bf16.mxu1 %v39781_v30 }
 0x620   : > { %30210 = vmatpush1.bf16.msra.mxu0 %v30209_v40 }
 0x621   : > { %30211 = vmatprep.subr.bf16.mxu0 %v39781_v30 }
 0x624   : > { %v34660_v16 = vpop.f32.mrb[16].mxu0  ;;  %30213 = vmatpush1.bf16.msra.mxu0 %v30212_v22 }
 0x625   : > { %v4238_v45 = vpop.f32.mrb[17].mxu0  ;;  %30214 = vmatprep.subr.bf16.mxu0 %v39781_v30 }
 0x626   : > { %v5834_v45 = vand.u32 4294901760, %v5833_v39  ;;  %v5848_v39 = vand.u32 4294901760, %v5847_v23 }
 0x628   : > { %v34693_v42 = vpop.f32.mrb[18].mxu0 }
 0x629   : > { %v4245_v48 = vpop.f32.mrb[19].mxu0 }
 0x62a   : > { %v3879_v27 = vpop.f32.mrb[12].mxu1  ;;  %v30215_v48 = vpack.c.bf16 %v5841_v7, %v5834_v45 }
 0x62b   : > { %v3880_v11 = vadd.f32 %v3879_v27, %v34559_v49  ;;  %v3881_v31 = vpop.f32.mrb[13].mxu1  ;;  %v5854_v49 = vsub.f32 %v34710_v57, %v39642_v56  ;;  %v26993_v27 = vld [vmem:[%s39579_s4 + $0x188] sm:$0xff] }
 0x62c   : > { %v5700_v54 = vand.u32 4294901760, %v26993_v27  ;;  %30216 = vmatpush1.bf16.msra.mxu0 %v30215_v48  ;;  %v26996_v48 = vld [vmem:[%s39579_s4 + $0x1a0] sm:$0xff] }
 0x62d   : > { %v34722_v21 = vadd.f32 %v34551_v5, %v3880_v11  ;;  %v5855_v5 = vand.u32 4294901760, %v5854_v49  ;;  %v5697_v11 = vand.u32 4294901760, %v26992_v63  ;;  %30217 = vmatprep.subr.bf16.mxu0 %v39781_v30 }
 0x62e   : > { %v3886_v40 = vpop.f32.mrb[14].mxu1  ;;  %v34740_v23 = vsub.f32 %v26993_v27, %v5700_v54 }
 0x62f   : > { %v3887_v31 = vadd.f32 %v3886_v40, %v34563_v13  ;;  %v3888_v53 = vpop.f32.mrb[15].mxu1  ;;  %v34738_v7 = vsub.f32 %v26992_v63, %v5697_v11  ;;  %v30218_v56 = vpack.c.bf16 %v5855_v5, %v5848_v39  ;;  %v26995_v13 = vld [vmem:[%s39579_s4 + $0x198] sm:$0xff] }
 0x630   : > { %v39647_v53 = vand.u32 4294901760, %v34740_v23  ;;  %v5706_v49 = vand.u32 4294901760, %v26995_v13 }
 0x631   : > { %v34736_v45 = vadd.f32 %v34556_v15, %v3887_v31  ;;  %v39645_v22 = vand.u32 4294901760, %v34738_v7  ;;  %v5703_v15 = vand.u32 4294901760, %v26994_v2  ;;  %v26997_v31 = vld [vmem:[%s39579_s4 + $0x1a8] sm:$0xff]  ;;  %30219 = vmatpush1.bf16.msra.mxu0 %v30218_v56 }
 0x632   : > { %v5868_v39 = vsub.f32 %v34740_v23, %v39647_v53  ;;  %v34759_v27 = vsub.f32 %v26995_v13, %v5706_v49  ;;  %30220 = vmatprep.subr.bf16.mxu0 %v39781_v30  ;;  %v5712_v13 = vand.u32 4294901760, %v26997_v31  ;;  %v34774_v53 = vpack.c.bf16 %v5688_v28, %v5685_v55 }
 0x633   : > { %v5861_v40 = vsub.f32 %v34738_v7, %v39645_v22  ;;  %v34757_v63 = vsub.f32 %v26994_v2, %v5703_v15  ;;  %v5709_v2 = vand.u32 4294901760, %v26996_v48 }
 0x634   : > { %v5869_v14 = vand.u32 4294901760, %v5868_v39  ;;  %v39652_v59 = vand.u32 4294901760, %v34759_v27  ;;  %v34784_v20 = vsub.f32 %v26997_v31, %v5712_v13  ;;  %30189 = vmatpush1.bf16.msra.mxu1 %v34774_v53 }
 0x635   : > { %v5862_v5 = vand.u32 4294901760, %v5861_v40  ;;  %v39653_v22 = vand.u32 4294901760, %v34757_v63  ;;  %v34782_v39 = vsub.f32 %v26996_v48, %v5709_v2  ;;  %30190 = vmatprep.subr.bf16.mxu1 %v39781_v30 }
 0x636   : > { %v5882_v40 = vsub.f32 %v34759_v27, %v39652_v59  ;;  %v39650_v28 = vand.u32 4294901760, %v34784_v20 }
 0x637   : > { %v30221_v50 = vpack.c.bf16 %v5869_v14, %v5862_v5  ;;  %v5875_v56 = vsub.f32 %v34757_v63, %v39653_v22  ;;  %v39651_v55 = vand.u32 4294901760, %v34782_v39  ;;  %v34795_v14 = vpack.c.bf16 %v5694_v4, %v5691_v10 }
 0x638   : > { %v5883_v62 = vand.u32 4294901760, %v5882_v40  ;;  %v5896_v31 = vsub.f32 %v34784_v20, %v39650_v28  ;;  %v34806_v10 = vpack.c.bf16 %v5700_v54, %v5697_v11  ;;  %v34811_v5 = vpack.c.bf16 %v5706_v49, %v5703_v15 }
 0x639   : > { %30222 = vmatpush1.bf16.msra.mxu0 %v30221_v50  ;;  %v5876_v37 = vand.u32 4294901760, %v5875_v56  ;;  %v5889_v50 = vsub.f32 %v34782_v39, %v39651_v55  ;;  %30192 = vmatpush1.bf16.msra.mxu1 %v34795_v14 }
 0x63a   : > { %30223 = vmatprep.subr.bf16.mxu0 %v39781_v30  ;;  %30193 = vmatprep.subr.bf16.mxu1 %v39781_v30  ;;  %v5897_v61 = vand.u32 4294901760, %v5896_v31 }
 0x63b   : > { %v30224_v48 = vpack.c.bf16 %v5883_v62, %v5876_v37  ;;  %v5890_v43 = vand.u32 4294901760, %v5889_v50  ;;  %v34815_v37 = vpack.c.bf16 %v5712_v13, %v5709_v2 }
 0x63d   : > { %30225 = vmatpush1.bf16.msra.mxu0 %v30224_v48  ;;  %v30227_v4 = vpack.c.bf16 %v5897_v61, %v5890_v43  ;;  %30195 = vmatpush1.bf16.msra.mxu1 %v34806_v10 }
 0x63e   : > { %30226 = vmatprep.subr.bf16.mxu0 %v39781_v30  ;;  %30196 = vmatprep.subr.bf16.mxu1 %v39781_v30 }
 0x641   : > { %30228 = vmatpush1.bf16.msra.mxu0 %v30227_v4  ;;  %30198 = vmatpush1.bf16.msra.mxu1 %v34811_v5 }
 0x642   : > { %30256 = vmatprep.subr.bf16.mxu0 %v39781_v30  ;;  %30199 = vmatprep.subr.bf16.mxu1 %v39781_v30 }
 0x645   : > { %30201 = vmatpush1.bf16.msra.mxu1 %v34815_v37 }
 0x646   : > { %30229 = vmatprep.subr.bf16.mxu1 %v39781_v30 }
 0x648   : > { %v4444_v56 = vpop.f32.mrb[20].mxu0 }
 0x649   : > { %v4446_v40 = vpop.f32.mrb[21].mxu0 }
 0x64c   : > { %v4459_v54 = vpop.f32.mrb[22].mxu0 }
 0x64d   : > { %v4461_v11 = vpop.f32.mrb[23].mxu0 }
 0x64e   : > { %v4099_v48 = vpop.f32.mrb[16].mxu1 }
 0x64f   : > { %v4100_v15 = vadd.f32 %v4099_v48, %v34722_v21  ;;  %v4101_v49 = vpop.f32.mrb[17].mxu1 }
 0x651   : > { %v4237_v50 = vadd.f32 %v34660_v16, %v4100_v15 }
 0x652   : > { %v4110_v2 = vpop.f32.mrb[18].mxu1 }
 0x653   : > { %v4111_v13 = vadd.f32 %v4110_v2, %v34736_v45  ;;  %v4112_v43 = vpop.f32.mrb[19].mxu1 }
 0x655   : > { %v4244_v61 = vadd.f32 %v34693_v42, %v4111_v13 }
 0x66c   : > { %v4738_v48 = vpop.f32.mrb[24].mxu0 }
 0x66d   : > { %v4740_v42 = vpop.f32.mrb[25].mxu0 }
 0x670   : > { %v4747_v49 = vpop.f32.mrb[26].mxu0 }
 0x671   : > { %v4749_v2 = vpop.f32.mrb[27].mxu0 }
 0x672   : > { %v4333_v13 = vpop.f32.mrb[20].mxu1 }
 0x673   : > { %v4334_v43 = vadd.f32 %v4333_v13, %v4237_v50  ;;  %v4335_v28 = vpop.f32.mrb[21].mxu1 }
 0x675   : > { %v4445_v55 = vadd.f32 %v4444_v56, %v4334_v43 }
 0x676   : > { %v4340_v59 = vpop.f32.mrb[22].mxu1 }
 0x677   : > { %v4341_v22 = vadd.f32 %v4340_v59, %v4244_v61  ;;  %v4342_v0 = vpop.f32.mrb[23].mxu1 }
 0x679   : > { %v4460_v29 = vadd.f32 %v4459_v54, %v4341_v22 }
 0x690   : > { %v4978_v44 = vpop.f32.mrb[28].mxu0 }
 0x691   : > { %v4980_v47 = vpop.f32.mrb[29].mxu0 }
 0x694   : > { %v4985_v11 = vpop.f32.mrb[30].mxu0 }
 0x695   : > { %v4987_v16 = vpop.f32.mrb[31].mxu0 }
 0x696   : > { %v4621_v45 = vpop.f32.mrb[24].mxu1 }
 0x697   : > { %v4622_v21 = vadd.f32 %v4621_v45, %v4445_v55  ;;  %v4623_v42 = vpop.f32.mrb[25].mxu1 }
 0x699   : > { %v4739_v40 = vadd.f32 %v4738_v48, %v4622_v21 }
 0x69a   : > { %v4628_v4 = vpop.f32.mrb[26].mxu1 }
 0x69b   : > { %v4629_v15 = vadd.f32 %v4628_v4, %v4460_v29  ;;  %v4630_v31 = vpop.f32.mrb[27].mxu1 }
 0x69d   : > { %v4748_v2 = vadd.f32 %v4747_v49, %v4629_v15 }
 0x6ba   : > { %v4841_v62 = vpop.f32.mrb[28].mxu1 }
 0x6bb   : > { %v4842_v50 = vadd.f32 %v4841_v62, %v4739_v40  ;;  %v4843_v28 = vpop.f32.mrb[29].mxu1 }
 0x6bd   : > { %v4979_v56 = vadd.f32 %v4978_v44, %v4842_v50 }
 0x6be   : > { %v4852_v13 = vpop.f32.mrb[30].mxu1 }
 0x6bf   : > { %v4853_v59 = vadd.f32 %v4852_v13, %v4748_v2  ;;  %v4854_v0 = vpop.f32.mrb[31].mxu1 }
 0x6c0   : > { %v5623_v22 = vpop.f32.mrb[32].mxu0  ;;  %v39815_v0 = vpack.c.bf16 %v34576_v46, %v34574_v51 }
 0x6c1   : > { %v34841_v54 = vand.u32 4294901760, %v5623_v22  ;;  %v5625_v47 = vpop.f32.mrb[33].mxu0  ;;  %v4986_v61 = vadd.f32 %v4985_v11, %v4853_v59 }
 0x6c2   : > { %v5655_v55 = vsel %vm2469_vm4, %v5625_v47, 0 }
 0x6c3   : > { %v34845_v21 = vsub.f32 %v5623_v22, %v34841_v54  ;;  %v34847_v29 = vand.u32 4294901760, %v5655_v55 }
 0x6c4   : > { %v5630_v31 = vpop.f32.mrb[34].mxu0 }
 0x6c5   : > { %v5750_v62 = vand.u32 4294901760, %v34845_v21  ;;  %v5743_v44 = vsub.f32 %v5655_v55, %v34847_v29  ;;  %v34851_v4 = vand.u32 4294901760, %v5630_v31  ;;  %v5632_v40 = vpop.f32.mrb[35].mxu0  ;;  %5928 = vmatprep.mubr.f32.mxu0 %v34847_v29  ;;  %v39816_v55 = vpack.c.bf16 %v34605_v3, %v34603_v18 }
 0x6c6   : > { %v5658_v16 = vsel %vm2469_vm4, %v5632_v40, 0  ;;  %5930 = vmatmul.mubr.f32.vlgmr.msra.gmra.mrb[36].mxu0 %v34841_v54  ;;  %v39818_v40 = vpack.c.bf16 %v34650_v41, %v34622_v36 }
 0x6c7   : > { %v34857_v11 = vsub.f32 %v5630_v31, %v34851_v4  ;;  %v34859_v45 = vand.u32 4294901760, %v5658_v16  ;;  %30258 = vmatpush1.bf16.msra.mxu0 %v34592_v26  ;;  %v5744_v48 = vand.u32 4294901760, %v5743_v44  ;;  %v5751_v15 = vsub.f32 %v34845_v21, %v5750_v62 }
 0x6c8   : > { %30259 = vmatprep.subr.bf16.mxu0 %v39781_v30  ;;  %v39817_v31 = vpack.c.bf16 %v34613_v52, %v34611_v33 }
 0x6c9   : > { %v5765_v49 = vand.u32 4294901760, %v34857_v11  ;;  %v34868_v43 = vsub.f32 %v5658_v16, %v34859_v45  ;;  %5935 = vmatprep.mubr.f32.mxu0 %v34859_v45  ;;  %v5745_v42 = vsub.f32 %v5743_v44, %v5744_v48  ;;  %v5752_v28 = vand.u32 4294901760, %v5751_v15 }
 0x6ca   : > { %5937 = vmatmul.mubr.f32.gmra.mrb[38].mxu0 %v34851_v4 }
 0x6cb   : > { %v5759_v2 = vand.u32 4294901760, %v34868_v43  ;;  %30261 = vmatpush1.bf16.msra.mxu0 %v34615_v35  ;;  %6146 = vmatprep.mubr.f32.mxu0 %v5744_v48  ;;  %v5746_v50 = vand.u32 4294901760, %v5745_v42  ;;  %v5766_v13 = vsub.f32 %v34857_v11, %v5765_v49  ;;  %v39819_v48 = vpack.c.bf16 %v34680_v24, %v34675_v17 }
 0x6cc   : > { %30262 = vmatprep.subr.bf16.mxu0 %v39781_v30 }
 0x6cd   : > { %5747 = vmatprep.mubr.f32.mxu1 %v5746_v50  ;;  %v5760_v59 = vsub.f32 %v34868_v43, %v5759_v2  ;;  %v5767_v47 = vand.u32 4294901760, %v5766_v13  ;;  %v39821_v13 = vpack.c.bf16 %v34740_v23, %v34738_v7 }
 0x6ce   : > { %5753 = vmatmul.mubr.f32.vlgmr.msra.gmra.mrb[36].mxu1 %v5752_v28  ;;  %v39820_v28 = vpack.c.bf16 %v34710_v57, %v34699_v19 }
 0x6cf   : > { %30231 = vmatpush1.bf16.msra.mxu1 %v39815_v0  ;;  %30264 = vmatpush1.bf16.msra.mxu0 %v34640_v58  ;;  %v5761_v22 = vand.u32 4294901760, %v5760_v59  ;;  %v39823_v59 = vpack.c.bf16 %v34784_v20, %v34782_v39  ;;  %v39825_v0 = vand.u32 4294901760, %v34576_v46  ;;  %v39829_v46 = vand.u32 4294901760, %v34613_v52 }
 0x6d0   : > { %30232 = vmatprep.subr.bf16.mxu1 %v39781_v30  ;;  %30265 = vmatprep.subr.bf16.mxu0 %v39781_v30  ;;  %v39833_v52 = vand.u32 4294901760, %v34680_v24  ;;  %v39836_v24 = vand.u32 4294901760, %v34738_v7  ;;  %v39839_v7 = vand.u32 4294901760, %v34759_v27 }
 0x6d1   : > { %5762 = vmatprep.mubr.f32.mxu1 %v5761_v22 }
 0x6d2   : > { %5768 = vmatmul.mubr.f32.gmra.mrb[38].mxu1 %v5767_v47  ;;  %v39840_v47 = vand.u32 4294901760, %v34782_v39 }
 0x6d3   : > { %30234 = vmatpush1.bf16.msra.mxu1 %v39816_v55  ;;  %30267 = vmatpush1.bf16.msra.mxu0 %v34686_v9 }
 0x6d4   : > { %6044 = vmatprep.mubr.f32.mxu1 %v5743_v44  ;;  %30235 = vmatprep.subr.bf16.mxu1 %v39781_v30 }
 0x6d5   : > { %30268 = vmatprep.subr.bf16.mxu0 %v39781_v30 }
 0x6d7   : > { %30237 = vmatpush1.bf16.msra.mxu1 %v39817_v31  ;;  %30270 = vmatpush1.bf16.msra.mxu0 %v34774_v53 }
 0x6d8   : > { %30238 = vmatprep.subr.bf16.mxu1 %v39781_v30  ;;  %30271 = vmatprep.subr.bf16.mxu0 %v39781_v30 }
 0x6db   : > { %30240 = vmatpush1.bf16.msra.mxu1 %v39818_v40  ;;  %30273 = vmatpush1.bf16.msra.mxu0 %v34795_v14 }
 0x6dc   : > { %30241 = vmatprep.subr.bf16.mxu1 %v39781_v30  ;;  %30274 = vmatprep.subr.bf16.mxu0 %v39781_v30 }
 0x6de   : > { %v5075_v44 = vpop.f32.mrb[32].mxu1 }
 0x6df   : > { %v34901_v16 = vadd.f32 %v5075_v44, %v4979_v56  ;;  %30243 = vmatpush1.bf16.msra.mxu1 %v39819_v48  ;;  %30276 = vmatpush1.bf16.msra.mxu0 %v34806_v10  ;;  %v5077_v15 = vpop.f32.mrb[33].mxu1 }
 0x6e0   : > { %30244 = vmatprep.subr.bf16.mxu1 %v39781_v30  ;;  %30277 = vmatprep.subr.bf16.mxu0 %v39781_v30 }
 0x6e2   : > { %v5082_v42 = vpop.f32.mrb[34].mxu1 }
 0x6e3   : > { %v34909_v50 = vadd.f32 %v5082_v42, %v4986_v61  ;;  %30246 = vmatpush1.bf16.msra.mxu1 %v39820_v28  ;;  %30279 = vmatpush1.bf16.msra.mxu0 %v34811_v5  ;;  %v5084_v56 = vpop.f32.mrb[35].mxu1  ;;  %v39822_v61 = vpack.c.bf16 %v34759_v27, %v34757_v63  ;;  %v27002_v28 = vld [vmem:[%s39579_s4 + $0x1c0] sm:$0xff] }
 0x6e4   : > { %30247 = vmatprep.subr.bf16.mxu1 %v39781_v30  ;;  %30280 = vmatprep.subr.bf16.mxu0 %v39781_v30  ;;  %v27003_v56 = vld [vmem:[%s39579_s4 + $0x1c8] sm:$0xff] }
 0x6e7   : > { %30249 = vmatpush1.bf16.msra.mxu1 %v39821_v13  ;;  %30282 = vmatpush1.bf16.msra.mxu0 %v34815_v37 }
 0x6e8   : > { %30250 = vmatprep.subr.bf16.mxu1 %v39781_v30  ;;  %30310 = vmatprep.subr.bf16.mxu0 %v39781_v30 }
 0x6ea   : > { %6150 = vmatmul.mubr.f32.vlgmr.msra.gmra.mrb[40].mxu0 %v5750_v62  ;;  %v39824_v62 = vand.u32 4294901760, %v34574_v51  ;;  %v39828_v51 = vand.u32 4294901760, %v34611_v33  ;;  %v39832_v33 = vand.u32 4294901760, %v34675_v17  ;;  %v26998_v17 = vld [vmem:[%s39578_s3 + $0x30] sm:$0xff] }
 0x6eb   : > { %30252 = vmatpush1.bf16.msra.mxu1 %v39822_v61  ;;  %6157 = vmatprep.mubr.f32.mxu0 %v5759_v2  ;;  %v27004_v61 = vld [vmem:[%s39579_s4 + $0x1d0] sm:$0xff] }
 0x6ec   : > { %30312 = vmatpush1.bf16.msra.mxu0 %v34592_v26  ;;  %30253 = vmatprep.subr.bf16.mxu1 %v39781_v30  ;;  %v30284_v22 = vpack.c.bf16 %v39825_v0, %v39824_v62  ;;  %v39826_v26 = vand.u32 4294901760, %v34603_v18  ;;  %v39830_v18 = vand.u32 4294901760, %v34622_v36  ;;  %v39834_v36 = vand.u32 4294901760, %v34699_v19  ;;  %v27005_v0 = vld [vmem:[%s39579_s4 + $0x1d8] sm:$0xff] }
 0x6ed   : > { %30313 = vmatprep.subr.bf16.mxu0 %v39781_v30  ;;  %v6402_v19 = vsel %vm2469_vm4, %v26998_v17, 0  ;;  %v6982_v62 = vand.u32 4294901760, %v27003_v56 }
 0x6ee   : > { %6161 = vmatmul.mubr.f32.gmra.mrb[42].mxu0 %v5765_v49  ;;  %v39827_v49 = vand.u32 4294901760, %v34605_v3  ;;  %v39831_v3 = vand.u32 4294901760, %v34650_v41  ;;  %v39835_v41 = vand.u32 4294901760, %v34710_v57  ;;  %v26999_v57 = vld [vmem:[%s39578_s3 + $0x38] sm:$0xff] }
 0x6ef   : > { %30255 = vmatpush1.bf16.msra.mxu1 %v39823_v59  ;;  %6382 = vmatprep.mubr.f32.mxu0 %v34847_v29  ;;  %v6979_v59 = vand.u32 4294901760, %v27002_v28 }
 0x6f0   : > { %30315 = vmatpush1.bf16.msra.mxu0 %v34615_v35  ;;  %30283 = vmatprep.subr.bf16.mxu1 %v39781_v30  ;;  %v30287_v2 = vpack.c.bf16 %v39827_v49, %v39826_v26  ;;  %v30290_v35 = vpack.c.bf16 %v39829_v46, %v39828_v51  ;;  %v27006_v26 = vld [vmem:[%s39579_s4 + $0x1e0] sm:$0xff]  ;;  %v27007_v49 = vld [vmem:[%s39579_s4 + $0x1e8] sm:$0xff]  ;;  %v6988_v46 = vand.u32 4294901760, %v27005_v0 }
 0x6f1   : > { %30316 = vmatprep.subr.bf16.mxu0 %v39781_v30 }
 0x6f2   : > { %6047 = vmatmul.mubr.f32.vlgmr.msra.gmra.mrb[40].mxu1 %v34845_v21 }
 0x6f3   : > { %6053 = vmatprep.mubr.f32.mxu1 %v34868_v43  ;;  %30285 = vmatpush1.bf16.msra.mxu1 %v30284_v22  ;;  %v6985_v22 = vand.u32 4294901760, %v27004_v61 }
 0x6f4   : > { %30318 = vmatpush1.bf16.msra.mxu0 %v34640_v58  ;;  %30286 = vmatprep.subr.bf16.mxu1 %v39781_v30  ;;  %v30293_v58 = vpack.c.bf16 %v39831_v3, %v39830_v18  ;;  %v35072_v18 = vsub.f32 %v27002_v28, %v6979_v59  ;;  %v35074_v3 = vsub.f32 %v27003_v56, %v6982_v62  ;;  %v35137_v28 = vld [vmem:[%s39579_s4 + $0x210] sm:$0xff] }
 0x6f5   : > { %30319 = vmatprep.subr.bf16.mxu0 %v39781_v30 }
 0x6f6   : > { %6056 = vmatmul.mubr.f32.gmra.mrb[42].mxu1 %v34857_v11  ;;  %v6405_v11 = vsel %vm2469_vm4, %v26999_v57, 0  ;;  %v39672_v17 = vand.u32 4294901760, %v35074_v3 }
 0x6f7   : > { %30288 = vmatpush1.bf16.msra.mxu1 %v30287_v2  ;;  %6285 = vmatprep.mubr.f32.mxu1 %v34847_v29  ;;  %v39838_v29 = vand.u32 4294901760, %v34757_v63  ;;  %v6487_v43 = vand.u32 4294901760, %v6405_v11  ;;  %v39841_v63 = vand.u32 4294901760, %v34784_v20 }
 0x6f8   : > { %30321 = vmatpush1.bf16.msra.mxu0 %v34686_v9  ;;  %30289 = vmatprep.subr.bf16.mxu1 %v39781_v30  ;;  %v30296_v9 = vpack.c.bf16 %v39833_v52, %v39832_v33  ;;  %v35079_v33 = vpack.c.bf16 %v6982_v62, %v6979_v59 }
 0x6f9   : > { %30322 = vmatprep.subr.bf16.mxu0 %v39781_v30  ;;  %v30308_v55 = vpack.c.bf16 %v39841_v63, %v39840_v47 }
 0x6fb   : > { %30291 = vmatpush1.bf16.msra.mxu1 %v30290_v35  ;;  %v6991_v35 = vand.u32 4294901760, %v27006_v26 }
 0x6fc   : > { %30324 = vmatpush1.bf16.msra.mxu0 %v34774_v53  ;;  %30292 = vmatprep.subr.bf16.mxu1 %v39781_v30  ;;  %v30299_v53 = vpack.c.bf16 %v39835_v41, %v39834_v36  ;;  %v35087_v36 = vsub.f32 %v27005_v0, %v6988_v46  ;;  %v6994_v41 = vand.u32 4294901760, %v27007_v49  ;;  %v35146_v0 = vld [vmem:[%s39579_s4 + $0x218] sm:$0xff] }
 0x6fd   : > { %30325 = vmatprep.subr.bf16.mxu0 %v39781_v30 }
 0x6fe   : > { %v39670_v57 = vand.u32 4294901760, %v35087_v36  ;;  %v35141_v59 = vpack.c.bf16 %v6994_v41, %v6991_v35 }
 0x6ff   : > { %30294 = vmatpush1.bf16.msra.mxu1 %v30293_v58  ;;  %v35076_v58 = vsub.f32 %v27004_v61, %v6985_v22 }
 0x700   : > { %30327 = vmatpush1.bf16.msra.mxu0 %v34795_v14  ;;  %30295 = vmatprep.subr.bf16.mxu1 %v39781_v30  ;;  %v39837_v14 = vand.u32 4294901760, %v34740_v23  ;;  %v30305_v23 = vpack.c.bf16 %v39839_v7, %v39838_v29  ;;  %v7110_v7 = vsub.f32 %v35074_v3, %v39672_v17  ;;  %v7124_v63 = vsub.f32 %v35087_v36, %v39670_v57 }
 0x701   : > { %30328 = vmatprep.subr.bf16.mxu0 %v39781_v30 }
 0x702   : > { %v30302_v21 = vpack.c.bf16 %v39837_v14, %v39836_v24  ;;  %v39671_v24 = vand.u32 4294901760, %v35076_v58  ;;  %v35092_v14 = vsub.f32 %v27006_v26, %v6991_v35  ;;  %v7009_v35 = vand.u32 4294901760, %v35137_v28 }
 0x703   : > { %30297 = vmatpush1.bf16.msra.mxu1 %v30296_v9 }
 0x704   : > { %30330 = vmatpush1.bf16.msra.mxu0 %v34806_v10  ;;  %30298 = vmatprep.subr.bf16.mxu1 %v39781_v30  ;;  %v6476_v10 = vand.u32 4294901760, %v6402_v19 }
 0x705   : > { %30331 = vmatprep.subr.bf16.mxu0 %v39781_v30 }
 0x707   : > { %30300 = vmatpush1.bf16.msra.mxu1 %v30299_v53  ;;  %v39673_v53 = vand.u32 4294901760, %v35072_v18 }
 0x708   : > { %30333 = vmatpush1.bf16.msra.mxu0 %v34811_v5  ;;  %30301 = vmatprep.subr.bf16.mxu1 %v39781_v30  ;;  %v6477_v5 = vsub.f32 %v6402_v19, %v6476_v10 }
 0x709   : > { %30334 = vmatprep.subr.bf16.mxu0 %v39781_v30  ;;  %v7103_v29 = vsub.f32 %v35072_v18, %v39673_v53 }
 0x70a   : > { %v6478_v27 = vand.u32 4294901760, %v6477_v5 }
 0x70b   : > { %30303 = vmatpush1.bf16.msra.mxu1 %v30302_v21 }
 0x70c   : > { %30336 = vmatpush1.bf16.msra.mxu0 %v34815_v37  ;;  %30304 = vmatprep.subr.bf16.mxu1 %v39781_v30  ;;  %v6488_v37 = vsub.f32 %v6405_v11, %v6487_v43  ;;  %v6479_v31 = vsub.f32 %v6477_v5, %v6478_v27  ;;  %v39669_v11 = vand.u32 4294901760, %v35092_v14 }
 0x70d   : > { %30361 = vmatprep.subr.bf16.mxu0 %v39781_v30 }
 0x70e   : > { %v6489_v40 = vand.u32 4294901760, %v6488_v37  ;;  %v6480_v20 = vand.u32 4294901760, %v6479_v31  ;;  %v7104_v31 = vand.u32 4294901760, %v7103_v29 }
 0x70f   : > { %6384 = vmatmul.mubr.f32.vlgmr.msra.gmra.mrb[44].mxu0 %v34841_v54  ;;  %30306 = vmatpush1.bf16.msra.mxu1 %v30305_v23  ;;  %v7117_v23 = vsub.f32 %v35076_v58, %v39671_v24 }
 0x710   : > { %6389 = vmatprep.mubr.f32.mxu0 %v34859_v45  ;;  %30307 = vmatprep.subr.bf16.mxu1 %v39781_v30  ;;  %v6490_v39 = vsub.f32 %v6488_v37, %v6489_v40 }
 0x712   : > { %v6491_v44 = vand.u32 4294901760, %v6490_v39  ;;  %v7131_v39 = vsub.f32 %v35092_v14, %v39669_v11 }
 0x713   : > { %6391 = vmatmul.mubr.f32.gmra.mrb[46].mxu0 %v34851_v4  ;;  %30309 = vmatpush1.bf16.msra.mxu1 %v30308_v55 }
 0x714   : > { %30338 = vmatprep.subr.bf16.mxu1 %v33583_v1  ;;  %v7132_v61 = vand.u32 4294901760, %v7131_v39 }
 0x716   : > { %6287 = vmatmul.mubr.f32.vlgmr.msra.gmra.mrb[44].mxu1 %v34841_v54  ;;  %v27000_v54 = vld [vmem:[%s39579_s4 + $0x1b0] sm:$0xff] }
 0x717   : > { %6292 = vmatprep.mubr.f32.mxu1 %v34859_v45  ;;  %30340 = vmatpush1.bf16.msra.mxu1 %v33596_v32  ;;  %v6973_v45 = vand.u32 4294901760, %v27000_v54 }
 0x718   : > { %30342 = vmatprep.subr.bf16.mxu1 %v33609_v60 }
 0x719   : > { %v35045_v15 = vsub.f32 %v27000_v54, %v6973_v45 }
 0x71a   : > { %6294 = vmatmul.mubr.f32.gmra.mrb[46].mxu1 %v34851_v4  ;;  %v27001_v4 = vld [vmem:[%s39579_s4 + $0x1b8] sm:$0xff] }
 0x71b   : > { %6475 = vmatprep.mubr.f32.mxu1 %v39803_v6  ;;  %v6976_v48 = vand.u32 4294901760, %v27001_v4  ;;  %v39675_v2 = vand.u32 4294901760, %v35045_v15 }
 0x71d   : > { %v35047_v42 = vsub.f32 %v27001_v4, %v6976_v48  ;;  %v35055_v13 = vpack.c.bf16 %v6976_v48, %v6973_v45  ;;  %v7089_v52 = vsub.f32 %v35045_v15, %v39675_v2  ;;  %v27011_v48 = vld [vmem:[%s39579_s4 + $0x208] sm:$0xff] }
 0x71e   : > { %6481 = vmatmul.mubr.f32.vlgmr.msra.gmra.mrb[48].mxu1 %v6480_v20  ;;  %v7118_v20 = vand.u32 4294901760, %v7117_v23  ;;  %v7012_v23 = vand.u32 4294901760, %v35146_v0 }
 0x71f   : > { %30344 = vmatpush1.bf16.msra.mxu1 %v33618_v8  ;;  %6486 = vmatprep.mubr.f32.mxu1 %v39803_v6  ;;  %v39674_v51 = vand.u32 4294901760, %v35047_v42  ;;  %v7090_v21 = vand.u32 4294901760, %v7089_v52  ;;  %v7006_v52 = vand.u32 4294901760, %v27011_v48 }
 0x720   : > { %30346 = vmatprep.subr.bf16.mxu1 %v33622_v34  ;;  %30363 = vmatpush1.bf16.msra.mxu0 %v35055_v13 }
 0x721   : > { %30364 = vmatprep.subr.bf16.mxu0 %v39781_v30  ;;  %v7096_v9 = vsub.f32 %v35047_v42, %v39674_v51 }
 0x722   : > { %6492 = vmatmul.mubr.f32.gmra.mrb[50].mxu1 %v6491_v44  ;;  %v7125_v44 = vand.u32 4294901760, %v7124_v63  ;;  %v35179_v63 = vsub.f32 %v35137_v28, %v7009_v35 }
 0x723   : > { %6582 = vmatprep.mubr.f32.mxu1 %v39803_v6  ;;  %v7097_v19 = vand.u32 4294901760, %v7096_v9 }
 0x724   : > { %30366 = vmatpush1.bf16.msra.mxu0 %v35079_v33 }
 0x725   : > { %30367 = vmatprep.subr.bf16.mxu0 %v39781_v30  ;;  %v30389_v47 = vpack.c.bf16 %v7097_v19, %v7090_v21 }
 0x726   : > { %6584 = vmatmul.mubr.f32.vlgmr.msra.gmra.mrb[48].mxu1 %v6476_v10 }
 0x727   : > { %30348 = vmatpush1.bf16.msra.mxu1 %v33602_v12  ;;  %6589 = vmatprep.mubr.f32.mxu1 %v39803_v6 }
 0x728   : > { %30350 = vmatprep.subr.bf16.mxu1 %v33583_v1 }
 0x72a   : > { %6591 = vmatmul.mubr.f32.gmra.mrb[50].mxu1 %v6487_v43 }
 0x72b   : > { %6669 = vmatprep.mubr.f32.mxu1 %v39803_v6 }
 0x72e   : > { %6672 = vmatmul.mubr.f32.vlgmr.msra.gmra.mrb[48].mxu1 %v6477_v5  ;;  %v27008_v5 = vld [vmem:[%s39579_s4 + $0x1f0] sm:$0xff] }
 0x72f   : > { %30352 = vmatpush1.bf16.msra.mxu1 %v33596_v32  ;;  %6677 = vmatprep.mubr.f32.mxu1 %v39803_v6  ;;  %v6997_v4 = vand.u32 4294901760, %v27008_v5 }
 0x730   : > { %30354 = vmatprep.subr.bf16.mxu1 %v39806_v38 }
 0x732   : > { %6680 = vmatmul.mubr.f32.gmra.mrb[50].mxu1 %v6488_v37  ;;  %v27010_v37 = vld [vmem:[%s39579_s4 + $0x200] sm:$0xff] }
 0x733   : > { %6754 = vmatprep.mubr.f32.mxu1 %v39803_v6  ;;  %v7003_v62 = vand.u32 4294901760, %v27010_v37 }
 0x735   : > { %v35152_v9 = vsub.f32 %v27010_v37, %v7003_v62  ;;  %v35181_v37 = vpack.c.bf16 %v7006_v52, %v7003_v62 }
 0x736   : > { %6758 = vmatmul.mubr.f32.vlgmr.msra.gmra.mrb[48].mxu1 %v6478_v27  ;;  %v35119_v27 = vpack.c.bf16 %v6988_v46, %v6985_v22  ;;  %v30395_v22 = vpack.c.bf16 %v7125_v44, %v7118_v20  ;;  %v35192_v20 = vsub.f32 %v35146_v0, %v7012_v23 }
 0x737   : > { %30356 = vmatpush1.bf16.msra.mxu1 %v39809_v25  ;;  %6763 = vmatprep.mubr.f32.mxu1 %v39803_v6 }
 0x738   : > { %30358 = vmatprep.subr.bf16.mxu1 %v33583_v1  ;;  %30369 = vmatpush1.bf16.msra.mxu0 %v35119_v27 }
 0x739   : > { %30370 = vmatprep.subr.bf16.mxu0 %v39781_v30 }
 0x73a   : > { %6767 = vmatmul.mubr.f32.gmra.mrb[50].mxu1 %v6489_v40  ;;  %v7111_v40 = vand.u32 4294901760, %v7110_v7 }
 0x73b   : > { %6849 = vmatprep.mubr.f32.mxu1 %v39803_v6 }
 0x73c   : > { %v30392_v56 = vpack.c.bf16 %v7111_v40, %v7104_v31  ;;  %30372 = vmatpush1.bf16.msra.mxu0 %v35141_v59 }
 0x73d   : > { %30373 = vmatprep.subr.bf16.mxu0 %v39781_v30 }
 0x73e   : > { %6851 = vmatmul.mubr.f32.vlgmr.msra.gmra.mrb[48].mxu1 %v6476_v10 }
 0x73f   : > { %30360 = vmatpush1.bf16.msra.mxu1 %v33596_v32  ;;  %6856 = vmatprep.mubr.f32.mxu1 %v39803_v6 }
 0x740   : > { %30388 = vmatprep.subr.bf16.mxu1 %v39781_v30 }
 0x742   : > { %6858 = vmatmul.mubr.f32.gmra.mrb[50].mxu1 %v6487_v43 }
 0x743   : > { %6932 = vmatprep.mubr.f32.mxu1 %v39803_v6 }
 0x746   : > { %6934 = vmatmul.mubr.f32.vlgmr.msra.gmra.mrb[48].mxu1 %v6476_v10  ;;  %v35096_v10 = vsub.f32 %v27007_v49, %v6994_v41  ;;  %v35148_v49 = vsub.f32 %v27008_v5, %v6997_v4  ;;  %v35160_v41 = vld [vmem:[%s39579_s4 + $0x220] sm:$0xff]  ;;  %v35169_v5 = vld [vmem:[%s39579_s4 + $0x228] sm:$0xff] }
 0x747   : > { %6939 = vmatprep.mubr.f32.mxu1 %v39803_v6  ;;  %30390 = vmatpush1.bf16.msra.mxu1 %v30389_v47  ;;  %v35173_v47 = vsub.f32 %v27011_v48, %v7006_v52  ;;  %v7015_v39 = vand.u32 4294901760, %v35160_v41 }
 0x748   : > { %v39668_v55 = vand.u32 4294901760, %v35096_v10  ;;  %30391 = vmatprep.subr.bf16.mxu1 %v39781_v30  ;;  %v39661_v29 = vand.u32 4294901760, %v35148_v49 }
 0x749   : > { %v35206_v62 = vsub.f32 %v35160_v41, %v7015_v39  ;;  %v30416_v41 = vpack.c.bf16 %v35047_v42, %v35045_v15 }
 0x74a   : > { %6941 = vmatmul.mubr.f32.gmra.mrb[50].mxu1 %v6487_v43  ;;  %v27009_v43 = vld [vmem:[%s39579_s4 + $0x1f8] sm:$0xff]  ;;  %v7138_v54 = vsub.f32 %v35096_v10, %v39668_v55  ;;  %v7145_v31 = vsub.f32 %v35148_v49, %v39661_v29 }
 0x74b   : > { %v7000_v45 = vand.u32 4294901760, %v27009_v43  ;;  %30393 = vmatpush1.bf16.msra.mxu1 %v30392_v56 }
 0x74c   : > { %v7139_v26 = vand.u32 4294901760, %v7138_v54  ;;  %30394 = vmatprep.subr.bf16.mxu1 %v39781_v30  ;;  %v39660_v54 = vand.u32 4294901760, %v35173_v47  ;;  %v7146_v48 = vand.u32 4294901760, %v7145_v31 }
 0x74d   : > { %v35150_v46 = vsub.f32 %v27009_v43, %v7000_v45  ;;  %v35154_v21 = vpack.c.bf16 %v7000_v45, %v6997_v4  ;;  %v39658_v43 = vand.u32 4294901760, %v35152_v9  ;;  %v39662_v4 = vand.u32 4294901760, %v35179_v63 }
 0x74e   : > { %v30398_v19 = vpack.c.bf16 %v7139_v26, %v7132_v61  ;;  %v7018_v45 = vand.u32 4294901760, %v35169_v5  ;;  %v39665_v61 = vand.u32 4294901760, %v35192_v20  ;;  %v7166_v26 = vsub.f32 %v35173_v47, %v39660_v54 }
 0x74f   : > { %v39659_v7 = vand.u32 4294901760, %v35150_v46  ;;  %v7159_v44 = vsub.f32 %v35152_v9, %v39658_v43  ;;  %30396 = vmatpush1.bf16.msra.mxu1 %v30395_v22  ;;  %30375 = vmatpush1.bf16.msra.mxu0 %v35154_v21  ;;  %v7173_v31 = vsub.f32 %v35179_v63, %v39662_v4  ;;  %v39663_v54 = vand.u32 4294901760, %v35206_v62 }
 0x750   : > { %30397 = vmatprep.subr.bf16.mxu1 %v39781_v30  ;;  %30376 = vmatprep.subr.bf16.mxu0 %v39781_v30  ;;  %v35214_v22 = vsub.f32 %v35169_v5, %v7018_v45 }
 0x751   : > { %v7152_v40 = vsub.f32 %v35150_v46, %v39659_v7  ;;  %v7160_v52 = vand.u32 4294901760, %v7159_v44  ;;  %v7167_v7 = vand.u32 4294901760, %v7166_v26  ;;  %v7174_v5 = vand.u32 4294901760, %v7173_v31  ;;  %v27016_v26 = vld [vmem:[%s39579_s4 + $0x230] sm:$0xff] }
 0x752   : > { %v39664_v29 = vand.u32 4294901760, %v35214_v22  ;;  %v7021_v31 = vand.u32 4294901760, %v27016_v26 }
 0x753   : > { %v7153_v56 = vand.u32 4294901760, %v7152_v40  ;;  %v7180_v40 = vsub.f32 %v35192_v20, %v39665_v61  ;;  %30399 = vmatpush1.bf16.msra.mxu1 %v30398_v19  ;;  %30378 = vmatpush1.bf16.msra.mxu0 %v35181_v37  ;;  %v30404_v4 = vpack.c.bf16 %v7167_v7, %v7160_v52  ;;  %v7187_v19 = vsub.f32 %v35206_v62, %v39663_v54 }
 0x754   : > { %30400 = vmatprep.subr.bf16.mxu1 %v39781_v30  ;;  %30379 = vmatprep.subr.bf16.mxu0 %v39781_v30  ;;  %v35241_v54 = vsub.f32 %v27016_v26, %v7021_v31 }
 0x755   : > { %v30401_v43 = vpack.c.bf16 %v7153_v56, %v7146_v48  ;;  %v7181_v44 = vand.u32 4294901760, %v7180_v40  ;;  %v7194_v48 = vsub.f32 %v35214_v22, %v39664_v29  ;;  %v7188_v7 = vand.u32 4294901760, %v7187_v19 }
 0x757   : > { %30402 = vmatpush1.bf16.msra.mxu1 %v30401_v43  ;;  %v30407_v56 = vpack.c.bf16 %v7181_v44, %v7174_v5  ;;  %v27017_v43 = vld [vmem:[%s39579_s4 + $0x238] sm:$0xff]  ;;  %v7195_v52 = vand.u32 4294901760, %v7194_v48  ;;  %v39666_v44 = vand.u32 4294901760, %v35241_v54 }
 0x758   : > { %30403 = vmatprep.subr.bf16.mxu1 %v39781_v30  ;;  %v7024_v40 = vand.u32 4294901760, %v27017_v43 }
 0x759   : > { %v30410_v5 = vpack.c.bf16 %v7195_v52, %v7188_v7  ;;  %v35259_v7 = vpack.c.bf16 %v7012_v23, %v7009_v35 }
 0x75a   : > { %v35243_v29 = vsub.f32 %v27017_v43, %v7024_v40  ;;  %v35270_v23 = vpack.c.bf16 %v7024_v40, %v7021_v31 }
 0x75b   : > { %30405 = vmatpush1.bf16.msra.mxu1 %v30404_v4  ;;  %v7201_v4 = vsub.f32 %v35241_v54, %v39666_v44  ;;  %30381 = vmatpush1.bf16.msra.mxu0 %v35259_v7 }
 0x75c   : > { %30406 = vmatprep.subr.bf16.mxu1 %v39781_v30  ;;  %v39667_v61 = vand.u32 4294901760, %v35243_v29  ;;  %30382 = vmatprep.subr.bf16.mxu0 %v39781_v30 }
 0x75d   : > { %v7202_v48 = vand.u32 4294901760, %v7201_v4  ;;  %v35266_v4 = vpack.c.bf16 %v7018_v45, %v7015_v39  ;;  %v30419_v39 = vpack.c.bf16 %v35074_v3, %v35072_v18  ;;  %v30422_v45 = vpack.c.bf16 %v35087_v36, %v35076_v58 }
 0x75e   : > { %v7208_v19 = vsub.f32 %v35243_v29, %v39667_v61 }
 0x75f   : > { %30408 = vmatpush1.bf16.msra.mxu1 %v30407_v56  ;;  %30384 = vmatpush1.bf16.msra.mxu0 %v35266_v4 }
 0x760   : > { %30409 = vmatprep.subr.bf16.mxu1 %v39781_v30  ;;  %v7209_v26 = vand.u32 4294901760, %v7208_v19  ;;  %30385 = vmatprep.subr.bf16.mxu0 %v39781_v30 }
 0x762   : > { %v30413_v52 = vpack.c.bf16 %v7209_v26, %v7202_v48 }
 0x763   : > { %30411 = vmatpush1.bf16.msra.mxu1 %v30410_v5  ;;  %30387 = vmatpush1.bf16.msra.mxu0 %v35270_v23 }
 0x764   : > { %30412 = vmatprep.subr.bf16.mxu1 %v39781_v30  ;;  %30415 = vmatprep.subr.bf16.mxu0 %v39781_v30 }
 0x767   : > { %30414 = vmatpush1.bf16.msra.mxu1 %v30413_v52 }
 0x768   : > { %30442 = vmatprep.subr.bf16.mxu1 %v39781_v30 }
 0x799   : > { %v5931_v43 = vpop.f32.mrb[36].mxu0 }
 0x79a   : > { %v5933_v56 = vpop.f32.mrb[37].mxu0 }
 0x79d   : > { %v5938_v44 = vpop.f32.mrb[38].mxu0 }
 0x79e   : > { %v5940_v5 = vpop.f32.mrb[39].mxu0 }
 0x7a1   : > { %v5754_v28 = vpop.f32.mrb[36].mxu1 }
 0x7a2   : > { %v5932_v0 = vadd.f32 %v5931_v43, %v5754_v28  ;;  %v5756_v35 = vpop.f32.mrb[37].mxu1 }
 0x7a5   : > { %v5769_v19 = vpop.f32.mrb[38].mxu1 }
 0x7a6   : > { %v5939_v48 = vadd.f32 %v5938_v44, %v5769_v19  ;;  %v5771_v26 = vpop.f32.mrb[39].mxu1 }
 0x7bd   : > { %v6151_v44 = vpop.f32.mrb[40].mxu0 }
 0x7be   : > { %v6153_v52 = vpop.f32.mrb[41].mxu0 }
 0x7c1   : > { %v6162_v5 = vpop.f32.mrb[42].mxu0 }
 0x7c2   : > { %v6164_v28 = vpop.f32.mrb[43].mxu0 }
 0x7c5   : > { %v6048_v19 = vpop.f32.mrb[40].mxu1 }
 0x7c6   : > { %v6049_v26 = vadd.f32 %v6048_v19, %v5932_v0  ;;  %v6050_v61 = vpop.f32.mrb[41].mxu1 }
 0x7c8   : > { %v6152_v11 = vadd.f32 %v6151_v44, %v6049_v26 }
 0x7c9   : > { %v6057_v57 = vpop.f32.mrb[42].mxu1 }
 0x7ca   : > { %v6058_v24 = vadd.f32 %v6057_v57, %v5939_v48  ;;  %v6059_v17 = vpop.f32.mrb[43].mxu1 }
 0x7cc   : > { %v6163_v53 = vadd.f32 %v6162_v5, %v6058_v24 }
 0x7e2   : > { %v6385_v51 = vpop.f32.mrb[44].mxu0 }
 0x7e3   : > { %v6387_v2 = vpop.f32.mrb[45].mxu0 }
 0x7e6   : > { %v6392_v56 = vpop.f32.mrb[46].mxu0 }
 0x7e7   : > { %v6394_v52 = vpop.f32.mrb[47].mxu0 }
 0x7e9   : > { %v6288_v43 = vpop.f32.mrb[44].mxu1 }
 0x7ea   : > { %v6289_v28 = vadd.f32 %v6288_v43, %v6152_v11  ;;  %v6290_v40 = vpop.f32.mrb[45].mxu1 }
 0x7ec   : > { %v6386_v31 = vadd.f32 %v6385_v51, %v6289_v28 }
 0x7ed   : > { %v6295_v35 = vpop.f32.mrb[46].mxu1 }
 0x7ee   : > { %v35293_v0 = vadd.f32 %v6386_v31, %v34901_v16  ;;  %v6296_v61 = vadd.f32 %v6295_v35, %v6163_v53  ;;  %v6297_v19 = vpop.f32.mrb[47].mxu1 }
 0x7f0   : > { %v6393_v55 = vadd.f32 %v6392_v56, %v6296_v61 }
 0x7f2   : > { %v35296_v44 = vadd.f32 %v6393_v55, %v34909_v50 }
 0x819   : > { %v6935_v17 = vpop.f32.mrb[48].mxu1 }
 0x81a   : > { %v35298_v24 = vand.u32 4294901760, %v6935_v17  ;;  %v6937_v2 = vpop.f32.mrb[49].mxu1 }
 0x81b   : > { %v6967_v57 = vsel %vm2469_vm4, %v6937_v2, 0 }
 0x81c   : > { %v35302_v11 = vsub.f32 %v6935_v17, %v35298_v24  ;;  %v35304_v51 = vand.u32 4294901760, %v6967_v57 }
 0x81d   : > { %v6942_v48 = vpop.f32.mrb[50].mxu1 }
 0x81e   : > { %v7062_v16 = vand.u32 4294901760, %v35302_v11  ;;  %v7055_v53 = vsub.f32 %v6967_v57, %v35304_v51  ;;  %v35308_v31 = vand.u32 4294901760, %v6942_v48  ;;  %v6944_v50 = vpop.f32.mrb[51].mxu1  ;;  %7240 = vmatprep.mubr.f32.mxu1 %v35304_v51 }
 0x81f   : > { %v6970_v55 = vsel %vm2469_vm4, %v6944_v50, 0  ;;  %7242 = vmatmul.mubr.f32.vlgmr.msra.gmra.mrb[52].mxu1 %v35298_v24  ;;  %v39846_v50 = vpack.c.bf16 %v35214_v22, %v35206_v62 }
 0x820   : > { %v35314_v40 = vsub.f32 %v6942_v48, %v35308_v31  ;;  %v35316_v43 = vand.u32 4294901760, %v6970_v55  ;;  %30444 = vmatpush1.bf16.msra.mxu1 %v35055_v13  ;;  %v7056_v56 = vand.u32 4294901760, %v7055_v53  ;;  %v7063_v5 = vsub.f32 %v35302_v11, %v7062_v16 }
 0x821   : > { %30445 = vmatprep.subr.bf16.mxu1 %v39781_v30 }
 0x822   : > { %v7077_v35 = vand.u32 4294901760, %v35314_v40  ;;  %v7070_v26 = vsub.f32 %v6970_v55, %v35316_v43  ;;  %7247 = vmatprep.mubr.f32.mxu1 %v35316_v43  ;;  %v7057_v52 = vsub.f32 %v7055_v53, %v7056_v56  ;;  %v7064_v19 = vand.u32 4294901760, %v7063_v5 }
 0x823   : > { %7249 = vmatmul.mubr.f32.gmra.mrb[54].mxu1 %v35308_v31  ;;  %v39847_v55 = vpack.c.bf16 %v35243_v29, %v35241_v54 }
 0x824   : > { %v7071_v28 = vand.u32 4294901760, %v7070_v26  ;;  %30447 = vmatpush1.bf16.msra.mxu1 %v35079_v33  ;;  %7458 = vmatprep.mubr.f32.mxu1 %v7056_v56  ;;  %v7058_v61 = vand.u32 4294901760, %v7057_v52  ;;  %v7078_v17 = vsub.f32 %v35314_v40, %v7077_v35  ;;  %v39849_v56 = vand.u32 4294901760, %v35047_v42 }
 0x825   : > { %30448 = vmatprep.subr.bf16.mxu1 %v39781_v30  ;;  %v39853_v42 = vand.u32 4294901760, %v35087_v36  ;;  %v39857_v36 = vand.u32 4294901760, %v35150_v46 }
 0x826   : > { %7059 = vmatprep.mubr.f32.mxu0 %v7058_v61  ;;  %v7072_v2 = vsub.f32 %v7070_v26, %v7071_v28  ;;  %v7079_v48 = vand.u32 4294901760, %v7078_v17 }
 0x827   : > { %7065 = vmatmul.mubr.f32.vlgmr.msra.gmra.mrb[48].mxu0 %v7064_v19 }
 0x828   : > { %30417 = vmatpush1.bf16.msra.mxu0 %v30416_v41  ;;  %30450 = vmatpush1.bf16.msra.mxu1 %v35119_v27  ;;  %v7073_v57 = vand.u32 4294901760, %v7072_v2  ;;  %v39842_v41 = vpack.c.bf16 %v35096_v10, %v35092_v14 }
 0x829   : > { %30418 = vmatprep.subr.bf16.mxu0 %v39781_v30  ;;  %30451 = vmatprep.subr.bf16.mxu1 %v39781_v30 }
 0x82a   : > { %7074 = vmatprep.mubr.f32.mxu0 %v7073_v57 }
 0x82b   : > { %7080 = vmatmul.mubr.f32.gmra.mrb[50].mxu0 %v7079_v48 }
 0x82c   : > { %30420 = vmatpush1.bf16.msra.mxu0 %v30419_v39  ;;  %30453 = vmatpush1.bf16.msra.mxu1 %v35141_v59  ;;  %v39843_v39 = vpack.c.bf16 %v35150_v46, %v35148_v49  ;;  %v39860_v46 = vand.u32 4294901760, %v35179_v63 }
 0x82d   : > { %7356 = vmatprep.mubr.f32.mxu0 %v7055_v53  ;;  %30421 = vmatprep.subr.bf16.mxu0 %v39781_v30  ;;  %v39845_v53 = vpack.c.bf16 %v35192_v20, %v35179_v63  ;;  %v39863_v63 = vand.u32 4294901760, %v35214_v22 }
 0x82e   : > { %30454 = vmatprep.subr.bf16.mxu1 %v39781_v30 }
 0x830   : > { %30423 = vmatpush1.bf16.msra.mxu0 %v30422_v45  ;;  %30456 = vmatpush1.bf16.msra.mxu1 %v35154_v21  ;;  %v39844_v45 = vpack.c.bf16 %v35173_v47, %v35152_v9 }
 0x831   : > { %30424 = vmatprep.subr.bf16.mxu0 %v39781_v30  ;;  %30457 = vmatprep.subr.bf16.mxu1 %v39781_v30 }
 0x834   : > { %30426 = vmatpush1.bf16.msra.mxu0 %v39842_v41  ;;  %30459 = vmatpush1.bf16.msra.mxu1 %v35181_v37 }
 0x835   : > { %30427 = vmatprep.subr.bf16.mxu0 %v39781_v30  ;;  %30460 = vmatprep.subr.bf16.mxu1 %v39781_v30 }
 0x838   : > { %30429 = vmatpush1.bf16.msra.mxu0 %v39843_v39  ;;  %30462 = vmatpush1.bf16.msra.mxu1 %v35259_v7  ;;  %v27022_v39 = vld [vmem:[%s39579_s4 + $0x250] sm:$0xff] }
 0x839   : > { %30430 = vmatprep.subr.bf16.mxu0 %v39781_v30  ;;  %30463 = vmatprep.subr.bf16.mxu1 %v39781_v30 }
 0x83c   : > { %30432 = vmatpush1.bf16.msra.mxu0 %v39844_v45  ;;  %30465 = vmatpush1.bf16.msra.mxu1 %v35266_v4  ;;  %v27023_v45 = vld [vmem:[%s39579_s4 + $0x258] sm:$0xff] }
 0x83d   : > { %30433 = vmatprep.subr.bf16.mxu0 %v39781_v30  ;;  %30466 = vmatprep.subr.bf16.mxu1 %v39781_v30 }
 0x840   : > { %30435 = vmatpush1.bf16.msra.mxu0 %v39845_v53  ;;  %30468 = vmatpush1.bf16.msra.mxu1 %v35270_v23 }
 0x841   : > { %30436 = vmatprep.subr.bf16.mxu0 %v39781_v30  ;;  %30496 = vmatprep.subr.bf16.mxu1 %v39781_v30 }
 0x843   : > { %7462 = vmatmul.mubr.f32.vlgmr.msra.gmra.mrb[56].mxu1 %v7062_v16  ;;  %v39848_v16 = vand.u32 4294901760, %v35045_v15  ;;  %v39852_v15 = vand.u32 4294901760, %v35076_v58  ;;  %v39856_v58 = vand.u32 4294901760, %v35148_v49  ;;  %v27018_v49 = vld [vmem:[%s39578_s3 + $0x40] sm:$0xff] }
 0x844   : > { %30438 = vmatpush1.bf16.msra.mxu0 %v39846_v50  ;;  %7469 = vmatprep.mubr.f32.mxu1 %v7071_v28  ;;  %v39864_v28 = vand.u32 4294901760, %v35241_v54  ;;  %v27024_v50 = vld [vmem:[%s39579_s4 + $0x260] sm:$0xff] }
 0x845   : > { %30498 = vmatpush1.bf16.msra.mxu1 %v35055_v13  ;;  %30439 = vmatprep.subr.bf16.mxu0 %v39781_v30  ;;  %v30470_v5 = vpack.c.bf16 %v39849_v56, %v39848_v16  ;;  %v39850_v13 = vand.u32 4294901760, %v35072_v18  ;;  %v39854_v18 = vand.u32 4294901760, %v35092_v14  ;;  %v39858_v14 = vand.u32 4294901760, %v35152_v9  ;;  %v27025_v56 = vld [vmem:[%s39579_s4 + $0x268] sm:$0xff] }
 0x846   : > { %30499 = vmatprep.subr.bf16.mxu1 %v39781_v30  ;;  %v7714_v9 = vsel %vm2469_vm4, %v27018_v49, 0  ;;  %v8294_v16 = vand.u32 4294901760, %v27023_v45 }
 0x847   : > { %7473 = vmatmul.mubr.f32.gmra.mrb[58].mxu1 %v7077_v35  ;;  %v39851_v35 = vand.u32 4294901760, %v35074_v3  ;;  %v39855_v3 = vand.u32 4294901760, %v35096_v10  ;;  %v39859_v10 = vand.u32 4294901760, %v35173_v47  ;;  %v27019_v47 = vld [vmem:[%s39578_s3 + $0x48] sm:$0xff] }
 0x848   : > { %30441 = vmatpush1.bf16.msra.mxu0 %v39847_v55  ;;  %7694 = vmatprep.mubr.f32.mxu1 %v35304_v51  ;;  %v8291_v55 = vand.u32 4294901760, %v27022_v39 }
 0x849   : > { %30501 = vmatpush1.bf16.msra.mxu1 %v35079_v33  ;;  %30469 = vmatprep.subr.bf16.mxu0 %v39781_v30  ;;  %v30473_v52 = vpack.c.bf16 %v39851_v35, %v39850_v13  ;;  %v30476_v33 = vpack.c.bf16 %v39853_v42, %v39852_v15  ;;  %v27026_v13 = vld [vmem:[%s39579_s4 + $0x270] sm:$0xff]  ;;  %v27027_v35 = vld [vmem:[%s39579_s4 + $0x278] sm:$0xff]  ;;  %v8300_v42 = vand.u32 4294901760, %v27025_v56 }
 0x84a   : > { %30502 = vmatprep.subr.bf16.mxu1 %v39781_v30 }
 0x84b   : > { %7359 = vmatmul.mubr.f32.vlgmr.msra.gmra.mrb[52].mxu0 %v35302_v11 }
 0x84c   : > { %7365 = vmatprep.mubr.f32.mxu0 %v7070_v26  ;;  %30471 = vmatpush1.bf16.msra.mxu0 %v30470_v5  ;;  %v8297_v5 = vand.u32 4294901760, %v27024_v50 }
 0x84d   : > { %30504 = vmatpush1.bf16.msra.mxu1 %v35119_v27  ;;  %30472 = vmatprep.subr.bf16.mxu0 %v39781_v30  ;;  %v30479_v27 = vpack.c.bf16 %v39855_v3, %v39854_v18  ;;  %v35516_v18 = vsub.f32 %v27022_v39, %v8291_v55  ;;  %v35518_v3 = vsub.f32 %v27023_v45, %v8294_v16  ;;  %v35581_v39 = vld [vmem:[%s39579_s4 + $0x2a0] sm:$0xff] }
 0x84e   : > { %30505 = vmatprep.subr.bf16.mxu1 %v39781_v30 }
 0x84f   : > { %7368 = vmatmul.mubr.f32.gmra.mrb[54].mxu0 %v35314_v40  ;;  %v7717_v40 = vsel %vm2469_vm4, %v27019_v47, 0  ;;  %v39690_v49 = vand.u32 4294901760, %v35518_v3 }
 0x850   : > { %30474 = vmatpush1.bf16.msra.mxu0 %v30473_v52  ;;  %7597 = vmatprep.mubr.f32.mxu0 %v35304_v51  ;;  %v39862_v51 = vand.u32 4294901760, %v35206_v62  ;;  %v7799_v26 = vand.u32 4294901760, %v7717_v40  ;;  %v39865_v62 = vand.u32 4294901760, %v35243_v29 }
 0x851   : > { %30507 = vmatpush1.bf16.msra.mxu1 %v35141_v59  ;;  %30475 = vmatprep.subr.bf16.mxu0 %v39781_v30  ;;  %v30482_v59 = vpack.c.bf16 %v39857_v36, %v39856_v58  ;;  %v35523_v58 = vpack.c.bf16 %v8294_v16, %v8291_v55 }
 0x852   : > { %30508 = vmatprep.subr.bf16.mxu1 %v39781_v30  ;;  %v30494_v61 = vpack.c.bf16 %v39865_v62, %v39864_v28 }
 0x854   : > { %30477 = vmatpush1.bf16.msra.mxu0 %v30476_v33  ;;  %v8303_v33 = vand.u32 4294901760, %v27026_v13 }
 0x855   : > { %30510 = vmatpush1.bf16.msra.mxu1 %v35154_v21  ;;  %30478 = vmatprep.subr.bf16.mxu0 %v39781_v30  ;;  %v30485_v21 = vpack.c.bf16 %v39859_v10, %v39858_v14  ;;  %v35531_v14 = vsub.f32 %v27025_v56, %v8300_v42  ;;  %v8306_v10 = vand.u32 4294901760, %v27027_v35  ;;  %v35590_v56 = vld [vmem:[%s39579_s4 + $0x2a8] sm:$0xff] }
 0x856   : > { %30511 = vmatprep.subr.bf16.mxu1 %v39781_v30 }
 0x857   : > { %v39688_v47 = vand.u32 4294901760, %v35531_v14  ;;  %v35585_v55 = vpack.c.bf16 %v8306_v10, %v8303_v33 }
 0x858   : > { %30480 = vmatpush1.bf16.msra.mxu0 %v30479_v27  ;;  %v35520_v27 = vsub.f32 %v27024_v50, %v8297_v5 }
 0x859   : > { %30513 = vmatpush1.bf16.msra.mxu1 %v35181_v37  ;;  %30481 = vmatprep.subr.bf16.mxu0 %v39781_v30  ;;  %v39861_v37 = vand.u32 4294901760, %v35192_v20  ;;  %v30491_v20 = vpack.c.bf16 %v39863_v63, %v39862_v51  ;;  %v8422_v63 = vsub.f32 %v35518_v3, %v39690_v49  ;;  %v8436_v62 = vsub.f32 %v35531_v14, %v39688_v47 }
 0x85a   : > { %30514 = vmatprep.subr.bf16.mxu1 %v39781_v30 }
 0x85b   : > { %v30488_v11 = vpack.c.bf16 %v39861_v37, %v39860_v46  ;;  %v39689_v46 = vand.u32 4294901760, %v35520_v27  ;;  %v35536_v37 = vsub.f32 %v27026_v13, %v8303_v33  ;;  %v8321_v33 = vand.u32 4294901760, %v35581_v39 }
 0x85c   : > { %30483 = vmatpush1.bf16.msra.mxu0 %v30482_v59 }
 0x85d   : > { %30516 = vmatpush1.bf16.msra.mxu1 %v35259_v7  ;;  %30484 = vmatprep.subr.bf16.mxu0 %v39781_v30  ;;  %v7788_v7 = vand.u32 4294901760, %v7714_v9 }
 0x85e   : > { %30517 = vmatprep.subr.bf16.mxu1 %v39781_v30 }
 0x860   : > { %30486 = vmatpush1.bf16.msra.mxu0 %v30485_v21  ;;  %v39691_v21 = vand.u32 4294901760, %v35516_v18 }
 0x861   : > { %30519 = vmatpush1.bf16.msra.mxu1 %v35266_v4  ;;  %30487 = vmatprep.subr.bf16.mxu0 %v39781_v30  ;;  %v7789_v4 = vsub.f32 %v7714_v9, %v7788_v7 }
 0x862   : > { %30520 = vmatprep.subr.bf16.mxu1 %v39781_v30  ;;  %v8415_v51 = vsub.f32 %v35516_v18, %v39691_v21 }
 0x863   : > { %v7790_v22 = vand.u32 4294901760, %v7789_v4 }
 0x864   : > { %30489 = vmatpush1.bf16.msra.mxu0 %v30488_v11 }
 0x865   : > { %30522 = vmatpush1.bf16.msra.mxu1 %v35270_v23  ;;  %30490 = vmatprep.subr.bf16.mxu0 %v39781_v30  ;;  %v7800_v23 = vsub.f32 %v7717_v40, %v7799_v26  ;;  %v7791_v19 = vsub.f32 %v7789_v4, %v7790_v22  ;;  %v39687_v40 = vand.u32 4294901760, %v35536_v37 }
 0x866   : > { %30547 = vmatprep.subr.bf16.mxu1 %v39781_v30 }
 0x867   : > { %v7801_v17 = vand.u32 4294901760, %v7800_v23  ;;  %v7792_v29 = vand.u32 4294901760, %v7791_v19  ;;  %v8416_v19 = vand.u32 4294901760, %v8415_v51 }
 0x868   : > { %7696 = vmatmul.mubr.f32.vlgmr.msra.gmra.mrb[60].mxu1 %v35298_v24  ;;  %30492 = vmatpush1.bf16.msra.mxu0 %v30491_v20  ;;  %v8429_v20 = vsub.f32 %v35520_v27, %v39689_v46 }
 0x869   : > { %7701 = vmatprep.mubr.f32.mxu1 %v35316_v43  ;;  %30493 = vmatprep.subr.bf16.mxu0 %v39781_v30  ;;  %v7802_v54 = vsub.f32 %v7800_v23, %v7801_v17 }
 0x86b   : > { %v7803_v2 = vand.u32 4294901760, %v7802_v54  ;;  %v8443_v54 = vsub.f32 %v35536_v37, %v39687_v40 }
 0x86c   : > { %7703 = vmatmul.mubr.f32.gmra.mrb[62].mxu1 %v35308_v31  ;;  %30495 = vmatpush1.bf16.msra.mxu0 %v30494_v61 }
 0x86d   : > { %30524 = vmatprep.subr.bf16.mxu0 %v33583_v1  ;;  %v8444_v50 = vand.u32 4294901760, %v8443_v54 }
 0x86f   : > { %7599 = vmatmul.mubr.f32.vlgmr.msra.gmra.mrb[56].mxu0 %v35298_v24  ;;  %v27020_v24 = vld [vmem:[%s39579_s4 + $0x240] sm:$0xff] }
 0x870   : > { %7604 = vmatprep.mubr.f32.mxu0 %v35316_v43  ;;  %30526 = vmatpush1.bf16.msra.mxu0 %v33596_v32  ;;  %v8285_v43 = vand.u32 4294901760, %v27020_v24 }
 0x871   : > { %30528 = vmatprep.subr.bf16.mxu0 %v33609_v60 }
 0x872   : > { %v35489_v48 = vsub.f32 %v27020_v24, %v8285_v43 }
 0x873   : > { %7606 = vmatmul.mubr.f32.gmra.mrb[58].mxu0 %v35308_v31  ;;  %v27021_v31 = vld [vmem:[%s39579_s4 + $0x248] sm:$0xff] }
 0x874   : > { %7787 = vmatprep.mubr.f32.mxu0 %v39803_v6  ;;  %v8288_v57 = vand.u32 4294901760, %v27021_v31  ;;  %v39693_v52 = vand.u32 4294901760, %v35489_v48 }
 0x876   : > { %v35491_v41 = vsub.f32 %v27021_v31, %v8288_v57  ;;  %v35499_v53 = vpack.c.bf16 %v8288_v57, %v8285_v43  ;;  %v8401_v36 = vsub.f32 %v35489_v48, %v39693_v52  ;;  %v27031_v57 = vld [vmem:[%s39579_s4 + $0x298] sm:$0xff] }
 0x877   : > { %7793 = vmatmul.mubr.f32.vlgmr.msra.gmra.mrb[60].mxu0 %v7792_v29  ;;  %v8430_v29 = vand.u32 4294901760, %v8429_v20  ;;  %v8324_v20 = vand.u32 4294901760, %v35590_v56 }
 0x878   : > { %30530 = vmatpush1.bf16.msra.mxu0 %v33618_v8  ;;  %7798 = vmatprep.mubr.f32.mxu0 %v39803_v6  ;;  %v39692_v15 = vand.u32 4294901760, %v35491_v41  ;;  %v8402_v11 = vand.u32 4294901760, %v8401_v36  ;;  %v8318_v36 = vand.u32 4294901760, %v27031_v57 }
 0x879   : > { %30532 = vmatprep.subr.bf16.mxu0 %v33622_v34  ;;  %30549 = vmatpush1.bf16.msra.mxu1 %v35499_v53 }
 0x87a   : > { %30550 = vmatprep.subr.bf16.mxu1 %v39781_v30  ;;  %v8408_v59 = vsub.f32 %v35491_v41, %v39692_v15 }
 0x87b   : > { %7804 = vmatmul.mubr.f32.gmra.mrb[62].mxu0 %v7803_v2  ;;  %v8437_v2 = vand.u32 4294901760, %v8436_v62  ;;  %v35623_v62 = vsub.f32 %v35581_v39, %v8321_v33 }
 0x87c   : > { %7894 = vmatprep.mubr.f32.mxu0 %v39803_v6  ;;  %v8409_v9 = vand.u32 4294901760, %v8408_v59 }
 0x87d   : > { %30552 = vmatpush1.bf16.msra.mxu1 %v35523_v58 }
 0x87e   : > { %30553 = vmatprep.subr.bf16.mxu1 %v39781_v30  ;;  %v30575_v28 = vpack.c.bf16 %v8409_v9, %v8402_v11 }
 0x87f   : > { %7896 = vmatmul.mubr.f32.vlgmr.msra.gmra.mrb[60].mxu0 %v7788_v7 }
 0x880   : > { %30534 = vmatpush1.bf16.msra.mxu0 %v33602_v12  ;;  %7901 = vmatprep.mubr.f32.mxu0 %v39803_v6 }
 0x881   : > { %30536 = vmatprep.subr.bf16.mxu0 %v33583_v1 }
 0x883   : > { %7903 = vmatmul.mubr.f32.gmra.mrb[62].mxu0 %v7799_v26 }
 0x884   : > { %7981 = vmatprep.mubr.f32.mxu0 %v39803_v6 }
 0x887   : > { %7984 = vmatmul.mubr.f32.vlgmr.msra.gmra.mrb[60].mxu0 %v7789_v4  ;;  %v27028_v4 = vld [vmem:[%s39579_s4 + $0x280] sm:$0xff] }
 0x888   : > { %30538 = vmatpush1.bf16.msra.mxu0 %v33596_v32  ;;  %7989 = vmatprep.mubr.f32.mxu0 %v39803_v6  ;;  %v8309_v31 = vand.u32 4294901760, %v27028_v4 }
 0x889   : > { %30540 = vmatprep.subr.bf16.mxu0 %v39806_v38 }
 0x88b   : > { %7992 = vmatmul.mubr.f32.gmra.mrb[62].mxu0 %v7800_v23  ;;  %v27030_v23 = vld [vmem:[%s39579_s4 + $0x290] sm:$0xff] }
 0x88c   : > { %8066 = vmatprep.mubr.f32.mxu0 %v39803_v6  ;;  %v8315_v16 = vand.u32 4294901760, %v27030_v23 }
 0x88e   : > { %v35596_v59 = vsub.f32 %v27030_v23, %v8315_v16  ;;  %v35625_v23 = vpack.c.bf16 %v8318_v36, %v8315_v16 }
 0x88f   : > { %8070 = vmatmul.mubr.f32.vlgmr.msra.gmra.mrb[60].mxu0 %v7790_v22  ;;  %v35563_v22 = vpack.c.bf16 %v8300_v42, %v8297_v5  ;;  %v30581_v5 = vpack.c.bf16 %v8437_v2, %v8430_v29  ;;  %v35636_v29 = vsub.f32 %v35590_v56, %v8324_v20 }
 0x890   : > { %30542 = vmatpush1.bf16.msra.mxu0 %v39809_v25  ;;  %8075 = vmatprep.mubr.f32.mxu0 %v39803_v6 }
 0x891   : > { %30544 = vmatprep.subr.bf16.mxu0 %v33583_v1  ;;  %30555 = vmatpush1.bf16.msra.mxu1 %v35563_v22 }
 0x892   : > { %30556 = vmatprep.subr.bf16.mxu1 %v39781_v30 }
 0x893   : > { %8079 = vmatmul.mubr.f32.gmra.mrb[62].mxu0 %v7801_v17  ;;  %v8423_v17 = vand.u32 4294901760, %v8422_v63 }
 0x894   : > { %8161 = vmatprep.mubr.f32.mxu0 %v39803_v6 }
 0x895   : > { %v30578_v45 = vpack.c.bf16 %v8423_v17, %v8416_v19  ;;  %30558 = vmatpush1.bf16.msra.mxu1 %v35585_v55 }
 0x896   : > { %30559 = vmatprep.subr.bf16.mxu1 %v39781_v30 }
 0x897   : > { %8163 = vmatmul.mubr.f32.vlgmr.msra.gmra.mrb[60].mxu0 %v7788_v7 }
 0x898   : > { %30546 = vmatpush1.bf16.msra.mxu0 %v33596_v32  ;;  %8168 = vmatprep.mubr.f32.mxu0 %v39803_v6 }
 0x899   : > { %30574 = vmatprep.subr.bf16.mxu0 %v39781_v30 }
 0x89b   : > { %8170 = vmatmul.mubr.f32.gmra.mrb[62].mxu0 %v7799_v26 }
 0x89c   : > { %8244 = vmatprep.mubr.f32.mxu0 %v39803_v6 }
 0x89f   : > { %8246 = vmatmul.mubr.f32.vlgmr.msra.gmra.mrb[60].mxu0 %v7788_v7  ;;  %v35540_v7 = vsub.f32 %v27027_v35, %v8306_v10  ;;  %v35592_v35 = vsub.f32 %v27028_v4, %v8309_v31  ;;  %v35604_v10 = vld [vmem:[%s39579_s4 + $0x2b0] sm:$0xff]  ;;  %v35613_v4 = vld [vmem:[%s39579_s4 + $0x2b8] sm:$0xff] }
 0x8a0   : > { %8251 = vmatprep.mubr.f32.mxu0 %v39803_v6  ;;  %30576 = vmatpush1.bf16.msra.mxu0 %v30575_v28  ;;  %v35617_v28 = vsub.f32 %v27031_v57, %v8318_v36  ;;  %v8327_v54 = vand.u32 4294901760, %v35604_v10 }
 0x8a1   : > { %v39686_v61 = vand.u32 4294901760, %v35540_v7  ;;  %30577 = vmatprep.subr.bf16.mxu0 %v39781_v30  ;;  %v39679_v51 = vand.u32 4294901760, %v35592_v35 }
 0x8a2   : > { %v35650_v16 = vsub.f32 %v35604_v10, %v8327_v54  ;;  %v30602_v10 = vpack.c.bf16 %v35491_v41, %v35489_v48 }
 0x8a3   : > { %8253 = vmatmul.mubr.f32.gmra.mrb[62].mxu0 %v7799_v26  ;;  %v27029_v26 = vld [vmem:[%s39579_s4 + $0x288] sm:$0xff]  ;;  %v8450_v24 = vsub.f32 %v35540_v7, %v39686_v61  ;;  %v8457_v19 = vsub.f32 %v35592_v35, %v39679_v51 }
 0x8a4   : > { %v8312_v43 = vand.u32 4294901760, %v27029_v26  ;;  %30579 = vmatpush1.bf16.msra.mxu0 %v30578_v45 }
 0x8a5   : > { %v8451_v13 = vand.u32 4294901760, %v8450_v24  ;;  %30580 = vmatprep.subr.bf16.mxu0 %v39781_v30  ;;  %v39678_v24 = vand.u32 4294901760, %v35617_v28  ;;  %v8458_v57 = vand.u32 4294901760, %v8457_v19 }
 0x8a6   : > { %v35594_v42 = vsub.f32 %v27029_v26, %v8312_v43  ;;  %v35598_v11 = vpack.c.bf16 %v8312_v43, %v8309_v31  ;;  %v39676_v26 = vand.u32 4294901760, %v35596_v59  ;;  %v39680_v31 = vand.u32 4294901760, %v35623_v62 }
 0x8a7   : > { %v30584_v9 = vpack.c.bf16 %v8451_v13, %v8444_v50  ;;  %v8330_v43 = vand.u32 4294901760, %v35613_v4  ;;  %v39683_v50 = vand.u32 4294901760, %v35636_v29  ;;  %v8478_v13 = vsub.f32 %v35617_v28, %v39678_v24 }
 0x8a8   : > { %v39677_v63 = vand.u32 4294901760, %v35594_v42  ;;  %v8471_v2 = vsub.f32 %v35596_v59, %v39676_v26  ;;  %30582 = vmatpush1.bf16.msra.mxu0 %v30581_v5  ;;  %30561 = vmatpush1.bf16.msra.mxu1 %v35598_v11  ;;  %v8485_v19 = vsub.f32 %v35623_v62, %v39680_v31  ;;  %v39681_v24 = vand.u32 4294901760, %v35650_v16 }
 0x8a9   : > { %30583 = vmatprep.subr.bf16.mxu0 %v39781_v30  ;;  %30562 = vmatprep.subr.bf16.mxu1 %v39781_v30  ;;  %v35658_v5 = vsub.f32 %v35613_v4, %v8330_v43 }
 0x8aa   : > { %v8464_v17 = vsub.f32 %v35594_v42, %v39677_v63  ;;  %v8472_v36 = vand.u32 4294901760, %v8471_v2  ;;  %v8479_v63 = vand.u32 4294901760, %v8478_v13  ;;  %v8486_v4 = vand.u32 4294901760, %v8485_v19  ;;  %v27036_v13 = vld [vmem:[%s39579_s4 + $0x2c0] sm:$0xff] }
 0x8ab   : > { %v39682_v51 = vand.u32 4294901760, %v35658_v5  ;;  %v8333_v19 = vand.u32 4294901760, %v27036_v13 }
 0x8ac   : > { %v8465_v45 = vand.u32 4294901760, %v8464_v17  ;;  %v8492_v17 = vsub.f32 %v35636_v29, %v39683_v50  ;;  %30585 = vmatpush1.bf16.msra.mxu0 %v30584_v9  ;;  %30564 = vmatpush1.bf16.msra.mxu1 %v35625_v23  ;;  %v30590_v31 = vpack.c.bf16 %v8479_v63, %v8472_v36  ;;  %v8499_v9 = vsub.f32 %v35650_v16, %v39681_v24 }
 0x8ad   : > { %30586 = vmatprep.subr.bf16.mxu0 %v39781_v30  ;;  %30565 = vmatprep.subr.bf16.mxu1 %v39781_v30  ;;  %v35685_v24 = vsub.f32 %v27036_v13, %v8333_v19 }
 0x8ae   : > { %v30587_v26 = vpack.c.bf16 %v8465_v45, %v8458_v57  ;;  %v8493_v2 = vand.u32 4294901760, %v8492_v17  ;;  %v8506_v57 = vsub.f32 %v35658_v5, %v39682_v51  ;;  %v8500_v63 = vand.u32 4294901760, %v8499_v9 }
 0x8b0   : > { %30588 = vmatpush1.bf16.msra.mxu0 %v30587_v26  ;;  %v30593_v45 = vpack.c.bf16 %v8493_v2, %v8486_v4  ;;  %v27037_v26 = vld [vmem:[%s39579_s4 + $0x2c8] sm:$0xff]  ;;  %v8507_v36 = vand.u32 4294901760, %v8506_v57  ;;  %v39684_v2 = vand.u32 4294901760, %v35685_v24 }
 0x8b1   : > { %30589 = vmatprep.subr.bf16.mxu0 %v39781_v30  ;;  %v8336_v17 = vand.u32 4294901760, %v27037_v26 }
 0x8b2   : > { %v30596_v4 = vpack.c.bf16 %v8507_v36, %v8500_v63  ;;  %v35703_v63 = vpack.c.bf16 %v8324_v20, %v8321_v33 }
 0x8b3   : > { %v35687_v51 = vsub.f32 %v27037_v26, %v8336_v17  ;;  %v35714_v20 = vpack.c.bf16 %v8336_v17, %v8333_v19 }
 0x8b4   : > { %30591 = vmatpush1.bf16.msra.mxu0 %v30590_v31  ;;  %v8513_v31 = vsub.f32 %v35685_v24, %v39684_v2  ;;  %30567 = vmatpush1.bf16.msra.mxu1 %v35703_v63 }
 0x8b5   : > { %30592 = vmatprep.subr.bf16.mxu0 %v39781_v30  ;;  %v39685_v50 = vand.u32 4294901760, %v35687_v51  ;;  %30568 = vmatprep.subr.bf16.mxu1 %v39781_v30 }
 0x8b6   : > { %v8514_v57 = vand.u32 4294901760, %v8513_v31  ;;  %v35710_v31 = vpack.c.bf16 %v8330_v43, %v8327_v54  ;;  %v30605_v54 = vpack.c.bf16 %v35518_v3, %v35516_v18  ;;  %v30608_v43 = vpack.c.bf16 %v35531_v14, %v35520_v27 }
 0x8b7   : > { %v8520_v9 = vsub.f32 %v35687_v51, %v39685_v50 }
 0x8b8   : > { %30594 = vmatpush1.bf16.msra.mxu0 %v30593_v45  ;;  %30570 = vmatpush1.bf16.msra.mxu1 %v35710_v31 }
 0x8b9   : > { %30595 = vmatprep.subr.bf16.mxu0 %v39781_v30  ;;  %v8521_v13 = vand.u32 4294901760, %v8520_v9  ;;  %30571 = vmatprep.subr.bf16.mxu1 %v39781_v30 }
 0x8bb   : > { %v30599_v36 = vpack.c.bf16 %v8521_v13, %v8514_v57 }
 0x8bc   : > { %30597 = vmatpush1.bf16.msra.mxu0 %v30596_v4  ;;  %30573 = vmatpush1.bf16.msra.mxu1 %v35714_v20 }
 0x8bd   : > { %30598 = vmatprep.subr.bf16.mxu0 %v39781_v30  ;;  %30601 = vmatprep.subr.bf16.mxu1 %v39781_v30 }
 0x8c0   : > { %30600 = vmatpush1.bf16.msra.mxu0 %v30599_v36 }
 0x8c1   : > { %30628 = vmatprep.subr.bf16.mxu0 %v39781_v30 }
 0x8f2   : > { %v7243_v26 = vpop.f32.mrb[52].mxu1 }
 0x8f3   : > { %v7245_v45 = vpop.f32.mrb[53].mxu1 }
 0x8f6   : > { %v7250_v2 = vpop.f32.mrb[54].mxu1 }
 0x8f7   : > { %v7252_v4 = vpop.f32.mrb[55].mxu1 }
 0x8fa   : > { %v7066_v39 = vpop.f32.mrb[48].mxu0 }
 0x8fb   : > { %v7244_v56 = vadd.f32 %v7243_v26, %v7066_v39  ;;  %v7068_v33 = vpop.f32.mrb[49].mxu0 }
 0x8fe   : > { %v7081_v9 = vpop.f32.mrb[50].mxu0 }
 0x8ff   : > { %v7251_v57 = vadd.f32 %v7250_v2, %v7081_v9  ;;  %v7083_v13 = vpop.f32.mrb[51].mxu0 }
 0x916   : > { %v7463_v2 = vpop.f32.mrb[56].mxu1 }
 0x917   : > { %v7465_v36 = vpop.f32.mrb[57].mxu1 }
 0x91a   : > { %v7474_v4 = vpop.f32.mrb[58].mxu1 }
 0x91b   : > { %v7476_v39 = vpop.f32.mrb[59].mxu1 }
 0x91e   : > { %v7360_v9 = vpop.f32.mrb[52].mxu0 }
 0x91f   : > { %v7361_v13 = vadd.f32 %v7360_v9, %v7244_v56  ;;  %v7362_v50 = vpop.f32.mrb[53].mxu0 }
 0x921   : > { %v7464_v40 = vadd.f32 %v7463_v2, %v7361_v13 }
 0x922   : > { %v7369_v47 = vpop.f32.mrb[54].mxu0 }
 0x923   : > { %v7370_v46 = vadd.f32 %v7369_v47, %v7251_v57  ;;  %v7371_v49 = vpop.f32.mrb[55].mxu0 }
 0x925   : > { %v7475_v21 = vadd.f32 %v7474_v4, %v7370_v46 }
 0x93b   : > { %v7697_v15 = vpop.f32.mrb[60].mxu1 }
 0x93c   : > { %v7699_v52 = vpop.f32.mrb[61].mxu1 }
 0x93f   : > { %v7704_v45 = vpop.f32.mrb[62].mxu1 }
 0x940   : > { %v7706_v36 = vpop.f32.mrb[63].mxu1 }
 0x942   : > { %v7600_v26 = vpop.f32.mrb[56].mxu0 }
 0x943   : > { %v7601_v39 = vadd.f32 %v7600_v26, %v7464_v40  ;;  %v7602_v17 = vpop.f32.mrb[57].mxu0 }
 0x945   : > { %v7698_v19 = vadd.f32 %v7697_v15, %v7601_v39 }
 0x946   : > { %v7607_v33 = vpop.f32.mrb[58].mxu0 }
 0x947   : > { %v35737_v56 = vadd.f32 %v7698_v19, %v35293_v0  ;;  %v7608_v50 = vadd.f32 %v7607_v33, %v7475_v21  ;;  %v7609_v9 = vpop.f32.mrb[59].mxu0 }
 0x949   : > { %v7705_v61 = vadd.f32 %v7704_v45, %v7608_v50 }
 0x94b   : > { %v35740_v2 = vadd.f32 %v7705_v61, %v35296_v44 }
 0x972   : > { %v8247_v49 = vpop.f32.mrb[60].mxu0 }
 0x973   : > { %v35742_v46 = vand.u32 4294901760, %v8247_v49  ;;  %v8249_v52 = vpop.f32.mrb[61].mxu0 }
 0x974   : > { %v8279_v47 = vsel %vm2469_vm4, %v8249_v52, 0 }
 0x975   : > { %v35746_v40 = vsub.f32 %v8247_v49, %v35742_v46  ;;  %v35748_v15 = vand.u32 4294901760, %v8279_v47 }
 0x976   : > { %v8254_v57 = vpop.f32.mrb[62].mxu0 }
 0x977   : > { %v8374_v0 = vand.u32 4294901760, %v35746_v40  ;;  %v8367_v21 = vsub.f32 %v8279_v47, %v35748_v15  ;;  %v35752_v19 = vand.u32 4294901760, %v8254_v57  ;;  %v8256_v44 = vpop.f32.mrb[63].mxu0  ;;  %8552 = vmatprep.mubr.f32.mxu0 %v35748_v15 }
 0x978   : > { %v8282_v61 = vsel %vm2469_vm4, %v8256_v44, 0  ;;  %8554 = vmatmul.mubr.f32.vlgmr.msra.gmra.mrb[64].mxu0 %v35742_v46  ;;  %v39870_v44 = vpack.c.bf16 %v35658_v5, %v35650_v16 }
 0x979   : > { %v35758_v17 = vsub.f32 %v8254_v57, %v35752_v19  ;;  %v35760_v26 = vand.u32 4294901760, %v8282_v61  ;;  %30630 = vmatpush1.bf16.msra.mxu0 %v35499_v53  ;;  %v8368_v45 = vand.u32 4294901760, %v8367_v21  ;;  %v8375_v4 = vsub.f32 %v35746_v40, %v8374_v0 }
 0x97a   : > { %30631 = vmatprep.subr.bf16.mxu0 %v39781_v30 }
 0x97b   : > { %v8389_v33 = vand.u32 4294901760, %v35758_v17  ;;  %v8382_v13 = vsub.f32 %v8282_v61, %v35760_v26  ;;  %8559 = vmatprep.mubr.f32.mxu0 %v35760_v26  ;;  %v8369_v36 = vsub.f32 %v8367_v21, %v8368_v45  ;;  %v8376_v9 = vand.u32 4294901760, %v8375_v4 }
 0x97c   : > { %8561 = vmatmul.mubr.f32.gmra.mrb[66].mxu0 %v35752_v19  ;;  %v39871_v61 = vpack.c.bf16 %v35687_v51, %v35685_v24 }
 0x97d   : > { %v8383_v39 = vand.u32 4294901760, %v8382_v13  ;;  %30633 = vmatpush1.bf16.msra.mxu0 %v35523_v58  ;;  %8770 = vmatprep.mubr.f32.mxu0 %v8368_v45  ;;  %v8370_v50 = vand.u32 4294901760, %v8369_v36  ;;  %v8390_v49 = vsub.f32 %v35758_v17, %v8389_v33  ;;  %v39873_v45 = vand.u32 4294901760, %v35491_v41 }
 0x97e   : > { %30634 = vmatprep.subr.bf16.mxu0 %v39781_v30  ;;  %v39877_v41 = vand.u32 4294901760, %v35531_v14  ;;  %v39881_v14 = vand.u32 4294901760, %v35594_v42 }
 0x97f   : > { %8371 = vmatprep.mubr.f32.mxu1 %v8370_v50  ;;  %v8384_v52 = vsub.f32 %v8382_v13, %v8383_v39  ;;  %v8391_v57 = vand.u32 4294901760, %v8390_v49 }
 0x980   : > { %8377 = vmatmul.mubr.f32.vlgmr.msra.gmra.mrb[64].mxu1 %v8376_v9 }
 0x981   : > { %30603 = vmatpush1.bf16.msra.mxu1 %v30602_v10  ;;  %30636 = vmatpush1.bf16.msra.mxu0 %v35563_v22  ;;  %v8385_v47 = vand.u32 4294901760, %v8384_v52  ;;  %v39866_v10 = vpack.c.bf16 %v35540_v7, %v35536_v37 }
 0x982   : > { %30604 = vmatprep.subr.bf16.mxu1 %v39781_v30  ;;  %30637 = vmatprep.subr.bf16.mxu0 %v39781_v30 }
 0x983   : > { %8386 = vmatprep.mubr.f32.mxu1 %v8385_v47 }
 0x984   : > { %8392 = vmatmul.mubr.f32.gmra.mrb[66].mxu1 %v8391_v57 }
 0x985   : > { %30606 = vmatpush1.bf16.msra.mxu1 %v30605_v54  ;;  %30639 = vmatpush1.bf16.msra.mxu0 %v35585_v55  ;;  %v39867_v54 = vpack.c.bf16 %v35594_v42, %v35592_v35  ;;  %v39884_v42 = vand.u32 4294901760, %v35623_v62 }
 0x986   : > { %8668 = vmatprep.mubr.f32.mxu1 %v8367_v21  ;;  %30607 = vmatprep.subr.bf16.mxu1 %v39781_v30  ;;  %v39869_v21 = vpack.c.bf16 %v35636_v29, %v35623_v62  ;;  %v39887_v62 = vand.u32 4294901760, %v35658_v5 }
 0x987   : > { %30640 = vmatprep.subr.bf16.mxu0 %v39781_v30 }
 0x989   : > { %30609 = vmatpush1.bf16.msra.mxu1 %v30608_v43  ;;  %30642 = vmatpush1.bf16.msra.mxu0 %v35598_v11  ;;  %v39868_v43 = vpack.c.bf16 %v35617_v28, %v35596_v59 }
 0x98a   : > { %30610 = vmatprep.subr.bf16.mxu1 %v39781_v30  ;;  %30643 = vmatprep.subr.bf16.mxu0 %v39781_v30 }
 0x98d   : > { %30612 = vmatpush1.bf16.msra.mxu1 %v39866_v10  ;;  %30645 = vmatpush1.bf16.msra.mxu0 %v35625_v23 }
 0x98e   : > { %30613 = vmatprep.subr.bf16.mxu1 %v39781_v30  ;;  %30646 = vmatprep.subr.bf16.mxu0 %v39781_v30 }
 0x991   : > { %30615 = vmatpush1.bf16.msra.mxu1 %v39867_v54  ;;  %30648 = vmatpush1.bf16.msra.mxu0 %v35703_v63  ;;  %v27042_v54 = vld [vmem:[%s39579_s4 + $0x2e0] sm:$0xff] }
 0x992   : > { %30616 = vmatprep.subr.bf16.mxu1 %v39781_v30  ;;  %30649 = vmatprep.subr.bf16.mxu0 %v39781_v30 }
 0x995   : > { %30618 = vmatpush1.bf16.msra.mxu1 %v39868_v43  ;;  %30651 = vmatpush1.bf16.msra.mxu0 %v35710_v31  ;;  %v27043_v43 = vld [vmem:[%s39579_s4 + $0x2e8] sm:$0xff] }
 0x996   : > { %30619 = vmatprep.subr.bf16.mxu1 %v39781_v30  ;;  %30652 = vmatprep.subr.bf16.mxu0 %v39781_v30 }
 0x999   : > { %30621 = vmatpush1.bf16.msra.mxu1 %v39869_v21  ;;  %30654 = vmatpush1.bf16.msra.mxu0 %v35714_v20 }
 0x99a   : > { %30622 = vmatprep.subr.bf16.mxu1 %v39781_v30  ;;  %30682 = vmatprep.subr.bf16.mxu0 %v39781_v30 }
 0x99c   : > { %8774 = vmatmul.mubr.f32.vlgmr.msra.gmra.mrb[68].mxu0 %v8374_v0  ;;  %v39872_v0 = vand.u32 4294901760, %v35489_v48  ;;  %v39876_v48 = vand.u32 4294901760, %v35520_v27  ;;  %v39880_v27 = vand.u32 4294901760, %v35592_v35  ;;  %v27038_v35 = vld [vmem:[%s39578_s3 + $0x50] sm:$0xff] }
 0x99d   : > { %30624 = vmatpush1.bf16.msra.mxu1 %v39870_v44  ;;  %8781 = vmatprep.mubr.f32.mxu0 %v8383_v39  ;;  %v39888_v39 = vand.u32 4294901760, %v35685_v24  ;;  %v27044_v44 = vld [vmem:[%s39579_s4 + $0x2f0] sm:$0xff] }
 0x99e   : > { %30684 = vmatpush1.bf16.msra.mxu0 %v35499_v53  ;;  %30625 = vmatprep.subr.bf16.mxu1 %v39781_v30  ;;  %v30656_v4 = vpack.c.bf16 %v39873_v45, %v39872_v0  ;;  %v39874_v53 = vand.u32 4294901760, %v35516_v18  ;;  %v39878_v18 = vand.u32 4294901760, %v35536_v37  ;;  %v39882_v37 = vand.u32 4294901760, %v35596_v59  ;;  %v27045_v45 = vld [vmem:[%s39579_s4 + $0x2f8] sm:$0xff] }
 0x99f   : > { %30685 = vmatprep.subr.bf16.mxu0 %v39781_v30  ;;  %v9026_v59 = vsel %vm2469_vm4, %v27038_v35, 0  ;;  %v9606_v0 = vand.u32 4294901760, %v27043_v43 }
 0x9a0   : > { %8785 = vmatmul.mubr.f32.gmra.mrb[70].mxu0 %v8389_v33  ;;  %v39875_v33 = vand.u32 4294901760, %v35518_v3  ;;  %v39879_v3 = vand.u32 4294901760, %v35540_v7  ;;  %v39883_v7 = vand.u32 4294901760, %v35617_v28  ;;  %v27039_v28 = vld [vmem:[%s39578_s3 + $0x58] sm:$0xff] }
 0x9a1   : > { %30627 = vmatpush1.bf16.msra.mxu1 %v39871_v61  ;;  %9006 = vmatprep.mubr.f32.mxu0 %v35748_v15  ;;  %v9603_v61 = vand.u32 4294901760, %v27042_v54 }
 0x9a2   : > { %30687 = vmatpush1.bf16.msra.mxu0 %v35523_v58  ;;  %30655 = vmatprep.subr.bf16.mxu1 %v39781_v30  ;;  %v30659_v36 = vpack.c.bf16 %v39875_v33, %v39874_v53  ;;  %v30662_v58 = vpack.c.bf16 %v39877_v41, %v39876_v48  ;;  %v27046_v53 = vld [vmem:[%s39579_s4 + $0x300] sm:$0xff]  ;;  %v27047_v33 = vld [vmem:[%s39579_s4 + $0x308] sm:$0xff]  ;;  %v9612_v41 = vand.u32 4294901760, %v27045_v45 }
 0x9a3   : > { %30688 = vmatprep.subr.bf16.mxu0 %v39781_v30 }
 0x9a4   : > { %8671 = vmatmul.mubr.f32.vlgmr.msra.gmra.mrb[68].mxu1 %v35746_v40 }
 0x9a5   : > { %8677 = vmatprep.mubr.f32.mxu1 %v8382_v13  ;;  %30657 = vmatpush1.bf16.msra.mxu1 %v30656_v4  ;;  %v9609_v4 = vand.u32 4294901760, %v27044_v44 }
 0x9a6   : > { %30690 = vmatpush1.bf16.msra.mxu0 %v35563_v22  ;;  %30658 = vmatprep.subr.bf16.mxu1 %v39781_v30  ;;  %v30665_v22 = vpack.c.bf16 %v39879_v3, %v39878_v18  ;;  %v35960_v18 = vsub.f32 %v27042_v54, %v9603_v61  ;;  %v35962_v3 = vsub.f32 %v27043_v43, %v9606_v0  ;;  %v36025_v54 = vld [vmem:[%s39579_s4 + $0x330] sm:$0xff] }
 0x9a7   : > { %30691 = vmatprep.subr.bf16.mxu0 %v39781_v30 }
 0x9a8   : > { %8680 = vmatmul.mubr.f32.gmra.mrb[70].mxu1 %v35758_v17  ;;  %v9029_v17 = vsel %vm2469_vm4, %v27039_v28, 0  ;;  %v39708_v35 = vand.u32 4294901760, %v35962_v3 }
 0x9a9   : > { %30660 = vmatpush1.bf16.msra.mxu1 %v30659_v36  ;;  %8909 = vmatprep.mubr.f32.mxu1 %v35748_v15  ;;  %v39886_v15 = vand.u32 4294901760, %v35650_v16  ;;  %v9111_v13 = vand.u32 4294901760, %v9029_v17  ;;  %v39889_v16 = vand.u32 4294901760, %v35687_v51 }
 0x9aa   : > { %30693 = vmatpush1.bf16.msra.mxu0 %v35585_v55  ;;  %30661 = vmatprep.subr.bf16.mxu1 %v39781_v30  ;;  %v30668_v55 = vpack.c.bf16 %v39881_v14, %v39880_v27  ;;  %v35967_v27 = vpack.c.bf16 %v9606_v0, %v9603_v61 }
 0x9ab   : > { %30694 = vmatprep.subr.bf16.mxu0 %v39781_v30  ;;  %v30680_v50 = vpack.c.bf16 %v39889_v16, %v39888_v39 }
 0x9ad   : > { %30663 = vmatpush1.bf16.msra.mxu1 %v30662_v58  ;;  %v9615_v58 = vand.u32 4294901760, %v27046_v53 }
 0x9ae   : > { %30696 = vmatpush1.bf16.msra.mxu0 %v35598_v11  ;;  %30664 = vmatprep.subr.bf16.mxu1 %v39781_v30  ;;  %v30671_v11 = vpack.c.bf16 %v39883_v7, %v39882_v37  ;;  %v35975_v37 = vsub.f32 %v27045_v45, %v9612_v41  ;;  %v9618_v7 = vand.u32 4294901760, %v27047_v33  ;;  %v36034_v45 = vld [vmem:[%s39579_s4 + $0x338] sm:$0xff] }
 0x9af   : > { %30697 = vmatprep.subr.bf16.mxu0 %v39781_v30 }
 0x9b0   : > { %v39706_v28 = vand.u32 4294901760, %v35975_v37  ;;  %v36029_v61 = vpack.c.bf16 %v9618_v7, %v9615_v58 }
 0x9b1   : > { %30666 = vmatpush1.bf16.msra.mxu1 %v30665_v22  ;;  %v35964_v22 = vsub.f32 %v27044_v44, %v9609_v4 }
 0x9b2   : > { %30699 = vmatpush1.bf16.msra.mxu0 %v35625_v23  ;;  %30667 = vmatprep.subr.bf16.mxu1 %v39781_v30  ;;  %v39885_v23 = vand.u32 4294901760, %v35636_v29  ;;  %v30677_v29 = vpack.c.bf16 %v39887_v62, %v39886_v15  ;;  %v9734_v62 = vsub.f32 %v35962_v3, %v39708_v35  ;;  %v9748_v16 = vsub.f32 %v35975_v37, %v39706_v28 }
 0x9b3   : > { %30700 = vmatprep.subr.bf16.mxu0 %v39781_v30 }
 0x9b4   : > { %v30674_v40 = vpack.c.bf16 %v39885_v23, %v39884_v42  ;;  %v39707_v42 = vand.u32 4294901760, %v35964_v22  ;;  %v35980_v23 = vsub.f32 %v27046_v53, %v9615_v58  ;;  %v9633_v58 = vand.u32 4294901760, %v36025_v54 }
 0x9b5   : > { %30669 = vmatpush1.bf16.msra.mxu1 %v30668_v55 }
 0x9b6   : > { %30702 = vmatpush1.bf16.msra.mxu0 %v35703_v63  ;;  %30670 = vmatprep.subr.bf16.mxu1 %v39781_v30  ;;  %v9100_v63 = vand.u32 4294901760, %v9026_v59 }
 0x9b7   : > { %30703 = vmatprep.subr.bf16.mxu0 %v39781_v30 }
 0x9b9   : > { %30672 = vmatpush1.bf16.msra.mxu1 %v30671_v11  ;;  %v39709_v11 = vand.u32 4294901760, %v35960_v18 }
 0x9ba   : > { %30705 = vmatpush1.bf16.msra.mxu0 %v35710_v31  ;;  %30673 = vmatprep.subr.bf16.mxu1 %v39781_v30  ;;  %v9101_v31 = vsub.f32 %v9026_v59, %v9100_v63 }
 0x9bb   : > { %30706 = vmatprep.subr.bf16.mxu0 %v39781_v30  ;;  %v9727_v15 = vsub.f32 %v35960_v18, %v39709_v11 }
 0x9bc   : > { %v9102_v5 = vand.u32 4294901760, %v9101_v31 }
 0x9bd   : > { %30675 = vmatpush1.bf16.msra.mxu1 %v30674_v40 }
 0x9be   : > { %30708 = vmatpush1.bf16.msra.mxu0 %v35714_v20  ;;  %30676 = vmatprep.subr.bf16.mxu1 %v39781_v30  ;;  %v9112_v20 = vsub.f32 %v9029_v17, %v9111_v13  ;;  %v9103_v9 = vsub.f32 %v9101_v31, %v9102_v5  ;;  %v39705_v17 = vand.u32 4294901760, %v35980_v23 }
 0x9bf   : > { %30733 = vmatprep.subr.bf16.mxu0 %v39781_v30 }
 0x9c0   : > { %v9113_v49 = vand.u32 4294901760, %v9112_v20  ;;  %v9104_v51 = vand.u32 4294901760, %v9103_v9  ;;  %v9728_v9 = vand.u32 4294901760, %v9727_v15 }
 0x9c1   : > { %9008 = vmatmul.mubr.f32.vlgmr.msra.gmra.mrb[72].mxu0 %v35742_v46  ;;  %30678 = vmatpush1.bf16.msra.mxu1 %v30677_v29  ;;  %v9741_v29 = vsub.f32 %v35964_v22, %v39707_v42 }
 0x9c2   : > { %9013 = vmatprep.mubr.f32.mxu0 %v35760_v26  ;;  %30679 = vmatprep.subr.bf16.mxu1 %v39781_v30  ;;  %v9114_v24 = vsub.f32 %v9112_v20, %v9113_v49 }
 0x9c4   : > { %v9115_v52 = vand.u32 4294901760, %v9114_v24  ;;  %v9755_v24 = vsub.f32 %v35980_v23, %v39705_v17 }
 0x9c5   : > { %9015 = vmatmul.mubr.f32.gmra.mrb[74].mxu0 %v35752_v19  ;;  %30681 = vmatpush1.bf16.msra.mxu1 %v30680_v50 }
 0x9c6   : > { %30710 = vmatprep.subr.bf16.mxu1 %v33583_v1  ;;  %v9756_v44 = vand.u32 4294901760, %v9755_v24 }
 0x9c8   : > { %8911 = vmatmul.mubr.f32.vlgmr.msra.gmra.mrb[72].mxu1 %v35742_v46  ;;  %v27040_v46 = vld [vmem:[%s39579_s4 + $0x2d0] sm:$0xff] }
 0x9c9   : > { %8916 = vmatprep.mubr.f32.mxu1 %v35760_v26  ;;  %30712 = vmatpush1.bf16.msra.mxu1 %v33596_v32  ;;  %v9597_v26 = vand.u32 4294901760, %v27040_v46 }
 0x9ca   : > { %30714 = vmatprep.subr.bf16.mxu1 %v33609_v60 }
 0x9cb   : > { %v35933_v57 = vsub.f32 %v27040_v46, %v9597_v26 }
 0x9cc   : > { %8918 = vmatmul.mubr.f32.gmra.mrb[74].mxu1 %v35752_v19  ;;  %v27041_v19 = vld [vmem:[%s39579_s4 + $0x2d8] sm:$0xff] }
 0x9cd   : > { %9099 = vmatprep.mubr.f32.mxu1 %v39803_v6  ;;  %v9600_v47 = vand.u32 4294901760, %v27041_v19  ;;  %v39711_v36 = vand.u32 4294901760, %v35933_v57 }
 0x9cf   : > { %v35935_v10 = vsub.f32 %v27041_v19, %v9600_v47  ;;  %v35943_v21 = vpack.c.bf16 %v9600_v47, %v9597_v26  ;;  %v9713_v14 = vsub.f32 %v35933_v57, %v39711_v36  ;;  %v27051_v47 = vld [vmem:[%s39579_s4 + $0x328] sm:$0xff] }
 0x9d0   : > { %9105 = vmatmul.mubr.f32.vlgmr.msra.gmra.mrb[76].mxu1 %v9104_v51  ;;  %v9742_v51 = vand.u32 4294901760, %v9741_v29  ;;  %v9636_v29 = vand.u32 4294901760, %v36034_v45 }
 0x9d1   : > { %30716 = vmatpush1.bf16.msra.mxu1 %v33618_v8  ;;  %9110 = vmatprep.mubr.f32.mxu1 %v39803_v6  ;;  %v39710_v48 = vand.u32 4294901760, %v35935_v10  ;;  %v9714_v40 = vand.u32 4294901760, %v9713_v14  ;;  %v9630_v14 = vand.u32 4294901760, %v27051_v47 }
 0x9d2   : > { %30718 = vmatprep.subr.bf16.mxu1 %v33622_v34  ;;  %30735 = vmatpush1.bf16.msra.mxu0 %v35943_v21 }
 0x9d3   : > { %30736 = vmatprep.subr.bf16.mxu0 %v39781_v30  ;;  %v9720_v55 = vsub.f32 %v35935_v10, %v39710_v48 }
 0x9d4   : > { %9116 = vmatmul.mubr.f32.gmra.mrb[78].mxu1 %v9115_v52  ;;  %v9749_v52 = vand.u32 4294901760, %v9748_v16  ;;  %v36067_v16 = vsub.f32 %v36025_v54, %v9633_v58 }
 0x9d5   : > { %9206 = vmatprep.mubr.f32.mxu1 %v39803_v6  ;;  %v9721_v59 = vand.u32 4294901760, %v9720_v55 }
 0x9d6   : > { %30738 = vmatpush1.bf16.msra.mxu0 %v35967_v27 }
 0x9d7   : > { %30739 = vmatprep.subr.bf16.mxu0 %v39781_v30  ;;  %v30761_v39 = vpack.c.bf16 %v9721_v59, %v9714_v40 }
 0x9d8   : > { %9208 = vmatmul.mubr.f32.vlgmr.msra.gmra.mrb[76].mxu1 %v9100_v63 }
 0x9d9   : > { %30720 = vmatpush1.bf16.msra.mxu1 %v33602_v12  ;;  %9213 = vmatprep.mubr.f32.mxu1 %v39803_v6 }
 0x9da   : > { %30722 = vmatprep.subr.bf16.mxu1 %v33583_v1 }
 0x9dc   : > { %9215 = vmatmul.mubr.f32.gmra.mrb[78].mxu1 %v9111_v13 }
 0x9dd   : > { %9293 = vmatprep.mubr.f32.mxu1 %v39803_v6 }
 0x9e0   : > { %9296 = vmatmul.mubr.f32.vlgmr.msra.gmra.mrb[76].mxu1 %v9101_v31  ;;  %v27048_v31 = vld [vmem:[%s39579_s4 + $0x310] sm:$0xff] }
 0x9e1   : > { %30724 = vmatpush1.bf16.msra.mxu1 %v33596_v32  ;;  %9301 = vmatprep.mubr.f32.mxu1 %v39803_v6  ;;  %v9621_v19 = vand.u32 4294901760, %v27048_v31 }
 0x9e2   : > { %30726 = vmatprep.subr.bf16.mxu1 %v39806_v38 }
 0x9e4   : > { %9304 = vmatmul.mubr.f32.gmra.mrb[78].mxu1 %v9112_v20  ;;  %v27050_v20 = vld [vmem:[%s39579_s4 + $0x320] sm:$0xff] }
 0x9e5   : > { %9378 = vmatprep.mubr.f32.mxu1 %v39803_v6  ;;  %v9627_v0 = vand.u32 4294901760, %v27050_v20 }
 0x9e7   : > { %v36040_v55 = vsub.f32 %v27050_v20, %v9627_v0  ;;  %v36069_v20 = vpack.c.bf16 %v9630_v14, %v9627_v0 }
 0x9e8   : > { %9382 = vmatmul.mubr.f32.vlgmr.msra.gmra.mrb[76].mxu1 %v9102_v5  ;;  %v36007_v5 = vpack.c.bf16 %v9612_v41, %v9609_v4  ;;  %v30767_v4 = vpack.c.bf16 %v9749_v52, %v9742_v51  ;;  %v36080_v51 = vsub.f32 %v36034_v45, %v9636_v29 }
 0x9e9   : > { %30728 = vmatpush1.bf16.msra.mxu1 %v39809_v25  ;;  %9387 = vmatprep.mubr.f32.mxu1 %v39803_v6 }
 0x9ea   : > { %30730 = vmatprep.subr.bf16.mxu1 %v33583_v1  ;;  %30741 = vmatpush1.bf16.msra.mxu0 %v36007_v5 }
 0x9eb   : > { %30742 = vmatprep.subr.bf16.mxu0 %v39781_v30 }
 0x9ec   : > { %9391 = vmatmul.mubr.f32.gmra.mrb[78].mxu1 %v9113_v49  ;;  %v9735_v49 = vand.u32 4294901760, %v9734_v62 }
 0x9ed   : > { %9473 = vmatprep.mubr.f32.mxu1 %v39803_v6 }
 0x9ee   : > { %v30764_v43 = vpack.c.bf16 %v9735_v49, %v9728_v9  ;;  %30744 = vmatpush1.bf16.msra.mxu0 %v36029_v61 }
 0x9ef   : > { %30745 = vmatprep.subr.bf16.mxu0 %v39781_v30 }
 0x9f0   : > { %9475 = vmatmul.mubr.f32.vlgmr.msra.gmra.mrb[76].mxu1 %v9100_v63 }
 0x9f1   : > { %30732 = vmatpush1.bf16.msra.mxu1 %v33596_v32  ;;  %9480 = vmatprep.mubr.f32.mxu1 %v39803_v6 }
 0x9f2   : > { %30760 = vmatprep.subr.bf16.mxu1 %v39781_v30 }
 0x9f4   : > { %9482 = vmatmul.mubr.f32.gmra.mrb[78].mxu1 %v9111_v13 }
 0x9f5   : > { %9556 = vmatprep.mubr.f32.mxu1 %v39803_v6 }
 0x9f8   : > { %9558 = vmatmul.mubr.f32.vlgmr.msra.gmra.mrb[76].mxu1 %v9100_v63  ;;  %v35984_v63 = vsub.f32 %v27047_v33, %v9618_v7  ;;  %v36036_v33 = vsub.f32 %v27048_v31, %v9621_v19  ;;  %v36048_v7 = vld [vmem:[%s39579_s4 + $0x340] sm:$0xff]  ;;  %v36057_v31 = vld [vmem:[%s39579_s4 + $0x348] sm:$0xff] }
 0x9f9   : > { %9563 = vmatprep.mubr.f32.mxu1 %v39803_v6  ;;  %30762 = vmatpush1.bf16.msra.mxu1 %v30761_v39  ;;  %v36061_v39 = vsub.f32 %v27051_v47, %v9630_v14  ;;  %v9639_v24 = vand.u32 4294901760, %v36048_v7 }
 0x9fa   : > { %v39704_v50 = vand.u32 4294901760, %v35984_v63  ;;  %30763 = vmatprep.subr.bf16.mxu1 %v39781_v30  ;;  %v39697_v15 = vand.u32 4294901760, %v36036_v33 }
 0x9fb   : > { %v36094_v0 = vsub.f32 %v36048_v7, %v9639_v24  ;;  %v30788_v7 = vpack.c.bf16 %v35935_v10, %v35933_v57 }
 0x9fc   : > { %9565 = vmatmul.mubr.f32.gmra.mrb[78].mxu1 %v9111_v13  ;;  %v27049_v13 = vld [vmem:[%s39579_s4 + $0x318] sm:$0xff]  ;;  %v9762_v46 = vsub.f32 %v35984_v63, %v39704_v50  ;;  %v9769_v9 = vsub.f32 %v36036_v33, %v39697_v15 }
 0x9fd   : > { %v9624_v26 = vand.u32 4294901760, %v27049_v13  ;;  %30765 = vmatpush1.bf16.msra.mxu1 %v30764_v43 }
 0x9fe   : > { %v9763_v53 = vand.u32 4294901760, %v9762_v46  ;;  %30766 = vmatprep.subr.bf16.mxu1 %v39781_v30  ;;  %v39696_v46 = vand.u32 4294901760, %v36061_v39  ;;  %v9770_v47 = vand.u32 4294901760, %v9769_v9 }
 0x9ff   : > { %v36038_v41 = vsub.f32 %v27049_v13, %v9624_v26  ;;  %v36042_v40 = vpack.c.bf16 %v9624_v26, %v9621_v19  ;;  %v39694_v13 = vand.u32 4294901760, %v36040_v55  ;;  %v39698_v19 = vand.u32 4294901760, %v36067_v16 }
 0xa00   : > { %v30770_v59 = vpack.c.bf16 %v9763_v53, %v9756_v44  ;;  %v9642_v26 = vand.u32 4294901760, %v36057_v31  ;;  %v39701_v44 = vand.u32 4294901760, %v36080_v51  ;;  %v9790_v53 = vsub.f32 %v36061_v39, %v39696_v46 }
 0xa01   : > { %v39695_v62 = vand.u32 4294901760, %v36038_v41  ;;  %v9783_v52 = vsub.f32 %v36040_v55, %v39694_v13  ;;  %30768 = vmatpush1.bf16.msra.mxu1 %v30767_v4  ;;  %30747 = vmatpush1.bf16.msra.mxu0 %v36042_v40  ;;  %v9797_v9 = vsub.f32 %v36067_v16, %v39698_v19  ;;  %v39699_v46 = vand.u32 4294901760, %v36094_v0 }
 0xa02   : > { %30769 = vmatprep.subr.bf16.mxu1 %v39781_v30  ;;  %30748 = vmatprep.subr.bf16.mxu0 %v39781_v30  ;;  %v36102_v4 = vsub.f32 %v36057_v31, %v9642_v26 }
 0xa03   : > { %v9776_v49 = vsub.f32 %v36038_v41, %v39695_v62  ;;  %v9784_v14 = vand.u32 4294901760, %v9783_v52  ;;  %v9791_v62 = vand.u32 4294901760, %v9790_v53  ;;  %v9798_v31 = vand.u32 4294901760, %v9797_v9  ;;  %v27056_v53 = vld [vmem:[%s39579_s4 + $0x350] sm:$0xff] }
 0xa04   : > { %v39700_v15 = vand.u32 4294901760, %v36102_v4  ;;  %v9645_v9 = vand.u32 4294901760, %v27056_v53 }
 0xa05   : > { %v9777_v43 = vand.u32 4294901760, %v9776_v49  ;;  %v9804_v49 = vsub.f32 %v36080_v51, %v39701_v44  ;;  %30771 = vmatpush1.bf16.msra.mxu1 %v30770_v59  ;;  %30750 = vmatpush1.bf16.msra.mxu0 %v36069_v20  ;;  %v30776_v19 = vpack.c.bf16 %v9791_v62, %v9784_v14  ;;  %v9811_v59 = vsub.f32 %v36094_v0, %v39699_v46 }
 0xa06   : > { %30772 = vmatprep.subr.bf16.mxu1 %v39781_v30  ;;  %30751 = vmatprep.subr.bf16.mxu0 %v39781_v30  ;;  %v36129_v46 = vsub.f32 %v27056_v53, %v9645_v9 }
 0xa07   : > { %v30773_v13 = vpack.c.bf16 %v9777_v43, %v9770_v47  ;;  %v9805_v52 = vand.u32 4294901760, %v9804_v49  ;;  %v9818_v47 = vsub.f32 %v36102_v4, %v39700_v15  ;;  %v9812_v62 = vand.u32 4294901760, %v9811_v59 }
 0xa09   : > { %30774 = vmatpush1.bf16.msra.mxu1 %v30773_v13  ;;  %v30779_v43 = vpack.c.bf16 %v9805_v52, %v9798_v31  ;;  %v27057_v13 = vld [vmem:[%s39579_s4 + $0x358] sm:$0xff]  ;;  %v9819_v14 = vand.u32 4294901760, %v9818_v47  ;;  %v39702_v52 = vand.u32 4294901760, %v36129_v46 }
 0xa0a   : > { %30775 = vmatprep.subr.bf16.mxu1 %v39781_v30  ;;  %v9648_v49 = vand.u32 4294901760, %v27057_v13 }
 0xa0b   : > { %v30782_v31 = vpack.c.bf16 %v9819_v14, %v9812_v62  ;;  %v36147_v62 = vpack.c.bf16 %v9636_v29, %v9633_v58 }
 0xa0c   : > { %v36131_v15 = vsub.f32 %v27057_v13, %v9648_v49  ;;  %v36158_v29 = vpack.c.bf16 %v9648_v49, %v9645_v9 }
 0xa0d   : > { %30777 = vmatpush1.bf16.msra.mxu1 %v30776_v19  ;;  %v9825_v19 = vsub.f32 %v36129_v46, %v39702_v52  ;;  %30753 = vmatpush1.bf16.msra.mxu0 %v36147_v62 }
 0xa0e   : > { %30778 = vmatprep.subr.bf16.mxu1 %v39781_v30  ;;  %v39703_v44 = vand.u32 4294901760, %v36131_v15  ;;  %30754 = vmatprep.subr.bf16.mxu0 %v39781_v30 }
 0xa0f   : > { %v9826_v47 = vand.u32 4294901760, %v9825_v19  ;;  %v36154_v19 = vpack.c.bf16 %v9642_v26, %v9639_v24  ;;  %v30791_v24 = vpack.c.bf16 %v35962_v3, %v35960_v18  ;;  %v30794_v26 = vpack.c.bf16 %v35975_v37, %v35964_v22 }
 0xa10   : > { %v9832_v59 = vsub.f32 %v36131_v15, %v39703_v44 }
 0xa11   : > { %30780 = vmatpush1.bf16.msra.mxu1 %v30779_v43  ;;  %30756 = vmatpush1.bf16.msra.mxu0 %v36154_v19 }
 0xa12   : > { %30781 = vmatprep.subr.bf16.mxu1 %v39781_v30  ;;  %v9833_v53 = vand.u32 4294901760, %v9832_v59  ;;  %30757 = vmatprep.subr.bf16.mxu0 %v39781_v30 }
 0xa14   : > { %v30785_v14 = vpack.c.bf16 %v9833_v53, %v9826_v47 }
 0xa15   : > { %30783 = vmatpush1.bf16.msra.mxu1 %v30782_v31  ;;  %30759 = vmatpush1.bf16.msra.mxu0 %v36158_v29 }
 0xa16   : > { %30784 = vmatprep.subr.bf16.mxu1 %v39781_v30  ;;  %30787 = vmatprep.subr.bf16.mxu0 %v39781_v30 }
 0xa19   : > { %30786 = vmatpush1.bf16.msra.mxu1 %v30785_v14 }
 0xa1a   : > { %30814 = vmatprep.subr.bf16.mxu1 %v39781_v30 }
 0xa4b   : > { %v8555_v13 = vpop.f32.mrb[64].mxu0 }
 0xa4c   : > { %v8557_v43 = vpop.f32.mrb[65].mxu0 }
 0xa4f   : > { %v8562_v52 = vpop.f32.mrb[66].mxu0 }
 0xa50   : > { %v8564_v31 = vpop.f32.mrb[67].mxu0 }
 0xa53   : > { %v8378_v54 = vpop.f32.mrb[64].mxu1 }
 0xa54   : > { %v8556_v45 = vadd.f32 %v8555_v13, %v8378_v54  ;;  %v8380_v58 = vpop.f32.mrb[65].mxu1 }
 0xa57   : > { %v8393_v59 = vpop.f32.mrb[66].mxu1 }
 0xa58   : > { %v8563_v47 = vadd.f32 %v8562_v52, %v8393_v59  ;;  %v8395_v53 = vpop.f32.mrb[67].mxu1 }
 0xa6f   : > { %v8775_v52 = vpop.f32.mrb[68].mxu0 }
 0xa70   : > { %v8777_v14 = vpop.f32.mrb[69].mxu0 }
 0xa73   : > { %v8786_v31 = vpop.f32.mrb[70].mxu0 }
 0xa74   : > { %v8788_v54 = vpop.f32.mrb[71].mxu0 }
 0xa77   : > { %v8672_v59 = vpop.f32.mrb[68].mxu1 }
 0xa78   : > { %v8673_v53 = vadd.f32 %v8672_v59, %v8556_v45  ;;  %v8674_v44 = vpop.f32.mrb[69].mxu1 }
 0xa7a   : > { %v8776_v17 = vadd.f32 %v8775_v52, %v8673_v53 }
 0xa7b   : > { %v8681_v28 = vpop.f32.mrb[70].mxu1 }
 0xa7c   : > { %v8682_v42 = vadd.f32 %v8681_v28, %v8563_v47  ;;  %v8683_v35 = vpop.f32.mrb[71].mxu1 }
 0xa7e   : > { %v8787_v11 = vadd.f32 %v8786_v31, %v8682_v42 }
 0xa94   : > { %v9009_v48 = vpop.f32.mrb[72].mxu0 }
 0xa95   : > { %v9011_v36 = vpop.f32.mrb[73].mxu0 }
 0xa98   : > { %v9016_v43 = vpop.f32.mrb[74].mxu0 }
 0xa99   : > { %v9018_v14 = vpop.f32.mrb[75].mxu0 }
 0xa9b   : > { %v8912_v13 = vpop.f32.mrb[72].mxu1 }
 0xa9c   : > { %v8913_v54 = vadd.f32 %v8912_v13, %v8776_v17  ;;  %v8914_v49 = vpop.f32.mrb[73].mxu1 }
 0xa9e   : > { %v9010_v9 = vadd.f32 %v9009_v48, %v8913_v54 }
 0xa9f   : > { %v8919_v58 = vpop.f32.mrb[74].mxu1 }
 0xaa0   : > { %v36181_v45 = vadd.f32 %v9010_v9, %v35737_v56  ;;  %v8920_v44 = vadd.f32 %v8919_v58, %v8787_v11  ;;  %v8921_v59 = vpop.f32.mrb[75].mxu1 }
 0xaa2   : > { %v9017_v50 = vadd.f32 %v9016_v43, %v8920_v44 }
 0xaa4   : > { %v36184_v52 = vadd.f32 %v9017_v50, %v35740_v2 }
 0xacb   : > { %v9559_v35 = vpop.f32.mrb[76].mxu1 }
 0xacc   : > { %v36186_v42 = vand.u32 4294901760, %v9559_v35  ;;  %v9561_v36 = vpop.f32.mrb[77].mxu1 }
 0xacd   : > { %v9591_v28 = vsel %vm2469_vm4, %v9561_v36, 0 }
 0xace   : > { %v36190_v17 = vsub.f32 %v9559_v35, %v36186_v42  ;;  %v36192_v48 = vand.u32 4294901760, %v9591_v28 }
 0xacf   : > { %v9566_v47 = vpop.f32.mrb[78].mxu1 }
 0xad0   : > { %v9686_v56 = vand.u32 4294901760, %v36190_v17  ;;  %v9679_v11 = vsub.f32 %v9591_v28, %v36192_v48  ;;  %v36196_v9 = vand.u32 4294901760, %v9566_v47  ;;  %v9568_v2 = vpop.f32.mrb[79].mxu1  ;;  %9864 = vmatprep.mubr.f32.mxu1 %v36192_v48 }
 0xad1   : > { %v9594_v50 = vsel %vm2469_vm4, %v9568_v2, 0  ;;  %9866 = vmatmul.mubr.f32.vlgmr.msra.gmra.mrb[80].mxu1 %v36186_v42  ;;  %v39894_v2 = vpack.c.bf16 %v36102_v4, %v36094_v0 }
 0xad2   : > { %v36202_v49 = vsub.f32 %v9566_v47, %v36196_v9  ;;  %v36204_v13 = vand.u32 4294901760, %v9594_v50  ;;  %30816 = vmatpush1.bf16.msra.mxu1 %v35943_v21  ;;  %v9680_v43 = vand.u32 4294901760, %v9679_v11  ;;  %v9687_v31 = vsub.f32 %v36190_v17, %v9686_v56 }
 0xad3   : > { %30817 = vmatprep.subr.bf16.mxu1 %v39781_v30 }
 0xad4   : > { %v9701_v58 = vand.u32 4294901760, %v36202_v49  ;;  %v9694_v53 = vsub.f32 %v9594_v50, %v36204_v13  ;;  %9871 = vmatprep.mubr.f32.mxu1 %v36204_v13  ;;  %v9681_v14 = vsub.f32 %v9679_v11, %v9680_v43  ;;  %v9688_v59 = vand.u32 4294901760, %v9687_v31 }
 0xad5   : > { %9873 = vmatmul.mubr.f32.gmra.mrb[82].mxu1 %v36196_v9  ;;  %v39895_v50 = vpack.c.bf16 %v36131_v15, %v36129_v46 }
 0xad6   : > { %v9695_v54 = vand.u32 4294901760, %v9694_v53  ;;  %30819 = vmatpush1.bf16.msra.mxu1 %v35967_v27  ;;  %10082 = vmatprep.mubr.f32.mxu1 %v9680_v43  ;;  %v9682_v44 = vand.u32 4294901760, %v9681_v14  ;;  %v9702_v35 = vsub.f32 %v36202_v49, %v9701_v58  ;;  %v39897_v43 = vand.u32 4294901760, %v35935_v10 }
 0xad7   : > { %30820 = vmatprep.subr.bf16.mxu1 %v39781_v30  ;;  %v39901_v10 = vand.u32 4294901760, %v35975_v37  ;;  %v39905_v37 = vand.u32 4294901760, %v36038_v41 }
 0xad8   : > { %9683 = vmatprep.mubr.f32.mxu0 %v9682_v44  ;;  %v9696_v36 = vsub.f32 %v9694_v53, %v9695_v54  ;;  %v9703_v47 = vand.u32 4294901760, %v9702_v35 }
 0xad9   : > { %9689 = vmatmul.mubr.f32.vlgmr.msra.gmra.mrb[76].mxu0 %v9688_v59 }
 0xada   : > { %30789 = vmatpush1.bf16.msra.mxu0 %v30788_v7  ;;  %30822 = vmatpush1.bf16.msra.mxu1 %v36007_v5  ;;  %v9697_v28 = vand.u32 4294901760, %v9696_v36  ;;  %v39890_v7 = vpack.c.bf16 %v35984_v63, %v35980_v23 }
 0xadb   : > { %30790 = vmatprep.subr.bf16.mxu0 %v39781_v30  ;;  %30823 = vmatprep.subr.bf16.mxu1 %v39781_v30 }
 0xadc   : > { %9698 = vmatprep.mubr.f32.mxu0 %v9697_v28 }
 0xadd   : > { %9704 = vmatmul.mubr.f32.gmra.mrb[78].mxu0 %v9703_v47 }
 0xade   : > { %30792 = vmatpush1.bf16.msra.mxu0 %v30791_v24  ;;  %30825 = vmatpush1.bf16.msra.mxu1 %v36029_v61  ;;  %v39891_v24 = vpack.c.bf16 %v36038_v41, %v36036_v33  ;;  %v39908_v41 = vand.u32 4294901760, %v36067_v16 }
 0xadf   : > { %9980 = vmatprep.mubr.f32.mxu0 %v9679_v11  ;;  %30793 = vmatprep.subr.bf16.mxu0 %v39781_v30  ;;  %v39893_v11 = vpack.c.bf16 %v36080_v51, %v36067_v16  ;;  %v39911_v16 = vand.u32 4294901760, %v36102_v4 }
 0xae0   : > { %30826 = vmatprep.subr.bf16.mxu1 %v39781_v30 }
 0xae2   : > { %30795 = vmatpush1.bf16.msra.mxu0 %v30794_v26  ;;  %30828 = vmatpush1.bf16.msra.mxu1 %v36042_v40  ;;  %v39892_v26 = vpack.c.bf16 %v36061_v39, %v36040_v55 }
 0xae3   : > { %30796 = vmatprep.subr.bf16.mxu0 %v39781_v30  ;;  %30829 = vmatprep.subr.bf16.mxu1 %v39781_v30 }
 0xae6   : > { %30798 = vmatpush1.bf16.msra.mxu0 %v39890_v7  ;;  %30831 = vmatpush1.bf16.msra.mxu1 %v36069_v20 }
 0xae7   : > { %30799 = vmatprep.subr.bf16.mxu0 %v39781_v30  ;;  %30832 = vmatprep.subr.bf16.mxu1 %v39781_v30 }
 0xaea   : > { %30801 = vmatpush1.bf16.msra.mxu0 %v39891_v24  ;;  %30834 = vmatpush1.bf16.msra.mxu1 %v36147_v62  ;;  %v27062_v24 = vld [vmem:[%s39579_s4 + $0x370] sm:$0xff] }
 0xaeb   : > { %30802 = vmatprep.subr.bf16.mxu0 %v39781_v30  ;;  %30835 = vmatprep.subr.bf16.mxu1 %v39781_v30 }
 0xaee   : > { %30804 = vmatpush1.bf16.msra.mxu0 %v39892_v26  ;;  %30837 = vmatpush1.bf16.msra.mxu1 %v36154_v19  ;;  %v27063_v26 = vld [vmem:[%s39579_s4 + $0x378] sm:$0xff] }
 0xaef   : > { %30805 = vmatprep.subr.bf16.mxu0 %v39781_v30  ;;  %30838 = vmatprep.subr.bf16.mxu1 %v39781_v30 }
 0xaf2   : > { %30807 = vmatpush1.bf16.msra.mxu0 %v39893_v11  ;;  %30840 = vmatpush1.bf16.msra.mxu1 %v36158_v29 }
 0xaf3   : > { %30808 = vmatprep.subr.bf16.mxu0 %v39781_v30  ;;  %30868 = vmatprep.subr.bf16.mxu1 %v39781_v30 }
 0xaf5   : > { %10086 = vmatmul.mubr.f32.vlgmr.msra.gmra.mrb[84].mxu1 %v9686_v56  ;;  %v39896_v56 = vand.u32 4294901760, %v35933_v57  ;;  %v39900_v57 = vand.u32 4294901760, %v35964_v22  ;;  %v39904_v22 = vand.u32 4294901760, %v36036_v33  ;;  %v27058_v33 = vld [vmem:[%s39578_s3 + $0x60] sm:$0xff] }
 0xaf6   : > { %30810 = vmatpush1.bf16.msra.mxu0 %v39894_v2  ;;  %10093 = vmatprep.mubr.f32.mxu1 %v9695_v54  ;;  %v39912_v54 = vand.u32 4294901760, %v36129_v46  ;;  %v27064_v2 = vld [vmem:[%s39579_s4 + $0x380] sm:$0xff] }
 0xaf7   : > { %30870 = vmatpush1.bf16.msra.mxu1 %v35943_v21  ;;  %30811 = vmatprep.subr.bf16.mxu0 %v39781_v30  ;;  %v30842_v31 = vpack.c.bf16 %v39897_v43, %v39896_v56  ;;  %v39898_v21 = vand.u32 4294901760, %v35960_v18  ;;  %v39902_v18 = vand.u32 4294901760, %v35980_v23  ;;  %v39906_v23 = vand.u32 4294901760, %v36040_v55  ;;  %v27065_v43 = vld [vmem:[%s39579_s4 + $0x388] sm:$0xff] }
 0xaf8   : > { %30871 = vmatprep.subr.bf16.mxu1 %v39781_v30  ;;  %v10338_v55 = vsel %vm2469_vm4, %v27058_v33, 0  ;;  %v10918_v56 = vand.u32 4294901760, %v27063_v26 }
 0xaf9   : > { %10097 = vmatmul.mubr.f32.gmra.mrb[86].mxu1 %v9701_v58  ;;  %v39899_v58 = vand.u32 4294901760, %v35962_v3  ;;  %v39903_v3 = vand.u32 4294901760, %v35984_v63  ;;  %v39907_v63 = vand.u32 4294901760, %v36061_v39  ;;  %v27059_v39 = vld [vmem:[%s39578_s3 + $0x68] sm:$0xff] }
 0xafa   : > { %30813 = vmatpush1.bf16.msra.mxu0 %v39895_v50  ;;  %10318 = vmatprep.mubr.f32.mxu1 %v36192_v48  ;;  %v10915_v50 = vand.u32 4294901760, %v27062_v24 }
 0xafb   : > { %30873 = vmatpush1.bf16.msra.mxu1 %v35967_v27  ;;  %30841 = vmatprep.subr.bf16.mxu0 %v39781_v30  ;;  %v30845_v14 = vpack.c.bf16 %v39899_v58, %v39898_v21  ;;  %v30848_v27 = vpack.c.bf16 %v39901_v10, %v39900_v57  ;;  %v27066_v21 = vld [vmem:[%s39579_s4 + $0x390] sm:$0xff]  ;;  %v27067_v58 = vld [vmem:[%s39579_s4 + $0x398] sm:$0xff]  ;;  %v10924_v10 = vand.u32 4294901760, %v27065_v43 }
 0xafc   : > { %30874 = vmatprep.subr.bf16.mxu1 %v39781_v30 }
 0xafd   : > { %9983 = vmatmul.mubr.f32.vlgmr.msra.gmra.mrb[80].mxu0 %v36190_v17 }
 0xafe   : > { %9989 = vmatprep.mubr.f32.mxu0 %v9694_v53  ;;  %30843 = vmatpush1.bf16.msra.mxu0 %v30842_v31  ;;  %v10921_v31 = vand.u32 4294901760, %v27064_v2 }
 0xaff   : > { %30876 = vmatpush1.bf16.msra.mxu1 %v36007_v5  ;;  %30844 = vmatprep.subr.bf16.mxu0 %v39781_v30  ;;  %v30851_v5 = vpack.c.bf16 %v39903_v3, %v39902_v18  ;;  %v36404_v18 = vsub.f32 %v27062_v24, %v10915_v50  ;;  %v36406_v3 = vsub.f32 %v27063_v26, %v10918_v56  ;;  %v36469_v24 = vld [vmem:[%s39579_s4 + $0x3c0] sm:$0xff] }
 0xb00   : > { %30877 = vmatprep.subr.bf16.mxu1 %v39781_v30 }
 0xb01   : > { %9992 = vmatmul.mubr.f32.gmra.mrb[82].mxu0 %v36202_v49  ;;  %v10341_v49 = vsel %vm2469_vm4, %v27059_v39, 0  ;;  %v39726_v33 = vand.u32 4294901760, %v36406_v3 }
 0xb02   : > { %30846 = vmatpush1.bf16.msra.mxu0 %v30845_v14  ;;  %10221 = vmatprep.mubr.f32.mxu0 %v36192_v48  ;;  %v39910_v48 = vand.u32 4294901760, %v36094_v0  ;;  %v10423_v53 = vand.u32 4294901760, %v10341_v49  ;;  %v39913_v0 = vand.u32 4294901760, %v36131_v15 }
 0xb03   : > { %30879 = vmatpush1.bf16.msra.mxu1 %v36029_v61  ;;  %30847 = vmatprep.subr.bf16.mxu0 %v39781_v30  ;;  %v30854_v61 = vpack.c.bf16 %v39905_v37, %v39904_v22  ;;  %v36411_v22 = vpack.c.bf16 %v10918_v56, %v10915_v50 }
 0xb04   : > { %30880 = vmatprep.subr.bf16.mxu1 %v39781_v30  ;;  %v30866_v44 = vpack.c.bf16 %v39913_v0, %v39912_v54 }
 0xb06   : > { %30849 = vmatpush1.bf16.msra.mxu0 %v30848_v27  ;;  %v10927_v27 = vand.u32 4294901760, %v27066_v21 }
 0xb07   : > { %30882 = vmatpush1.bf16.msra.mxu1 %v36042_v40  ;;  %30850 = vmatprep.subr.bf16.mxu0 %v39781_v30  ;;  %v30857_v40 = vpack.c.bf16 %v39907_v63, %v39906_v23  ;;  %v36419_v23 = vsub.f32 %v27065_v43, %v10924_v10  ;;  %v10930_v63 = vand.u32 4294901760, %v27067_v58  ;;  %v36478_v43 = vld [vmem:[%s39579_s4 + $0x3c8] sm:$0xff] }
 0xb08   : > { %30883 = vmatprep.subr.bf16.mxu1 %v39781_v30 }
 0xb09   : > { %v39724_v39 = vand.u32 4294901760, %v36419_v23  ;;  %v36473_v50 = vpack.c.bf16 %v10930_v63, %v10927_v27 }
 0xb0a   : > { %30852 = vmatpush1.bf16.msra.mxu0 %v30851_v5  ;;  %v36408_v5 = vsub.f32 %v27064_v2, %v10921_v31 }
 0xb0b   : > { %30885 = vmatpush1.bf16.msra.mxu1 %v36069_v20  ;;  %30853 = vmatprep.subr.bf16.mxu0 %v39781_v30  ;;  %v39909_v20 = vand.u32 4294901760, %v36080_v51  ;;  %v30863_v51 = vpack.c.bf16 %v39911_v16, %v39910_v48  ;;  %v11046_v16 = vsub.f32 %v36406_v3, %v39726_v33  ;;  %v11060_v0 = vsub.f32 %v36419_v23, %v39724_v39 }
 0xb0c   : > { %30886 = vmatprep.subr.bf16.mxu1 %v39781_v30 }
 0xb0d   : > { %v30860_v17 = vpack.c.bf16 %v39909_v20, %v39908_v41  ;;  %v39725_v41 = vand.u32 4294901760, %v36408_v5  ;;  %v36424_v20 = vsub.f32 %v27066_v21, %v10927_v27  ;;  %v10945_v27 = vand.u32 4294901760, %v36469_v24 }
 0xb0e   : > { %30855 = vmatpush1.bf16.msra.mxu0 %v30854_v61 }
 0xb0f   : > { %30888 = vmatpush1.bf16.msra.mxu1 %v36147_v62  ;;  %30856 = vmatprep.subr.bf16.mxu0 %v39781_v30  ;;  %v10412_v62 = vand.u32 4294901760, %v10338_v55 }
 0xb10   : > { %30889 = vmatprep.subr.bf16.mxu1 %v39781_v30 }
 0xb12   : > { %30858 = vmatpush1.bf16.msra.mxu0 %v30857_v40  ;;  %v39727_v40 = vand.u32 4294901760, %v36404_v18 }
 0xb13   : > { %30891 = vmatpush1.bf16.msra.mxu1 %v36154_v19  ;;  %30859 = vmatprep.subr.bf16.mxu0 %v39781_v30  ;;  %v10413_v19 = vsub.f32 %v10338_v55, %v10412_v62 }
 0xb14   : > { %30892 = vmatprep.subr.bf16.mxu1 %v39781_v30  ;;  %v11039_v48 = vsub.f32 %v36404_v18, %v39727_v40 }
 0xb15   : > { %v10414_v4 = vand.u32 4294901760, %v10413_v19 }
 0xb16   : > { %30861 = vmatpush1.bf16.msra.mxu0 %v30860_v17 }
 0xb17   : > { %30894 = vmatpush1.bf16.msra.mxu1 %v36158_v29  ;;  %30862 = vmatprep.subr.bf16.mxu0 %v39781_v30  ;;  %v10424_v29 = vsub.f32 %v10341_v49, %v10423_v53  ;;  %v10415_v59 = vsub.f32 %v10413_v19, %v10414_v4  ;;  %v39723_v49 = vand.u32 4294901760, %v36424_v20 }
 0xb18   : > { %30919 = vmatprep.subr.bf16.mxu1 %v39781_v30 }
 0xb19   : > { %v10425_v35 = vand.u32 4294901760, %v10424_v29  ;;  %v10416_v15 = vand.u32 4294901760, %v10415_v59  ;;  %v11040_v59 = vand.u32 4294901760, %v11039_v48 }
 0xb1a   : > { %10320 = vmatmul.mubr.f32.vlgmr.msra.gmra.mrb[88].mxu1 %v36186_v42  ;;  %30864 = vmatpush1.bf16.msra.mxu0 %v30863_v51  ;;  %v11053_v51 = vsub.f32 %v36408_v5, %v39725_v41 }
 0xb1b   : > { %10325 = vmatprep.mubr.f32.mxu1 %v36204_v13  ;;  %30865 = vmatprep.subr.bf16.mxu0 %v39781_v30  ;;  %v10426_v46 = vsub.f32 %v10424_v29, %v10425_v35 }
 0xb1d   : > { %v10427_v36 = vand.u32 4294901760, %v10426_v46  ;;  %v11067_v46 = vsub.f32 %v36424_v20, %v39723_v49 }
 0xb1e   : > { %10327 = vmatmul.mubr.f32.gmra.mrb[90].mxu1 %v36196_v9  ;;  %30867 = vmatpush1.bf16.msra.mxu0 %v30866_v44 }
 0xb1f   : > { %30896 = vmatprep.subr.bf16.mxu0 %v33583_v1  ;;  %v11068_v2 = vand.u32 4294901760, %v11067_v46 }
 0xb21   : > { %10223 = vmatmul.mubr.f32.vlgmr.msra.gmra.mrb[84].mxu0 %v36186_v42  ;;  %v27060_v42 = vld [vmem:[%s39579_s4 + $0x360] sm:$0xff] }
 0xb22   : > { %10228 = vmatprep.mubr.f32.mxu0 %v36204_v13  ;;  %30898 = vmatpush1.bf16.msra.mxu0 %v33596_v32  ;;  %v10909_v13 = vand.u32 4294901760, %v27060_v42 }
 0xb23   : > { %30900 = vmatprep.subr.bf16.mxu0 %v33609_v60 }
 0xb24   : > { %v36377_v47 = vsub.f32 %v27060_v42, %v10909_v13 }
 0xb25   : > { %10230 = vmatmul.mubr.f32.gmra.mrb[86].mxu0 %v36196_v9  ;;  %v27061_v9 = vld [vmem:[%s39579_s4 + $0x368] sm:$0xff] }
 0xb26   : > { %10411 = vmatprep.mubr.f32.mxu0 %v39803_v6  ;;  %v10912_v28 = vand.u32 4294901760, %v27061_v9  ;;  %v39729_v14 = vand.u32 4294901760, %v36377_v47 }
 0xb28   : > { %v36379_v7 = vsub.f32 %v27061_v9, %v10912_v28  ;;  %v36387_v11 = vpack.c.bf16 %v10912_v28, %v10909_v13  ;;  %v11025_v37 = vsub.f32 %v36377_v47, %v39729_v14  ;;  %v27071_v28 = vld [vmem:[%s39579_s4 + $0x3b8] sm:$0xff] }
 0xb29   : > { %10417 = vmatmul.mubr.f32.vlgmr.msra.gmra.mrb[88].mxu0 %v10416_v15  ;;  %v11054_v15 = vand.u32 4294901760, %v11053_v51  ;;  %v10948_v51 = vand.u32 4294901760, %v36478_v43 }
 0xb2a   : > { %30902 = vmatpush1.bf16.msra.mxu0 %v33618_v8  ;;  %10422 = vmatprep.mubr.f32.mxu0 %v39803_v6  ;;  %v39728_v57 = vand.u32 4294901760, %v36379_v7  ;;  %v11026_v17 = vand.u32 4294901760, %v11025_v37  ;;  %v10942_v37 = vand.u32 4294901760, %v27071_v28 }
 0xb2b   : > { %30904 = vmatprep.subr.bf16.mxu0 %v33622_v34  ;;  %30921 = vmatpush1.bf16.msra.mxu1 %v36387_v11 }
 0xb2c   : > { %30922 = vmatprep.subr.bf16.mxu1 %v39781_v30  ;;  %v11032_v61 = vsub.f32 %v36379_v7, %v39728_v57 }
 0xb2d   : > { %10428 = vmatmul.mubr.f32.gmra.mrb[90].mxu0 %v10427_v36  ;;  %v11061_v36 = vand.u32 4294901760, %v11060_v0  ;;  %v36511_v0 = vsub.f32 %v36469_v24, %v10945_v27 }
 0xb2e   : > { %10518 = vmatprep.mubr.f32.mxu0 %v39803_v6  ;;  %v11033_v55 = vand.u32 4294901760, %v11032_v61 }
 0xb2f   : > { %30924 = vmatpush1.bf16.msra.mxu1 %v36411_v22 }
 0xb30   : > { %30925 = vmatprep.subr.bf16.mxu1 %v39781_v30  ;;  %v30947_v54 = vpack.c.bf16 %v11033_v55, %v11026_v17 }
 0xb31   : > { %10520 = vmatmul.mubr.f32.vlgmr.msra.gmra.mrb[88].mxu0 %v10412_v62 }
 0xb32   : > { %30906 = vmatpush1.bf16.msra.mxu0 %v33602_v12  ;;  %10525 = vmatprep.mubr.f32.mxu0 %v39803_v6 }
 0xb33   : > { %30908 = vmatprep.subr.bf16.mxu0 %v33583_v1 }
 0xb35   : > { %10527 = vmatmul.mubr.f32.gmra.mrb[90].mxu0 %v10423_v53 }
 0xb36   : > { %10605 = vmatprep.mubr.f32.mxu0 %v39803_v6 }
 0xb39   : > { %10608 = vmatmul.mubr.f32.vlgmr.msra.gmra.mrb[88].mxu0 %v10413_v19  ;;  %v27068_v19 = vld [vmem:[%s39579_s4 + $0x3a0] sm:$0xff] }
 0xb3a   : > { %30910 = vmatpush1.bf16.msra.mxu0 %v33596_v32  ;;  %10613 = vmatprep.mubr.f32.mxu0 %v39803_v6  ;;  %v10933_v9 = vand.u32 4294901760, %v27068_v19 }
 0xb3b   : > { %30912 = vmatprep.subr.bf16.mxu0 %v39806_v38 }
 0xb3d   : > { %10616 = vmatmul.mubr.f32.gmra.mrb[90].mxu0 %v10424_v29  ;;  %v27070_v29 = vld [vmem:[%s39579_s4 + $0x3b0] sm:$0xff] }
 0xb3e   : > { %10690 = vmatprep.mubr.f32.mxu0 %v39803_v6  ;;  %v10939_v56 = vand.u32 4294901760, %v27070_v29 }
 0xb40   : > { %v36484_v61 = vsub.f32 %v27070_v29, %v10939_v56  ;;  %v36513_v29 = vpack.c.bf16 %v10942_v37, %v10939_v56 }
 0xb41   : > { %10694 = vmatmul.mubr.f32.vlgmr.msra.gmra.mrb[88].mxu0 %v10414_v4  ;;  %v36451_v4 = vpack.c.bf16 %v10924_v10, %v10921_v31  ;;  %v30953_v31 = vpack.c.bf16 %v11061_v36, %v11054_v15  ;;  %v36524_v15 = vsub.f32 %v36478_v43, %v10948_v51 }
 0xb42   : > { %30914 = vmatpush1.bf16.msra.mxu0 %v39809_v25  ;;  %10699 = vmatprep.mubr.f32.mxu0 %v39803_v6 }
 0xb43   : > { %30916 = vmatprep.subr.bf16.mxu0 %v33583_v1  ;;  %30927 = vmatpush1.bf16.msra.mxu1 %v36451_v4 }
 0xb44   : > { %30928 = vmatprep.subr.bf16.mxu1 %v39781_v30 }
 0xb45   : > { %10703 = vmatmul.mubr.f32.gmra.mrb[90].mxu0 %v10425_v35  ;;  %v11047_v35 = vand.u32 4294901760, %v11046_v16 }
 0xb46   : > { %10785 = vmatprep.mubr.f32.mxu0 %v39803_v6 }
 0xb47   : > { %v30950_v26 = vpack.c.bf16 %v11047_v35, %v11040_v59  ;;  %30930 = vmatpush1.bf16.msra.mxu1 %v36473_v50 }
 0xb48   : > { %30931 = vmatprep.subr.bf16.mxu1 %v39781_v30 }
 0xb49   : > { %10787 = vmatmul.mubr.f32.vlgmr.msra.gmra.mrb[88].mxu0 %v10412_v62 }
 0xb4a   : > { %30918 = vmatpush1.bf16.msra.mxu0 %v33596_v32  ;;  %10792 = vmatprep.mubr.f32.mxu0 %v39803_v6 }
 0xb4b   : > { %30946 = vmatprep.subr.bf16.mxu0 %v39781_v30 }
 0xb4d   : > { %10794 = vmatmul.mubr.f32.gmra.mrb[90].mxu0 %v10423_v53 }
 0xb4e   : > { %10868 = vmatprep.mubr.f32.mxu0 %v39803_v6 }
 0xb51   : > { %10870 = vmatmul.mubr.f32.vlgmr.msra.gmra.mrb[88].mxu0 %v10412_v62  ;;  %v36428_v62 = vsub.f32 %v27067_v58, %v10930_v63  ;;  %v36480_v58 = vsub.f32 %v27068_v19, %v10933_v9  ;;  %v36492_v63 = vld [vmem:[%s39579_s4 + $0x3d0] sm:$0xff]  ;;  %v36501_v19 = vld [vmem:[%s39579_s4 + $0x3d8] sm:$0xff] }
 0xb52   : > { %10875 = vmatprep.mubr.f32.mxu0 %v39803_v6  ;;  %30948 = vmatpush1.bf16.msra.mxu0 %v30947_v54  ;;  %v36505_v54 = vsub.f32 %v27071_v28, %v10942_v37  ;;  %v10951_v46 = vand.u32 4294901760, %v36492_v63 }
 0xb53   : > { %v39722_v44 = vand.u32 4294901760, %v36428_v62  ;;  %30949 = vmatprep.subr.bf16.mxu0 %v39781_v30  ;;  %v39715_v48 = vand.u32 4294901760, %v36480_v58 }
 0xb54   : > { %v36538_v56 = vsub.f32 %v36492_v63, %v10951_v46  ;;  %v30974_v63 = vpack.c.bf16 %v36379_v7, %v36377_v47 }
 0xb55   : > { %10877 = vmatmul.mubr.f32.gmra.mrb[90].mxu0 %v10423_v53  ;;  %v27069_v53 = vld [vmem:[%s39579_s4 + $0x3a8] sm:$0xff]  ;;  %v11074_v42 = vsub.f32 %v36428_v62, %v39722_v44  ;;  %v11081_v59 = vsub.f32 %v36480_v58, %v39715_v48 }
 0xb56   : > { %v10936_v13 = vand.u32 4294901760, %v27069_v53  ;;  %30951 = vmatpush1.bf16.msra.mxu0 %v30950_v26 }
 0xb57   : > { %v11075_v21 = vand.u32 4294901760, %v11074_v42  ;;  %30952 = vmatprep.subr.bf16.mxu0 %v39781_v30  ;;  %v39714_v42 = vand.u32 4294901760, %v36505_v54  ;;  %v11082_v28 = vand.u32 4294901760, %v11081_v59 }
 0xb58   : > { %v36482_v10 = vsub.f32 %v27069_v53, %v10936_v13  ;;  %v36486_v17 = vpack.c.bf16 %v10936_v13, %v10933_v9  ;;  %v39712_v53 = vand.u32 4294901760, %v36484_v61  ;;  %v39716_v9 = vand.u32 4294901760, %v36511_v0 }
 0xb59   : > { %v30956_v55 = vpack.c.bf16 %v11075_v21, %v11068_v2  ;;  %v10954_v13 = vand.u32 4294901760, %v36501_v19  ;;  %v39719_v2 = vand.u32 4294901760, %v36524_v15  ;;  %v11102_v21 = vsub.f32 %v36505_v54, %v39714_v42 }
 0xb5a   : > { %v39713_v16 = vand.u32 4294901760, %v36482_v10  ;;  %v11095_v36 = vsub.f32 %v36484_v61, %v39712_v53  ;;  %30954 = vmatpush1.bf16.msra.mxu0 %v30953_v31  ;;  %30933 = vmatpush1.bf16.msra.mxu1 %v36486_v17  ;;  %v11109_v59 = vsub.f32 %v36511_v0, %v39716_v9  ;;  %v39717_v42 = vand.u32 4294901760, %v36538_v56 }
 0xb5b   : > { %30955 = vmatprep.subr.bf16.mxu0 %v39781_v30  ;;  %30934 = vmatprep.subr.bf16.mxu1 %v39781_v30  ;;  %v36546_v31 = vsub.f32 %v36501_v19, %v10954_v13 }
 0xb5c   : > { %v11088_v35 = vsub.f32 %v36482_v10, %v39713_v16  ;;  %v11096_v37 = vand.u32 4294901760, %v11095_v36  ;;  %v11103_v16 = vand.u32 4294901760, %v11102_v21  ;;  %v11110_v19 = vand.u32 4294901760, %v11109_v59  ;;  %v27076_v21 = vld [vmem:[%s39579_s4 + $0x3e0] sm:$0xff] }
 0xb5d   : > { %v39718_v48 = vand.u32 4294901760, %v36546_v31  ;;  %v10957_v59 = vand.u32 4294901760, %v27076_v21 }
 0xb5e   : > { %v11089_v26 = vand.u32 4294901760, %v11088_v35  ;;  %v11116_v35 = vsub.f32 %v36524_v15, %v39719_v2  ;;  %30957 = vmatpush1.bf16.msra.mxu0 %v30956_v55  ;;  %30936 = vmatpush1.bf16.msra.mxu1 %v36513_v29  ;;  %v30962_v9 = vpack.c.bf16 %v11103_v16, %v11096_v37  ;;  %v11123_v55 = vsub.f32 %v36538_v56, %v39717_v42 }
 0xb5f   : > { %30958 = vmatprep.subr.bf16.mxu0 %v39781_v30  ;;  %30937 = vmatprep.subr.bf16.mxu1 %v39781_v30  ;;  %v36573_v42 = vsub.f32 %v27076_v21, %v10957_v59 }
 0xb60   : > { %v30959_v53 = vpack.c.bf16 %v11089_v26, %v11082_v28  ;;  %v11117_v36 = vand.u32 4294901760, %v11116_v35  ;;  %v11130_v28 = vsub.f32 %v36546_v31, %v39718_v48  ;;  %v11124_v16 = vand.u32 4294901760, %v11123_v55 }
 0xb62   : > { %30960 = vmatpush1.bf16.msra.mxu0 %v30959_v53  ;;  %v30965_v26 = vpack.c.bf16 %v11117_v36, %v11110_v19  ;;  %v27077_v53 = vld [vmem:[%s39579_s4 + $0x3e8] sm:$0xff]  ;;  %v11131_v37 = vand.u32 4294901760, %v11130_v28  ;;  %v39720_v36 = vand.u32 4294901760, %v36573_v42 }
 0xb63   : > { %30961 = vmatprep.subr.bf16.mxu0 %v39781_v30  ;;  %v10960_v35 = vand.u32 4294901760, %v27077_v53 }
 0xb64   : > { %v30968_v19 = vpack.c.bf16 %v11131_v37, %v11124_v16  ;;  %v36591_v16 = vpack.c.bf16 %v10948_v51, %v10945_v27 }
 0xb65   : > { %v36575_v48 = vsub.f32 %v27077_v53, %v10960_v35  ;;  %v36602_v51 = vpack.c.bf16 %v10960_v35, %v10957_v59 }
 0xb66   : > { %30963 = vmatpush1.bf16.msra.mxu0 %v30962_v9  ;;  %v11137_v9 = vsub.f32 %v36573_v42, %v39720_v36  ;;  %30939 = vmatpush1.bf16.msra.mxu1 %v36591_v16 }
 0xb67   : > { %30964 = vmatprep.subr.bf16.mxu0 %v39781_v30  ;;  %v39721_v2 = vand.u32 4294901760, %v36575_v48  ;;  %30940 = vmatprep.subr.bf16.mxu1 %v39781_v30 }
 0xb68   : > { %v11138_v28 = vand.u32 4294901760, %v11137_v9  ;;  %v36598_v9 = vpack.c.bf16 %v10954_v13, %v10951_v46  ;;  %v30977_v46 = vpack.c.bf16 %v36406_v3, %v36404_v18  ;;  %v30980_v13 = vpack.c.bf16 %v36419_v23, %v36408_v5 }
 0xb69   : > { %v11144_v55 = vsub.f32 %v36575_v48, %v39721_v2 }
 0xb6a   : > { %30966 = vmatpush1.bf16.msra.mxu0 %v30965_v26  ;;  %30942 = vmatpush1.bf16.msra.mxu1 %v36598_v9 }
 0xb6b   : > { %30967 = vmatprep.subr.bf16.mxu0 %v39781_v30  ;;  %v11145_v21 = vand.u32 4294901760, %v11144_v55  ;;  %30943 = vmatprep.subr.bf16.mxu1 %v39781_v30 }
 0xb6d   : > { %v30971_v37 = vpack.c.bf16 %v11145_v21, %v11138_v28 }
 0xb6e   : > { %30969 = vmatpush1.bf16.msra.mxu0 %v30968_v19  ;;  %30945 = vmatpush1.bf16.msra.mxu1 %v36602_v51 }
 0xb6f   : > { %30970 = vmatprep.subr.bf16.mxu0 %v39781_v30  ;;  %30973 = vmatprep.subr.bf16.mxu1 %v39781_v30 }
 0xb72   : > { %30972 = vmatpush1.bf16.msra.mxu0 %v30971_v37 }
 0xb73   : > { %31000 = vmatprep.subr.bf16.mxu0 %v39781_v30 }
 0xba4   : > { %v9867_v53 = vpop.f32.mrb[80].mxu1 }
 0xba5   : > { %v9869_v26 = vpop.f32.mrb[81].mxu1 }
 0xba8   : > { %v9874_v36 = vpop.f32.mrb[82].mxu1 }
 0xba9   : > { %v9876_v19 = vpop.f32.mrb[83].mxu1 }
 0xbac   : > { %v9690_v24 = vpop.f32.mrb[76].mxu0 }
 0xbad   : > { %v9868_v43 = vadd.f32 %v9867_v53, %v9690_v24  ;;  %v9692_v27 = vpop.f32.mrb[77].mxu0 }
 0xbb0   : > { %v9705_v55 = vpop.f32.mrb[78].mxu0 }
 0xbb1   : > { %v9875_v28 = vadd.f32 %v9874_v36, %v9705_v55  ;;  %v9707_v21 = vpop.f32.mrb[79].mxu0 }
 0xbc8   : > { %v10087_v36 = vpop.f32.mrb[84].mxu1 }
 0xbc9   : > { %v10089_v37 = vpop.f32.mrb[85].mxu1 }
 0xbcc   : > { %v10098_v19 = vpop.f32.mrb[86].mxu1 }
 0xbcd   : > { %v10100_v24 = vpop.f32.mrb[87].mxu1 }
 0xbd0   : > { %v9984_v55 = vpop.f32.mrb[80].mxu0 }
 0xbd1   : > { %v9985_v21 = vadd.f32 %v9984_v55, %v9868_v43  ;;  %v9986_v2 = vpop.f32.mrb[81].mxu0 }
 0xbd3   : > { %v10088_v49 = vadd.f32 %v10087_v36, %v9985_v21 }
 0xbd4   : > { %v9993_v39 = vpop.f32.mrb[82].mxu0 }
 0xbd5   : > { %v9994_v41 = vadd.f32 %v9993_v39, %v9875_v28  ;;  %v9995_v33 = vpop.f32.mrb[83].mxu0 }
 0xbd7   : > { %v10099_v40 = vadd.f32 %v10098_v19, %v9994_v41 }
 0xbed   : > { %v10321_v57 = vpop.f32.mrb[88].mxu1 }
 0xbee   : > { %v10323_v14 = vpop.f32.mrb[89].mxu1 }
 0xbf1   : > { %v10328_v26 = vpop.f32.mrb[90].mxu1 }
 0xbf2   : > { %v10330_v37 = vpop.f32.mrb[91].mxu1 }
 0xbf4   : > { %v10224_v53 = vpop.f32.mrb[84].mxu0 }
 0xbf5   : > { %v10225_v24 = vadd.f32 %v10224_v53, %v10088_v49  ;;  %v10226_v35 = vpop.f32.mrb[85].mxu0 }
 0xbf7   : > { %v10322_v59 = vadd.f32 %v10321_v57, %v10225_v24 }
 0xbf8   : > { %v10231_v27 = vpop.f32.mrb[86].mxu0 }
 0xbf9   : > { %v36625_v43 = vadd.f32 %v10322_v59, %v36181_v45  ;;  %v10232_v2 = vadd.f32 %v10231_v27, %v10099_v40  ;;  %v10233_v55 = vpop.f32.mrb[87].mxu0 }
 0xbfb   : > { %v10329_v44 = vadd.f32 %v10328_v26, %v10232_v2 }
 0xbfd   : > { %v36628_v36 = vadd.f32 %v10329_v44, %v36184_v52 }
 0xc24   : > { %v10871_v33 = vpop.f32.mrb[88].mxu0 }
 0xc25   : > { %v36630_v41 = vand.u32 4294901760, %v10871_v33  ;;  %v10873_v14 = vpop.f32.mrb[89].mxu0 }
 0xc26   : > { %v10903_v39 = vsel %vm2469_vm4, %v10873_v14, 0 }
 0xc27   : > { %v36634_v49 = vsub.f32 %v10871_v33, %v36630_v41  ;;  %v36636_v57 = vand.u32 4294901760, %v10903_v39 }
 0xc28   : > { %v10878_v28 = vpop.f32.mrb[90].mxu0 }
 0xc29   : > { %v10998_v45 = vand.u32 4294901760, %v36634_v49  ;;  %v10991_v40 = vsub.f32 %v10903_v39, %v36636_v57  ;;  %v36640_v59 = vand.u32 4294901760, %v10878_v28  ;;  %v10880_v52 = vpop.f32.mrb[91].mxu0  ;;  %11176 = vmatprep.mubr.f32.mxu0 %v36636_v57 }
 0xc2a   : > { %v10906_v44 = vsel %vm2469_vm4, %v10880_v52, 0  ;;  %11178 = vmatmul.mubr.f32.vlgmr.msra.gmra.mrb[92].mxu0 %v36630_v41  ;;  %v39918_v52 = vpack.c.bf16 %v36546_v31, %v36538_v56 }
 0xc2b   : > { %v36646_v35 = vsub.f32 %v10878_v28, %v36640_v59  ;;  %v36648_v53 = vand.u32 4294901760, %v10906_v44  ;;  %31002 = vmatpush1.bf16.msra.mxu0 %v36387_v11  ;;  %v10992_v26 = vand.u32 4294901760, %v10991_v40  ;;  %v10999_v19 = vsub.f32 %v36634_v49, %v10998_v45 }
 0xc2c   : > { %31003 = vmatprep.subr.bf16.mxu0 %v39781_v30 }
 0xc2d   : > { %v11013_v27 = vand.u32 4294901760, %v36646_v35  ;;  %v11006_v21 = vsub.f32 %v10906_v44, %v36648_v53  ;;  %11183 = vmatprep.mubr.f32.mxu0 %v36648_v53  ;;  %v10993_v37 = vsub.f32 %v10991_v40, %v10992_v26  ;;  %v11000_v55 = vand.u32 4294901760, %v10999_v19 }
 0xc2e   : > { %11185 = vmatmul.mubr.f32.gmra.mrb[94].mxu0 %v36640_v59  ;;  %v39919_v44 = vpack.c.bf16 %v36575_v48, %v36573_v42 }
 0xc2f   : > { %v11007_v24 = vand.u32 4294901760, %v11006_v21  ;;  %31005 = vmatpush1.bf16.msra.mxu0 %v36411_v22  ;;  %11394 = vmatprep.mubr.f32.mxu0 %v10992_v26  ;;  %v10994_v2 = vand.u32 4294901760, %v10993_v37  ;;  %v11014_v33 = vsub.f32 %v36646_v35, %v11013_v27  ;;  %v39921_v26 = vand.u32 4294901760, %v36379_v7 }
 0xc30   : > { %31006 = vmatprep.subr.bf16.mxu0 %v39781_v30  ;;  %v39925_v7 = vand.u32 4294901760, %v36419_v23  ;;  %v39929_v23 = vand.u32 4294901760, %v36482_v10 }
 0xc31   : > { %10995 = vmatprep.mubr.f32.mxu1 %v10994_v2  ;;  %v11008_v14 = vsub.f32 %v11006_v21, %v11007_v24  ;;  %v11015_v28 = vand.u32 4294901760, %v11014_v33 }
 0xc32   : > { %11001 = vmatmul.mubr.f32.vlgmr.msra.gmra.mrb[92].mxu1 %v11000_v55 }
 0xc33   : > { %30975 = vmatpush1.bf16.msra.mxu1 %v30974_v63  ;;  %31008 = vmatpush1.bf16.msra.mxu0 %v36451_v4  ;;  %v11009_v39 = vand.u32 4294901760, %v11008_v14  ;;  %v39914_v63 = vpack.c.bf16 %v36428_v62, %v36424_v20 }
 0xc34   : > { %30976 = vmatprep.subr.bf16.mxu1 %v39781_v30  ;;  %31009 = vmatprep.subr.bf16.mxu0 %v39781_v30 }
 0xc35   : > { %11010 = vmatprep.mubr.f32.mxu1 %v11009_v39 }
 0xc36   : > { %11016 = vmatmul.mubr.f32.gmra.mrb[94].mxu1 %v11015_v28 }
 0xc37   : > { %30978 = vmatpush1.bf16.msra.mxu1 %v30977_v46  ;;  %31011 = vmatpush1.bf16.msra.mxu0 %v36473_v50  ;;  %v39915_v46 = vpack.c.bf16 %v36482_v10, %v36480_v58  ;;  %v39932_v10 = vand.u32 4294901760, %v36511_v0 }
 0xc38   : > { %11292 = vmatprep.mubr.f32.mxu1 %v10991_v40  ;;  %30979 = vmatprep.subr.bf16.mxu1 %v39781_v30  ;;  %v39917_v40 = vpack.c.bf16 %v36524_v15, %v36511_v0  ;;  %v39935_v0 = vand.u32 4294901760, %v36546_v31 }
 0xc39   : > { %31012 = vmatprep.subr.bf16.mxu0 %v39781_v30 }
 0xc3b   : > { %30981 = vmatpush1.bf16.msra.mxu1 %v30980_v13  ;;  %31014 = vmatpush1.bf16.msra.mxu0 %v36486_v17  ;;  %v39916_v13 = vpack.c.bf16 %v36505_v54, %v36484_v61 }
 0xc3c   : > { %30982 = vmatprep.subr.bf16.mxu1 %v39781_v30  ;;  %31015 = vmatprep.subr.bf16.mxu0 %v39781_v30 }
 0xc3f   : > { %30984 = vmatpush1.bf16.msra.mxu1 %v39914_v63  ;;  %31017 = vmatpush1.bf16.msra.mxu0 %v36513_v29 }
 0xc40   : > { %30985 = vmatprep.subr.bf16.mxu1 %v39781_v30  ;;  %31018 = vmatprep.subr.bf16.mxu0 %v39781_v30 }
 0xc43   : > { %30987 = vmatpush1.bf16.msra.mxu1 %v39915_v46  ;;  %31020 = vmatpush1.bf16.msra.mxu0 %v36591_v16  ;;  %v27082_v46 = vld [vmem:[%s39579_s4 + $0x400] sm:$0xff] }
 0xc44   : > { %30988 = vmatprep.subr.bf16.mxu1 %v39781_v30  ;;  %31021 = vmatprep.subr.bf16.mxu0 %v39781_v30 }
 0xc47   : > { %30990 = vmatpush1.bf16.msra.mxu1 %v39916_v13  ;;  %31023 = vmatpush1.bf16.msra.mxu0 %v36598_v9  ;;  %v27083_v13 = vld [vmem:[%s39579_s4 + $0x408] sm:$0xff] }
 0xc48   : > { %30991 = vmatprep.subr.bf16.mxu1 %v39781_v30  ;;  %31024 = vmatprep.subr.bf16.mxu0 %v39781_v30 }
 0xc4b   : > { %30993 = vmatpush1.bf16.msra.mxu1 %v39917_v40  ;;  %31026 = vmatpush1.bf16.msra.mxu0 %v36602_v51 }
 0xc4c   : > { %30994 = vmatprep.subr.bf16.mxu1 %v39781_v30  ;;  %31054 = vmatprep.subr.bf16.mxu0 %v39781_v30 }
 0xc4e   : > { %11398 = vmatmul.mubr.f32.vlgmr.msra.gmra.mrb[96].mxu0 %v10998_v45  ;;  %v39920_v45 = vand.u32 4294901760, %v36377_v47  ;;  %v39924_v47 = vand.u32 4294901760, %v36408_v5  ;;  %v39928_v5 = vand.u32 4294901760, %v36480_v58  ;;  %v27078_v58 = vld [vmem:[%s39578_s3 + $0x70] sm:$0xff] }
 0xc4f   : > { %30996 = vmatpush1.bf16.msra.mxu1 %v39918_v52  ;;  %11405 = vmatprep.mubr.f32.mxu0 %v11007_v24  ;;  %v39936_v24 = vand.u32 4294901760, %v36573_v42  ;;  %v27084_v52 = vld [vmem:[%s39579_s4 + $0x410] sm:$0xff] }
 0xc50   : > { %31056 = vmatpush1.bf16.msra.mxu0 %v36387_v11  ;;  %30997 = vmatprep.subr.bf16.mxu1 %v39781_v30  ;;  %v31028_v19 = vpack.c.bf16 %v39921_v26, %v39920_v45  ;;  %v39922_v11 = vand.u32 4294901760, %v36404_v18  ;;  %v39926_v18 = vand.u32 4294901760, %v36424_v20  ;;  %v39930_v20 = vand.u32 4294901760, %v36484_v61  ;;  %v27085_v26 = vld [vmem:[%s39579_s4 + $0x418] sm:$0xff] }
 0xc51   : > { %31057 = vmatprep.subr.bf16.mxu0 %v39781_v30  ;;  %v11650_v61 = vsel %vm2469_vm4, %v27078_v58, 0  ;;  %v12230_v45 = vand.u32 4294901760, %v27083_v13 }
 0xc52   : > { %11409 = vmatmul.mubr.f32.gmra.mrb[98].mxu0 %v11013_v27  ;;  %v39923_v27 = vand.u32 4294901760, %v36406_v3  ;;  %v39927_v3 = vand.u32 4294901760, %v36428_v62  ;;  %v39931_v62 = vand.u32 4294901760, %v36505_v54  ;;  %v27079_v54 = vld [vmem:[%s39578_s3 + $0x78] sm:$0xff] }
 0xc53   : > { %30999 = vmatpush1.bf16.msra.mxu1 %v39919_v44  ;;  %11630 = vmatprep.mubr.f32.mxu0 %v36636_v57  ;;  %v12227_v44 = vand.u32 4294901760, %v27082_v46 }
 0xc54   : > { %31059 = vmatpush1.bf16.msra.mxu0 %v36411_v22  ;;  %31027 = vmatprep.subr.bf16.mxu1 %v39781_v30  ;;  %v31031_v37 = vpack.c.bf16 %v39923_v27, %v39922_v11  ;;  %v31034_v22 = vpack.c.bf16 %v39925_v7, %v39924_v47  ;;  %v27086_v11 = vld [vmem:[%s39579_s4 + $0x420] sm:$0xff]  ;;  %v27087_v27 = vld [vmem:[%s39579_s4 + $0x428] sm:$0xff]  ;;  %v12236_v7 = vand.u32 4294901760, %v27085_v26 }
 0xc55   : > { %31060 = vmatprep.subr.bf16.mxu0 %v39781_v30 }
 0xc56   : > { %11295 = vmatmul.mubr.f32.vlgmr.msra.gmra.mrb[96].mxu1 %v36634_v49 }
 0xc57   : > { %11301 = vmatprep.mubr.f32.mxu1 %v11006_v21  ;;  %31029 = vmatpush1.bf16.msra.mxu1 %v31028_v19  ;;  %v12233_v19 = vand.u32 4294901760, %v27084_v52 }
 0xc58   : > { %31062 = vmatpush1.bf16.msra.mxu0 %v36451_v4  ;;  %31030 = vmatprep.subr.bf16.mxu1 %v39781_v30  ;;  %v31037_v4 = vpack.c.bf16 %v39927_v3, %v39926_v18  ;;  %v36848_v18 = vsub.f32 %v27082_v46, %v12227_v44  ;;  %v36850_v3 = vsub.f32 %v27083_v13, %v12230_v45  ;;  %v36913_v46 = vld [vmem:[%s39579_s4 + $0x450] sm:$0xff] }
 0xc59   : > { %31063 = vmatprep.subr.bf16.mxu0 %v39781_v30 }
 0xc5a   : > { %11304 = vmatmul.mubr.f32.gmra.mrb[98].mxu1 %v36646_v35  ;;  %v11653_v35 = vsel %vm2469_vm4, %v27079_v54, 0  ;;  %v39744_v58 = vand.u32 4294901760, %v36850_v3 }
 0xc5b   : > { %31032 = vmatpush1.bf16.msra.mxu1 %v31031_v37  ;;  %11533 = vmatprep.mubr.f32.mxu1 %v36636_v57  ;;  %v39934_v57 = vand.u32 4294901760, %v36538_v56  ;;  %v11735_v21 = vand.u32 4294901760, %v11653_v35  ;;  %v39937_v56 = vand.u32 4294901760, %v36575_v48 }
 0xc5c   : > { %31065 = vmatpush1.bf16.msra.mxu0 %v36473_v50  ;;  %31033 = vmatprep.subr.bf16.mxu1 %v39781_v30  ;;  %v31040_v50 = vpack.c.bf16 %v39929_v23, %v39928_v5  ;;  %v36855_v5 = vpack.c.bf16 %v12230_v45, %v12227_v44 }
 0xc5d   : > { %31066 = vmatprep.subr.bf16.mxu0 %v39781_v30  ;;  %v31052_v2 = vpack.c.bf16 %v39937_v56, %v39936_v24 }
 0xc5f   : > { %31035 = vmatpush1.bf16.msra.mxu1 %v31034_v22  ;;  %v12239_v22 = vand.u32 4294901760, %v27086_v11 }
 0xc60   : > { %31068 = vmatpush1.bf16.msra.mxu0 %v36486_v17  ;;  %31036 = vmatprep.subr.bf16.mxu1 %v39781_v30  ;;  %v31043_v17 = vpack.c.bf16 %v39931_v62, %v39930_v20  ;;  %v36863_v20 = vsub.f32 %v27085_v26, %v12236_v7  ;;  %v12242_v62 = vand.u32 4294901760, %v27087_v27  ;;  %v36922_v26 = vld [vmem:[%s39579_s4 + $0x458] sm:$0xff] }
 0xc61   : > { %31069 = vmatprep.subr.bf16.mxu0 %v39781_v30 }
 0xc62   : > { %v39742_v54 = vand.u32 4294901760, %v36863_v20  ;;  %v36917_v44 = vpack.c.bf16 %v12242_v62, %v12239_v22 }
 0xc63   : > { %31038 = vmatpush1.bf16.msra.mxu1 %v31037_v4  ;;  %v36852_v4 = vsub.f32 %v27084_v52, %v12233_v19 }
 0xc64   : > { %31071 = vmatpush1.bf16.msra.mxu0 %v36513_v29  ;;  %31039 = vmatprep.subr.bf16.mxu1 %v39781_v30  ;;  %v39933_v29 = vand.u32 4294901760, %v36524_v15  ;;  %v31049_v15 = vpack.c.bf16 %v39935_v0, %v39934_v57  ;;  %v12358_v0 = vsub.f32 %v36850_v3, %v39744_v58  ;;  %v12372_v56 = vsub.f32 %v36863_v20, %v39742_v54 }
 0xc65   : > { %31072 = vmatprep.subr.bf16.mxu0 %v39781_v30 }
 0xc66   : > { %v31046_v49 = vpack.c.bf16 %v39933_v29, %v39932_v10  ;;  %v39743_v10 = vand.u32 4294901760, %v36852_v4  ;;  %v36868_v29 = vsub.f32 %v27086_v11, %v12239_v22  ;;  %v12257_v22 = vand.u32 4294901760, %v36913_v46 }
 0xc67   : > { %31041 = vmatpush1.bf16.msra.mxu1 %v31040_v50 }
 0xc68   : > { %31074 = vmatpush1.bf16.msra.mxu0 %v36591_v16  ;;  %31042 = vmatprep.subr.bf16.mxu1 %v39781_v30  ;;  %v11724_v16 = vand.u32 4294901760, %v11650_v61 }
 0xc69   : > { %31075 = vmatprep.subr.bf16.mxu0 %v39781_v30 }
 0xc6b   : > { %31044 = vmatpush1.bf16.msra.mxu1 %v31043_v17  ;;  %v39745_v17 = vand.u32 4294901760, %v36848_v18 }
 0xc6c   : > { %31077 = vmatpush1.bf16.msra.mxu0 %v36598_v9  ;;  %31045 = vmatprep.subr.bf16.mxu1 %v39781_v30  ;;  %v11725_v9 = vsub.f32 %v11650_v61, %v11724_v16 }
 0xc6d   : > { %31078 = vmatprep.subr.bf16.mxu0 %v39781_v30  ;;  %v12351_v57 = vsub.f32 %v36848_v18, %v39745_v17 }
 0xc6e   : > { %v11726_v31 = vand.u32 4294901760, %v11725_v9 }
 0xc6f   : > { %31047 = vmatpush1.bf16.msra.mxu1 %v31046_v49 }
 0xc70   : > { %31080 = vmatpush1.bf16.msra.mxu0 %v36602_v51  ;;  %31048 = vmatprep.subr.bf16.mxu1 %v39781_v30  ;;  %v11736_v51 = vsub.f32 %v11653_v35, %v11735_v21  ;;  %v11727_v55 = vsub.f32 %v11725_v9, %v11726_v31  ;;  %v39741_v35 = vand.u32 4294901760, %v36868_v29 }
 0xc71   : > { %31105 = vmatprep.subr.bf16.mxu0 %v39781_v30 }
 0xc72   : > { %v11737_v33 = vand.u32 4294901760, %v11736_v51  ;;  %v11728_v48 = vand.u32 4294901760, %v11727_v55  ;;  %v12352_v55 = vand.u32 4294901760, %v12351_v57 }
 0xc73   : > { %11632 = vmatmul.mubr.f32.vlgmr.msra.gmra.mrb[100].mxu0 %v36630_v41  ;;  %31050 = vmatpush1.bf16.msra.mxu1 %v31049_v15  ;;  %v12365_v15 = vsub.f32 %v36852_v4, %v39743_v10 }
 0xc74   : > { %11637 = vmatprep.mubr.f32.mxu0 %v36648_v53  ;;  %31051 = vmatprep.subr.bf16.mxu1 %v39781_v30  ;;  %v11738_v42 = vsub.f32 %v11736_v51, %v11737_v33 }
 0xc76   : > { %v11739_v14 = vand.u32 4294901760, %v11738_v42  ;;  %v12379_v42 = vsub.f32 %v36868_v29, %v39741_v35 }
 0xc77   : > { %11639 = vmatmul.mubr.f32.gmra.mrb[102].mxu0 %v36640_v59  ;;  %31053 = vmatpush1.bf16.msra.mxu1 %v31052_v2 }
 0xc78   : > { %31082 = vmatprep.subr.bf16.mxu1 %v33583_v1  ;;  %v12380_v52 = vand.u32 4294901760, %v12379_v42 }
 0xc7a   : > { %11535 = vmatmul.mubr.f32.vlgmr.msra.gmra.mrb[100].mxu1 %v36630_v41  ;;  %v27080_v41 = vld [vmem:[%s39579_s4 + $0x3f0] sm:$0xff] }
 0xc7b   : > { %11540 = vmatprep.mubr.f32.mxu1 %v36648_v53  ;;  %31084 = vmatpush1.bf16.msra.mxu1 %v33596_v32  ;;  %v12221_v53 = vand.u32 4294901760, %v27080_v41 }
 0xc7c   : > { %31086 = vmatprep.subr.bf16.mxu1 %v33609_v60 }
 0xc7d   : > { %v36821_v28 = vsub.f32 %v27080_v41, %v12221_v53 }
 0xc7e   : > { %11542 = vmatmul.mubr.f32.gmra.mrb[102].mxu1 %v36640_v59  ;;  %v27081_v59 = vld [vmem:[%s39579_s4 + $0x3f8] sm:$0xff] }
 0xc7f   : > { %11723 = vmatprep.mubr.f32.mxu1 %v39803_v6  ;;  %v12224_v39 = vand.u32 4294901760, %v27081_v59  ;;  %v39747_v37 = vand.u32 4294901760, %v36821_v28 }
 0xc81   : > { %v36823_v63 = vsub.f32 %v27081_v59, %v12224_v39  ;;  %v36831_v40 = vpack.c.bf16 %v12224_v39, %v12221_v53  ;;  %v12337_v23 = vsub.f32 %v36821_v28, %v39747_v37  ;;  %v27091_v39 = vld [vmem:[%s39579_s4 + $0x448] sm:$0xff] }
 0xc82   : > { %11729 = vmatmul.mubr.f32.vlgmr.msra.gmra.mrb[104].mxu1 %v11728_v48  ;;  %v12366_v48 = vand.u32 4294901760, %v12365_v15  ;;  %v12260_v15 = vand.u32 4294901760, %v36922_v26 }
 0xc83   : > { %31088 = vmatpush1.bf16.msra.mxu1 %v33618_v8  ;;  %11734 = vmatprep.mubr.f32.mxu1 %v39803_v6  ;;  %v39746_v47 = vand.u32 4294901760, %v36823_v63  ;;  %v12338_v49 = vand.u32 4294901760, %v12337_v23  ;;  %v12254_v23 = vand.u32 4294901760, %v27091_v39 }
 0xc84   : > { %31090 = vmatprep.subr.bf16.mxu1 %v33622_v34  ;;  %31107 = vmatpush1.bf16.msra.mxu0 %v36831_v40 }
 0xc85   : > { %31108 = vmatprep.subr.bf16.mxu0 %v39781_v30  ;;  %v12344_v50 = vsub.f32 %v36823_v63, %v39746_v47 }
 0xc86   : > { %11740 = vmatmul.mubr.f32.gmra.mrb[106].mxu1 %v11739_v14  ;;  %v12373_v14 = vand.u32 4294901760, %v12372_v56  ;;  %v36955_v56 = vsub.f32 %v36913_v46, %v12257_v22 }
 0xc87   : > { %11830 = vmatprep.mubr.f32.mxu1 %v39803_v6  ;;  %v12345_v61 = vand.u32 4294901760, %v12344_v50 }
 0xc88   : > { %31110 = vmatpush1.bf16.msra.mxu0 %v36855_v5 }
 0xc89   : > { %31111 = vmatprep.subr.bf16.mxu0 %v39781_v30  ;;  %v31133_v24 = vpack.c.bf16 %v12345_v61, %v12338_v49 }
 0xc8a   : > { %11832 = vmatmul.mubr.f32.vlgmr.msra.gmra.mrb[104].mxu1 %v11724_v16 }
 0xc8b   : > { %31092 = vmatpush1.bf16.msra.mxu1 %v33602_v12  ;;  %11837 = vmatprep.mubr.f32.mxu1 %v39803_v6 }
 0xc8c   : > { %31094 = vmatprep.subr.bf16.mxu1 %v33583_v1 }
 0xc8e   : > { %11839 = vmatmul.mubr.f32.gmra.mrb[106].mxu1 %v11735_v21 }
 0xc8f   : > { %11917 = vmatprep.mubr.f32.mxu1 %v39803_v6 }
 0xc92   : > { %11920 = vmatmul.mubr.f32.vlgmr.msra.gmra.mrb[104].mxu1 %v11725_v9  ;;  %v27088_v9 = vld [vmem:[%s39579_s4 + $0x430] sm:$0xff] }
 0xc93   : > { %31096 = vmatpush1.bf16.msra.mxu1 %v33596_v32  ;;  %11925 = vmatprep.mubr.f32.mxu1 %v39803_v6  ;;  %v12245_v59 = vand.u32 4294901760, %v27088_v9 }
 0xc94   : > { %31098 = vmatprep.subr.bf16.mxu1 %v39806_v38 }
 0xc96   : > { %11928 = vmatmul.mubr.f32.gmra.mrb[106].mxu1 %v11736_v51  ;;  %v27090_v51 = vld [vmem:[%s39579_s4 + $0x440] sm:$0xff] }
 0xc97   : > { %12002 = vmatprep.mubr.f32.mxu1 %v39803_v6  ;;  %v12251_v45 = vand.u32 4294901760, %v27090_v51 }
 0xc99   : > { %v36928_v50 = vsub.f32 %v27090_v51, %v12251_v45  ;;  %v36957_v51 = vpack.c.bf16 %v12254_v23, %v12251_v45 }
 0xc9a   : > { %12006 = vmatmul.mubr.f32.vlgmr.msra.gmra.mrb[104].mxu1 %v11726_v31  ;;  %v36895_v31 = vpack.c.bf16 %v12236_v7, %v12233_v19  ;;  %v31139_v19 = vpack.c.bf16 %v12373_v14, %v12366_v48  ;;  %v36968_v48 = vsub.f32 %v36922_v26, %v12260_v15 }
 0xc9b   : > { %31100 = vmatpush1.bf16.msra.mxu1 %v39809_v25  ;;  %12011 = vmatprep.mubr.f32.mxu1 %v39803_v6 }
 0xc9c   : > { %31102 = vmatprep.subr.bf16.mxu1 %v33583_v1  ;;  %31113 = vmatpush1.bf16.msra.mxu0 %v36895_v31 }
 0xc9d   : > { %31114 = vmatprep.subr.bf16.mxu0 %v39781_v30 }
 0xc9e   : > { %12015 = vmatmul.mubr.f32.gmra.mrb[106].mxu1 %v11737_v33  ;;  %v12359_v33 = vand.u32 4294901760, %v12358_v0 }
 0xc9f   : > { %12097 = vmatprep.mubr.f32.mxu1 %v39803_v6 }
 0xca0   : > { %v31136_v13 = vpack.c.bf16 %v12359_v33, %v12352_v55  ;;  %31116 = vmatpush1.bf16.msra.mxu0 %v36917_v44 }
 0xca1   : > { %31117 = vmatprep.subr.bf16.mxu0 %v39781_v30 }
 0xca2   : > { %12099 = vmatmul.mubr.f32.vlgmr.msra.gmra.mrb[104].mxu1 %v11724_v16 }
 0xca3   : > { %31104 = vmatpush1.bf16.msra.mxu1 %v33596_v32  ;;  %12104 = vmatprep.mubr.f32.mxu1 %v39803_v6 }
 0xca4   : > { %31132 = vmatprep.subr.bf16.mxu1 %v39781_v30 }
 0xca6   : > { %12106 = vmatmul.mubr.f32.gmra.mrb[106].mxu1 %v11735_v21 }
 0xca7   : > { %12180 = vmatprep.mubr.f32.mxu1 %v39803_v6 }
 0xcaa   : > { %12182 = vmatmul.mubr.f32.vlgmr.msra.gmra.mrb[104].mxu1 %v11724_v16  ;;  %v36872_v16 = vsub.f32 %v27087_v27, %v12242_v62  ;;  %v36924_v27 = vsub.f32 %v27088_v9, %v12245_v59  ;;  %v36936_v62 = vld [vmem:[%s39579_s4 + $0x460] sm:$0xff]  ;;  %v36945_v9 = vld [vmem:[%s39579_s4 + $0x468] sm:$0xff] }
 0xcab   : > { %12187 = vmatprep.mubr.f32.mxu1 %v39803_v6  ;;  %31134 = vmatpush1.bf16.msra.mxu1 %v31133_v24  ;;  %v36949_v24 = vsub.f32 %v27091_v39, %v12254_v23  ;;  %v12263_v42 = vand.u32 4294901760, %v36936_v62 }
 0xcac   : > { %v39740_v2 = vand.u32 4294901760, %v36872_v16  ;;  %31135 = vmatprep.subr.bf16.mxu1 %v39781_v30  ;;  %v39733_v57 = vand.u32 4294901760, %v36924_v27 }
 0xcad   : > { %v36982_v45 = vsub.f32 %v36936_v62, %v12263_v42  ;;  %v31160_v62 = vpack.c.bf16 %v36823_v63, %v36821_v28 }
 0xcae   : > { %12189 = vmatmul.mubr.f32.gmra.mrb[106].mxu1 %v11735_v21  ;;  %v27089_v21 = vld [vmem:[%s39579_s4 + $0x438] sm:$0xff]  ;;  %v12386_v41 = vsub.f32 %v36872_v16, %v39740_v2  ;;  %v12393_v55 = vsub.f32 %v36924_v27, %v39733_v57 }
 0xcaf   : > { %v12248_v53 = vand.u32 4294901760, %v27089_v21  ;;  %31137 = vmatpush1.bf16.msra.mxu1 %v31136_v13 }
 0xcb0   : > { %v12387_v11 = vand.u32 4294901760, %v12386_v41  ;;  %31138 = vmatprep.subr.bf16.mxu1 %v39781_v30  ;;  %v39732_v41 = vand.u32 4294901760, %v36949_v24  ;;  %v12394_v39 = vand.u32 4294901760, %v12393_v55 }
 0xcb1   : > { %v36926_v7 = vsub.f32 %v27089_v21, %v12248_v53  ;;  %v36930_v49 = vpack.c.bf16 %v12248_v53, %v12245_v59  ;;  %v39730_v21 = vand.u32 4294901760, %v36928_v50  ;;  %v39734_v59 = vand.u32 4294901760, %v36955_v56 }
 0xcb2   : > { %v31142_v61 = vpack.c.bf16 %v12387_v11, %v12380_v52  ;;  %v12266_v53 = vand.u32 4294901760, %v36945_v9  ;;  %v39737_v52 = vand.u32 4294901760, %v36968_v48  ;;  %v12414_v11 = vsub.f32 %v36949_v24, %v39732_v41 }
 0xcb3   : > { %v39731_v0 = vand.u32 4294901760, %v36926_v7  ;;  %v12407_v14 = vsub.f32 %v36928_v50, %v39730_v21  ;;  %31140 = vmatpush1.bf16.msra.mxu1 %v31139_v19  ;;  %31119 = vmatpush1.bf16.msra.mxu0 %v36930_v49  ;;  %v12421_v55 = vsub.f32 %v36955_v56, %v39734_v59  ;;  %v39735_v41 = vand.u32 4294901760, %v36982_v45 }
 0xcb4   : > { %31141 = vmatprep.subr.bf16.mxu1 %v39781_v30  ;;  %31120 = vmatprep.subr.bf16.mxu0 %v39781_v30  ;;  %v36990_v19 = vsub.f32 %v36945_v9, %v12266_v53 }
 0xcb5   : > { %v12400_v33 = vsub.f32 %v36926_v7, %v39731_v0  ;;  %v12408_v23 = vand.u32 4294901760, %v12407_v14  ;;  %v12415_v0 = vand.u32 4294901760, %v12414_v11  ;;  %v12422_v9 = vand.u32 4294901760, %v12421_v55  ;;  %v27096_v11 = vld [vmem:[%s39579_s4 + $0x470] sm:$0xff] }
 0xcb6   : > { %v39736_v57 = vand.u32 4294901760, %v36990_v19  ;;  %v12269_v55 = vand.u32 4294901760, %v27096_v11 }
 0xcb7   : > { %v12401_v13 = vand.u32 4294901760, %v12400_v33  ;;  %v12428_v33 = vsub.f32 %v36968_v48, %v39737_v52  ;;  %31143 = vmatpush1.bf16.msra.mxu1 %v31142_v61  ;;  %31122 = vmatpush1.bf16.msra.mxu0 %v36957_v51  ;;  %v31148_v59 = vpack.c.bf16 %v12415_v0, %v12408_v23  ;;  %v12435_v61 = vsub.f32 %v36982_v45, %v39735_v41 }
 0xcb8   : > { %31144 = vmatprep.subr.bf16.mxu1 %v39781_v30  ;;  %31123 = vmatprep.subr.bf16.mxu0 %v39781_v30  ;;  %v37017_v41 = vsub.f32 %v27096_v11, %v12269_v55 }
 0xcb9   : > { %v31145_v21 = vpack.c.bf16 %v12401_v13, %v12394_v39  ;;  %v12429_v14 = vand.u32 4294901760, %v12428_v33  ;;  %v12442_v39 = vsub.f32 %v36990_v19, %v39736_v57  ;;  %v12436_v0 = vand.u32 4294901760, %v12435_v61 }
 0xcbb   : > { %31146 = vmatpush1.bf16.msra.mxu1 %v31145_v21  ;;  %v31151_v13 = vpack.c.bf16 %v12429_v14, %v12422_v9  ;;  %v27097_v21 = vld [vmem:[%s39579_s4 + $0x478] sm:$0xff]  ;;  %v12443_v23 = vand.u32 4294901760, %v12442_v39  ;;  %v39738_v14 = vand.u32 4294901760, %v37017_v41 }
 0xcbc   : > { %31147 = vmatprep.subr.bf16.mxu1 %v39781_v30  ;;  %v12272_v33 = vand.u32 4294901760, %v27097_v21 }
 0xcbd   : > { %v31154_v9 = vpack.c.bf16 %v12443_v23, %v12436_v0  ;;  %v37035_v0 = vpack.c.bf16 %v12260_v15, %v12257_v22 }
 0xcbe   : > { %v37019_v57 = vsub.f32 %v27097_v21, %v12272_v33  ;;  %v37046_v15 = vpack.c.bf16 %v12272_v33, %v12269_v55 }
 0xcbf   : > { %31149 = vmatpush1.bf16.msra.mxu1 %v31148_v59  ;;  %v12449_v59 = vsub.f32 %v37017_v41, %v39738_v14  ;;  %31125 = vmatpush1.bf16.msra.mxu0 %v37035_v0 }
 0xcc0   : > { %31150 = vmatprep.subr.bf16.mxu1 %v39781_v30  ;;  %v39739_v52 = vand.u32 4294901760, %v37019_v57  ;;  %31126 = vmatprep.subr.bf16.mxu0 %v39781_v30 }
 0xcc1   : > { %v12450_v39 = vand.u32 4294901760, %v12449_v59  ;;  %v37042_v59 = vpack.c.bf16 %v12266_v53, %v12263_v42  ;;  %v31163_v42 = vpack.c.bf16 %v36850_v3, %v36848_v18  ;;  %v31166_v53 = vpack.c.bf16 %v36863_v20, %v36852_v4 }
 0xcc2   : > { %v12456_v61 = vsub.f32 %v37019_v57, %v39739_v52 }
 0xcc3   : > { %31152 = vmatpush1.bf16.msra.mxu1 %v31151_v13  ;;  %31128 = vmatpush1.bf16.msra.mxu0 %v37042_v59 }
 0xcc4   : > { %31153 = vmatprep.subr.bf16.mxu1 %v39781_v30  ;;  %v12457_v11 = vand.u32 4294901760, %v12456_v61  ;;  %31129 = vmatprep.subr.bf16.mxu0 %v39781_v30 }
 0xcc6   : > { %v31157_v23 = vpack.c.bf16 %v12457_v11, %v12450_v39 }
 0xcc7   : > { %31155 = vmatpush1.bf16.msra.mxu1 %v31154_v9  ;;  %31131 = vmatpush1.bf16.msra.mxu0 %v37046_v15 }
 0xcc8   : > { %31156 = vmatprep.subr.bf16.mxu1 %v39781_v30  ;;  %31159 = vmatprep.subr.bf16.mxu0 %v39781_v30 }
 0xccb   : > { %31158 = vmatpush1.bf16.msra.mxu1 %v31157_v23 }
 0xccc   : > { %31186 = vmatprep.subr.bf16.mxu1 %v39781_v30 }
 0xcfd   : > { %v11179_v21 = vpop.f32.mrb[92].mxu0 }
 0xcfe   : > { %v11181_v13 = vpop.f32.mrb[93].mxu0 }
 0xd01   : > { %v11186_v14 = vpop.f32.mrb[94].mxu0 }
 0xd02   : > { %v11188_v9 = vpop.f32.mrb[95].mxu0 }
 0xd05   : > { %v11002_v46 = vpop.f32.mrb[92].mxu1 }
 0xd06   : > { %v11180_v26 = vadd.f32 %v11179_v21, %v11002_v46  ;;  %v11004_v22 = vpop.f32.mrb[93].mxu1 }
 0xd09   : > { %v11017_v61 = vpop.f32.mrb[94].mxu1 }
 0xd0a   : > { %v11187_v39 = vadd.f32 %v11186_v14, %v11017_v61  ;;  %v11019_v11 = vpop.f32.mrb[95].mxu1 }
 0xd21   : > { %v11399_v14 = vpop.f32.mrb[96].mxu0 }
 0xd22   : > { %v11401_v23 = vpop.f32.mrb[97].mxu0 }
 0xd25   : > { %v11410_v9 = vpop.f32.mrb[98].mxu0 }
 0xd26   : > { %v11412_v46 = vpop.f32.mrb[99].mxu0 }
 0xd29   : > { %v11296_v61 = vpop.f32.mrb[96].mxu1 }
 0xd2a   : > { %v11297_v11 = vadd.f32 %v11296_v61, %v11180_v26  ;;  %v11298_v52 = vpop.f32.mrb[97].mxu1 }
 0xd2c   : > { %v11400_v35 = vadd.f32 %v11399_v14, %v11297_v11 }
 0xd2d   : > { %v11305_v54 = vpop.f32.mrb[98].mxu1 }
 0xd2e   : > { %v11306_v10 = vadd.f32 %v11305_v54, %v11187_v39  ;;  %v11307_v58 = vpop.f32.mrb[99].mxu1 }
 0xd30   : > { %v11411_v17 = vadd.f32 %v11410_v9, %v11306_v10 }
 0xd46   : > { %v11633_v47 = vpop.f32.mrb[100].mxu0 }
 0xd47   : > { %v11635_v37 = vpop.f32.mrb[101].mxu0 }
 0xd4a   : > { %v11640_v13 = vpop.f32.mrb[102].mxu0 }
 0xd4b   : > { %v11642_v23 = vpop.f32.mrb[103].mxu0 }
 0xd4d   : > { %v11536_v21 = vpop.f32.mrb[100].mxu1 }
 0xd4e   : > { %v11537_v46 = vadd.f32 %v11536_v21, %v11400_v35  ;;  %v11538_v33 = vpop.f32.mrb[101].mxu1 }
 0xd50   : > { %v11634_v55 = vadd.f32 %v11633_v47, %v11537_v46 }
 0xd51   : > { %v11543_v22 = vpop.f32.mrb[102].mxu1 }
 0xd52   : > { %v37069_v26 = vadd.f32 %v11634_v55, %v36625_v43  ;;  %v11544_v52 = vadd.f32 %v11543_v22, %v11411_v17  ;;  %v11545_v61 = vpop.f32.mrb[103].mxu1 }
 0xd54   : > { %v11641_v2 = vadd.f32 %v11640_v13, %v11544_v52 }
 0xd56   : > { %v37072_v14 = vadd.f32 %v11641_v2, %v36628_v36 }
 0xd7d   : > { %v12183_v58 = vpop.f32.mrb[104].mxu1 }
 0xd7e   : > { %v37074_v10 = vand.u32 4294901760, %v12183_v58  ;;  %v12185_v37 = vpop.f32.mrb[105].mxu1 }
 0xd7f   : > { %v12215_v54 = vsel %vm2469_vm4, %v12185_v37, 0 }
 0xd80   : > { %v37078_v35 = vsub.f32 %v12183_v58, %v37074_v10  ;;  %v37080_v47 = vand.u32 4294901760, %v12215_v54 }
 0xd81   : > { %v12190_v39 = vpop.f32.mrb[106].mxu1 }
 0xd82   : > { %v12310_v43 = vand.u32 4294901760, %v37078_v35  ;;  %v12303_v17 = vsub.f32 %v12215_v54, %v37080_v47  ;;  %v37084_v55 = vand.u32 4294901760, %v12190_v39  ;;  %v12192_v36 = vpop.f32.mrb[107].mxu1  ;;  %12488 = vmatprep.mubr.f32.mxu1 %v37080_v47 }
 0xd83   : > { %v12218_v2 = vsel %vm2469_vm4, %v12192_v36, 0  ;;  %12490 = vmatmul.mubr.f32.vlgmr.msra.gmra.mrb[108].mxu1 %v37074_v10  ;;  %v39942_v36 = vpack.c.bf16 %v36990_v19, %v36982_v45 }
 0xd84   : > { %v37090_v33 = vsub.f32 %v12190_v39, %v37084_v55  ;;  %v37092_v21 = vand.u32 4294901760, %v12218_v2  ;;  %31188 = vmatpush1.bf16.msra.mxu1 %v36831_v40  ;;  %v12304_v13 = vand.u32 4294901760, %v12303_v17  ;;  %v12311_v9 = vsub.f32 %v37078_v35, %v12310_v43 }
 0xd85   : > { %31189 = vmatprep.subr.bf16.mxu1 %v39781_v30 }
 0xd86   : > { %v12325_v22 = vand.u32 4294901760, %v37090_v33  ;;  %v12318_v11 = vsub.f32 %v12218_v2, %v37092_v21  ;;  %12495 = vmatprep.mubr.f32.mxu1 %v37092_v21  ;;  %v12305_v23 = vsub.f32 %v12303_v17, %v12304_v13  ;;  %v12312_v61 = vand.u32 4294901760, %v12311_v9 }
 0xd87   : > { %12497 = vmatmul.mubr.f32.gmra.mrb[110].mxu1 %v37084_v55  ;;  %v39943_v2 = vpack.c.bf16 %v37019_v57, %v37017_v41 }
 0xd88   : > { %v12319_v46 = vand.u32 4294901760, %v12318_v11  ;;  %31191 = vmatpush1.bf16.msra.mxu1 %v36855_v5  ;;  %12706 = vmatprep.mubr.f32.mxu1 %v12304_v13  ;;  %v12306_v52 = vand.u32 4294901760, %v12305_v23  ;;  %v12326_v58 = vsub.f32 %v37090_v33, %v12325_v22  ;;  %v39945_v13 = vand.u32 4294901760, %v36823_v63 }
 0xd89   : > { %31192 = vmatprep.subr.bf16.mxu1 %v39781_v30  ;;  %v39949_v63 = vand.u32 4294901760, %v36863_v20  ;;  %v39953_v20 = vand.u32 4294901760, %v36926_v7 }
 0xd8a   : > { %12307 = vmatprep.mubr.f32.mxu0 %v12306_v52  ;;  %v12320_v37 = vsub.f32 %v12318_v11, %v12319_v46  ;;  %v12327_v39 = vand.u32 4294901760, %v12326_v58 }
 0xd8b   : > { %12313 = vmatmul.mubr.f32.vlgmr.msra.gmra.mrb[104].mxu0 %v12312_v61 }
 0xd8c   : > { %31161 = vmatpush1.bf16.msra.mxu0 %v31160_v62  ;;  %31194 = vmatpush1.bf16.msra.mxu1 %v36895_v31  ;;  %v12321_v54 = vand.u32 4294901760, %v12320_v37  ;;  %v39938_v62 = vpack.c.bf16 %v36872_v16, %v36868_v29 }
 0xd8d   : > { %31162 = vmatprep.subr.bf16.mxu0 %v39781_v30  ;;  %31195 = vmatprep.subr.bf16.mxu1 %v39781_v30 }
 0xd8e   : > { %12322 = vmatprep.mubr.f32.mxu0 %v12321_v54  ;;  %v27106_v54 = vld [vmem:[%s39579_s4 + $0x4b0] sm:$0xff] }
 0xd8f   : > { %12328 = vmatmul.mubr.f32.gmra.mrb[106].mxu0 %v12327_v39 }
 0xd90   : > { %31164 = vmatpush1.bf16.msra.mxu0 %v31163_v42  ;;  %31197 = vmatpush1.bf16.msra.mxu1 %v36917_v44  ;;  %v39939_v42 = vpack.c.bf16 %v36926_v7, %v36924_v27  ;;  %v39956_v7 = vand.u32 4294901760, %v36955_v56 }
 0xd91   : > { %12604 = vmatprep.mubr.f32.mxu0 %v12303_v17  ;;  %31165 = vmatprep.subr.bf16.mxu0 %v39781_v30  ;;  %v39941_v17 = vpack.c.bf16 %v36968_v48, %v36955_v56  ;;  %v39959_v56 = vand.u32 4294901760, %v36990_v19 }
 0xd92   : > { %31198 = vmatprep.subr.bf16.mxu1 %v39781_v30 }
 0xd94   : > { %31167 = vmatpush1.bf16.msra.mxu0 %v31166_v53  ;;  %31200 = vmatpush1.bf16.msra.mxu1 %v36930_v49  ;;  %v39940_v53 = vpack.c.bf16 %v36949_v24, %v36928_v50 }
 0xd95   : > { %31168 = vmatprep.subr.bf16.mxu0 %v39781_v30  ;;  %31201 = vmatprep.subr.bf16.mxu1 %v39781_v30 }
 0xd98   : > { %31170 = vmatpush1.bf16.msra.mxu0 %v39938_v62  ;;  %31203 = vmatpush1.bf16.msra.mxu1 %v36957_v51 }
 0xd99   : > { %31171 = vmatprep.subr.bf16.mxu0 %v39781_v30  ;;  %31204 = vmatprep.subr.bf16.mxu1 %v39781_v30 }
 0xd9c   : > { %31173 = vmatpush1.bf16.msra.mxu0 %v39939_v42  ;;  %31206 = vmatpush1.bf16.msra.mxu1 %v37035_v0 }
 0xd9d   : > { %31174 = vmatprep.subr.bf16.mxu0 %v39781_v30  ;;  %31207 = vmatprep.subr.bf16.mxu1 %v39781_v30 }
 0xda0   : > { %31176 = vmatpush1.bf16.msra.mxu0 %v39940_v53  ;;  %31209 = vmatpush1.bf16.msra.mxu1 %v37042_v59 }
 0xda1   : > { %31177 = vmatprep.subr.bf16.mxu0 %v39781_v30  ;;  %31210 = vmatprep.subr.bf16.mxu1 %v39781_v30 }
 0xda4   : > { %31179 = vmatpush1.bf16.msra.mxu0 %v39941_v17  ;;  %31212 = vmatpush1.bf16.msra.mxu1 %v37046_v15  ;;  %v27107_v17 = vld [vmem:[%s39579_s4 + $0x4b8] sm:$0xff] }
 0xda5   : > { %31180 = vmatprep.subr.bf16.mxu0 %v39781_v30  ;;  %31240 = vmatprep.subr.bf16.mxu1 %v39781_v30 }
 0xda7   : > { %12710 = vmatmul.mubr.f32.vlgmr.msra.gmra.mrb[112].mxu1 %v12310_v43  ;;  %v39944_v43 = vand.u32 4294901760, %v36821_v28  ;;  %v39948_v28 = vand.u32 4294901760, %v36852_v4  ;;  %v39952_v4 = vand.u32 4294901760, %v36924_v27  ;;  %v27098_v27 = vld [vmem:[%s39578_s3 + $0x80] sm:$0xff] }
 0xda8   : > { %31182 = vmatpush1.bf16.msra.mxu0 %v39942_v36  ;;  %12717 = vmatprep.mubr.f32.mxu1 %v12319_v46  ;;  %v39960_v46 = vand.u32 4294901760, %v37017_v41 }
 0xda9   : > { %31242 = vmatpush1.bf16.msra.mxu1 %v36831_v40  ;;  %31183 = vmatprep.subr.bf16.mxu0 %v39781_v30  ;;  %v31214_v9 = vpack.c.bf16 %v39945_v13, %v39944_v43  ;;  %v39946_v40 = vand.u32 4294901760, %v36848_v18  ;;  %v39950_v18 = vand.u32 4294901760, %v36868_v29  ;;  %v39954_v29 = vand.u32 4294901760, %v36928_v50 }
 0xdaa   : > { %31243 = vmatprep.subr.bf16.mxu1 %v39781_v30  ;;  %v12962_v50 = vsel %vm2469_vm4, %v27098_v27, 0 }
 0xdab   : > { %12721 = vmatmul.mubr.f32.gmra.mrb[114].mxu1 %v12325_v22  ;;  %v39947_v22 = vand.u32 4294901760, %v36850_v3  ;;  %v39951_v3 = vand.u32 4294901760, %v36872_v16  ;;  %v39955_v16 = vand.u32 4294901760, %v36949_v24  ;;  %v27099_v24 = vld [vmem:[%s39578_s3 + $0x88] sm:$0xff] }
 0xdac   : > { %31185 = vmatpush1.bf16.msra.mxu0 %v39943_v2  ;;  %12942 = vmatprep.mubr.f32.mxu1 %v37080_v47 }
 0xdad   : > { %31245 = vmatpush1.bf16.msra.mxu1 %v36855_v5  ;;  %31213 = vmatprep.subr.bf16.mxu0 %v39781_v30  ;;  %v31217_v23 = vpack.c.bf16 %v39947_v22, %v39946_v40  ;;  %v31220_v5 = vpack.c.bf16 %v39949_v63, %v39948_v28 }
 0xdae   : > { %31246 = vmatprep.subr.bf16.mxu1 %v39781_v30 }
 0xdaf   : > { %12607 = vmatmul.mubr.f32.vlgmr.msra.gmra.mrb[108].mxu0 %v37078_v35 }
 0xdb0   : > { %12613 = vmatprep.mubr.f32.mxu0 %v12318_v11  ;;  %31215 = vmatpush1.bf16.msra.mxu0 %v31214_v9 }
 0xdb1   : > { %31248 = vmatpush1.bf16.msra.mxu1 %v36895_v31  ;;  %31216 = vmatprep.subr.bf16.mxu0 %v39781_v30  ;;  %v31223_v31 = vpack.c.bf16 %v39951_v3, %v39950_v18  ;;  %v13554_v18 = vand.u32 4294901760, %v27107_v17 }
 0xdb2   : > { %31249 = vmatprep.subr.bf16.mxu1 %v39781_v30 }
 0xdb3   : > { %12616 = vmatmul.mubr.f32.gmra.mrb[110].mxu0 %v37090_v33  ;;  %v12965_v33 = vsel %vm2469_vm4, %v27099_v24, 0  ;;  %v27109_v24 = vld [vmem:[%s39579_s4 + $0x4c8] sm:$0xff] }
 0xdb4   : > { %31218 = vmatpush1.bf16.msra.mxu0 %v31217_v23  ;;  %12845 = vmatprep.mubr.f32.mxu0 %v37080_v47  ;;  %v39958_v47 = vand.u32 4294901760, %v36982_v45  ;;  %v13047_v11 = vand.u32 4294901760, %v12965_v33  ;;  %v39961_v45 = vand.u32 4294901760, %v37019_v57  ;;  %v13551_v23 = vand.u32 4294901760, %v27106_v54 }
 0xdb5   : > { %31251 = vmatpush1.bf16.msra.mxu1 %v36917_v44  ;;  %31219 = vmatprep.subr.bf16.mxu0 %v39781_v30  ;;  %v31226_v44 = vpack.c.bf16 %v39953_v20, %v39952_v4 }
 0xdb6   : > { %31252 = vmatprep.subr.bf16.mxu1 %v39781_v30  ;;  %v31238_v52 = vpack.c.bf16 %v39961_v45, %v39960_v46  ;;  %v37313_v20 = vsub.f32 %v27106_v54, %v13551_v23  ;;  %v27111_v45 = vld [vmem:[%s39579_s4 + $0x4d8] sm:$0xff] }
 0xdb8   : > { %31221 = vmatpush1.bf16.msra.mxu0 %v31220_v5 }
 0xdb9   : > { %31254 = vmatpush1.bf16.msra.mxu1 %v36930_v49  ;;  %31222 = vmatprep.subr.bf16.mxu0 %v39781_v30  ;;  %v31229_v49 = vpack.c.bf16 %v39955_v16, %v39954_v29 }
 0xdba   : > { %31255 = vmatprep.subr.bf16.mxu1 %v39781_v30 }
 0xdbc   : > { %31224 = vmatpush1.bf16.msra.mxu0 %v31223_v31 }
 0xdbd   : > { %31257 = vmatpush1.bf16.msra.mxu1 %v36957_v51  ;;  %31225 = vmatprep.subr.bf16.mxu0 %v39781_v30  ;;  %v39957_v51 = vand.u32 4294901760, %v36968_v48  ;;  %v31235_v48 = vpack.c.bf16 %v39959_v56, %v39958_v47 }
 0xdbe   : > { %31258 = vmatprep.subr.bf16.mxu1 %v39781_v30 }
 0xdbf   : > { %v31232_v35 = vpack.c.bf16 %v39957_v51, %v39956_v7 }
 0xdc0   : > { %31227 = vmatpush1.bf16.msra.mxu0 %v31226_v44 }
 0xdc1   : > { %31260 = vmatpush1.bf16.msra.mxu1 %v37035_v0  ;;  %31228 = vmatprep.subr.bf16.mxu0 %v39781_v30  ;;  %v13036_v0 = vand.u32 4294901760, %v12962_v50 }
 0xdc2   : > { %31261 = vmatprep.subr.bf16.mxu1 %v39781_v30 }
 0xdc4   : > { %31230 = vmatpush1.bf16.msra.mxu0 %v31229_v49  ;;  %v37324_v49 = vsub.f32 %v27107_v17, %v13554_v18 }
 0xdc5   : > { %31263 = vmatpush1.bf16.msra.mxu1 %v37042_v59  ;;  %31231 = vmatprep.subr.bf16.mxu0 %v39781_v30  ;;  %v13037_v59 = vsub.f32 %v12962_v50, %v13036_v0  ;;  %v27108_v50 = vld [vmem:[%s39579_s4 + $0x4c0] sm:$0xff] }
 0xdc6   : > { %31264 = vmatprep.subr.bf16.mxu1 %v39781_v30  ;;  %v39758_v56 = vand.u32 4294901760, %v37324_v49 }
 0xdc7   : > { %v13038_v19 = vand.u32 4294901760, %v13037_v59 }
 0xdc8   : > { %31233 = vmatpush1.bf16.msra.mxu0 %v31232_v35  ;;  %v39759_v35 = vand.u32 4294901760, %v37313_v20 }
 0xdc9   : > { %31266 = vmatpush1.bf16.msra.mxu1 %v37046_v15  ;;  %31234 = vmatprep.subr.bf16.mxu0 %v39781_v30  ;;  %v13048_v15 = vsub.f32 %v12965_v33, %v13047_v11  ;;  %v13039_v61 = vsub.f32 %v13037_v59, %v13038_v19 }
 0xdca   : > { %31291 = vmatprep.subr.bf16.mxu1 %v39781_v30 }
 0xdcb   : > { %v13049_v58 = vand.u32 4294901760, %v13048_v15  ;;  %v13040_v57 = vand.u32 4294901760, %v13039_v61  ;;  %v13560_v61 = vand.u32 4294901760, %v27109_v24 }
 0xdcc   : > { %12944 = vmatmul.mubr.f32.vlgmr.msra.gmra.mrb[116].mxu1 %v37074_v10  ;;  %31236 = vmatpush1.bf16.msra.mxu0 %v31235_v48  ;;  %v27110_v48 = vld [vmem:[%s39579_s4 + $0x4d0] sm:$0xff] }
 0xdcd   : > { %12949 = vmatprep.mubr.f32.mxu1 %v37092_v21  ;;  %31237 = vmatprep.subr.bf16.mxu0 %v39781_v30  ;;  %v13050_v41 = vsub.f32 %v13048_v15, %v13049_v58 }
 0xdcf   : > { %v13051_v37 = vand.u32 4294901760, %v13050_v41 }
 0xdd0   : > { %12951 = vmatmul.mubr.f32.gmra.mrb[118].mxu1 %v37084_v55  ;;  %31239 = vmatpush1.bf16.msra.mxu0 %v31238_v52 }
 0xdd1   : > { %31268 = vmatprep.subr.bf16.mxu0 %v33583_v1 }
 0xdd3   : > { %12847 = vmatmul.mubr.f32.vlgmr.msra.gmra.mrb[112].mxu0 %v37074_v10 }
 0xdd4   : > { %12852 = vmatprep.mubr.f32.mxu0 %v37092_v21  ;;  %31270 = vmatpush1.bf16.msra.mxu0 %v33596_v32 }
 0xdd5   : > { %31272 = vmatprep.subr.bf16.mxu0 %v33609_v60 }
 0xdd7   : > { %12854 = vmatmul.mubr.f32.gmra.mrb[114].mxu0 %v37084_v55  ;;  %v27105_v55 = vld [vmem:[%s39579_s4 + $0x4a8] sm:$0xff] }
 0xdd8   : > { %13035 = vmatprep.mubr.f32.mxu0 %v39803_v6  ;;  %v13548_v53 = vand.u32 4294901760, %v27105_v55 }
 0xdda   : > { %v37300_v22 = vsub.f32 %v27105_v55, %v13548_v53  ;;  %v37379_v55 = vld [vmem:[%s39579_s4 + $0x4f0] sm:$0xff] }
 0xddb   : > { %13041 = vmatmul.mubr.f32.vlgmr.msra.gmra.mrb[116].mxu0 %v13040_v57  ;;  %v37361_v57 = vld [vmem:[%s39579_s4 + $0x4e8] sm:$0xff] }
 0xddc   : > { %31274 = vmatpush1.bf16.msra.mxu0 %v33618_v8  ;;  %13046 = vmatprep.mubr.f32.mxu0 %v39803_v6  ;;  %v27102_v8 = vld [vmem:[%s39579_s4 + $0x490] sm:$0xff]  ;;  %v39760_v4 = vand.u32 4294901760, %v37300_v22 }
 0xddd   : > { %31276 = vmatprep.subr.bf16.mxu0 %v33622_v34  ;;  %v27103_v34 = vld [vmem:[%s39579_s4 + $0x498] sm:$0xff] }
 0xdde   : > { %v13542_v10 = vand.u32 4294901760, %v27103_v34  ;;  %v13684_v51 = vsub.f32 %v37300_v22, %v39760_v4 }
 0xddf   : > { %13052 = vmatmul.mubr.f32.gmra.mrb[118].mxu0 %v13051_v37  ;;  %v37364_v37 = vpack.c.bf16 %v13554_v18, %v13551_v23  ;;  %v37388_v23 = vld [vmem:[%s39579_s4 + $0x4f8] sm:$0xff] }
 0xde0   : > { %13142 = vmatprep.mubr.f32.mxu0 %v39803_v6  ;;  %v37291_v2 = vsub.f32 %v27103_v34, %v13542_v10  ;;  %v13685_v52 = vand.u32 4294901760, %v13684_v51 }
 0xde2   : > { %v39762_v63 = vand.u32 4294901760, %v37291_v2 }
 0xde3   : > { %13144 = vmatmul.mubr.f32.vlgmr.msra.gmra.mrb[116].mxu0 %v13036_v0 }
 0xde4   : > { %31278 = vmatpush1.bf16.msra.mxu0 %v33602_v12  ;;  %13149 = vmatprep.mubr.f32.mxu0 %v39803_v6  ;;  %v27101_v12 = vld [vmem:[%s39579_s4 + $0x488] sm:$0xff]  ;;  %v13670_v29 = vsub.f32 %v37291_v2, %v39762_v63 }
 0xde5   : > { %31280 = vmatprep.subr.bf16.mxu0 %v33583_v1  ;;  %v13536_v60 = vand.u32 4294901760, %v27101_v12 }
 0xde6   : > { %v13671_v47 = vand.u32 4294901760, %v13670_v29 }
 0xde7   : > { %13151 = vmatmul.mubr.f32.gmra.mrb[118].mxu0 %v13047_v11  ;;  %v37282_v62 = vsub.f32 %v27101_v12, %v13536_v60 }
 0xde8   : > { %13229 = vmatprep.mubr.f32.mxu0 %v39803_v6 }
 0xde9   : > { %v13655_v40 = vand.u32 4294901760, %v37282_v62 }
 0xdeb   : > { %13232 = vmatmul.mubr.f32.vlgmr.msra.gmra.mrb[116].mxu0 %v13037_v59  ;;  %v13656_v31 = vsub.f32 %v37282_v62, %v13655_v40 }
 0xdec   : > { %31282 = vmatpush1.bf16.msra.mxu0 %v33596_v32  ;;  %13237 = vmatprep.mubr.f32.mxu0 %v39803_v6 }
 0xded   : > { %31284 = vmatprep.subr.bf16.mxu0 %v39806_v38  ;;  %v27104_v38 = vld [vmem:[%s39579_s4 + $0x4a0] sm:$0xff]  ;;  %v13657_v7 = vand.u32 4294901760, %v13656_v31 }
 0xdee   : > { %v13545_v21 = vand.u32 4294901760, %v27104_v38 }
 0xdef   : > { %13240 = vmatmul.mubr.f32.gmra.mrb[118].mxu0 %v13048_v15  ;;  %v13557_v15 = vand.u32 4294901760, %v27108_v50 }
 0xdf0   : > { %13314 = vmatprep.mubr.f32.mxu0 %v39803_v6  ;;  %v37293_v43 = vsub.f32 %v27104_v38, %v13545_v21  ;;  %v37345_v46 = vpack.c.bf16 %v13548_v53, %v13545_v21 }
 0xdf2   : > { %v39761_v5 = vand.u32 4294901760, %v37293_v43 }
 0xdf3   : > { %13318 = vmatmul.mubr.f32.vlgmr.msra.gmra.mrb[116].mxu0 %v13038_v19  ;;  %v13698_v19 = vsub.f32 %v37324_v49, %v39758_v56 }
 0xdf4   : > { %31286 = vmatpush1.bf16.msra.mxu0 %v39809_v25  ;;  %13323 = vmatprep.mubr.f32.mxu0 %v39803_v6  ;;  %v13539_v25 = vand.u32 4294901760, %v27102_v8  ;;  %v13677_v16 = vsub.f32 %v37293_v43, %v39761_v5 }
 0xdf5   : > { %31288 = vmatprep.subr.bf16.mxu0 %v33583_v1  ;;  %v27100_v1 = vld [vmem:[%s39579_s4 + $0x480] sm:$0xff]  ;;  %v13699_v34 = vand.u32 4294901760, %v13698_v19 }
 0xdf6   : > { %v37289_v36 = vsub.f32 %v27102_v8, %v13539_v25  ;;  %v37295_v13 = vpack.c.bf16 %v13542_v10, %v13539_v25  ;;  %v13678_v59 = vand.u32 4294901760, %v13677_v16  ;;  %v13566_v8 = vand.u32 4294901760, %v27111_v45 }
 0xdf7   : > { %13327 = vmatmul.mubr.f32.gmra.mrb[118].mxu0 %v13049_v58  ;;  %v37356_v58 = vld [vmem:[%s39579_s4 + $0x4e0] sm:$0xff]  ;;  %v13572_v10 = vand.u32 4294901760, %v37361_v57 }
 0xdf8   : > { %13409 = vmatprep.mubr.f32.mxu0 %v39803_v6  ;;  %v39763_v28 = vand.u32 4294901760, %v37289_v36  ;;  %v13569_v25 = vand.u32 4294901760, %v37356_v58  ;;  %v31325_v21 = vpack.c.bf16 %v13685_v52, %v13678_v59  ;;  %v37383_v17 = vsub.f32 %v27111_v45, %v13566_v8 }
 0xdfa   : > { %v13663_v44 = vsub.f32 %v37289_v36, %v39763_v28  ;;  %v37397_v31 = vsub.f32 %v37356_v58, %v13569_v25 }
 0xdfb   : > { %13411 = vmatmul.mubr.f32.vlgmr.msra.gmra.mrb[116].mxu0 %v13036_v0 }
 0xdfc   : > { %31290 = vmatpush1.bf16.msra.mxu0 %v33596_v32  ;;  %13416 = vmatprep.mubr.f32.mxu0 %v39803_v6  ;;  %v13533_v32 = vand.u32 4294901760, %v27100_v1 }
 0xdfd   : > { %31318 = vmatprep.subr.bf16.mxu0 %v39781_v30 }
 0xdfe   : > { %v37280_v39 = vsub.f32 %v27100_v1, %v13533_v32  ;;  %v37284_v42 = vpack.c.bf16 %v13536_v60, %v13533_v32  ;;  %v13563_v1 = vand.u32 4294901760, %v27110_v48  ;;  %v37367_v32 = vsub.f32 %v27108_v50, %v13557_v15 }
 0xdff   : > { %13418 = vmatmul.mubr.f32.gmra.mrb[118].mxu0 %v13047_v11  ;;  %v37369_v60 = vsub.f32 %v27109_v24, %v13560_v61  ;;  %v13578_v24 = vand.u32 4294901760, %v37388_v23 }
 0xe00   : > { %13492 = vmatprep.mubr.f32.mxu0 %v39803_v6  ;;  %v13648_v9 = vand.u32 4294901760, %v37280_v39  ;;  %31293 = vmatpush1.bf16.msra.mxu1 %v37284_v42  ;;  %v37372_v38 = vsub.f32 %v27110_v48, %v13563_v1  ;;  %v39757_v54 = vand.u32 4294901760, %v37367_v32  ;;  %v37414_v50 = vpack.c.bf16 %v13566_v8, %v13563_v1 }
 0xe01   : > { %31294 = vmatprep.subr.bf16.mxu1 %v39781_v30  ;;  %v39756_v53 = vand.u32 4294901760, %v37369_v60  ;;  %v39753_v48 = vand.u32 4294901760, %v37397_v31  ;;  %v37434_v52 = vsub.f32 %v37388_v23, %v13578_v24  ;;  %v31346_v23 = vpack.c.bf16 %v37282_v62, %v37280_v39 }
 0xe02   : > { %v13649_v3 = vsub.f32 %v37280_v39, %v13648_v9  ;;  %v39755_v18 = vand.u32 4294901760, %v37372_v38  ;;  %v13705_v29 = vsub.f32 %v37367_v32, %v39757_v54  ;;  %v39965_v39 = vand.u32 4294901760, %v37293_v43 }
 0xe03   : > { %13494 = vmatmul.mubr.f32.vlgmr.msra.gmra.mrb[116].mxu0 %v13036_v0  ;;  %v13664_v0 = vand.u32 4294901760, %v13663_v44  ;;  %v37402_v44 = vsub.f32 %v37361_v57, %v13572_v10  ;;  %v13712_v16 = vsub.f32 %v37369_v60, %v39756_v53  ;;  %v39748_v8 = vand.u32 4294901760, %v37434_v52 }
 0xe04   : > { %13499 = vmatprep.mubr.f32.mxu0 %v39803_v6  ;;  %v13650_v27 = vand.u32 4294901760, %v13649_v3  ;;  %31296 = vmatpush1.bf16.msra.mxu1 %v37295_v13  ;;  %v37392_v3 = vpack.c.bf16 %v13560_v61, %v13557_v15  ;;  %v13733_v15 = vsub.f32 %v37397_v31, %v39753_v48  ;;  %v39966_v62 = vand.u32 4294901760, %v37300_v22 }
 0xe05   : > { %31297 = vmatprep.subr.bf16.mxu1 %v39781_v30  ;;  %v31322_v41 = vpack.c.bf16 %v13671_v47, %v13664_v0  ;;  %v13706_v0 = vand.u32 4294901760, %v13705_v29  ;;  %v13719_v47 = vsub.f32 %v37372_v38, %v39755_v18  ;;  %v13713_v59 = vand.u32 4294901760, %v13712_v16 }
 0xe06   : > { %v31319_v33 = vpack.c.bf16 %v13657_v7, %v13650_v27  ;;  %v39754_v27 = vand.u32 4294901760, %v37383_v17  ;;  %v13575_v7 = vand.u32 4294901760, %v37379_v55 }
 0xe07   : > { %13501 = vmatmul.mubr.f32.gmra.mrb[118].mxu0 %v13047_v11  ;;  %v13691_v11 = vsub.f32 %v37313_v20, %v39759_v35  ;;  %v13720_v19 = vand.u32 4294901760, %v13719_v47  ;;  %v27116_v47 = vld [vmem:[%s39579_s4 + $0x500] sm:$0xff] }
 0xe08   : > { %31320 = vmatpush1.bf16.msra.mxu0 %v31319_v33  ;;  %31299 = vmatpush1.bf16.msra.mxu1 %v37345_v46  ;;  %v39752_v33 = vand.u32 4294901760, %v37402_v44  ;;  %v37429_v45 = vsub.f32 %v37379_v55, %v13575_v7 }
 0xe09   : > { %31321 = vmatprep.subr.bf16.mxu0 %v39781_v30  ;;  %v13692_v12 = vand.u32 4294901760, %v13691_v11  ;;  %31300 = vmatprep.subr.bf16.mxu1 %v39781_v30  ;;  %v13726_v11 = vsub.f32 %v37383_v17, %v39754_v27 }
 0xe0a   : > { %v13740_v61 = vsub.f32 %v37402_v44, %v39752_v33 }
 0xe0b   : > { %v31328_v51 = vpack.c.bf16 %v13699_v34, %v13692_v12  ;;  %v13727_v1 = vand.u32 4294901760, %v13726_v11  ;;  %v39751_v12 = vand.u32 4294901760, %v37429_v45  ;;  %v13734_v34 = vand.u32 4294901760, %v13733_v15 }
 0xe0c   : > { %31323 = vmatpush1.bf16.msra.mxu0 %v31322_v41  ;;  %31302 = vmatpush1.bf16.msra.mxu1 %v37364_v37  ;;  %v31331_v41 = vpack.c.bf16 %v13713_v59, %v13706_v0  ;;  %v27117_v59 = vld [vmem:[%s39579_s4 + $0x508] sm:$0xff]  ;;  %v13581_v15 = vand.u32 4294901760, %v27116_v47 }
 0xe0d   : > { %31324 = vmatprep.subr.bf16.mxu0 %v39781_v30  ;;  %31303 = vmatprep.subr.bf16.mxu1 %v39781_v30  ;;  %v31334_v29 = vpack.c.bf16 %v13727_v1, %v13720_v19  ;;  %v13747_v16 = vsub.f32 %v37429_v45, %v39751_v12 }
 0xe0f   : > { %v13748_v11 = vand.u32 4294901760, %v13747_v16 }
 0xe10   : > { %31326 = vmatpush1.bf16.msra.mxu0 %v31325_v21  ;;  %31305 = vmatpush1.bf16.msra.mxu1 %v37392_v3  ;;  %v13741_v21 = vand.u32 4294901760, %v13740_v61  ;;  %v13584_v61 = vand.u32 4294901760, %v27117_v59 }
 0xe11   : > { %31327 = vmatprep.subr.bf16.mxu0 %v39781_v30  ;;  %31306 = vmatprep.subr.bf16.mxu1 %v39781_v30 }
 0xe12   : > { %v31337_v0 = vpack.c.bf16 %v13741_v21, %v13734_v34  ;;  %v37465_v1 = vsub.f32 %v27117_v59, %v13584_v61 }
 0xe14   : > { %31329 = vmatpush1.bf16.msra.mxu0 %v31328_v51  ;;  %31308 = vmatpush1.bf16.msra.mxu1 %v37414_v50  ;;  %v13754_v51 = vsub.f32 %v37434_v52, %v39748_v8  ;;  %v39750_v8 = vand.u32 4294901760, %v37465_v1 }
 0xe15   : > { %31330 = vmatprep.subr.bf16.mxu0 %v39781_v30  ;;  %31309 = vmatprep.subr.bf16.mxu1 %v39781_v30 }
 0xe16   : > { %v13755_v19 = vand.u32 4294901760, %v13754_v51  ;;  %v13768_v16 = vsub.f32 %v37465_v1, %v39750_v8 }
 0xe18   : > { %31332 = vmatpush1.bf16.msra.mxu0 %v31331_v41  ;;  %v37463_v41 = vsub.f32 %v27116_v47, %v13581_v15  ;;  %v31340_v34 = vpack.c.bf16 %v13755_v19, %v13748_v11  ;;  %v13769_v47 = vand.u32 4294901760, %v13768_v16  ;;  %v37481_v11 = vpack.c.bf16 %v13572_v10, %v13569_v25 }
 0xe19   : > { %31333 = vmatprep.subr.bf16.mxu0 %v39781_v30  ;;  %v37494_v10 = vpack.c.bf16 %v13584_v61, %v13581_v15  ;;  %v31355_v15 = vpack.c.bf16 %v37324_v49, %v37313_v20  ;;  %v31358_v61 = vpack.c.bf16 %v37369_v60, %v37367_v32 }
 0xe1a   : > { %v39749_v21 = vand.u32 4294901760, %v37463_v41  ;;  %31311 = vmatpush1.bf16.msra.mxu1 %v37481_v11  ;;  %v31370_v8 = vpack.c.bf16 %v37465_v1, %v37463_v41 }
 0xe1b   : > { %31312 = vmatprep.subr.bf16.mxu1 %v39781_v30 }
 0xe1c   : > { %31335 = vmatpush1.bf16.msra.mxu0 %v31334_v29  ;;  %v13761_v29 = vsub.f32 %v37463_v41, %v39749_v21 }
 0xe1d   : > { %31336 = vmatprep.subr.bf16.mxu0 %v39781_v30 }
 0xe1e   : > { %v13762_v51 = vand.u32 4294901760, %v13761_v29  ;;  %v37490_v29 = vpack.c.bf16 %v13578_v24, %v13575_v7  ;;  %v31349_v7 = vpack.c.bf16 %v37291_v2, %v37289_v36  ;;  %v31352_v24 = vpack.c.bf16 %v37300_v22, %v37293_v43 }
 0xe1f   : > { %v39969_v43 = vand.u32 4294901760, %v37367_v32  ;;  %v39974_v32 = vand.u32 4294901760, %v37402_v44 }
 0xe20   : > { %31338 = vmatpush1.bf16.msra.mxu0 %v31337_v0  ;;  %v31343_v19 = vpack.c.bf16 %v13769_v47, %v13762_v51  ;;  %31314 = vmatpush1.bf16.msra.mxu1 %v37490_v29  ;;  %v31361_v47 = vpack.c.bf16 %v37383_v17, %v37372_v38 }
 0xe21   : > { %31339 = vmatprep.subr.bf16.mxu0 %v39781_v30  ;;  %31315 = vmatprep.subr.bf16.mxu1 %v39781_v30 }
 0xe24   : > { %31341 = vmatpush1.bf16.msra.mxu0 %v31340_v34  ;;  %31317 = vmatpush1.bf16.msra.mxu1 %v37494_v10 }
 0xe25   : > { %31342 = vmatprep.subr.bf16.mxu0 %v39781_v30  ;;  %31345 = vmatprep.subr.bf16.mxu1 %v39781_v30 }
 0xe28   : > { %31344 = vmatpush1.bf16.msra.mxu0 %v31343_v19 }
 0xe29   : > { %31372 = vmatprep.subr.bf16.mxu0 %v39781_v30 }
 0xe56   : > { %v12491_v59 = vpop.f32.mrb[108].mxu1 }
 0xe57   : > { %v12493_v0 = vpop.f32.mrb[109].mxu1 }
 0xe5a   : > { %v12498_v21 = vpop.f32.mrb[110].mxu1 }
 0xe5b   : > { %v12500_v34 = vpop.f32.mrb[111].mxu1 }
 0xe5e   : > { %v12314_v58 = vpop.f32.mrb[104].mxu0 }
 0xe5f   : > { %v12492_v57 = vadd.f32 %v12491_v59, %v12314_v58  ;;  %v12316_v25 = vpop.f32.mrb[105].mxu0  ;;  %v31364_v59 = vpack.c.bf16 %v37402_v44, %v37397_v31  ;;  %v31367_v58 = vpack.c.bf16 %v37434_v52, %v37429_v45  ;;  %v39978_v44 = vand.u32 4294901760, %v37465_v1 }
 0xe62   : > { %v12329_v16 = vpop.f32.mrb[106].mxu0 }
 0xe63   : > { %v12499_v51 = vadd.f32 %v12498_v21, %v12329_v16  ;;  %v12331_v55 = vpop.f32.mrb[107].mxu0 }
 0xe7a   : > { %v12711_v21 = vpop.f32.mrb[112].mxu1 }
 0xe7b   : > { %v12713_v0 = vpop.f32.mrb[113].mxu1 }
 0xe7e   : > { %v12722_v19 = vpop.f32.mrb[114].mxu1 }
 0xe7f   : > { %v12724_v34 = vpop.f32.mrb[115].mxu1 }
 0xe82   : > { %v12608_v25 = vpop.f32.mrb[108].mxu0 }
 0xe83   : > { %v12609_v16 = vadd.f32 %v12608_v25, %v12492_v57  ;;  %v12610_v55 = vpop.f32.mrb[109].mxu0 }
 0xe85   : > { %v12712_v12 = vadd.f32 %v12711_v21, %v12609_v16 }
 0xe86   : > { %v12617_v33 = vpop.f32.mrb[110].mxu0 }
 0xe87   : > { %v12618_v48 = vadd.f32 %v12617_v33, %v12499_v51  ;;  %v12619_v27 = vpop.f32.mrb[111].mxu0 }
 0xe89   : > { %v12723_v18 = vadd.f32 %v12722_v19, %v12618_v48 }
 0xe9f   : > { %v12945_v53 = vpop.f32.mrb[116].mxu1 }
 0xea0   : > { %v12947_v54 = vpop.f32.mrb[117].mxu1 }
 0xea1   : > { %v37525_v54 = vld [vmem:[%s39580_s5 + $0x8] sm:$0xff] }
 0xea2   : > { %14279 = vperm.xlu1 %32967, %v37525_v54  }
 0xea3   : > { %v12952_v56 = vpop.f32.mrb[118].mxu1 }
 0xea4   : > { %v12954_v0 = vpop.f32.mrb[119].mxu1 }
 0xea6   : > { %v12848_v35 = vpop.f32.mrb[112].mxu0 }
 0xea7   : > { %v12849_v34 = vadd.f32 %v12848_v35, %v12712_v12  ;;  %v12850_v4 = vpop.f32.mrb[113].mxu0  ;;  %v39962_v35 = vmov 1  }
 0xea8   : > { %32968 = vset.pattern.permute.xlu1 %v39962_v35 }
 0xea9   : > { %v12946_v5 = vadd.f32 %v12945_v53, %v12849_v34 }
 0xeaa   : > { %v12855_v63 = vpop.f32.mrb[114].mxu0 }
 0xeab   : > { %v37517_v57 = vadd.f32 %v12946_v5, %v37069_v26  ;;  %v12856_v25 = vadd.f32 %v12855_v63, %v12723_v18  ;;  %v12857_v55 = vpop.f32.mrb[115].mxu0 }
 0xead   : > { %v12953_v28 = vadd.f32 %v12952_v56, %v12856_v25 }
 0xeaf   : > { %v37520_v21 = vadd.f32 %v12953_v28, %v37072_v14 }
 0xed6   : > { %v13495_v4 = vpop.f32.mrb[116].mxu0 }
 0xed7   : > { %v37529_v53 = vand.u32 4294901760, %v13495_v4  ;;  %v13497_v26 = vpop.f32.mrb[117].mxu0 }
 0xed8   : > { %v13527_v63 = vsel %vm2469_vm4, %v13497_v26, 0 }
 0xed9   : > { %v37533_v5 = vsub.f32 %v13495_v4, %v37529_v53  ;;  %v37535_v14 = vand.u32 4294901760, %v13527_v63 }
 0xeda   : > { %v13502_v28 = vpop.f32.mrb[118].mxu0 }
 0xedb   : > { %v13622_v56 = vand.u32 4294901760, %v37533_v5  ;;  %v13615_v18 = vsub.f32 %v13527_v63, %v37535_v14  ;;  %v37539_v27 = vand.u32 4294901760, %v13502_v28  ;;  %v13504_v48 = vpop.f32.mrb[119].mxu0  ;;  %13800 = vmatprep.mubr.f32.mxu0 %v37535_v14 }
 0xedc   : > { %v13530_v33 = vsel %vm2469_vm4, %v13504_v48, 0  ;;  %13802 = vmatmul.mubr.f32.vlgmr.msra.gmra.mrb[120].mxu0 %v37529_v53 }
 0xedd   : > { %v37545_v12 = vsub.f32 %v13502_v28, %v37539_v27  ;;  %v37547_v51 = vand.u32 4294901760, %v13530_v33  ;;  %31374 = vmatpush1.bf16.msra.mxu0 %v37284_v42  ;;  %v13616_v19 = vand.u32 4294901760, %v13615_v18  ;;  %v13623_v16 = vsub.f32 %v37533_v5, %v13622_v56 }
 0xede   : > { %31375 = vmatprep.subr.bf16.mxu0 %v39781_v30 }
 0xedf   : > { %v13637_v0 = vand.u32 4294901760, %v37545_v12  ;;  %v13630_v34 = vsub.f32 %v13530_v33, %v37547_v51  ;;  %13807 = vmatprep.mubr.f32.mxu0 %v37547_v51  ;;  %v13617_v25 = vsub.f32 %v13615_v18, %v13616_v19  ;;  %v13624_v26 = vand.u32 4294901760, %v13623_v16 }
 0xee0   : > { %13809 = vmatmul.mubr.f32.gmra.mrb[122].mxu0 %v37539_v27 }
 0xee1   : > { %v13631_v55 = vand.u32 4294901760, %v13630_v34  ;;  %31377 = vmatpush1.bf16.msra.mxu0 %v37295_v13  ;;  %14018 = vmatprep.mubr.f32.mxu0 %v13616_v19  ;;  %v13618_v4 = vand.u32 4294901760, %v13617_v25  ;;  %v13638_v63 = vsub.f32 %v37545_v12, %v13637_v0 }
 0xee2   : > { %31378 = vmatprep.subr.bf16.mxu0 %v39781_v30 }
 0xee3   : > { %13619 = vmatprep.mubr.f32.mxu1 %v13618_v4  ;;  %v13632_v28 = vsub.f32 %v13630_v34, %v13631_v55  ;;  %v13639_v33 = vand.u32 4294901760, %v13638_v63 }
 0xee4   : > { %13625 = vmatmul.mubr.f32.vlgmr.msra.gmra.mrb[120].mxu1 %v13624_v26 }
 0xee5   : > { %31347 = vmatpush1.bf16.msra.mxu1 %v31346_v23  ;;  %31380 = vmatpush1.bf16.msra.mxu0 %v37345_v46  ;;  %v13633_v48 = vand.u32 4294901760, %v13632_v28  ;;  %v31400_v23 = vpack.c.bf16 %v13655_v40, %v13648_v9  ;;  %v39970_v40 = vand.u32 4294901760, %v37369_v60 }
 0xee6   : > { %31348 = vmatprep.subr.bf16.mxu1 %v39781_v30  ;;  %31381 = vmatprep.subr.bf16.mxu0 %v39781_v30 }
 0xee7   : > { %13634 = vmatprep.mubr.f32.mxu1 %v13633_v48  ;;  %v31412_v22 = vpack.c.bf16 %v39970_v40, %v39969_v43 }
 0xee8   : > { %13640 = vmatmul.mubr.f32.gmra.mrb[122].mxu1 %v13639_v33 }
 0xee9   : > { %31350 = vmatpush1.bf16.msra.mxu1 %v31349_v7  ;;  %31383 = vmatpush1.bf16.msra.mxu0 %v37364_v37 }
 0xeea   : > { %13916 = vmatprep.mubr.f32.mxu1 %v13615_v18  ;;  %31351 = vmatprep.subr.bf16.mxu1 %v39781_v30 }
 0xeeb   : > { %31384 = vmatprep.subr.bf16.mxu0 %v39781_v30 }
 0xeed   : > { %31353 = vmatpush1.bf16.msra.mxu1 %v31352_v24  ;;  %31386 = vmatpush1.bf16.msra.mxu0 %v37392_v3 }
 0xeee   : > { %31354 = vmatprep.subr.bf16.mxu1 %v39781_v30  ;;  %31387 = vmatprep.subr.bf16.mxu0 %v39781_v30 }
 0xef1   : > { %31356 = vmatpush1.bf16.msra.mxu1 %v31355_v15  ;;  %31389 = vmatpush1.bf16.msra.mxu0 %v37414_v50 }
 0xef2   : > { %31357 = vmatprep.subr.bf16.mxu1 %v39781_v30  ;;  %31390 = vmatprep.subr.bf16.mxu0 %v39781_v30 }
 0xef5   : > { %31359 = vmatpush1.bf16.msra.mxu1 %v31358_v61  ;;  %31392 = vmatpush1.bf16.msra.mxu0 %v37481_v11 }
 0xef6   : > { %31360 = vmatprep.subr.bf16.mxu1 %v39781_v30  ;;  %31393 = vmatprep.subr.bf16.mxu0 %v39781_v30 }
 0xef9   : > { %31362 = vmatpush1.bf16.msra.mxu1 %v31361_v47  ;;  %31395 = vmatpush1.bf16.msra.mxu0 %v37490_v29 }
 0xefa   : > { %31363 = vmatprep.subr.bf16.mxu1 %v39781_v30  ;;  %31396 = vmatprep.subr.bf16.mxu0 %v39781_v30 }
 0xefd   : > { %31365 = vmatpush1.bf16.msra.mxu1 %v31364_v59  ;;  %31398 = vmatpush1.bf16.msra.mxu0 %v37494_v10 }
 0xefe   : > { %31366 = vmatprep.subr.bf16.mxu1 %v39781_v30  ;;  %31426 = vmatprep.subr.bf16.mxu0 %v39781_v30 }
 0xf00   : > { %14022 = vmatmul.mubr.f32.vlgmr.msra.gmra.mrb[124].mxu0 %v13622_v56 }
 0xf01   : > { %31368 = vmatpush1.bf16.msra.mxu1 %v31367_v58  ;;  %14029 = vmatprep.mubr.f32.mxu0 %v13631_v55 }
 0xf02   : > { %31428 = vmatpush1.bf16.msra.mxu0 %v37284_v42  ;;  %31369 = vmatprep.subr.bf16.mxu1 %v39781_v30  ;;  %v39963_v42 = vand.u32 4294901760, %v37289_v36  ;;  %v39967_v36 = vand.u32 4294901760, %v37313_v20  ;;  %v39971_v20 = vand.u32 4294901760, %v37372_v38  ;;  %v39975_v38 = vand.u32 4294901760, %v37429_v45 }
 0xf03   : > { %31429 = vmatprep.subr.bf16.mxu0 %v39781_v30 }
 0xf04   : > { %14033 = vmatmul.mubr.f32.gmra.mrb[126].mxu0 %v13637_v0 }
 0xf05   : > { %31371 = vmatpush1.bf16.msra.mxu1 %v31370_v8  ;;  %14254 = vmatprep.mubr.f32.mxu0 %v37535_v14  ;;  %v39964_v8 = vand.u32 4294901760, %v37291_v2  ;;  %v39968_v2 = vand.u32 4294901760, %v37324_v49  ;;  %v39972_v49 = vand.u32 4294901760, %v37383_v17  ;;  %v39976_v17 = vand.u32 4294901760, %v37434_v52 }
 0xf06   : > { %31431 = vmatpush1.bf16.msra.mxu0 %v37295_v13  ;;  %31399 = vmatprep.subr.bf16.mxu1 %v39781_v30  ;;  %v31406_v13 = vpack.c.bf16 %v39966_v62, %v39965_v39 }
 0xf07   : > { %31432 = vmatprep.subr.bf16.mxu0 %v39781_v30  ;;  %v31403_v7 = vpack.c.bf16 %v39964_v8, %v39963_v42  ;;  %v31409_v9 = vpack.c.bf16 %v39968_v2, %v39967_v36 }
 0xf08   : > { %13919 = vmatmul.mubr.f32.vlgmr.msra.gmra.mrb[124].mxu1 %v37533_v5 }
 0xf09   : > { %13925 = vmatprep.mubr.f32.mxu1 %v13630_v34  ;;  %31401 = vmatpush1.bf16.msra.mxu1 %v31400_v23  ;;  %v14275_v23 = vpop.permute.xlu0 %14274 }
 0xf0a   : > { %31434 = vmatpush1.bf16.msra.mxu0 %v37345_v46  ;;  %31402 = vmatprep.subr.bf16.mxu1 %v39781_v30  ;;  %v31415_v46 = vpack.c.bf16 %v39972_v49, %v39971_v20 }
 0xf0b   : > { %31435 = vmatprep.subr.bf16.mxu0 %v39781_v30 }
 0xf0c   : > { %13928 = vmatmul.mubr.f32.gmra.mrb[126].mxu1 %v37545_v12 }
 0xf0d   : > { %31404 = vmatpush1.bf16.msra.mxu1 %v31403_v7  ;;  %14157 = vmatprep.mubr.f32.mxu1 %v37535_v14 }
 0xf0e   : > { %31437 = vmatpush1.bf16.msra.mxu0 %v37364_v37  ;;  %31405 = vmatprep.subr.bf16.mxu1 %v39781_v30  ;;  %v39973_v37 = vand.u32 4294901760, %v37397_v31  ;;  %v39977_v31 = vand.u32 4294901760, %v37463_v41 }
 0xf0f   : > { %31438 = vmatprep.subr.bf16.mxu0 %v39781_v30 }
 0xf10   : > { %v31418_v60 = vpack.c.bf16 %v39974_v32, %v39973_v37 }
 0xf11   : > { %31407 = vmatpush1.bf16.msra.mxu1 %v31406_v13 }
 0xf12   : > { %31440 = vmatpush1.bf16.msra.mxu0 %v37392_v3  ;;  %31408 = vmatprep.subr.bf16.mxu1 %v39781_v30  ;;  %v31421_v3 = vpack.c.bf16 %v39976_v17, %v39975_v38 }
 0xf13   : > { %31441 = vmatprep.subr.bf16.mxu0 %v39781_v30 }
 0xf15   : > { %31410 = vmatpush1.bf16.msra.mxu1 %v31409_v9 }
 0xf16   : > { %31443 = vmatpush1.bf16.msra.mxu0 %v37414_v50  ;;  %31411 = vmatprep.subr.bf16.mxu1 %v39781_v30  ;;  %v31424_v50 = vpack.c.bf16 %v39978_v44, %v39977_v31  ;;  %v33025_v44 = vld [vmem:[%s39580_s5] sm:$0xff] }
 0xf17   : > { %31444 = vmatprep.subr.bf16.mxu0 %v39781_v30 }
 0xf19   : > { %31413 = vmatpush1.bf16.msra.mxu1 %v31412_v22 }
 0xf1a   : > { %31446 = vmatpush1.bf16.msra.mxu0 %v37481_v11  ;;  %31414 = vmatprep.subr.bf16.mxu1 %v39781_v30 }
 0xf1b   : > { %31447 = vmatprep.subr.bf16.mxu0 %v39781_v30 }
 0xf1d   : > { %31416 = vmatpush1.bf16.msra.mxu1 %v31415_v46 }
 0xf1e   : > { %31449 = vmatpush1.bf16.msra.mxu0 %v37490_v29  ;;  %31417 = vmatprep.subr.bf16.mxu1 %v39781_v30 }
 0xf1f   : > { %31450 = vmatprep.subr.bf16.mxu0 %v39781_v30 }
 0xf21   : > { %31419 = vmatpush1.bf16.msra.mxu1 %v31418_v60  ;;  %v14280_v7 = vpop.permute.xlu1 %14279 }
 0xf22   : > { %31452 = vmatpush1.bf16.msra.mxu0 %v37494_v10  ;;  %31420 = vmatprep.subr.bf16.mxu1 %v39781_v30 }
 0xf25   : > { %14256 = vmatmul.mubr.f32.vlgmr.msra.gmra.mrb[128].mxu0 %v37529_v53  ;;  %31422 = vmatpush1.bf16.msra.mxu1 %v31421_v3 }
 0xf26   : > { %14261 = vmatprep.mubr.f32.mxu0 %v37547_v51  ;;  %31423 = vmatprep.subr.bf16.mxu1 %v39781_v30 }
 0xf29   : > { %14263 = vmatmul.mubr.f32.gmra.mrb[130].mxu0 %v37539_v27  ;;  %31425 = vmatpush1.bf16.msra.mxu1 %v31424_v50 }
 0xf2c   : > { %14159 = vmatmul.mubr.f32.vlgmr.msra.gmra.mrb[128].mxu1 %v37529_v53 }
 0xf2d   : > { %14164 = vmatprep.mubr.f32.mxu1 %v37547_v51 }
 0xf30   : > { %14166 = vmatmul.mubr.f32.gmra.mrb[130].mxu1 %v37539_v27 }
 0xfaf   : > { %v13803_v45 = vpop.f32.mrb[120].mxu0 }
 0xfb0   : > { %v13805_v52 = vpop.f32.mrb[121].mxu0 }
 0xfb3   : > { %v13810_v11 = vpop.f32.mrb[122].mxu0 }
 0xfb4   : > { %v13812_v41 = vpop.f32.mrb[123].mxu0 }
 0xfb5   : > { %v39980_v41 = vmov 0  }
 0xfb7   : > { %v13626_v29 = vpop.f32.mrb[120].mxu1 }
 0xfb8   : > { %v13804_v1 = vadd.f32 %v13803_v45, %v13626_v29  ;;  %v13628_v10 = vpop.f32.mrb[121].mxu1 }
 0xfbb   : > { %v13641_v24 = vpop.f32.mrb[122].mxu1 }
 0xfbc   : > { %v13811_v15 = vadd.f32 %v13810_v11, %v13641_v24  ;;  %v13643_v61 = vpop.f32.mrb[123].mxu1  ;;  %v39979_v11 = vmov 2  }
 0xfd3   : > { %v14023_v30 = vpop.f32.mrb[124].mxu0 }
 0xfd4   : > { %v14025_v47 = vpop.f32.mrb[125].mxu0 }
 0xfd7   : > { %v14034_v59 = vpop.f32.mrb[126].mxu0 }
 0xfd8   : > { %v14036_v58 = vpop.f32.mrb[127].mxu0 }
 0xfdb   : > { %v13920_v5 = vpop.f32.mrb[124].mxu1 }
 0xfdc   : > { %v13921_v53 = vadd.f32 %v13920_v5, %v13804_v1  ;;  %v13922_v14 = vpop.f32.mrb[125].mxu1  ;;  %v14356_v5 = vld [vmem:[%s39581_s6] sm:$0xff] }
 0xfde   : > { %v14024_v56 = vadd.f32 %v14023_v30, %v13921_v53  ;;  %v14359_v53 = vsel %vm2469_vm4, %v14356_v5, 0 }
 0xfdf   : > { %v13929_v18 = vpop.f32.mrb[126].mxu1 }
 0xfe0   : > { %v13930_v27 = vadd.f32 %v13929_v18, %v13811_v15  ;;  %v13931_v12 = vpop.f32.mrb[127].mxu1 }
 0xfe2   : > { %v14035_v51 = vadd.f32 %v14034_v59, %v13930_v27 }
 0xff8   : > { %v14257_v19 = vpop.f32.mrb[128].mxu0 }
 0xff9   : > { %v14259_v16 = vpop.f32.mrb[129].mxu0 }
 0xffc   : > { %v14264_v0 = vpop.f32.mrb[130].mxu0 }
 0xffd   : > { %v14266_v34 = vpop.f32.mrb[131].mxu0 }
 0xfff   : > { %v14160_v25 = vpop.f32.mrb[128].mxu1 }
0x1000   : > { %v14161_v55 = vadd.f32 %v14160_v25, %v14024_v56  ;;  %v14162_v4 = vpop.f32.mrb[129].mxu1  ;;  %v37702_v56 = vand.u32 4294901760, %v14359_v53 }
0x1002   : > { %v14258_v26 = vadd.f32 %v14257_v19, %v14161_v55  ;;  %v37707_v27 = vsub.f32 %v14359_v53, %v37702_v56 }
0x1003   : > { %v14167_v63 = vpop.f32.mrb[130].mxu1 }
0x1004   : > { %v14168_v28 = vadd.f32 %v14167_v63, %v14035_v51  ;;  %v14169_v48 = vpop.f32.mrb[131].mxu1  ;;  %v14268_v33 = vadd.f32 %v14258_v26, %v37517_v57  ;;  %v14433_v51 = vand.u32 4294901760, %v37707_v27 }
0x1005   : > { %v27119_v48 = vld [vmem:[%s39581_s6 + $0x18] sm:$0xff] }
0x1006   : > { %v14265_v42 = vadd.f32 %v14264_v0, %v14168_v28  ;;  %v14282_v8 = vadd.f32 %v14275_v23, %v14268_v33  ;;  %v14434_v0 = vsub.f32 %v37707_v27, %v14433_v51  ;;  %v14357_v28 = vld [vmem:[%s39581_s6 + $0x8] sm:$0xff]  ;;  %v14877_v23 = vsel %vm2469_vm4, %v27119_v48, 0 }
0x1007   : > { %v14362_v33 = vsel %vm2469_vm4, %v14357_v28, 0  ;;  %v27137_v48 = vld [vmem:[%s39581_s6 + $0x48] sm:$0xff] }
0x1008   : > { %v14269_v39 = vadd.f32 %v14265_v42, %v37520_v21  ;;  %v14285_v62 = vsel %vm14284_vm6, %v14282_v8, 0.0  ;;  %v14435_v55 = vand.u32 4294901760, %v14434_v0  ;;  %v37728_v42 = vand.u32 4294901760, %v14362_v33 }
0x1009   : > { %14286 = vadd.xlane.f32.xlu0 %v14285_v62 }
0x100a   : > { %v14283_v13 = vadd.f32 %v14280_v7, %v14269_v39  ;;  %28067 = vmatprep.mubr.f32.mxu1 %v14435_v55  ;;  %v14442_v7 = vsub.f32 %v14362_v33, %v37728_v42 }
0x100c   : > { %v14288_v36 = vsel %vm14284_vm6, %v14283_v13, 0.0 }
0x100d   : > { %14289 = vadd.xlane.f32.xlu1 %v14288_v36 }
0x1096   : > { %v14287_v2 = vpop.xlane.xlu0 %14286 }
0x1097   : > { %v14292_v9 = vmul.f32 0.01, %v14287_v2  ;;  %v14443_v2 = vand.u32 4294901760, %v14442_v7 }
0x1099   : > { %v14294_v43 = vsub.f32 %v14282_v8, %v14292_v9  ;;  %v37730_v8 = vand.u32 4294901760, %v14877_v23 }
0x109a   : > { %v14290_v40 = vpop.xlane.xlu1 %14289 }
0x109b   : > { %v14293_v22 = vmul.f32 0.01, %v14290_v40  ;;  %v14296_v57 = vmul.f32 %v14294_v43, %v14294_v43  ;;  %v14957_v39 = vsub.f32 %v14877_v23, %v37730_v8  ;;  %v18579_v23 = vsel %vm2469_vm4, %v27137_v48, 0 }
0x109d   : > { %v14295_v20 = vsub.f32 %v14283_v13, %v14293_v22  ;;  %v14298_v49 = vsel %vm14284_vm6, %v14296_v57, 0.0  ;;  %v14958_v9 = vand.u32 4294901760, %v14957_v39 }
0x109e   : > { %14299 = vadd.xlane.f32.xlu0 %v14298_v49  ;;  %v14444_v49 = vsub.f32 %v14442_v7, %v14443_v2 }
0x109f   : > { %v14297_v46 = vmul.f32 %v14295_v20, %v14295_v20 }
0x10a1   : > { %v14301_v21 = vsel %vm14284_vm6, %v14297_v46, 0.0  ;;  %v14959_v46 = vsub.f32 %v14957_v39, %v14958_v9 }
0x10a2   : > { %14302 = vadd.xlane.f32.xlu0 %v14301_v21 }
0x112b   : > { %v14300_v37 = vpop.xlane.xlu0 %14299 }
0x112c   : > { %v14304_v32 = vmul.f32 0.01, %v14300_v37 }
0x112e   : > { %v14306_v60 = vadd.f32 1e-05, %v14304_v32 }
0x112f   : > { %v14303_v38 = vpop.xlane.xlu0 %14302 }
0x1130   : > { %32981 = vrsqrt.f32 %v14306_v60  ;;  %v14305_v17 = vmul.f32 0.01, %v14303_v38  ;;  %v14445_v38 = vand.u32 4294901760, %v14444_v49  ;;  %v27123_v49 = vld [vmem:[%s39582_s7 + $0x38] sm:$0x1] }
0x1132   : > { %v14307_v3 = vadd.f32 1e-05, %v14305_v17  ;;  %v14960_v17 = vand.u32 4294901760, %v14959_v46 }
0x1134   : > { %32983 = vrsqrt.f32 %v14307_v3 }
0x113a   : > { %v32982_v31 = vpop.eup %32981 }
0x113b   : > { %v14310_v50 = vmul.f32 %v33025_v44, %v32982_v31 }
0x113d   : > { %14314 = vperm.xlu1 %32968, %v14310_v50  }
0x113e   : > { %v32984_v45 = vpop.eup %32983 }
0x113f   : > { %v14311_v52 = vmul.f32 %v32984_v45, %v37525_v54 }
0x1141   : > { %32970 = vset.pattern.permute.xlu1 %v39979_v11  ;;  %14319 = vperm.xlu0 %32969, %v14311_v52   ;;  %v27124_v52 = vld [vmem:[%s39581_s6 + $0x20] sm:$0xff] }
0x1142   : > { %14325 = vperm.xlu1 %32970, %v33025_v44  }
0x1145   : > { %32972 = vset.pattern.permute.xlu0 %v39980_v41 }
0x1146   : > { %14329 = vperm.xlu1 %32970, %v37525_v54   ;;  %v27118_v54 = vld [vmem:[%s39581_s6 + $0x10] sm:$0xff] }
0x1147   : > { %v14874_v14 = vsel %vm2469_vm4, %v27118_v54, 0 }
0x1148   : > { %v37704_v18 = vand.u32 4294901760, %v14874_v14 }
0x114a   : > { %32971 = vset.pattern.permute.xlu1 %v39980_v41  ;;  %v37710_v12 = vsub.f32 %v14874_v14, %v37704_v18  ;;  %v27130_v14 = vld [vmem:[%s39581_s6 + $0x30] sm:$0xff] }
0x114c   : > { %v14948_v19 = vand.u32 4294901760, %v37710_v12 }
0x114e   : > { %v14949_v34 = vsub.f32 %v37710_v12, %v14948_v19 }
0x1150   : > { %v14950_v4 = vand.u32 4294901760, %v14949_v34 }
0x1152   : > { %28109 = vmatprep.mubr.f32.mxu0 %v14950_v4 }
0x11bc   : > { %v14315_v29 = vpop.permute.xlu1 %14314 }
0x11bd   : > { %v14322_v1 = vmul.f32 %v14315_v29, %v14294_v43  ;;  %v16466_v29 = vsel %vm2469_vm4, %v27124_v52, 0 }
0x11c0   : > { %v14320_v10 = vpop.permute.xlu0 %14319 }
0x11c1   : > { %v14326_v24 = vpop.permute.xlu1 %14325  ;;  %v14323_v61 = vmul.f32 %v14320_v10, %v14295_v20  ;;  %v16538_v10 = vand.u32 4294901760, %v16466_v29 }
0x11c2   : > { %v14332_v15 = vadd.f32 %v14326_v24, %v14322_v1  ;;  %v27125_v1 = vld [vmem:[%s39581_s6 + $0x28] sm:$0xff] }
0x11c3   : > { %v16469_v24 = vsel %vm2469_vm4, %v27125_v1, 0 }
0x11c4   : > { %v14334_v30 = vmax.f32 %v14332_v15, 0.0  ;;  %v16548_v15 = vand.u32 4294901760, %v16469_v24 }
0x11c5   : > { %v14330_v47 = vpop.permute.xlu1 %14329 }
0x11c6   : > { %v14333_v59 = vadd.f32 %v14330_v47, %v14323_v61  ;;  %14338 = vrot.lane.b32.xlu1 %v14334_v30, %s33041_s27  ;;  %v16539_v61 = vsub.f32 %v16466_v29, %v16538_v10 }
0x11c8   : > { %v14335_v58 = vmax.f32 %v14333_v59, 0.0  ;;  %v16540_v47 = vand.u32 4294901760, %v16539_v61 }
0x11ca   : > { %14340 = vrot.lane.b32.xlu1 %v14335_v58, %s33041_s27 }
0x1238   : > { %v14339_v16 = vpop.permute.xlu1 %14338 }
0x1239   : > { %v14344_v25 = vmax.f32 %v14334_v30, %v14339_v16  ;;  %v16549_v30 = vsub.f32 %v16469_v24, %v16548_v15 }
0x123b   : > { %14348 = vrot.lane.b32.xlu1 %v14344_v25, %s33042_s17  ;;  %v16550_v59 = vand.u32 4294901760, %v16549_v30 }
0x123c   : > { %v14341_v26 = vpop.permute.xlu1 %14340 }
0x123d   : > { %v14345_v63 = vmax.f32 %v14335_v58, %v14341_v26  ;;  %v16541_v58 = vsub.f32 %v16539_v61, %v16540_v47  ;;  %v16551_v5 = vsub.f32 %v16549_v30, %v16550_v59 }
0x123f   : > { %14350 = vrot.lane.b32.xlu1 %v14345_v63, %s33042_s17  ;;  %v16542_v54 = vand.u32 4294901760, %v16541_v58  ;;  %v16552_v53 = vand.u32 4294901760, %v16551_v5 }
0x12ad   : > { %v14349_v62 = vpop.permute.xlu1 %14348 }
0x12ae   : > { %v14354_v13 = vmax.f32 %v14344_v25, %v14349_v62 }
0x12b0   : > { %v14365_v36 = vand.u32 4294901760, %v14354_v13 }
0x12b1   : > { %v14351_v43 = vpop.permute.xlu1 %14350 }
0x12b2   : > { %v14453_v40 = vsub.f32 %v14354_v13, %v14365_v36  ;;  %v14355_v22 = vmax.f32 %v14345_v63, %v14351_v43  ;;  %v27136_v63 = vld [vmem:[%s39581_s6 + $0x40] sm:$0xff]  ;;  %v27121_v43 = vld [vmem:[%s39582_s7 + $0x28] sm:$0xff] }
0x12b3   : > { %v18576_v28 = vsel %vm2469_vm4, %v27136_v63, 0 }
0x12b4   : > { %v14454_v57 = vand.u32 4294901760, %v14453_v40  ;;  %v14368_v20 = vand.u32 4294901760, %v14355_v22  ;;  %v37828_v33 = vand.u32 4294901760, %v18576_v28 }
0x12b6   : > { %v37734_v21 = vpack.c.bf16 %v14368_v20, %v14365_v36  ;;  %v14460_v37 = vsub.f32 %v14355_v22, %v14368_v20  ;;  %v14455_v32 = vsub.f32 %v14453_v40, %v14454_v57  ;;  %v15401_v22 = vand.u32 4294901760, %v27121_v43 }
0x12b8   : > { %v14461_v60 = vand.u32 4294901760, %v14460_v37  ;;  %31454 = vmatprep.subr.bf16.mxu1 %v37734_v21  ;;  %31478 = vmatprep.subr.bf16.mxu0 %v37734_v21  ;;  %v14456_v31 = vand.u32 4294901760, %v14455_v32  ;;  %v37744_v45 = vpack.c.bf16 %v14460_v37, %v14453_v40  ;;  %v15395_v32 = vsel %vm15393_vm7, %v27123_v49, 0  ;;  %v27154_v49 = vld [vmem:[%s39581_s6 + $0x70] sm:$0xff] }
0x12b9   : > { %31456 = vmatpush3.bf16.msra.mxu1 %v37734_v21  ;;  %31480 = vmatpush3.bf16.msra.mxu0 %v37734_v21 }
0x12ba   : > { %v14462_v3 = vsub.f32 %v14460_v37, %v14461_v60  ;;  %v37763_v41 = vpack.c.bf16 %v14461_v60, %v14454_v57  ;;  %v27122_v37 = vld [vmem:[%s39582_s7 + $0x30] sm:$0xff]  ;;  %v15495_v60 = vsub.f32 %v27121_v43, %v15401_v22 }
0x12bc   : > { %v14463_v44 = vand.u32 4294901760, %v14462_v3  ;;  %28068 = vmatmul.mubr.f32.vlgmr.msra.gmra.mrb[132].mxu1 %v14445_v38  ;;  %28110 = vmatmul.mubr.f32.vlgmr.msra.gmra.mrb[132].mxu0 %v14960_v17  ;;  %v15404_v38 = vand.u32 4294901760, %v27122_v37  ;;  %v15407_v17 = vand.u32 4294901760, %v15395_v32 }
0x12bd   : > { %28074 = vmatprep.mubr.f32.mxu1 %v37702_v56  ;;  %28116 = vmatprep.mubr.f32.mxu0 %v37704_v18 }
0x12be   : > { %v37742_v50 = vpack.c.bf16 %v14463_v44, %v14456_v31  ;;  %v15496_v31 = vand.u32 4294901760, %v15495_v60  ;;  %v37868_v44 = vpack.c.bf16 %v15407_v17, %v15404_v38  ;;  %v15502_v29 = vsub.f32 %v27122_v37, %v15404_v38  ;;  %v27155_v37 = vld [vmem:[%s39581_s6 + $0x78] sm:$0xff] }
0x12c0   : > { %31458 = vmatprep.subr.bf16.mxu1 %v37742_v50  ;;  %31482 = vmatprep.subr.bf16.mxu0 %v37742_v50  ;;  %v15497_v1 = vsub.f32 %v15495_v60, %v15496_v31 }
0x12c1   : > { %31460 = vmatpush3.bf16.msra.mxu1 %v37742_v50  ;;  %31484 = vmatpush3.bf16.msra.mxu0 %v37742_v50 }
0x12c2   : > { %31462 = vmatprep.subr.bf16.mxu1 %v37744_v45  ;;  %31486 = vmatprep.subr.bf16.mxu0 %v37744_v45 }
0x12c4   : > { %28075 = vmatmul.mubr.f32.vlgmr.msra.gmra.mrb[132].mxu1 %v37728_v42  ;;  %28117 = vmatmul.mubr.f32.vlgmr.msra.gmra.mrb[132].mxu0 %v37730_v8 }
0x12c5   : > { %31464 = vmatpush3.bf16.msra.mxu1 %v37744_v45  ;;  %31488 = vmatpush3.bf16.msra.mxu0 %v37744_v45 }
0x12c6   : > { %31466 = vmatprep.subr.bf16.mxu1 %v37734_v21  ;;  %31490 = vmatprep.subr.bf16.mxu0 %v37734_v21 }
0x12c7   : > { %28081 = vmatprep.mubr.f32.mxu1 %v37707_v27  ;;  %28123 = vmatprep.mubr.f32.mxu0 %v37710_v12 }
0x12cc   : > { %28082 = vmatmul.mubr.f32.vlgmr.msra.gmra.mrb[132].mxu1 %v14442_v7  ;;  %28124 = vmatmul.mubr.f32.vlgmr.msra.gmra.mrb[132].mxu0 %v14957_v39 }
0x12cd   : > { %31468 = vmatpush3.bf16.msra.mxu1 %v37734_v21  ;;  %31492 = vmatpush3.bf16.msra.mxu0 %v37734_v21 }
0x12ce   : > { %31470 = vmatprep.subr.bf16.mxu1 %v37763_v41  ;;  %31494 = vmatprep.subr.bf16.mxu0 %v37763_v41 }
0x12cf   : > { %28088 = vmatprep.mubr.f32.mxu1 %v14433_v51  ;;  %28130 = vmatprep.mubr.f32.mxu0 %v14948_v19 }
0x12d4   : > { %28089 = vmatmul.mubr.f32.vlgmr.msra.gmra.mrb[132].mxu1 %v14443_v2  ;;  %28131 = vmatmul.mubr.f32.vlgmr.msra.gmra.mrb[132].mxu0 %v14958_v9  ;;  %v27120_v9 = vld [vmem:[%s39582_s7 + $0x20] sm:$0xff] }
0x12d5   : > { %31472 = vmatpush3.bf16.msra.mxu1 %v37763_v41  ;;  %31496 = vmatpush3.bf16.msra.mxu0 %v37763_v41  ;;  %v15398_v40 = vand.u32 4294901760, %v27120_v9 }
0x12d6   : > { %31474 = vmatprep.subr.bf16.mxu1 %v37734_v21  ;;  %31498 = vmatprep.subr.bf16.mxu0 %v37734_v21 }
0x12d7   : > { %28095 = vmatprep.mubr.f32.mxu1 %v37702_v56  ;;  %28137 = vmatprep.mubr.f32.mxu0 %v37704_v18  ;;  %v37855_v20 = vpack.c.bf16 %v15401_v22, %v15398_v40  ;;  %v15488_v46 = vsub.f32 %v27120_v9, %v15398_v40 }
0x12d9   : > { %v15489_v3 = vand.u32 4294901760, %v15488_v46 }
0x12db   : > { %v15490_v52 = vsub.f32 %v15488_v46, %v15489_v3 }
0x12dc   : > { %28096 = vmatmul.mubr.f32.vlgmr.msra.gmra.mrb[132].mxu1 %v37728_v42  ;;  %28138 = vmatmul.mubr.f32.vlgmr.msra.gmra.mrb[132].mxu0 %v37730_v8 }
0x12dd   : > { %31476 = vmatpush3.bf16.msra.mxu1 %v37734_v21  ;;  %31500 = vmatpush3.bf16.msra.mxu0 %v37734_v21  ;;  %v15491_v24 = vand.u32 4294901760, %v15490_v52 }
0x12de   : > { %31598 = vmatprep.subr.bf16.mxu0 %v37734_v21  ;;  %28144 = vmatprep.mubr.f32.mxu0 %v37704_v18  ;;  %v27131_v18 = vld [vmem:[%s39581_s6 + $0x38] sm:$0xff] }
0x12df   : > { %28102 = vmatprep.mubr.f32.mxu1 %v37702_v56  ;;  %v17521_v56 = vsel %vm2469_vm4, %v27130_v14, 0  ;;  %v17524_v12 = vsel %vm2469_vm4, %v27131_v18, 0  ;;  %31502 = vmatprep.subr.bf16.mxu1 %v37855_v20  ;;  %v37884_v14 = vpack.c.bf16 %v15495_v60, %v15488_v46  ;;  %v21741_v46 = vsel %vm2469_vm4, %v27154_v49, 0 }
0x12e0   : > { %v17593_v27 = vand.u32 4294901760, %v17521_v56  ;;  %v17603_v51 = vand.u32 4294901760, %v17524_v12  ;;  %v21744_v60 = vsel %vm2469_vm4, %v27155_v37, 0 }
0x12e1   : > { %v37955_v38 = vand.u32 4294901760, %v21744_v60 }
0x12e2   : > { %v17594_v19 = vsub.f32 %v17521_v56, %v17593_v27  ;;  %v17604_v16 = vsub.f32 %v17524_v12, %v17603_v51  ;;  %v27142_v56 = vld [vmem:[%s39581_s6 + $0x50] sm:$0xff]  ;;  %v27143_v12 = vld [vmem:[%s39581_s6 + $0x58] sm:$0xff] }
0x12e4   : > { %28145 = vmatmul.mubr.f32.vlgmr.msra.gmra.mrb[132].mxu0 %v37730_v8  ;;  %28103 = vmatmul.mubr.f32.vlgmr.msra.gmra.mrb[132].mxu1 %v37728_v42  ;;  %v17595_v0 = vand.u32 4294901760, %v17594_v19  ;;  %v17605_v34 = vand.u32 4294901760, %v17604_v16  ;;  %v37831_v42 = vand.u32 4294901760, %v18579_v23  ;;  %v37835_v8 = vsub.f32 %v18576_v28, %v37828_v33 }
0x12e5   : > { %31600 = vmatpush3.bf16.msra.mxu0 %v37734_v21  ;;  %28283 = vmatprep.mubr.f32.mxu0 %v16542_v54 }
0x12e6   : > { %31602 = vmatprep.subr.bf16.mxu0 %v37742_v50  ;;  %v17596_v25 = vsub.f32 %v17594_v19, %v17595_v0  ;;  %v17606_v55 = vsub.f32 %v17604_v16, %v17605_v34  ;;  %v37839_v7 = vsub.f32 %v18579_v23, %v37831_v42  ;;  %v18650_v39 = vand.u32 4294901760, %v37835_v8  ;;  %31504 = vmatpush3.bf16.msra.mxu1 %v37855_v20 }
0x12e7   : > { %31506 = vmatprep.subr.bf16.mxu1 %v37868_v44 }
0x12e8   : > { %28284 = vmatmul.mubr.f32.vlgmr.msra.gmra.mrb[134].mxu0 %v16552_v53  ;;  %v17597_v4 = vand.u32 4294901760, %v17596_v25  ;;  %v17607_v26 = vand.u32 4294901760, %v17606_v55  ;;  %v18660_v62 = vand.u32 4294901760, %v37839_v7  ;;  %v18651_v13 = vsub.f32 %v37835_v8, %v18650_v39 }
0x12e9   : > { %31604 = vmatpush3.bf16.msra.mxu0 %v37742_v50  ;;  %28290 = vmatprep.mubr.f32.mxu0 %v16538_v10  ;;  %v37904_v25 = vpack.c.bf16 %v15496_v31, %v15489_v3  ;;  %v37963_v3 = vsub.f32 %v21744_v60, %v37955_v38 }
0x12ea   : > { %31606 = vmatprep.subr.bf16.mxu0 %v37744_v45  ;;  %v18661_v36 = vsub.f32 %v37839_v7, %v18660_v62  ;;  %v18652_v2 = vand.u32 4294901760, %v18651_v13  ;;  %31508 = vmatpush3.bf16.msra.mxu1 %v37868_v44 }
0x12ec   : > { %v18662_v57 = vand.u32 4294901760, %v18661_v36 }
0x12f0   : > { %28291 = vmatmul.mubr.f32.vlgmr.msra.gmra.mrb[134].mxu0 %v16548_v15 }
0x12f1   : > { %31608 = vmatpush3.bf16.msra.mxu0 %v37744_v45  ;;  %28297 = vmatprep.mubr.f32.mxu0 %v16539_v61  ;;  %v15498_v61 = vand.u32 4294901760, %v15497_v1 }
0x12f2   : > { %31610 = vmatprep.subr.bf16.mxu0 %v37734_v21 }
0x12f8   : > { %28298 = vmatmul.mubr.f32.vlgmr.msra.gmra.mrb[134].mxu0 %v16549_v30 }
0x12f9   : > { %31612 = vmatpush3.bf16.msra.mxu0 %v37734_v21  ;;  %28304 = vmatprep.mubr.f32.mxu0 %v16540_v47 }
0x12fa   : > { %31614 = vmatprep.subr.bf16.mxu0 %v37763_v41 }
0x1300   : > { %28305 = vmatmul.mubr.f32.vlgmr.msra.gmra.mrb[134].mxu0 %v16550_v59  ;;  %v37875_v59 = vpack.c.bf16 %v15498_v61, %v15491_v24 }
0x1301   : > { %31616 = vmatpush3.bf16.msra.mxu0 %v37763_v41  ;;  %28311 = vmatprep.mubr.f32.mxu0 %v16538_v10 }
0x1302   : > { %31618 = vmatprep.subr.bf16.mxu0 %v37734_v21  ;;  %31510 = vmatprep.subr.bf16.mxu1 %v37875_v59 }
0x1308   : > { %28312 = vmatmul.mubr.f32.vlgmr.msra.gmra.mrb[134].mxu0 %v16548_v15 }
0x1309   : > { %31620 = vmatpush3.bf16.msra.mxu0 %v37734_v21  ;;  %28318 = vmatprep.mubr.f32.mxu0 %v16538_v10  ;;  %v15509_v10 = vsub.f32 %v15395_v32, %v15407_v17  ;;  %v37952_v32 = vand.u32 4294901760, %v21741_v46 }
0x130a   : > { %31670 = vmatprep.subr.bf16.mxu0 %v37734_v21 }
0x130b   : > { %v15510_v30 = vand.u32 4294901760, %v15509_v10  ;;  %v37889_v18 = vpack.c.bf16 %v15509_v10, %v15502_v29  ;;  %v37959_v17 = vsub.f32 %v21741_v46, %v37952_v32 }
0x130d   : > { %v15511_v58 = vsub.f32 %v15509_v10, %v15510_v30  ;;  %v21815_v31 = vand.u32 4294901760, %v37959_v17 }
0x130f   : > { %v15512_v54 = vand.u32 4294901760, %v15511_v58 }
0x1310   : > { %28319 = vmatmul.mubr.f32.vlgmr.msra.gmra.mrb[134].mxu0 %v16548_v15  ;;  %v15503_v15 = vand.u32 4294901760, %v15502_v29 }
0x1311   : > { %31672 = vmatpush3.bf16.msra.mxu0 %v37734_v21  ;;  %28391 = vmatprep.mubr.f32.mxu0 %v17597_v4 }
0x1312   : > { %31674 = vmatprep.subr.bf16.mxu0 %v37742_v50  ;;  %v15504_v47 = vsub.f32 %v15502_v29, %v15503_v15  ;;  %v37906_v4 = vpack.c.bf16 %v15510_v30, %v15503_v15  ;;  %v21825_v15 = vand.u32 4294901760, %v37963_v3 }
0x1314   : > { %28392 = vmatmul.mubr.f32.vlgmr.msra.gmra.mrb[136].mxu0 %v17607_v26  ;;  %v15505_v5 = vand.u32 4294901760, %v15504_v47  ;;  %v21816_v47 = vsub.f32 %v37959_v17, %v21815_v31 }
0x1315   : > { %31676 = vmatpush3.bf16.msra.mxu0 %v37742_v50  ;;  %28398 = vmatprep.mubr.f32.mxu0 %v17593_v27 }
0x1316   : > { %31678 = vmatprep.subr.bf16.mxu0 %v37744_v45  ;;  %v37881_v53 = vpack.c.bf16 %v15512_v54, %v15505_v5 }
0x131c   : > { %28399 = vmatmul.mubr.f32.vlgmr.msra.gmra.mrb[136].mxu0 %v17603_v51 }
0x131d   : > { %31680 = vmatpush3.bf16.msra.mxu0 %v37744_v45  ;;  %28405 = vmatprep.mubr.f32.mxu0 %v17594_v19  ;;  %v19634_v19 = vsel %vm2469_vm4, %v27143_v12, 0  ;;  %v21817_v12 = vand.u32 4294901760, %v21816_v47 }
0x131e   : > { %31682 = vmatprep.subr.bf16.mxu0 %v37734_v21 }
0x1324   : > { %28406 = vmatmul.mubr.f32.vlgmr.msra.gmra.mrb[136].mxu0 %v17604_v16  ;;  %v19713_v16 = vand.u32 4294901760, %v19634_v19 }
0x1325   : > { %31684 = vmatpush3.bf16.msra.mxu0 %v37734_v21  ;;  %28412 = vmatprep.mubr.f32.mxu0 %v17595_v0 }
0x1326   : > { %31686 = vmatprep.subr.bf16.mxu0 %v37763_v41 }
0x132c   : > { %28413 = vmatmul.mubr.f32.vlgmr.msra.gmra.mrb[136].mxu0 %v17605_v34  ;;  %v19714_v34 = vsub.f32 %v19634_v19, %v19713_v16 }
0x132d   : > { %31688 = vmatpush3.bf16.msra.mxu0 %v37763_v41  ;;  %28419 = vmatprep.mubr.f32.mxu0 %v17593_v27 }
0x132e   : > { %31690 = vmatprep.subr.bf16.mxu0 %v37734_v21  ;;  %v19715_v26 = vand.u32 4294901760, %v19714_v34 }
0x1330   : > { %v19716_v28 = vsub.f32 %v19714_v34, %v19715_v26 }
0x1332   : > { %v19717_v23 = vand.u32 4294901760, %v19716_v28  ;;  %v14869_v28 = vld [vmem:[%s39582_s7 + $0x18] sm:$0x1] }
0x1334   : > { %28420 = vmatmul.mubr.f32.vlgmr.msra.gmra.mrb[136].mxu0 %v17603_v51 }
0x1335   : > { %31692 = vmatpush3.bf16.msra.mxu0 %v37734_v21  ;;  %28426 = vmatprep.mubr.f32.mxu0 %v17593_v27  ;;  %v19631_v27 = vsel %vm2469_vm4, %v27142_v56, 0  ;;  %v21826_v56 = vsub.f32 %v37963_v3, %v21825_v15 }
0x1336   : > { %31742 = vmatprep.subr.bf16.mxu0 %v37734_v21 }
0x133c   : > { %28427 = vmatmul.mubr.f32.vlgmr.msra.gmra.mrb[136].mxu0 %v17603_v51  ;;  %v19703_v51 = vand.u32 4294901760, %v19631_v27 }
0x133d   : > { %31744 = vmatpush3.bf16.msra.mxu0 %v37734_v21  ;;  %28499 = vmatprep.mubr.f32.mxu0 %v18652_v2 }
0x133e   : > { %31746 = vmatprep.subr.bf16.mxu0 %v37742_v50  ;;  %v19704_v0 = vsub.f32 %v19631_v27, %v19703_v51 }
0x1340   : > { %28500 = vmatmul.mubr.f32.vlgmr.msra.gmra.mrb[138].mxu0 %v18662_v57  ;;  %v19705_v55 = vand.u32 4294901760, %v19704_v0 }
0x1341   : > { %31748 = vmatpush3.bf16.msra.mxu0 %v37742_v50  ;;  %28506 = vmatprep.mubr.f32.mxu0 %v37828_v33 }
0x1342   : > { %31750 = vmatprep.subr.bf16.mxu0 %v37744_v45  ;;  %v19706_v63 = vsub.f32 %v19704_v0, %v19705_v55 }
0x1344   : > { %v19707_v48 = vand.u32 4294901760, %v19706_v63 }
0x1348   : > { %28507 = vmatmul.mubr.f32.vlgmr.msra.gmra.mrb[138].mxu0 %v37831_v42 }
0x1349   : > { %31752 = vmatpush3.bf16.msra.mxu0 %v37744_v45  ;;  %28513 = vmatprep.mubr.f32.mxu0 %v37835_v8  ;;  %v27149_v8 = vld [vmem:[%s39581_s6 + $0x68] sm:$0xff] }
0x134a   : > { %31754 = vmatprep.subr.bf16.mxu0 %v37734_v21 }
0x1350   : > { %28514 = vmatmul.mubr.f32.vlgmr.msra.gmra.mrb[138].mxu0 %v37839_v7 }
0x1351   : > { %31756 = vmatpush3.bf16.msra.mxu0 %v37734_v21  ;;  %28520 = vmatprep.mubr.f32.mxu0 %v18650_v39  ;;  %v20689_v39 = vsel %vm2469_vm4, %v27149_v8, 0 }
0x1352   : > { %31758 = vmatprep.subr.bf16.mxu0 %v37763_v41 }
0x1358   : > { %28521 = vmatmul.mubr.f32.vlgmr.msra.gmra.mrb[138].mxu0 %v18660_v62  ;;  %v37929_v62 = vand.u32 4294901760, %v20689_v39 }
0x1359   : > { %31760 = vmatpush3.bf16.msra.mxu0 %v37763_v41  ;;  %28527 = vmatprep.mubr.f32.mxu0 %v37828_v33 }
0x135a   : > { %31762 = vmatprep.subr.bf16.mxu0 %v37734_v21  ;;  %v20769_v36 = vsub.f32 %v20689_v39, %v37929_v62  ;;  %v15932_v39 = vsel %vm15393_vm7, %v14869_v28, 0 }
0x135c   : > { %v20770_v9 = vand.u32 4294901760, %v20769_v36 }
0x135e   : > { %v20771_v40 = vsub.f32 %v20769_v36, %v20770_v9 }
0x1360   : > { %28528 = vmatmul.mubr.f32.vlgmr.msra.gmra.mrb[138].mxu0 %v37831_v42  ;;  %v20772_v57 = vand.u32 4294901760, %v20771_v40 }
0x1361   : > { %31764 = vmatpush3.bf16.msra.mxu0 %v37734_v21  ;;  %28534 = vmatprep.mubr.f32.mxu0 %v37828_v33  ;;  %v27148_v33 = vld [vmem:[%s39581_s6 + $0x60] sm:$0xff] }
0x1362   : > { %31814 = vmatprep.subr.bf16.mxu0 %v37734_v21 }
0x1368   : > { %28535 = vmatmul.mubr.f32.vlgmr.msra.gmra.mrb[138].mxu0 %v37831_v42  ;;  %v20686_v42 = vsel %vm2469_vm4, %v27148_v33, 0 }
0x1369   : > { %31816 = vmatpush3.bf16.msra.mxu0 %v37734_v21  ;;  %28607 = vmatprep.mubr.f32.mxu0 %v19707_v48  ;;  %v20758_v7 = vand.u32 4294901760, %v20686_v42 }
0x136a   : > { %31818 = vmatprep.subr.bf16.mxu0 %v37742_v50 }
0x136b   : > { %v20759_v13 = vsub.f32 %v20686_v42, %v20758_v7 }
0x136c   : > { %28608 = vmatmul.mubr.f32.vlgmr.msra.gmra.mrb[140].mxu0 %v19717_v23 }
0x136d   : > { %31820 = vmatpush3.bf16.msra.mxu0 %v37742_v50  ;;  %28614 = vmatprep.mubr.f32.mxu0 %v19703_v51  ;;  %v20760_v2 = vand.u32 4294901760, %v20759_v13 }
0x136e   : > { %31822 = vmatprep.subr.bf16.mxu0 %v37744_v45 }
0x136f   : > { %v20761_v43 = vsub.f32 %v20759_v13, %v20760_v2 }
0x1371   : > { %v20762_v22 = vand.u32 4294901760, %v20761_v43 }
0x1374   : > { %28615 = vmatmul.mubr.f32.vlgmr.msra.gmra.mrb[140].mxu0 %v19713_v16 }
0x1375   : > { %31824 = vmatpush3.bf16.msra.mxu0 %v37744_v45  ;;  %28621 = vmatprep.mubr.f32.mxu0 %v19704_v0  ;;  %v21827_v0 = vand.u32 4294901760, %v21826_v56 }
0x1376   : > { %31826 = vmatprep.subr.bf16.mxu0 %v37734_v21 }
0x137c   : > { %28622 = vmatmul.mubr.f32.vlgmr.msra.gmra.mrb[140].mxu0 %v19714_v34 }
0x137d   : > { %31828 = vmatpush3.bf16.msra.mxu0 %v37734_v21  ;;  %28628 = vmatprep.mubr.f32.mxu0 %v19705_v55 }
0x137e   : > { %31830 = vmatprep.subr.bf16.mxu0 %v37763_v41 }
0x1384   : > { %28629 = vmatmul.mubr.f32.vlgmr.msra.gmra.mrb[140].mxu0 %v19715_v26  ;;  %v14867_v26 = vld [vmem:[%s39582_s7 + $0x8] sm:$0xff] }
0x1385   : > { %31832 = vmatpush3.bf16.msra.mxu0 %v37763_v41  ;;  %28635 = vmatprep.mubr.f32.mxu0 %v19703_v51  ;;  %v15938_v42 = vand.u32 4294901760, %v14867_v26 }
0x1386   : > { %31834 = vmatprep.subr.bf16.mxu0 %v37734_v21 }
0x1387   : > { %v38056_v43 = vsub.f32 %v14867_v26, %v15938_v42  ;;  %v27129_v26 = vld [vmem:[%s39582_s7 + $0x58] sm:$0x1] }
0x1389   : > { %v16033_v60 = vand.u32 4294901760, %v38056_v43 }
0x138c   : > { %28636 = vmatmul.mubr.f32.vlgmr.msra.gmra.mrb[140].mxu0 %v19713_v16 }
0x138d   : > { %31836 = vmatpush3.bf16.msra.mxu0 %v37734_v21  ;;  %28642 = vmatprep.mubr.f32.mxu0 %v19703_v51 }
0x138e   : > { %31886 = vmatprep.subr.bf16.mxu0 %v37734_v21 }
0x1394   : > { %28643 = vmatmul.mubr.f32.vlgmr.msra.gmra.mrb[140].mxu0 %v19713_v16 }
0x1395   : > { %31888 = vmatpush3.bf16.msra.mxu0 %v37734_v21  ;;  %28715 = vmatprep.mubr.f32.mxu0 %v20762_v22 }
0x1396   : > { %31890 = vmatprep.subr.bf16.mxu0 %v37742_v50 }
0x1398   : > { %28716 = vmatmul.mubr.f32.vlgmr.msra.gmra.mrb[142].mxu0 %v20772_v57 }
0x1399   : > { %31892 = vmatpush3.bf16.msra.mxu0 %v37742_v50  ;;  %28722 = vmatprep.mubr.f32.mxu0 %v20758_v7 }
0x139a   : > { %31894 = vmatprep.subr.bf16.mxu0 %v37744_v45 }
0x13a0   : > { %28723 = vmatmul.mubr.f32.vlgmr.msra.gmra.mrb[142].mxu0 %v37929_v62 }
0x13a1   : > { %31896 = vmatpush3.bf16.msra.mxu0 %v37744_v45  ;;  %28729 = vmatprep.mubr.f32.mxu0 %v20759_v13 }
0x13a2   : > { %31898 = vmatprep.subr.bf16.mxu0 %v37734_v21 }
0x13a8   : > { %28730 = vmatmul.mubr.f32.vlgmr.msra.gmra.mrb[142].mxu0 %v20769_v36 }
0x13a9   : > { %31900 = vmatpush3.bf16.msra.mxu0 %v37734_v21  ;;  %28736 = vmatprep.mubr.f32.mxu0 %v20760_v2 }
0x13aa   : > { %31902 = vmatprep.subr.bf16.mxu0 %v37763_v41 }
0x13b0   : > { %28737 = vmatmul.mubr.f32.vlgmr.msra.gmra.mrb[142].mxu0 %v20770_v9  ;;  %v15944_v9 = vand.u32 4294901760, %v15932_v39 }
0x13b1   : > { %31904 = vmatpush3.bf16.msra.mxu0 %v37763_v41  ;;  %28743 = vmatprep.mubr.f32.mxu0 %v20758_v7 }
0x13b2   : > { %31906 = vmatprep.subr.bf16.mxu0 %v37734_v21 }
0x13b7   : > { %v28146_v52 = vpop.f32.mrb[132].mxu0  ;;  %v37966_v29 = vpop.f32.mrb[132].mxu1 }
0x13b8   : > { %v15391_v1 = vsel %vm15386_vm8, %v28146_v52, 0  ;;  %v15371_v10 = vpop.f32.mrb[133].mxu0  ;;  %28744 = vmatmul.mubr.f32.vlgmr.msra.gmra.mrb[142].mxu0 %v37929_v62  ;;  %v14856_v24 = vpop.f32.mrb[133].mxu1  ;;  %v15929_v40 = vsel %vm15386_vm8, %v37966_v29, 0 }
0x13b9   : > { %v37971_v61 = vand.u32 4294901760, %v15391_v1  ;;  %v15388_v30 = vsel %vm15386_vm8, %v15371_v10, 0  ;;  %31908 = vmatpush3.bf16.msra.mxu0 %v37734_v21  ;;  %28750 = vmatprep.mubr.f32.mxu0 %v20758_v7  ;;  %v15926_v48 = vsel %vm15386_vm8, %v14856_v24, 0  ;;  %v14868_v7 = vld [vmem:[%s39582_s7 + $0x10] sm:$0xff]  ;;  %v38070_v46 = vand.u32 4294901760, %v15929_v40 }
0x13ba   : > { %v37976_v58 = vand.u32 4294901760, %v15388_v30  ;;  %31958 = vmatprep.subr.bf16.mxu0 %v37734_v21  ;;  %v15941_v2 = vand.u32 4294901760, %v14868_v7 }
0x13bb   : > { %v37980_v5 = vsub.f32 %v15391_v1, %v37971_v61  ;;  %v38098_v24 = vsub.f32 %v15929_v40, %v38070_v46 }
0x13bc   : > { %v15467_v54 = vsub.f32 %v15388_v30, %v37976_v58 }
0x13bd   : > { %v15478_v27 = vand.u32 4294901760, %v37980_v5  ;;  %v16015_v56 = vand.u32 4294901760, %v38098_v24 }
0x13be   : > { %v15468_v51 = vand.u32 4294901760, %v15467_v54 }
0x13bf   : > { %v15479_v19 = vsub.f32 %v37980_v5, %v15478_v27 }
0x13c0   : > { %28751 = vmatmul.mubr.f32.vlgmr.msra.gmra.mrb[142].mxu0 %v37929_v62  ;;  %v15469_v16 = vsub.f32 %v15467_v54, %v15468_v51  ;;  %v38044_v62 = vand.u32 4294901760, %v15926_v48 }
0x13c1   : > { %31960 = vmatpush3.bf16.msra.mxu0 %v37734_v21  ;;  %28823 = vmatprep.mubr.f32.mxu0 %v21817_v12  ;;  %v15480_v55 = vand.u32 4294901760, %v15479_v19  ;;  %v38124_v19 = vpack.c.bf16 %v15944_v9, %v15941_v2 }
0x13c2   : > { %31962 = vmatprep.subr.bf16.mxu0 %v37742_v50  ;;  %v15470_v34 = vand.u32 4294901760, %v15469_v16  ;;  %v38065_v22 = vsub.f32 %v15926_v48, %v38044_v62  ;;  %v16016_v16 = vsub.f32 %v38098_v24, %v16015_v56 }
0x13c4   : > { %28155 = vmatprep.mubr.f32.mxu1 %v15470_v34  ;;  %28824 = vmatmul.mubr.f32.vlgmr.msra.gmra.mrb[144].mxu0 %v21827_v0  ;;  %v16005_v52 = vand.u32 4294901760, %v38065_v22 }
0x13c5   : > { %31964 = vmatpush3.bf16.msra.mxu0 %v37742_v50  ;;  %28156 = vmatmul.mubr.f32.vlgmr.msra.gmra.mrb[134].mxu1 %v15480_v55 }
0x13c6   : > { %31966 = vmatprep.subr.bf16.mxu0 %v37744_v45  ;;  %31512 = vmatpush3.bf16.msra.mxu1 %v37875_v59  ;;  %v27160_v59 = vld [vmem:[%s39581_s6 + $0x80] sm:$0xff] }
0x13c7   : > { %28166 = vmatprep.mubr.f32.mxu1 %v37976_v58  ;;  %31514 = vmatprep.subr.bf16.mxu1 %v37881_v53 }
0x13c8   : > { %28830 = vmatprep.mubr.f32.mxu0 %v37952_v32 }
0x13ca   : > { %31516 = vmatpush3.bf16.msra.mxu1 %v37881_v53  ;;  %v27161_v53 = vld [vmem:[%s39581_s6 + $0x88] sm:$0xff] }
0x13cb   : > { %31518 = vmatprep.subr.bf16.mxu1 %v37884_v14  ;;  %v22799_v63 = vsel %vm2469_vm4, %v27161_v53, 0  ;;  %v27126_v53 = vld [vmem:[%s39582_s7 + $0x40] sm:$0xff] }
0x13cc   : > { %28831 = vmatmul.mubr.f32.vlgmr.msra.gmra.mrb[144].mxu0 %v37955_v38  ;;  %v38038_v8 = vand.u32 4294901760, %v22799_v63 }
0x13cd   : > { %31968 = vmatpush3.bf16.msra.mxu0 %v37744_v45  ;;  %28167 = vmatmul.mubr.f32.vlgmr.msra.gmra.mrb[134].mxu1 %v37971_v61 }
0x13ce   : > { %31970 = vmatprep.subr.bf16.mxu0 %v37734_v21  ;;  %31520 = vmatpush3.bf16.msra.mxu1 %v37884_v14  ;;  %v14866_v14 = vld [vmem:[%s39582_s7] sm:$0xff] }
0x13cf   : > { %28177 = vmatprep.mubr.f32.mxu1 %v15467_v54  ;;  %31522 = vmatprep.subr.bf16.mxu1 %v37889_v18  ;;  %v15935_v23 = vand.u32 4294901760, %v14866_v14 }
0x13d0   : > { %28837 = vmatprep.mubr.f32.mxu0 %v37959_v17  ;;  %v38076_v17 = vsub.f32 %v14868_v7, %v15941_v2 }
0x13d1   : > { %v38052_v36 = vsub.f32 %v14866_v14, %v15935_v23  ;;  %v38089_v29 = vpack.c.bf16 %v15938_v42, %v15935_v23  ;;  %v27127_v14 = vld [vmem:[%s39582_s7 + $0x48] sm:$0xff]  ;;  %v16985_v42 = vsel %vm15393_vm7, %v27129_v26, 0 }
0x13d2   : > { %31524 = vmatpush3.bf16.msra.mxu1 %v37889_v18  ;;  %v22796_v18 = vsel %vm2469_vm4, %v27160_v59, 0  ;;  %v16991_v48 = vand.u32 4294901760, %v27127_v14 }
0x13d3   : > { %31526 = vmatprep.subr.bf16.mxu1 %v37855_v20  ;;  %v38033_v33 = vand.u32 4294901760, %v22796_v18  ;;  %v16026_v49 = vand.u32 4294901760, %v38052_v36  ;;  %v31565_v59 = vpack.c.bf16 %v38056_v43, %v38052_v36 }
0x13d4   : > { %28838 = vmatmul.mubr.f32.vlgmr.msra.gmra.mrb[144].mxu0 %v37963_v3  ;;  %v38078_v3 = vsub.f32 %v15932_v39, %v15944_v9  ;;  %v38198_v2 = vsub.f32 %v27127_v14, %v16991_v48 }
0x13d5   : > { %31972 = vmatpush3.bf16.msra.mxu0 %v37734_v21  ;;  %28178 = vmatmul.mubr.f32.vlgmr.msra.gmra.mrb[134].mxu1 %v37980_v5  ;;  %v38050_v13 = vsub.f32 %v22796_v18, %v38033_v33  ;;  %v16027_v10 = vsub.f32 %v38052_v36, %v16026_v49  ;;  %v16997_v36 = vand.u32 4294901760, %v16985_v42 }
0x13d6   : > { %31974 = vmatprep.subr.bf16.mxu0 %v37763_v41  ;;  %31528 = vmatpush3.bf16.msra.mxu1 %v37855_v20  ;;  %v16047_v30 = vand.u32 4294901760, %v38078_v3 }
0x13d7   : > { %28188 = vmatprep.mubr.f32.mxu1 %v15468_v51  ;;  %31530 = vmatprep.subr.bf16.mxu1 %v37868_v44  ;;  %v22870_v57 = vand.u32 4294901760, %v38050_v13  ;;  %v16028_v54 = vand.u32 4294901760, %v16027_v10 }
0x13d8   : > { %28844 = vmatprep.mubr.f32.mxu0 %v21815_v31  ;;  %v16048_v12 = vsub.f32 %v38078_v3, %v16047_v30 }
0x13d9   : > { %v22871_v1 = vsub.f32 %v38050_v13, %v22870_v57 }
0x13da   : > { %31532 = vmatpush3.bf16.msra.mxu1 %v37868_v44  ;;  %v16049_v34 = vand.u32 4294901760, %v16048_v12  ;;  %v27133_v12 = vld [vmem:[%s39582_s7 + $0x68] sm:$0xff] }
0x13db   : > { %31534 = vmatprep.subr.bf16.mxu1 %v37904_v25  ;;  %v22872_v5 = vand.u32 4294901760, %v22871_v1 }
0x13dc   : > { %28845 = vmatmul.mubr.f32.vlgmr.msra.gmra.mrb[144].mxu0 %v21825_v15  ;;  %v16040_v15 = vand.u32 4294901760, %v38076_v17 }
0x13dd   : > { %31976 = vmatpush3.bf16.msra.mxu0 %v37763_v41  ;;  %28189 = vmatmul.mubr.f32.vlgmr.msra.gmra.mrb[134].mxu1 %v15478_v27 }
0x13de   : > { %31978 = vmatprep.subr.bf16.mxu0 %v37734_v21  ;;  %31536 = vmatpush3.bf16.msra.mxu1 %v37904_v25  ;;  %v38062_v25 = vsub.f32 %v22799_v63, %v38038_v8  ;;  %v16988_v63 = vand.u32 4294901760, %v27126_v53  ;;  %v31585_v28 = vpack.c.bf16 %v16047_v30, %v16040_v15 }
0x13df   : > { %28199 = vmatprep.mubr.f32.mxu1 %v37976_v58  ;;  %31538 = vmatprep.subr.bf16.mxu1 %v37906_v4 }
0x13e0   : > { %28851 = vmatprep.mubr.f32.mxu0 %v37952_v32  ;;  %v38194_v7 = vsub.f32 %v27126_v53, %v16988_v63 }
0x13e2   : > { %31540 = vmatpush3.bf16.msra.mxu1 %v37906_v4  ;;  %v22880_v4 = vand.u32 4294901760, %v38062_v25 }
0x13e3   : > { %31542 = vmatprep.subr.bf16.mxu1 %v37855_v20  ;;  %v38073_v37 = vpop.f32.mrb[134].mxu0 }
0x13e4   : > { %28852 = vmatmul.mubr.f32.vlgmr.msra.gmra.mrb[144].mxu0 %v37955_v38  ;;  %v38081_v31 = vpop.f32.mrb[135].mxu0  ;;  %v22881_v47 = vsub.f32 %v38062_v25, %v22880_v4  ;;  %v16982_v9 = vsel %vm15386_vm8, %v38073_v37, 0  ;;  %v17099_v37 = vsub.f32 %v16985_v42, %v16997_v36 }
0x13e5   : > { %31980 = vmatpush3.bf16.msra.mxu0 %v37734_v21  ;;  %28200 = vmatmul.mubr.f32.vlgmr.msra.gmra.mrb[134].mxu1 %v37971_v61  ;;  %v16979_v18 = vsel %vm15386_vm8, %v38081_v31, 0 }
0x13e6   : > { %32030 = vmatprep.subr.bf16.mxu0 %v37734_v21  ;;  %31544 = vmatpush3.bf16.msra.mxu1 %v37855_v20  ;;  %v16034_v20 = vsub.f32 %v38056_v43, %v16033_v60  ;;  %v22882_v51 = vand.u32 4294901760, %v22881_v47  ;;  %v38185_v23 = vand.u32 4294901760, %v16979_v18 }
0x13e7   : > { %28210 = vmatprep.mubr.f32.mxu1 %v37976_v58  ;;  %31546 = vmatprep.subr.bf16.mxu1 %v37868_v44  ;;  %v16006_v58 = vsub.f32 %v38065_v22, %v16005_v52 }
0x13e8   : > { %28858 = vmatprep.mubr.f32.mxu0 %v37952_v32  ;;  %v16035_v27 = vand.u32 4294901760, %v16034_v20  ;;  %v16041_v32 = vsub.f32 %v38076_v17, %v16040_v15  ;;  %v38203_v43 = vsub.f32 %v16979_v18, %v38185_v23 }
0x13ea   : > { %31548 = vmatpush3.bf16.msra.mxu1 %v37868_v44  ;;  %v16007_v44 = vand.u32 4294901760, %v16006_v58  ;;  %v31557_v0 = vpack.c.bf16 %v16035_v27, %v16028_v54 }
0x13eb   : > { %31550 = vmatprep.subr.bf16.mxu1 %v38089_v29 }
0x13ec   : > { %28859 = vmatmul.mubr.f32.vlgmr.msra.gmra.mrb[144].mxu0 %v37955_v38  ;;  %v16042_v38 = vand.u32 4294901760, %v16041_v32  ;;  %v27132_v32 = vld [vmem:[%s39582_s7 + $0x60] sm:$0xff] }
0x13ed   : > { %32032 = vmatpush3.bf16.msra.mxu0 %v37734_v21  ;;  %28211 = vmatmul.mubr.f32.vlgmr.msra.gmra.mrb[134].mxu1 %v37971_v61  ;;  %v16017_v61 = vand.u32 4294901760, %v16016_v16 }
0x13ee   : > { %32034 = vmatprep.subr.bf16.mxu0 %v37742_v50  ;;  %31552 = vmatpush3.bf16.msra.mxu1 %v38089_v29  ;;  %v31561_v55 = vpack.c.bf16 %v16049_v34, %v16042_v38  ;;  %v18046_v38 = vand.u32 4294901760, %v27133_v12 }
0x13ef   : > { %28221 = vmatprep.mubr.f32.mxu1 %v16007_v44  ;;  %28931 = vmatprep.mubr.f32.mxu0 %v22872_v5  ;;  %v18043_v44 = vand.u32 4294901760, %v27132_v32 }
0x13f0   : > { %28932 = vmatmul.mubr.f32.vlgmr.msra.gmra.mrb[146].mxu0 %v22882_v51  ;;  %31554 = vmatprep.subr.bf16.mxu1 %v38124_v19  ;;  %v18140_v14 = vsub.f32 %v27133_v12, %v18046_v38 }
0x13f1   : > { %32036 = vmatpush3.bf16.msra.mxu0 %v37742_v50  ;;  %28938 = vmatprep.mubr.f32.mxu0 %v38033_v33  ;;  %v31569_v50 = vpack.c.bf16 %v38078_v3, %v38076_v17 }
0x13f2   : > { %32038 = vmatprep.subr.bf16.mxu0 %v37744_v45  ;;  %31556 = vmatpush3.bf16.msra.mxu1 %v38124_v19 }
0x13f3   : > { %31558 = vmatprep.subr.bf16.mxu1 %v31557_v0 }
0x13f5   : > { %28222 = vmatmul.mubr.f32.vlgmr.msra.gmra.mrb[134].mxu1 %v16017_v61 }
0x13f6   : > { %31560 = vmatpush3.bf16.msra.mxu1 %v31557_v0  ;;  %28232 = vmatprep.mubr.f32.mxu1 %v38044_v62 }
0x13f7   : > { %31562 = vmatprep.subr.bf16.mxu1 %v31561_v55 }
0x13f8   : > { %28939 = vmatmul.mubr.f32.vlgmr.msra.gmra.mrb[146].mxu0 %v38038_v8 }
0x13f9   : > { %32040 = vmatpush3.bf16.msra.mxu0 %v37744_v45  ;;  %28945 = vmatprep.mubr.f32.mxu0 %v38050_v13  ;;  %v31581_v45 = vpack.c.bf16 %v16033_v60, %v16026_v49  ;;  %v17058_v60 = vand.u32 4294901760, %v38203_v43 }
0x13fa   : > { %32042 = vmatprep.subr.bf16.mxu0 %v37734_v21  ;;  %31564 = vmatpush3.bf16.msra.mxu1 %v31561_v55  ;;  %v27134_v55 = vld [vmem:[%s39582_s7 + $0x70] sm:$0xff] }
0x13fb   : > { %31566 = vmatprep.subr.bf16.mxu1 %v31565_v59 }
0x13fd   : > { %28233 = vmatmul.mubr.f32.vlgmr.msra.gmra.mrb[134].mxu1 %v38070_v46 }
0x13fe   : > { %31568 = vmatpush3.bf16.msra.mxu1 %v31565_v59  ;;  %28243 = vmatprep.mubr.f32.mxu1 %v38065_v22  ;;  %v38212_v22 = vand.u32 4294901760, %v16982_v9 }
0x13ff   : > { %31570 = vmatprep.subr.bf16.mxu1 %v31569_v50 }
0x1400   : > { %28946 = vmatmul.mubr.f32.vlgmr.msra.gmra.mrb[146].mxu0 %v38062_v25  ;;  %v17079_v25 = vand.u32 4294901760, %v38194_v7  ;;  %v17067_v17 = vsub.f32 %v16982_v9, %v38212_v22 }
0x1401   : > { %32044 = vmatpush3.bf16.msra.mxu0 %v37734_v21  ;;  %28952 = vmatprep.mubr.f32.mxu0 %v22870_v57  ;;  %v17086_v57 = vand.u32 4294901760, %v38198_v2 }
0x1402   : > { %32046 = vmatprep.subr.bf16.mxu0 %v37763_v41  ;;  %31572 = vmatpush3.bf16.msra.mxu1 %v31569_v50  ;;  %v17068_v1 = vand.u32 4294901760, %v17067_v17  ;;  %v38272_v50 = vsub.f32 %v27132_v32, %v18043_v44 }
0x1403   : > { %31574 = vmatprep.subr.bf16.mxu1 %v38089_v29  ;;  %v17087_v3 = vsub.f32 %v38198_v2, %v17086_v57  ;;  %v31653_v27 = vpack.c.bf16 %v17086_v57, %v17079_v25 }
0x1404   : > { %v17069_v30 = vsub.f32 %v17067_v17, %v17068_v1 }
0x1405   : > { %28244 = vmatmul.mubr.f32.vlgmr.msra.gmra.mrb[134].mxu1 %v38098_v24  ;;  %v17088_v10 = vand.u32 4294901760, %v17087_v3 }
0x1406   : > { %31576 = vmatpush3.bf16.msra.mxu1 %v38089_v29  ;;  %28254 = vmatprep.mubr.f32.mxu1 %v16005_v52  ;;  %v17059_v52 = vsub.f32 %v38203_v43, %v17058_v60  ;;  %v17070_v5 = vand.u32 4294901760, %v17069_v30  ;;  %v27141_v30 = vld [vmem:[%s39582_s7 + $0x98] sm:$0x1] }
0x1407   : > { %31578 = vmatprep.subr.bf16.mxu1 %v38124_v19 }
0x1408   : > { %28953 = vmatmul.mubr.f32.vlgmr.msra.gmra.mrb[146].mxu0 %v22880_v4  ;;  %v17100_v4 = vand.u32 4294901760, %v17099_v37  ;;  %v17060_v15 = vand.u32 4294901760, %v17059_v52 }
0x1409   : > { %32048 = vmatpush3.bf16.msra.mxu0 %v37763_v41  ;;  %28959 = vmatprep.mubr.f32.mxu0 %v38033_v33  ;;  %v27128_v41 = vld [vmem:[%s39582_s7 + $0x50] sm:$0xff] }
0x140a   : > { %32050 = vmatprep.subr.bf16.mxu0 %v37734_v21  ;;  %31580 = vmatpush3.bf16.msra.mxu1 %v38124_v19  ;;  %v16994_v13 = vand.u32 4294901760, %v27128_v41  ;;  %v17101_v20 = vsub.f32 %v17099_v37, %v17100_v4 }
0x140b   : > { %31582 = vmatprep.subr.bf16.mxu1 %v31581_v45 }
0x140c   : > { %v38216_v49 = vsub.f32 %v27128_v41, %v16994_v13  ;;  %v17102_v58 = vand.u32 4294901760, %v17101_v20  ;;  %v27139_v20 = vld [vmem:[%s39582_s7 + $0x88] sm:$0xff] }
0x140d   : > { %28255 = vmatmul.mubr.f32.vlgmr.msra.gmra.mrb[134].mxu1 %v16015_v56 }
0x140e   : > { %31584 = vmatpush3.bf16.msra.mxu1 %v31581_v45  ;;  %28265 = vmatprep.mubr.f32.mxu1 %v38044_v62  ;;  %v17093_v31 = vand.u32 4294901760, %v38216_v49  ;;  %v31641_v56 = vpack.c.bf16 %v17099_v37, %v38216_v49  ;;  %v18049_v45 = vand.u32 4294901760, %v27134_v55 }
0x140f   : > { %31586 = vmatprep.subr.bf16.mxu1 %v31585_v28  ;;  %v38196_v39 = vpop.f32.mrb[136].mxu0 }
0x1410   : > { %28960 = vmatmul.mubr.f32.vlgmr.msra.gmra.mrb[146].mxu0 %v38038_v8  ;;  %v38206_v40 = vpop.f32.mrb[137].mxu0  ;;  %v17094_v24 = vsub.f32 %v38216_v49, %v17093_v31  ;;  %v31657_v16 = vpack.c.bf16 %v17100_v4, %v17093_v31  ;;  %v18037_v18 = vsel %vm15386_vm8, %v38196_v39, 0  ;;  %v38281_v41 = vsub.f32 %v27134_v55, %v18049_v45 }
0x1411   : > { %32052 = vmatpush3.bf16.msra.mxu0 %v37734_v21  ;;  %28966 = vmatprep.mubr.f32.mxu0 %v38033_v33  ;;  %v38222_v21 = vpack.c.bf16 %v16991_v48, %v16988_v63  ;;  %v17080_v33 = vsub.f32 %v38194_v7, %v17079_v25  ;;  %v18034_v51 = vsel %vm15386_vm8, %v38206_v40, 0  ;;  %v18134_v63 = vand.u32 4294901760, %v38272_v50 }
0x1412   : > { %31588 = vmatpush3.bf16.msra.mxu1 %v31585_v28  ;;  %29035 = vmatprep.subr.mxu0 %v39803_v6  ;;  %v17095_v47 = vand.u32 4294901760, %v17094_v24  ;;  %v38263_v34 = vand.u32 4294901760, %v18034_v51  ;;  %v38278_v28 = vand.u32 4294901760, %v18037_v18  ;;  %v18141_v48 = vand.u32 4294901760, %v18140_v14 }
0x1413   : > { %31590 = vmatprep.subr.bf16.mxu1 %v38089_v29  ;;  %v38288_v39 = vpack.c.bf16 %v18046_v38, %v18043_v44  ;;  %v18148_v9 = vand.u32 4294901760, %v38281_v41 }
0x1414   : > { %v31633_v54 = vpack.c.bf16 %v17102_v58, %v17095_v47  ;;  %v18112_v26 = vsub.f32 %v18034_v51, %v38263_v34  ;;  %v19101_v58 = vand.u32 4294901760, %v27139_v20 }
0x1415   : > { %28266 = vmatmul.mubr.f32.vlgmr.msra.gmra.mrb[134].mxu1 %v38070_v46  ;;  %v18149_v37 = vsub.f32 %v38281_v41, %v18148_v9 }
0x1416   : > { %31592 = vmatpush3.bf16.msra.mxu1 %v38089_v29  ;;  %28276 = vmatprep.mubr.f32.mxu1 %v38044_v62  ;;  %v38232_v62 = vpack.c.bf16 %v16997_v36, %v16994_v13  ;;  %v17081_v29 = vand.u32 4294901760, %v17080_v33  ;;  %v18135_v13 = vsub.f32 %v38272_v50, %v18134_v63  ;;  %v18122_v36 = vsub.f32 %v18037_v18, %v38278_v28 }
0x1417   : > { %31594 = vmatprep.subr.bf16.mxu1 %v38124_v19  ;;  %v18150_v3 = vand.u32 4294901760, %v18149_v37  ;;  %v38338_v12 = vsub.f32 %v27139_v20, %v19101_v58  ;;  %v27144_v37 = vld [vmem:[%s39582_s7 + $0xa0] sm:$0xff] }
0x1418   : > { %28967 = vmatmul.mubr.f32.vlgmr.msra.gmra.mrb[146].mxu0 %v38038_v8  ;;  %v31629_v8 = vpack.c.bf16 %v17088_v10, %v17081_v29  ;;  %v18136_v57 = vand.u32 4294901760, %v18135_v13  ;;  %v31725_v29 = vpack.c.bf16 %v18141_v48, %v18134_v63  ;;  %v27138_v10 = vld [vmem:[%s39582_s7 + $0x80] sm:$0xff] }
0x1419   : > { %v19196_v38 = vand.u32 4294901760, %v38338_v12  ;;  %29037 = vmatprep.mubr.msk.f32.mxu0 %vm33043_vm10, %v39803_v6 }
0x141a   : > { %31596 = vmatpush3.bf16.msra.mxu1 %v38124_v19  ;;  %v27135_v19 = vld [vmem:[%s39582_s7 + $0x78] sm:$0x1] }
0x141b   : > { %31622 = vmatprep.subr.bf16.mxu1 %v38222_v21  ;;  %v18040_v59 = vsel %vm15393_vm7, %v27135_v19, 0 }
0x141c   : > { %v18052_v53 = vand.u32 4294901760, %v18040_v59 }
0x141d   : > { %28277 = vmatmul.mubr.f32.vlgmr.msra.gmra.mrb[134].mxu1 %v38070_v46  ;;  %v31637_v46 = vpack.c.bf16 %v38198_v2, %v38194_v7  ;;  %v18113_v7 = vand.u32 4294901760, %v18112_v26  ;;  %v18142_v2 = vsub.f32 %v18140_v14, %v18141_v48 }
0x141e   : > { %31624 = vmatpush3.bf16.msra.mxu1 %v38222_v21  ;;  %28329 = vmatprep.mubr.f32.mxu1 %v17060_v15  ;;  %v38283_v42 = vsub.f32 %v18040_v59, %v18052_v53  ;;  %v38296_v25 = vpack.c.bf16 %v18052_v53, %v18049_v45  ;;  %v19197_v53 = vsub.f32 %v38338_v12, %v19196_v38 }
0x141f   : > { %31626 = vmatprep.subr.bf16.mxu1 %v38232_v62  ;;  %v18114_v40 = vsub.f32 %v18112_v26, %v18113_v7  ;;  %v18143_v49 = vand.u32 4294901760, %v18142_v2 }
0x1422   : > { %31628 = vmatpush3.bf16.msra.mxu1 %v38232_v62 }
0x1423   : > { %31630 = vmatprep.subr.bf16.mxu1 %v31629_v8 }
0x1425   : > { %28330 = vmatmul.mubr.f32.vlgmr.msra.gmra.mrb[134].mxu1 %v17070_v5 }
0x1426   : > { %31632 = vmatpush3.bf16.msra.mxu1 %v31629_v8  ;;  %28340 = vmatprep.mubr.f32.mxu1 %v38185_v23  ;;  %v19098_v8 = vand.u32 4294901760, %v27138_v10 }
0x1427   : > { %31634 = vmatprep.subr.bf16.mxu1 %v31633_v54 }
0x142a   : > { %31636 = vmatpush3.bf16.msra.mxu1 %v31633_v54  ;;  %v27140_v54 = vld [vmem:[%s39582_s7 + $0x90] sm:$0xff] }
0x142b   : > { %31638 = vmatprep.subr.bf16.mxu1 %v31637_v46 }
0x142d   : > { %28341 = vmatmul.mubr.f32.vlgmr.msra.gmra.mrb[134].mxu1 %v38212_v22 }
0x142e   : > { %31640 = vmatpush3.bf16.msra.mxu1 %v31637_v46  ;;  %28351 = vmatprep.mubr.f32.mxu1 %v38203_v43  ;;  %v18155_v43 = vand.u32 4294901760, %v38283_v42  ;;  %v19095_v46 = vsel %vm15393_vm7, %v27141_v30, 0 }
0x142f   : > { %31642 = vmatprep.subr.bf16.mxu1 %v31641_v56  ;;  %v19107_v32 = vand.u32 4294901760, %v19095_v46 }
0x1430   : > { %v31729_v47 = vpack.c.bf16 %v18155_v43, %v18148_v9 }
0x1431   : > { %v38350_v55 = vsub.f32 %v19095_v46, %v19107_v32 }
0x1432   : > { %31644 = vmatpush3.bf16.msra.mxu1 %v31641_v56  ;;  %v38336_v56 = vsub.f32 %v27138_v10, %v19098_v8 }
0x1433   : > { %31646 = vmatprep.subr.bf16.mxu1 %v38222_v21  ;;  %v19210_v18 = vand.u32 4294901760, %v38350_v55 }
0x1434   : > { %v19189_v44 = vand.u32 4294901760, %v38336_v56 }
0x1435   : > { %28352 = vmatmul.mubr.f32.vlgmr.msra.gmra.mrb[134].mxu1 %v17067_v17  ;;  %v31701_v17 = vpack.c.bf16 %v18143_v49, %v18136_v57 }
0x1436   : > { %31648 = vmatpush3.bf16.msra.mxu1 %v38222_v21  ;;  %28362 = vmatprep.mubr.f32.mxu1 %v17058_v60  ;;  %v18156_v60 = vsub.f32 %v38283_v42, %v18155_v43  ;;  %v31797_v49 = vpack.c.bf16 %v19196_v38, %v19189_v44 }
0x1437   : > { %31650 = vmatprep.subr.bf16.mxu1 %v38232_v62 }
0x1438   : > { %v18157_v31 = vand.u32 4294901760, %v18156_v60  ;;  %v27145_v60 = vld [vmem:[%s39582_s7 + $0xa8] sm:$0xff] }
0x143a   : > { %31652 = vmatpush3.bf16.msra.mxu1 %v38232_v62  ;;  %v31705_v52 = vpack.c.bf16 %v18157_v31, %v18150_v3  ;;  %v20156_v31 = vand.u32 4294901760, %v27145_v60 }
0x143b   : > { %31654 = vmatprep.subr.bf16.mxu1 %v31653_v27  ;;  %v38261_v0 = vpop.f32.mrb[138].mxu0 }
0x143c   : > { %v38265_v61 = vpop.f32.mrb[139].mxu0  ;;  %v19092_v51 = vsel %vm15386_vm8, %v38261_v0, 0  ;;  %v38355_v0 = vpack.c.bf16 %v19101_v58, %v19098_v8 }
0x143d   : > { %28363 = vmatmul.mubr.f32.vlgmr.msra.gmra.mrb[134].mxu1 %v17068_v1  ;;  %v19089_v15 = vsel %vm15386_vm8, %v38265_v61, 0 }
0x143e   : > { %31656 = vmatpush3.bf16.msra.mxu1 %v31653_v27  ;;  %28373 = vmatprep.mubr.f32.mxu1 %v38185_v23  ;;  %v38329_v5 = vand.u32 4294901760, %v19089_v15  ;;  %v19104_v27 = vand.u32 4294901760, %v27140_v54 }
0x143f   : > { %31658 = vmatprep.subr.bf16.mxu1 %v31657_v16 }
0x1440   : > { %v19167_v19 = vsub.f32 %v19089_v15, %v38329_v5  ;;  %v38348_v61 = vsub.f32 %v27140_v54, %v19104_v27  ;;  %v38364_v63 = vpack.c.bf16 %v19107_v32, %v19104_v27 }
0x1442   : > { %31660 = vmatpush3.bf16.msra.mxu1 %v31657_v16  ;;  %v38344_v16 = vand.u32 4294901760, %v19092_v51  ;;  %v19168_v59 = vand.u32 4294901760, %v19167_v19 }
0x1443   : > { %31662 = vmatprep.subr.bf16.mxu1 %v38222_v21 }
0x1444   : > { %v19177_v45 = vsub.f32 %v19092_v51, %v38344_v16 }
0x1445   : > { %28374 = vmatmul.mubr.f32.vlgmr.msra.gmra.mrb[134].mxu1 %v38212_v22 }
0x1446   : > { %31664 = vmatpush3.bf16.msra.mxu1 %v38222_v21  ;;  %28384 = vmatprep.mubr.f32.mxu1 %v38185_v23  ;;  %v18123_v23 = vand.u32 4294901760, %v18122_v36  ;;  %v18115_v21 = vand.u32 4294901760, %v18114_v40  ;;  %v19178_v48 = vand.u32 4294901760, %v19177_v45 }
0x1447   : > { %31666 = vmatprep.subr.bf16.mxu1 %v38232_v62 }
0x1448   : > { %v18124_v33 = vsub.f32 %v18122_v36, %v18123_v23  ;;  %v19179_v13 = vsub.f32 %v19177_v45, %v19178_v48 }
0x144a   : > { %31668 = vmatpush3.bf16.msra.mxu1 %v38232_v62  ;;  %v18125_v4 = vand.u32 4294901760, %v18124_v33  ;;  %v31713_v62 = vpack.c.bf16 %v38283_v42, %v38281_v41  ;;  %v19198_v41 = vand.u32 4294901760, %v19197_v53  ;;  %v19180_v43 = vand.u32 4294901760, %v19179_v13  ;;  %v27147_v33 = vld [vmem:[%s39582_s7 + $0xb8] sm:$0x1] }
0x144b   : > { %31694 = vmatprep.subr.bf16.mxu1 %v38288_v39  ;;  %v27153_v13 = vld [vmem:[%s39582_s7 + $0xd8] sm:$0x1] }
0x144d   : > { %28385 = vmatmul.mubr.f32.vlgmr.msra.gmra.mrb[134].mxu1 %v38212_v22  ;;  %v31709_v22 = vpack.c.bf16 %v18140_v14, %v38272_v50  ;;  %v19190_v50 = vsub.f32 %v38336_v56, %v19189_v44  ;;  %v19203_v14 = vand.u32 4294901760, %v38348_v61 }
0x144e   : > { %31696 = vmatpush3.bf16.msra.mxu1 %v38288_v39  ;;  %28437 = vmatprep.mubr.f32.mxu1 %v18115_v21 }
0x144f   : > { %31698 = vmatprep.subr.bf16.mxu1 %v38296_v25  ;;  %v19204_v42 = vsub.f32 %v38348_v61, %v19203_v14  ;;  %v31801_v3 = vpack.c.bf16 %v19210_v18, %v19203_v14 }
0x1451   : > { %v19205_v2 = vand.u32 4294901760, %v19204_v42  ;;  %v27150_v42 = vld [vmem:[%s39582_s7 + $0xc0] sm:$0xff] }
0x1452   : > { %31700 = vmatpush3.bf16.msra.mxu1 %v38296_v25 }
0x1453   : > { %31702 = vmatprep.subr.bf16.mxu1 %v31701_v17 }
0x1455   : > { %28438 = vmatmul.mubr.f32.vlgmr.msra.gmra.mrb[134].mxu1 %v18125_v4 }
0x1456   : > { %31704 = vmatpush3.bf16.msra.mxu1 %v31701_v17  ;;  %28448 = vmatprep.mubr.f32.mxu1 %v38263_v34  ;;  %v20153_v17 = vand.u32 4294901760, %v27144_v37 }
0x1457   : > { %31706 = vmatprep.subr.bf16.mxu1 %v31705_v52 }
0x145a   : > { %31708 = vmatpush3.bf16.msra.mxu1 %v31705_v52  ;;  %v27146_v52 = vld [vmem:[%s39582_s7 + $0xb0] sm:$0xff] }
0x145b   : > { %31710 = vmatprep.subr.bf16.mxu1 %v31709_v22 }
0x145d   : > { %28449 = vmatmul.mubr.f32.vlgmr.msra.gmra.mrb[134].mxu1 %v38278_v28 }
0x145e   : > { %31712 = vmatpush3.bf16.msra.mxu1 %v31709_v22  ;;  %28459 = vmatprep.mubr.f32.mxu1 %v18112_v26  ;;  %v19169_v26 = vsub.f32 %v19167_v19, %v19168_v59  ;;  %v20150_v22 = vsel %vm15393_vm7, %v27147_v33, 0 }
0x145f   : > { %31714 = vmatprep.subr.bf16.mxu1 %v31713_v62  ;;  %v20162_v10 = vand.u32 4294901760, %v20150_v22 }
0x1461   : > { %v38419_v54 = vsub.f32 %v20150_v22, %v20162_v10 }
0x1462   : > { %31716 = vmatpush3.bf16.msra.mxu1 %v31713_v62  ;;  %v38405_v62 = vsub.f32 %v27144_v37, %v20153_v17 }
0x1463   : > { %31718 = vmatprep.subr.bf16.mxu1 %v38288_v39  ;;  %v20265_v51 = vand.u32 4294901760, %v38419_v54 }
0x1464   : > { %v20244_v30 = vand.u32 4294901760, %v38405_v62 }
0x1465   : > { %28460 = vmatmul.mubr.f32.vlgmr.msra.gmra.mrb[134].mxu1 %v18122_v36 }
0x1466   : > { %31720 = vmatpush3.bf16.msra.mxu1 %v38288_v39  ;;  %28470 = vmatprep.mubr.f32.mxu1 %v18113_v7  ;;  %v19211_v7 = vsub.f32 %v38350_v55, %v19210_v18 }
0x1467   : > { %31722 = vmatprep.subr.bf16.mxu1 %v38296_v25  ;;  %v38313_v1 = vpop.f32.mrb[140].mxu0 }
0x1468   : > { %v38318_v24 = vpop.f32.mrb[141].mxu0  ;;  %v19212_v9 = vand.u32 4294901760, %v19211_v7  ;;  %v20147_v20 = vsel %vm15386_vm8, %v38313_v1, 0  ;;  %v38424_v1 = vpack.c.bf16 %v20156_v31, %v20153_v17  ;;  %v27151_v7 = vld [vmem:[%s39582_s7 + $0xc8] sm:$0xff] }
0x1469   : > { %v20144_v21 = vsel %vm15386_vm8, %v38318_v24, 0  ;;  %v38407_v24 = vsub.f32 %v27145_v60, %v20156_v31  ;;  %v38413_v8 = vand.u32 4294901760, %v20147_v20 }
0x146a   : > { %31724 = vmatpush3.bf16.msra.mxu1 %v38296_v25  ;;  %v31777_v40 = vpack.c.bf16 %v19212_v9, %v19205_v2  ;;  %v38398_v4 = vand.u32 4294901760, %v20144_v21  ;;  %v21211_v9 = vand.u32 4294901760, %v27151_v7 }
0x146b   : > { %31726 = vmatprep.subr.bf16.mxu1 %v31725_v29  ;;  %v20232_v27 = vsub.f32 %v20147_v20, %v38413_v8 }
0x146c   : > { %v20222_v15 = vsub.f32 %v20144_v21, %v38398_v4  ;;  %v38476_v37 = vsub.f32 %v27151_v7, %v21211_v9 }
0x146d   : > { %28471 = vmatmul.mubr.f32.vlgmr.msra.gmra.mrb[134].mxu1 %v18123_v23  ;;  %v20233_v38 = vand.u32 4294901760, %v20232_v27 }
0x146e   : > { %31728 = vmatpush3.bf16.msra.mxu1 %v31725_v29  ;;  %28481 = vmatprep.mubr.f32.mxu1 %v38263_v34  ;;  %v20159_v29 = vand.u32 4294901760, %v27146_v52  ;;  %v20223_v46 = vand.u32 4294901760, %v20222_v15 }
0x146f   : > { %31730 = vmatprep.subr.bf16.mxu1 %v31729_v47 }
0x1470   : > { %v38417_v58 = vsub.f32 %v27146_v52, %v20159_v29  ;;  %v38433_v44 = vpack.c.bf16 %v20162_v10, %v20159_v29 }
0x1472   : > { %31732 = vmatpush3.bf16.msra.mxu1 %v31729_v47  ;;  %v20251_v47 = vand.u32 4294901760, %v38407_v24 }
0x1473   : > { %31734 = vmatprep.subr.bf16.mxu1 %v38288_v39 }
0x1474   : > { %v20252_v32 = vsub.f32 %v38407_v24, %v20251_v47 }
0x1475   : > { %28482 = vmatmul.mubr.f32.vlgmr.msra.gmra.mrb[134].mxu1 %v38278_v28 }
0x1476   : > { %31736 = vmatpush3.bf16.msra.mxu1 %v38288_v39  ;;  %28492 = vmatprep.mubr.f32.mxu1 %v38263_v34  ;;  %v19191_v34 = vand.u32 4294901760, %v19190_v50  ;;  %v19170_v39 = vand.u32 4294901760, %v19169_v26  ;;  %v20234_v50 = vsub.f32 %v20232_v27, %v20233_v38 }
0x1477   : > { %31738 = vmatprep.subr.bf16.mxu1 %v38296_v25 }
0x1478   : > { %v31773_v36 = vpack.c.bf16 %v19198_v41, %v19191_v34  ;;  %v20235_v18 = vand.u32 4294901760, %v20234_v50  ;;  %v31869_v41 = vpack.c.bf16 %v20251_v47, %v20244_v30  ;;  %v27157_v50 = vld [vmem:[%s39582_s7 + $0xe8] sm:$0xff] }
0x147a   : > { %31740 = vmatpush3.bf16.msra.mxu1 %v38296_v25  ;;  %v31785_v25 = vpack.c.bf16 %v38350_v55, %v38348_v61  ;;  %v20253_v61 = vand.u32 4294901760, %v20252_v32 }
0x147b   : > { %31766 = vmatprep.subr.bf16.mxu1 %v38355_v0 }
0x147d   : > { %28493 = vmatmul.mubr.f32.vlgmr.msra.gmra.mrb[134].mxu1 %v38278_v28  ;;  %v31781_v28 = vpack.c.bf16 %v38338_v12, %v38336_v56  ;;  %v20245_v56 = vsub.f32 %v38405_v62, %v20244_v30  ;;  %v20258_v12 = vand.u32 4294901760, %v38417_v58 }
0x147e   : > { %31768 = vmatpush3.bf16.msra.mxu1 %v38355_v0  ;;  %28545 = vmatprep.mubr.f32.mxu1 %v19170_v39 }
0x147f   : > { %31770 = vmatprep.subr.bf16.mxu1 %v38364_v63  ;;  %v20259_v55 = vsub.f32 %v38417_v58, %v20258_v12  ;;  %v31873_v2 = vpack.c.bf16 %v20265_v51, %v20258_v12 }
0x1481   : > { %v20260_v53 = vand.u32 4294901760, %v20259_v55  ;;  %v38539_v55 = vld [vmem:[%s39583_s8] sm:$0xff] }
0x1482   : > { %31772 = vmatpush3.bf16.msra.mxu1 %v38364_v63  ;;  %23851 = vperm.xlu1 %32971, %v38539_v55  }
0x1483   : > { %31774 = vmatprep.subr.bf16.mxu1 %v31773_v36 }
0x1485   : > { %28546 = vmatmul.mubr.f32.vlgmr.msra.gmra.mrb[134].mxu1 %v19180_v43 }
0x1486   : > { %31776 = vmatpush3.bf16.msra.mxu1 %v31773_v36  ;;  %28556 = vmatprep.mubr.f32.mxu1 %v38329_v5  ;;  %v21208_v36 = vand.u32 4294901760, %v27150_v42 }
0x1487   : > { %31778 = vmatprep.subr.bf16.mxu1 %v31777_v40  ;;  %32974 = vset.pattern.permute.xlu1 %v39962_v35 }
0x148a   : > { %31780 = vmatpush3.bf16.msra.mxu1 %v31777_v40  ;;  %v27152_v40 = vld [vmem:[%s39582_s7 + $0xd0] sm:$0xff] }
0x148b   : > { %31782 = vmatprep.subr.bf16.mxu1 %v31781_v28 }
0x148d   : > { %28557 = vmatmul.mubr.f32.vlgmr.msra.gmra.mrb[134].mxu1 %v38344_v16 }
0x148e   : > { %31784 = vmatpush3.bf16.msra.mxu1 %v31781_v28  ;;  %28567 = vmatprep.mubr.f32.mxu1 %v19167_v19  ;;  %v20224_v19 = vsub.f32 %v20222_v15, %v20223_v46  ;;  %v21205_v28 = vsel %vm15393_vm7, %v27153_v13, 0 }
0x148f   : > { %31786 = vmatprep.subr.bf16.mxu1 %v31785_v25 }
0x1492   : > { %31788 = vmatpush3.bf16.msra.mxu1 %v31785_v25  ;;  %v38474_v25 = vsub.f32 %v27150_v42, %v21208_v36 }
0x1493   : > { %31790 = vmatprep.subr.bf16.mxu1 %v38355_v0  ;;  %v38380_v57 = vpop.f32.mrb[142].mxu0 }
0x1494   : > { %v38382_v23 = vpop.f32.mrb[143].mxu0  ;;  %v21202_v60 = vsel %vm15386_vm8, %v38380_v57, 0  ;;  %v21299_v33 = vand.u32 4294901760, %v38474_v25  ;;  %v38496_v57 = vpack.c.bf16 %v21211_v9, %v21208_v36 }
0x1495   : > { %28568 = vmatmul.mubr.f32.vlgmr.msra.gmra.mrb[134].mxu1 %v19177_v45  ;;  %v21199_v39 = vsel %vm15386_vm8, %v38382_v23, 0  ;;  %v21214_v23 = vand.u32 4294901760, %v27152_v40  ;;  %v38484_v17 = vand.u32 4294901760, %v21202_v60 }
0x1496   : > { %31792 = vmatpush3.bf16.msra.mxu1 %v38355_v0  ;;  %28578 = vmatprep.mubr.f32.mxu1 %v19168_v59  ;;  %v20266_v59 = vsub.f32 %v38419_v54, %v20265_v51  ;;  %v38467_v43 = vand.u32 4294901760, %v21199_v39 }
0x1497   : > { %31794 = vmatprep.subr.bf16.mxu1 %v38364_v63  ;;  %v38488_v31 = vsub.f32 %v27152_v40, %v21214_v23  ;;  %v38502_v29 = vsub.f32 %v21202_v60, %v38484_v17 }
0x1498   : > { %v20267_v14 = vand.u32 4294901760, %v20266_v59  ;;  %v38481_v21 = vsub.f32 %v21199_v39, %v38467_v43 }
0x1499   : > { %v21288_v47 = vand.u32 4294901760, %v38502_v29 }
0x149a   : > { %31796 = vmatpush3.bf16.msra.mxu1 %v38364_v63  ;;  %v31849_v26 = vpack.c.bf16 %v20267_v14, %v20260_v53  ;;  %v21278_v22 = vand.u32 4294901760, %v38481_v21  ;;  %v27159_v53 = vld [vmem:[%s39582_s7 + $0xf8] sm:$0x1] }
0x149b   : > { %31798 = vmatprep.subr.bf16.mxu1 %v31797_v49 }
0x149d   : > { %28579 = vmatmul.mubr.f32.vlgmr.msra.gmra.mrb[134].mxu1 %v19178_v48 }
0x149e   : > { %31800 = vmatpush3.bf16.msra.mxu1 %v31797_v49  ;;  %28589 = vmatprep.mubr.f32.mxu1 %v38329_v5  ;;  %v21217_v49 = vand.u32 4294901760, %v21205_v28 }
0x149f   : > { %31802 = vmatprep.subr.bf16.mxu1 %v31801_v3 }
0x14a0   : > { %v38490_v52 = vsub.f32 %v21205_v28, %v21217_v49 }
0x14a2   : > { %31804 = vmatpush3.bf16.msra.mxu1 %v31801_v3  ;;  %v21306_v3 = vand.u32 4294901760, %v38476_v37  ;;  %v21320_v20 = vand.u32 4294901760, %v38490_v52 }
0x14a3   : > { %31806 = vmatprep.subr.bf16.mxu1 %v38355_v0 }
0x14a4   : > { %v21307_v10 = vsub.f32 %v38476_v37, %v21306_v3  ;;  %v31941_v59 = vpack.c.bf16 %v21306_v3, %v21299_v33 }
0x14a5   : > { %28590 = vmatmul.mubr.f32.vlgmr.msra.gmra.mrb[134].mxu1 %v38344_v16 }
0x14a6   : > { %31808 = vmatpush3.bf16.msra.mxu1 %v38355_v0  ;;  %28600 = vmatprep.mubr.f32.mxu1 %v38329_v5  ;;  %v20246_v5 = vand.u32 4294901760, %v20245_v56  ;;  %v20225_v0 = vand.u32 4294901760, %v20224_v19  ;;  %v21289_v56 = vsub.f32 %v38502_v29, %v21288_v47 }
0x14a7   : > { %31810 = vmatprep.subr.bf16.mxu1 %v38364_v63 }
0x14a8   : > { %v31845_v45 = vpack.c.bf16 %v20253_v61, %v20246_v5  ;;  %v21290_v51 = vand.u32 4294901760, %v21289_v56  ;;  %v38534_v61 = vld [vmem:[%s39583_s8 + $0x8] sm:$0xff]  ;;  %v27165_v56 = vld [vmem:[%s39582_s7 + $0x118] sm:$0x1] }
0x14a9   : > { %23856 = vperm.xlu0 %32972, %v38534_v61  }
0x14aa   : > { %31812 = vmatpush3.bf16.msra.mxu1 %v38364_v63  ;;  %v31857_v63 = vpack.c.bf16 %v38419_v54, %v38417_v58  ;;  %v21308_v58 = vand.u32 4294901760, %v21307_v10 }
0x14ab   : > { %31838 = vmatprep.subr.bf16.mxu1 %v38424_v1 }
0x14ad   : > { %28601 = vmatmul.mubr.f32.vlgmr.msra.gmra.mrb[134].mxu1 %v38344_v16  ;;  %v31853_v16 = vpack.c.bf16 %v38407_v24, %v38405_v62  ;;  %v21300_v62 = vsub.f32 %v38474_v25, %v21299_v33  ;;  %v21313_v24 = vand.u32 4294901760, %v38488_v31  ;;  %32973 = vset.pattern.permute.xlu0 %v39979_v11 }
0x14ae   : > { %31840 = vmatpush3.bf16.msra.mxu1 %v38424_v1  ;;  %28653 = vmatprep.mubr.f32.mxu1 %v20225_v0  ;;  %v27156_v0 = vld [vmem:[%s39582_s7 + $0xe0] sm:$0xff] }
0x14af   : > { %31842 = vmatprep.subr.bf16.mxu1 %v38433_v44  ;;  %v21301_v30 = vand.u32 4294901760, %v21300_v62  ;;  %v21314_v54 = vsub.f32 %v38488_v31, %v21313_v24  ;;  %v22263_v14 = vand.u32 4294901760, %v27156_v0 }
0x14b1   : > { %v21315_v32 = vand.u32 4294901760, %v21314_v54  ;;  %v27162_v54 = vld [vmem:[%s39582_s7 + $0x100] sm:$0xff] }
0x14b2   : > { %31844 = vmatpush3.bf16.msra.mxu1 %v38433_v44 }
0x14b3   : > { %31846 = vmatprep.subr.bf16.mxu1 %v31845_v45 }
0x14b5   : > { %28654 = vmatmul.mubr.f32.vlgmr.msra.gmra.mrb[134].mxu1 %v20235_v18  ;;  %v31945_v18 = vpack.c.bf16 %v21320_v20, %v21313_v24 }
0x14b6   : > { %31848 = vmatpush3.bf16.msra.mxu1 %v31845_v45  ;;  %28664 = vmatprep.mubr.f32.mxu1 %v38398_v4 }
0x14b7   : > { %31850 = vmatprep.subr.bf16.mxu1 %v31849_v26 }
0x14ba   : > { %31852 = vmatpush3.bf16.msra.mxu1 %v31849_v26  ;;  %v22266_v26 = vand.u32 4294901760, %v27157_v50 }
0x14bb   : > { %31854 = vmatprep.subr.bf16.mxu1 %v31853_v16 }
0x14bc   : > { %v22360_v39 = vsub.f32 %v27157_v50, %v22266_v26 }
0x14bd   : > { %28665 = vmatmul.mubr.f32.vlgmr.msra.gmra.mrb[134].mxu1 %v38413_v8 }
0x14be   : > { %31856 = vmatpush3.bf16.msra.mxu1 %v31853_v16  ;;  %28675 = vmatprep.mubr.f32.mxu1 %v20222_v15  ;;  %v21279_v15 = vsub.f32 %v38481_v21, %v21278_v22  ;;  %v22361_v40 = vand.u32 4294901760, %v22360_v39 }
0x14bf   : > { %31858 = vmatprep.subr.bf16.mxu1 %v31857_v63  ;;  %v38448_v34 = vpop.f32.mrb[144].mxu0 }
0x14c0   : > { %v38450_v48 = vpop.f32.mrb[145].mxu0  ;;  %v22257_v13 = vsel %vm15386_vm8, %v38448_v34, 0  ;;  %v38583_v34 = vpack.c.bf16 %v22266_v26, %v22263_v14  ;;  %v22362_v60 = vsub.f32 %v22360_v39, %v22361_v40 }
0x14c1   : > { %v22254_v45 = vsel %vm15386_vm8, %v38450_v48, 0  ;;  %v38571_v48 = vsub.f32 %v27156_v0, %v22263_v14  ;;  %v38577_v9 = vand.u32 4294901760, %v22257_v13 }
0x14c2   : > { %31860 = vmatpush3.bf16.msra.mxu1 %v31857_v63  ;;  %v38564_v16 = vand.u32 4294901760, %v22254_v45  ;;  %v27158_v63 = vld [vmem:[%s39582_s7 + $0xf0] sm:$0xff] }
0x14c3   : > { %31862 = vmatprep.subr.bf16.mxu1 %v38424_v1  ;;  %v22269_v42 = vand.u32 4294901760, %v27158_v63 }
0x14c4   : > { %v22332_v36 = vsub.f32 %v22254_v45, %v38564_v16 }
0x14c5   : > { %28676 = vmatmul.mubr.f32.vlgmr.msra.gmra.mrb[134].mxu1 %v20232_v27  ;;  %v31917_v27 = vpack.c.bf16 %v21308_v58, %v21301_v30  ;;  %v22367_v28 = vsub.f32 %v27158_v63, %v22269_v42 }
0x14c6   : > { %31864 = vmatpush3.bf16.msra.mxu1 %v38424_v1  ;;  %28686 = vmatprep.mubr.f32.mxu1 %v20223_v46  ;;  %v21321_v46 = vsub.f32 %v38490_v52, %v21320_v20 }
0x14c7   : > { %31866 = vmatprep.subr.bf16.mxu1 %v38433_v44 }
0x14c8   : > { %v21322_v12 = vand.u32 4294901760, %v21321_v46  ;;  %v27163_v46 = vld [vmem:[%s39582_s7 + $0x108] sm:$0xff] }
0x14ca   : > { %31868 = vmatpush3.bf16.msra.mxu1 %v38433_v44  ;;  %v31921_v19 = vpack.c.bf16 %v21322_v12, %v21315_v32  ;;  %v23321_v12 = vand.u32 4294901760, %v27163_v46 }
0x14cb   : > { %31870 = vmatprep.subr.bf16.mxu1 %v31869_v41 }
0x14cc   : > { %v23415_v0 = vsub.f32 %v27163_v46, %v23321_v12 }
0x14cd   : > { %28687 = vmatmul.mubr.f32.vlgmr.msra.gmra.mrb[134].mxu1 %v20233_v38 }
0x14ce   : > { %31872 = vmatpush3.bf16.msra.mxu1 %v31869_v41  ;;  %28697 = vmatprep.mubr.f32.mxu1 %v38398_v4  ;;  %v22260_v41 = vsel %vm15393_vm7, %v27159_v53, 0 }
0x14cf   : > { %31874 = vmatprep.subr.bf16.mxu1 %v31873_v2  ;;  %v22272_v7 = vand.u32 4294901760, %v22260_v41 }
0x14d2   : > { %31876 = vmatpush3.bf16.msra.mxu1 %v31873_v2  ;;  %v22354_v2 = vand.u32 4294901760, %v38571_v48 }
0x14d3   : > { %31878 = vmatprep.subr.bf16.mxu1 %v38424_v1 }
0x14d4   : > { %v32013_v58 = vpack.c.bf16 %v22361_v40, %v22354_v2 }
0x14d5   : > { %28698 = vmatmul.mubr.f32.vlgmr.msra.gmra.mrb[134].mxu1 %v38413_v8 }
0x14d6   : > { %31880 = vmatpush3.bf16.msra.mxu1 %v38424_v1  ;;  %28708 = vmatprep.mubr.f32.mxu1 %v38398_v4  ;;  %v38510_v4 = vpack.c.bf16 %v21217_v49, %v21214_v23  ;;  %v21280_v1 = vand.u32 4294901760, %v21279_v15  ;;  %v22333_v23 = vand.u32 4294901760, %v22332_v36  ;;  %v22355_v49 = vsub.f32 %v38571_v48, %v22354_v2 }
0x14d7   : > { %31882 = vmatprep.subr.bf16.mxu1 %v38433_v44 }
0x14d8   : > { %v22334_v3 = vsub.f32 %v22332_v36, %v22333_v23 }
0x14da   : > { %31884 = vmatpush3.bf16.msra.mxu1 %v38433_v44  ;;  %v31929_v44 = vpack.c.bf16 %v38490_v52, %v38488_v31  ;;  %v38589_v31 = vpack.c.bf16 %v22272_v7, %v22269_v42  ;;  %v22356_v52 = vand.u32 4294901760, %v22355_v49 }
0x14db   : > { %31910 = vmatprep.subr.bf16.mxu1 %v38496_v57 }
0x14dd   : > { %28709 = vmatmul.mubr.f32.vlgmr.msra.gmra.mrb[134].mxu1 %v38413_v8  ;;  %v31925_v8 = vpack.c.bf16 %v38476_v37, %v38474_v25  ;;  %v22374_v25 = vsub.f32 %v22260_v41, %v22272_v7  ;;  %v22342_v37 = vsub.f32 %v22257_v13, %v38577_v9 }
0x14de   : > { %31912 = vmatpush3.bf16.msra.mxu1 %v38496_v57  ;;  %28761 = vmatprep.mubr.f32.mxu1 %v21280_v1 }
0x14df   : > { %31914 = vmatprep.subr.bf16.mxu1 %v38510_v4  ;;  %v22375_v33 = vand.u32 4294901760, %v22374_v25 }
0x14e1   : > { %v22376_v62 = vsub.f32 %v22374_v25, %v22375_v33 }
0x14e2   : > { %31916 = vmatpush3.bf16.msra.mxu1 %v38510_v4 }
0x14e3   : > { %31918 = vmatprep.subr.bf16.mxu1 %v31917_v27  ;;  %v22377_v15 = vand.u32 4294901760, %v22376_v62 }
0x14e5   : > { %28762 = vmatmul.mubr.f32.vlgmr.msra.gmra.mrb[134].mxu1 %v21290_v51 }
0x14e6   : > { %31920 = vmatpush3.bf16.msra.mxu1 %v31917_v27  ;;  %28772 = vmatprep.mubr.f32.mxu1 %v38467_v43  ;;  %v23318_v27 = vand.u32 4294901760, %v27162_v54 }
0x14e7   : > { %31922 = vmatprep.subr.bf16.mxu1 %v31921_v19 }
0x14ea   : > { %31924 = vmatpush3.bf16.msra.mxu1 %v31921_v19  ;;  %v27164_v19 = vld [vmem:[%s39582_s7 + $0x110] sm:$0xff] }
0x14eb   : > { %31926 = vmatprep.subr.bf16.mxu1 %v31925_v8  ;;  %v38526_v5 = vpop.f32.mrb[146].mxu0 }
0x14ec   : > { %v38528_v38 = vpop.f32.mrb[147].mxu0  ;;  %v23312_v50 = vsel %vm15386_vm8, %v38526_v5, 0  ;;  %v32053_v5 = vpack.c.bf16 %v23321_v12, %v23318_v27 }
0x14ed   : > { %28773 = vmatmul.mubr.f32.vlgmr.msra.gmra.mrb[134].mxu1 %v38484_v17  ;;  %v23309_v1 = vsel %vm15386_vm8, %v38528_v38, 0  ;;  %v23324_v38 = vand.u32 4294901760, %v27164_v19  ;;  %v38627_v14 = vand.u32 4294901760, %v23312_v50 }
0x14ee   : > { %31928 = vmatpush3.bf16.msra.mxu1 %v31925_v8  ;;  %28783 = vmatprep.mubr.f32.mxu1 %v38481_v21  ;;  %v22368_v21 = vand.u32 4294901760, %v22367_v28  ;;  %v38614_v51 = vand.u32 4294901760, %v23309_v1  ;;  %v23315_v8 = vsel %vm15393_vm7, %v27165_v56, 0 }
0x14ef   : > { %31930 = vmatprep.subr.bf16.mxu1 %v31929_v44  ;;  %v23422_v26 = vsub.f32 %v27164_v19, %v23324_v38  ;;  %v23397_v42 = vsub.f32 %v23312_v50, %v38627_v14 }
0x14f0   : > { %v32017_v32 = vpack.c.bf16 %v22375_v33, %v22368_v21  ;;  %v23387_v45 = vsub.f32 %v23309_v1, %v38614_v51 }
0x14f2   : > { %31932 = vmatpush3.bf16.msra.mxu1 %v31929_v44  ;;  %v38621_v44 = vsub.f32 %v27162_v54, %v23318_v27  ;;  %v23388_v41 = vand.u32 4294901760, %v23387_v45 }
0x14f3   : > { %31934 = vmatprep.subr.bf16.mxu1 %v38496_v57 }
0x14f4   : > { %v23409_v53 = vand.u32 4294901760, %v38621_v44 }
0x14f5   : > { %28784 = vmatmul.mubr.f32.vlgmr.msra.gmra.mrb[134].mxu1 %v38502_v29  ;;  %v22335_v29 = vand.u32 4294901760, %v22334_v3 }
0x14f6   : > { %31936 = vmatpush3.bf16.msra.mxu1 %v38496_v57  ;;  %28794 = vmatprep.mubr.f32.mxu1 %v21278_v22  ;;  %v22343_v22 = vand.u32 4294901760, %v22342_v37 }
0x14f7   : > { %31938 = vmatprep.subr.bf16.mxu1 %v38510_v4 }
0x14f8   : > { %v22344_v10 = vsub.f32 %v22342_v37, %v22343_v22 }
0x14fa   : > { %31940 = vmatpush3.bf16.msra.mxu1 %v38510_v4 }
0x14fb   : > { %31942 = vmatprep.subr.bf16.mxu1 %v31941_v59 }
0x14fd   : > { %28795 = vmatmul.mubr.f32.vlgmr.msra.gmra.mrb[134].mxu1 %v21288_v47  ;;  %v32001_v47 = vpack.c.bf16 %v22374_v25, %v22367_v28 }
0x14fe   : > { %31944 = vmatpush3.bf16.msra.mxu1 %v31941_v59  ;;  %28805 = vmatprep.mubr.f32.mxu1 %v38467_v43  ;;  %v23327_v59 = vand.u32 4294901760, %v23315_v8 }
0x14ff   : > { %31946 = vmatprep.subr.bf16.mxu1 %v31945_v18 }
0x1500   : > { %v23429_v63 = vsub.f32 %v23315_v8, %v23327_v59  ;;  %v32057_v2 = vpack.c.bf16 %v23327_v59, %v23324_v38  ;;  %v23923_v8 = vld [vmem:[%s39584_s9] sm:$0xff] }
0x1502   : > { %31948 = vmatpush3.bf16.msra.mxu1 %v31945_v18  ;;  %v23416_v18 = vand.u32 4294901760, %v23415_v0  ;;  %v23430_v13 = vand.u32 4294901760, %v23429_v63 }
0x1503   : > { %31950 = vmatprep.subr.bf16.mxu1 %v38496_v57 }
0x1504   : > { %v23417_v7 = vsub.f32 %v23415_v0, %v23416_v18 }
0x1505   : > { %28806 = vmatmul.mubr.f32.vlgmr.msra.gmra.mrb[134].mxu1 %v38484_v17 }
0x1506   : > { %31952 = vmatpush3.bf16.msra.mxu1 %v38496_v57  ;;  %28816 = vmatprep.mubr.f32.mxu1 %v38467_v43  ;;  %v22363_v43 = vand.u32 4294901760, %v22362_v60  ;;  %v22369_v57 = vsub.f32 %v22367_v28, %v22368_v21  ;;  %v23398_v28 = vand.u32 4294901760, %v23397_v42  ;;  %v23418_v25 = vand.u32 4294901760, %v23417_v7 }
0x1507   : > { %31954 = vmatprep.subr.bf16.mxu1 %v38510_v4 }
0x1508   : > { %v31989_v24 = vpack.c.bf16 %v22363_v43, %v22356_v52  ;;  %v22370_v20 = vand.u32 4294901760, %v22369_v57  ;;  %v23399_v49 = vsub.f32 %v23397_v42, %v23398_v28  ;;  %v32085_v52 = vpack.c.bf16 %v23416_v18, %v23409_v53  ;;  %v23852_v43 = vpop.permute.xlu1 %23851 }
0x150a   : > { %31956 = vmatpush3.bf16.msra.mxu1 %v38510_v4  ;;  %v22345_v4 = vand.u32 4294901760, %v22344_v10  ;;  %v31993_v30 = vpack.c.bf16 %v22377_v15, %v22370_v20  ;;  %v23400_v33 = vand.u32 4294901760, %v23399_v49 }
0x150b   : > { %31982 = vmatprep.subr.bf16.mxu1 %v38583_v34 }
0x150d   : > { %28817 = vmatmul.mubr.f32.vlgmr.msra.gmra.mrb[134].mxu1 %v38484_v17  ;;  %v31997_v17 = vpack.c.bf16 %v22360_v39, %v38571_v48  ;;  %v23410_v48 = vsub.f32 %v38621_v44, %v23409_v53  ;;  %v23423_v39 = vand.u32 4294901760, %v23422_v26 }
0x150e   : > { %31984 = vmatpush3.bf16.msra.mxu1 %v38583_v34  ;;  %28869 = vmatprep.mubr.f32.mxu1 %v22335_v29 }
0x150f   : > { %31986 = vmatprep.subr.bf16.mxu1 %v38589_v31  ;;  %v23411_v40 = vand.u32 4294901760, %v23410_v48 }
0x1512   : > { %31988 = vmatpush3.bf16.msra.mxu1 %v38589_v31 }
0x1513   : > { %31990 = vmatprep.subr.bf16.mxu1 %v31989_v24 }
0x1515   : > { %28870 = vmatmul.mubr.f32.vlgmr.msra.gmra.mrb[134].mxu1 %v22345_v4 }
0x1516   : > { %31992 = vmatpush3.bf16.msra.mxu1 %v31989_v24  ;;  %28880 = vmatprep.mubr.f32.mxu1 %v38564_v16 }
0x1517   : > { %31994 = vmatprep.subr.bf16.mxu1 %v31993_v30 }
0x151a   : > { %31996 = vmatpush3.bf16.msra.mxu1 %v31993_v30 }
0x151b   : > { %31998 = vmatprep.subr.bf16.mxu1 %v31997_v17 }
0x151d   : > { %28881 = vmatmul.mubr.f32.vlgmr.msra.gmra.mrb[134].mxu1 %v38577_v9 }
0x151e   : > { %32000 = vmatpush3.bf16.msra.mxu1 %v31997_v17  ;;  %28891 = vmatprep.mubr.f32.mxu1 %v22332_v36  ;;  %v23389_v36 = vsub.f32 %v23387_v45, %v23388_v41 }
0x151f   : > { %32002 = vmatprep.subr.bf16.mxu1 %v32001_v47 }
0x1522   : > { %32004 = vmatpush3.bf16.msra.mxu1 %v32001_v47 }
0x1523   : > { %32006 = vmatprep.subr.bf16.mxu1 %v38583_v34 }
0x1525   : > { %28892 = vmatmul.mubr.f32.vlgmr.msra.gmra.mrb[134].mxu1 %v22342_v37  ;;  %v32061_v37 = vpack.c.bf16 %v23418_v25, %v23411_v40  ;;  %v23928_v25 = vld [vmem:[%s39584_s9 + $0x28] sm:$0xff] }
0x1526   : > { %32008 = vmatpush3.bf16.msra.mxu1 %v38583_v34  ;;  %28902 = vmatprep.mubr.f32.mxu1 %v22333_v23  ;;  %v23424_v23 = vsub.f32 %v23422_v26, %v23423_v39 }
0x1527   : > { %32010 = vmatprep.subr.bf16.mxu1 %v38589_v31 }
0x1528   : > { %v23425_v60 = vand.u32 4294901760, %v23424_v23  ;;  %v23857_v62 = vpop.permute.xlu0 %23856 }
0x152a   : > { %32012 = vmatpush3.bf16.msra.mxu1 %v38589_v31 }
0x152b   : > { %32014 = vmatprep.subr.bf16.mxu1 %v32013_v58 }
0x152d   : > { %28903 = vmatmul.mubr.f32.vlgmr.msra.gmra.mrb[134].mxu1 %v22343_v22  ;;  %v32089_v22 = vpack.c.bf16 %v23430_v13, %v23423_v39 }
0x152e   : > { %32016 = vmatpush3.bf16.msra.mxu1 %v32013_v58  ;;  %28913 = vmatprep.mubr.f32.mxu1 %v38564_v16 }
0x152f   : > { %32018 = vmatprep.subr.bf16.mxu1 %v32017_v32 }
0x1532   : > { %32020 = vmatpush3.bf16.msra.mxu1 %v32017_v32 }
0x1533   : > { %32022 = vmatprep.subr.bf16.mxu1 %v38583_v34 }
0x1535   : > { %28914 = vmatmul.mubr.f32.vlgmr.msra.gmra.mrb[134].mxu1 %v38577_v9 }
0x1536   : > { %32024 = vmatpush3.bf16.msra.mxu1 %v38583_v34  ;;  %28924 = vmatprep.mubr.f32.mxu1 %v38564_v16  ;;  %v23431_v16 = vsub.f32 %v23429_v63, %v23430_v13  ;;  %v23390_v34 = vand.u32 4294901760, %v23389_v36 }
0x1537   : > { %32026 = vmatprep.subr.bf16.mxu1 %v38589_v31 }
0x1538   : > { %v23432_v21 = vand.u32 4294901760, %v23431_v16 }
0x153a   : > { %32028 = vmatpush3.bf16.msra.mxu1 %v38589_v31  ;;  %v32065_v3 = vpack.c.bf16 %v23432_v21, %v23425_v60  ;;  %v32069_v31 = vpack.c.bf16 %v23415_v0, %v38621_v44  ;;  %v23924_v44 = vld [vmem:[%s39584_s9 + $0x8] sm:$0xff]  ;;  %v23925_v0 = vld [vmem:[%s39584_s9 + $0x10] sm:$0xff] }
0x153b   : > { %32054 = vmatprep.subr.bf16.mxu1 %v32053_v5  ;;  %v23937_v59 = vsel %vm23932_vm11, %v23924_v44, 0  ;;  %v23940_v53 = vsel %vm23932_vm11, %v23925_v0, 0 }
0x153d   : > { %28925 = vmatmul.mubr.f32.vlgmr.msra.gmra.mrb[134].mxu1 %v38577_v9  ;;  %v32073_v9 = vpack.c.bf16 %v23429_v63, %v23422_v26  ;;  %v38684_v63 = vand.u32 4294901760, %v23940_v53 }
0x153e   : > { %32056 = vmatpush3.bf16.msra.mxu1 %v32053_v5  ;;  %28977 = vmatprep.mubr.f32.mxu1 %v23390_v34 }
0x153f   : > { %32058 = vmatprep.subr.bf16.mxu1 %v32057_v2  ;;  %v38695_v36 = vsub.f32 %v23940_v53, %v38684_v63 }
0x1542   : > { %32060 = vmatpush3.bf16.msra.mxu1 %v32057_v2 }
0x1543   : > { %32062 = vmatprep.subr.bf16.mxu1 %v32061_v37 }
0x1545   : > { %28978 = vmatmul.mubr.f32.vlgmr.msra.gmra.mrb[134].mxu1 %v23400_v33  ;;  %v23949_v33 = vsel %vm23932_vm11, %v23928_v25, 0 }
0x1546   : > { %32064 = vmatpush3.bf16.msra.mxu1 %v32061_v37  ;;  %28988 = vmatprep.mubr.f32.mxu1 %v38614_v51  ;;  %v24048_v37 = vand.u32 4294901760, %v38695_v36 }
0x1547   : > { %32066 = vmatprep.subr.bf16.mxu1 %v32065_v3 }
0x154a   : > { %32068 = vmatpush3.bf16.msra.mxu1 %v32065_v3  ;;  %v23929_v3 = vld [vmem:[%s39584_s9 + $0x30] sm:$0xff] }
0x154b   : > { %32070 = vmatprep.subr.bf16.mxu1 %v32069_v31 }
0x154d   : > { %28989 = vmatmul.mubr.f32.vlgmr.msra.gmra.mrb[134].mxu1 %v38627_v14 }
0x154e   : > { %32072 = vmatpush3.bf16.msra.mxu1 %v32069_v31  ;;  %28999 = vmatprep.mubr.f32.mxu1 %v23387_v45  ;;  %v38674_v45 = vand.u32 4294901760, %v23937_v59 }
0x154f   : > { %32074 = vmatprep.subr.bf16.mxu1 %v32073_v9 }
0x1550   : > { %v38682_v26 = vsub.f32 %v23937_v59, %v38674_v45 }
0x1552   : > { %32076 = vmatpush3.bf16.msra.mxu1 %v32073_v9  ;;  %v24038_v13 = vand.u32 4294901760, %v38682_v26 }
0x1553   : > { %32078 = vmatprep.subr.bf16.mxu1 %v32053_v5 }
0x1554   : > { %v24039_v49 = vsub.f32 %v38682_v26, %v24038_v13 }
0x1555   : > { %29000 = vmatmul.mubr.f32.vlgmr.msra.gmra.mrb[134].mxu1 %v23397_v42 }
0x1556   : > { %32080 = vmatpush3.bf16.msra.mxu1 %v32053_v5  ;;  %29010 = vmatprep.mubr.f32.mxu1 %v23388_v41 }
0x1557   : > { %32082 = vmatprep.subr.bf16.mxu1 %v32057_v2 }
0x155a   : > { %32084 = vmatpush3.bf16.msra.mxu1 %v32057_v2 }
0x155b   : > { %32086 = vmatprep.subr.bf16.mxu1 %v32085_v52 }
0x155d   : > { %29011 = vmatmul.mubr.f32.vlgmr.msra.gmra.mrb[134].mxu1 %v23398_v28 }
0x155e   : > { %32088 = vmatpush3.bf16.msra.mxu1 %v32085_v52  ;;  %29021 = vmatprep.mubr.f32.mxu1 %v38614_v51  ;;  %v24040_v52 = vand.u32 4294901760, %v24039_v49 }
0x155f   : > { %32090 = vmatprep.subr.bf16.mxu1 %v32089_v22 }
0x1562   : > { %32092 = vmatpush3.bf16.msra.mxu1 %v32089_v22  ;;  %v24049_v22 = vsub.f32 %v38695_v36, %v24048_v37 }
0x1563   : > { %32094 = vmatprep.subr.bf16.mxu1 %v32053_v5 }
0x1565   : > { %29022 = vmatmul.mubr.f32.vlgmr.msra.gmra.mrb[134].mxu1 %v38627_v14 }
0x1566   : > { %32096 = vmatpush3.bf16.msra.mxu1 %v32053_v5  ;;  %29032 = vmatprep.mubr.f32.mxu1 %v38614_v51  ;;  %v23927_v5 = vld [vmem:[%s39584_s9 + $0x20] sm:$0xff] }
0x1567   : > { %32098 = vmatprep.subr.bf16.mxu1 %v32057_v2  ;;  %v23946_v40 = vsel %vm23932_vm11, %v23927_v5, 0 }
0x1568   : > { %v38703_v16 = vand.u32 4294901760, %v23946_v40 }
0x156a   : > { %32100 = vmatpush3.bf16.msra.mxu1 %v32057_v2  ;;  %v38723_v9 = vsub.f32 %v23946_v40, %v38703_v16 }
0x156d   : > { %29033 = vmatmul.mubr.f32.vlgmr.msra.gmra.mrb[134].mxu1 %v38627_v14  ;;  %v23926_v14 = vld [vmem:[%s39584_s9 + $0x18] sm:$0xff] }
0x156e   : > { %v23943_v41 = vsel %vm23932_vm11, %v23926_v14, 0 }
0x156f   : > { %v38697_v2 = vand.u32 4294901760, %v23943_v41 }
0x1571   : > { %v38710_v60 = vsub.f32 %v23943_v41, %v38697_v2 }
0x1640   : > { %v29034_v57 = vpop.f32.mrb[134].mxu1 }
0x1641   : > { %v23835_v29 = vpop.f32.mrb[135].mxu1  ;;  %v23860_v24 = vadd.f32 %v29034_v57, %v23857_v62  ;;  %v38730_v57 = vand.u32 4294901760, %v23949_v33 }
0x1642   : > { %v23859_v10 = vadd.f32 %v23852_v43, %v23835_v29  ;;  %v24058_v43 = vand.u32 4294901760, %v38710_v60  ;;  %v23952_v29 = vsel %vm23932_vm11, %v23929_v3, 0 }
0x1643   : > { %v23865_v15 = vsel %vm23861_vm9, %v23860_v24, 0.0 }
0x1644   : > { %v23862_v20 = vsel %vm23861_vm9, %v23859_v10, 0.0 }
0x1645   : > { %23863 = vadd.xlane.f32.xlu1 %v23862_v20  ;;  %v24068_v20 = vand.u32 4294901760, %v38723_v9 }
0x1649   : > { %23866 = vadd.xlane.f32.xlu1 %v23865_v15  ;;  %v24050_v15 = vand.u32 4294901760, %v24049_v22 }
0x16d2   : > { %v23864_v4 = vpop.xlane.xlu1 %23863 }
0x16d3   : > { %v23869_v30 = vmul.f32 0.11111111, %v23864_v4  ;;  %v24059_v4 = vsub.f32 %v38710_v60, %v24058_v43 }
0x16d5   : > { %v23871_v17 = vsub.f32 %v23859_v10, %v23869_v30  ;;  %v23930_v10 = vld [vmem:[%s39584_s9 + $0x38] sm:$0xff]  ;;  %v38747_v30 = vsub.f32 %v23949_v33, %v38730_v57 }
0x16d6   : > { %v23867_v32 = vpop.xlane.xlu1 %23866 }
0x16d7   : > { %v23873_v47 = vmul.f32 %v23871_v17, %v23871_v17  ;;  %v23870_v12 = vmul.f32 0.11111111, %v23867_v32 }
0x16d9   : > { %v23875_v58 = vsel %vm23861_vm9, %v23873_v47, 0.0  ;;  %v38653_v51 = vsub.f32 %v23860_v24, %v23870_v12 }
0x16da   : > { %23876 = vadd.xlane.f32.xlu0 %v23875_v58  ;;  %v23955_v58 = vsel %vm23932_vm11, %v23930_v10, 0  ;;  %v24754_v10 = vld [vmem:[%s39585_s10 + $0x20] sm:$0xff] }
0x16db   : > { %v23874_v19 = vmul.f32 %v38653_v51, %v38653_v51  ;;  %v38764_v32 = vand.u32 4294901760, %v23955_v58 }
0x16f0   : > { %23902 = vperm.xlu0 %32973, %v38539_v55  }
0x16f4   : > { %32975 = vset.pattern.permute.xlu0 %v39962_v35  ;;  %v23878_v35 = vsel %vm23861_vm9, %v23874_v19, 0.0 }
0x1767   : > { %v23877_v54 = vpop.xlane.xlu0 %23876 }
0x1768   : > { %v23881_v46 = vmul.f32 0.11111111, %v23877_v54  ;;  %v23931_v54 = vld [vmem:[%s39584_s9 + $0x40] sm:$0xff] }
0x1769   : > { %v23958_v12 = vsel %vm23932_vm11, %v23931_v54, 0 }
0x176a   : > { %v23883_v1 = vadd.f32 1e-05, %v23881_v46  ;;  %v24069_v46 = vsub.f32 %v38723_v9, %v24068_v20  ;;  %v38777_v44 = vand.u32 4294901760, %v23958_v12 }
0x176c   : > { %32985 = vrsqrt.f32 %v23883_v1  ;;  %v24060_v1 = vand.u32 4294901760, %v24059_v4  ;;  %v24070_v19 = vand.u32 4294901760, %v24069_v46  ;;  %v38786_v14 = vsub.f32 %v23958_v12, %v38777_v44  ;;  %v24797_v12 = vld [vmem:[%s39586_s11 + $0x10] sm:$0xff] }
0x176f   : > { %v23903_v42 = vpop.permute.xlu0 %23902 }
0x1776   : > { %v32986_v56 = vpop.eup %32985 }
0x1777   : > { %v23887_v27 = vmul.f32 %v32986_v56, %v38539_v55  ;;  %v23934_v55 = vsel %vm23932_vm11, %v23923_v8, 0  ;;  %v24078_v56 = vand.u32 4294901760, %v38747_v30 }
0x1778   : > { %v38665_v38 = vand.u32 4294901760, %v23934_v55 }
0x1779   : > { %23891 = vperm.xlu1 %32974, %v23887_v27  }
0x177a   : > { %v38672_v50 = vsub.f32 %v23934_v55, %v38665_v38  ;;  %v38775_v55 = vsub.f32 %v23955_v58, %v38764_v32 }
0x177c   : > { %v24028_v18 = vand.u32 4294901760, %v38672_v50  ;;  %v24098_v53 = vand.u32 4294901760, %v38775_v55 }
0x177e   : > { %v24029_v39 = vsub.f32 %v38672_v50, %v24028_v18  ;;  %v24099_v5 = vsub.f32 %v38775_v55, %v24098_v53 }
0x1780   : > { %v24030_v34 = vand.u32 4294901760, %v24029_v39 }
0x179d   : > { %23879 = vadd.xlane.f32.xlu1 %v23878_v35  ;;  %v24079_v35 = vsub.f32 %v38747_v30, %v24078_v56 }
0x179f   : > { %v24080_v59 = vand.u32 4294901760, %v24079_v35 }
0x17f8   : > { %v23892_v48 = vpop.permute.xlu1 %23891 }
0x17f9   : > { %v23899_v7 = vmul.f32 %v23892_v48, %v23871_v17  ;;  %v38749_v17 = vand.u32 4294901760, %v23952_v29  ;;  %v24108_v48 = vand.u32 4294901760, %v38786_v14 }
0x17fb   : > { %v23909_v28 = vadd.f32 %v23903_v42, %v23899_v7  ;;  %v38762_v27 = vsub.f32 %v23952_v29, %v38749_v17  ;;  %v24100_v42 = vand.u32 4294901760, %v24099_v5  ;;  %v24109_v7 = vsub.f32 %v38786_v14, %v24108_v48  ;;  %v24795_v29 = vld [vmem:[%s39586_s11] sm:$0xff] }
0x17fd   : > { %v23911_v23 = vmax.f32 %v23909_v28, 0.0  ;;  %v24088_v8 = vand.u32 4294901760, %v38762_v27  ;;  %v24110_v39 = vand.u32 4294901760, %v24109_v7 }
0x17ff   : > { %v38712_v21 = vand.u32 4294901760, %v23911_v23  ;;  %v24089_v0 = vsub.f32 %v38762_v27, %v24088_v8 }
0x1801   : > { %v38719_v31 = vsub.f32 %v23911_v23, %v38712_v21  ;;  %29036 = vmatpush3.msra.mxu0 %v38712_v21  ;;  %v24090_v41 = vand.u32 4294901760, %v24089_v0  ;;  %v24820_v0 = vsel %vm23932_vm11, %v24797_v12, 0 }
0x1802   : > { %29038 = vmatmul.mubr.f32.vlgmr.msra.gmra.mrb[148].mxu0 %v24030_v34  ;;  %29064 = vmatprep.subr.mxu0 %v39803_v6  ;;  %v39022_v7 = vand.u32 4294901760, %v24820_v0 }
0x1803   : > { %v24119_v62 = vand.u32 4294901760, %v38719_v31  ;;  %29040 = vmatprep.mubr.msk.f32.mxu0 %vm33043_vm10, %v39803_v6 }
0x1805   : > { %v24120_v24 = vsub.f32 %v38719_v31, %v24119_v62 }
0x1806   : > { %29041 = vmatmul.mubr.f32.gmra.mrb[150].mxu0 %v24040_v52  ;;  %v24753_v52 = vld [vmem:[%s39585_s10 + $0x18] sm:$0xff] }
0x1807   : > { %29043 = vmatprep.mubr.msk.f32.mxu0 %vm33043_vm10, %v39803_v6  ;;  %v24121_v47 = vand.u32 4294901760, %v24120_v24 }
0x1809   : > { %29065 = vmatpush3.msra.mxu0 %v24121_v47  ;;  %v24755_v47 = vld [vmem:[%s39585_s10 + $0x28] sm:$0xff] }
0x180a   : > { %29044 = vmatmul.mubr.f32.gmra.mrb[152].mxu0 %v24050_v15  ;;  %29093 = vmatprep.subr.mxu0 %v39803_v6  ;;  %v24814_v15 = vsel %vm23932_vm11, %v24795_v29, 0 }
0x180b   : > { %29046 = vmatprep.mubr.msk.f32.mxu0 %vm33043_vm10, %v39803_v6  ;;  %v38995_v54 = vand.u32 4294901760, %v24814_v15 }
0x180d   : > { %v39006_v35 = vsub.f32 %v24814_v15, %v38995_v54 }
0x180e   : > { %29047 = vmatmul.mubr.f32.gmra.mrb[154].mxu0 %v24060_v1 }
0x180f   : > { %29049 = vmatprep.mubr.msk.f32.mxu0 %vm33043_vm10, %v39803_v6  ;;  %v24908_v5 = vand.u32 4294901760, %v39006_v35 }
0x1812   : > { %29050 = vmatmul.mubr.f32.gmra.mrb[156].mxu0 %v24070_v19 }
0x1813   : > { %29052 = vmatprep.mubr.msk.f32.mxu0 %vm33043_vm10, %v39803_v6 }
0x1816   : > { %29053 = vmatmul.mubr.f32.gmra.mrb[158].mxu0 %v24080_v59 }
0x1817   : > { %29055 = vmatprep.mubr.msk.f32.mxu0 %vm33043_vm10, %v39803_v6 }
0x181a   : > { %29056 = vmatmul.mubr.f32.gmra.mrb[160].mxu0 %v24090_v41 }
0x181b   : > { %29058 = vmatprep.mubr.msk.f32.mxu0 %vm33043_vm10, %v39803_v6 }
0x181e   : > { %29059 = vmatmul.mubr.f32.gmra.mrb[162].mxu0 %v24100_v42 }
0x181f   : > { %29061 = vmatprep.mubr.msk.f32.mxu0 %vm33043_vm10, %v39803_v6 }
0x1822   : > { %29062 = vmatmul.mubr.f32.gmra.mrb[164].mxu0 %v24110_v39 }
0x1823   : > { %29066 = vmatprep.mubr.msk.f32.mxu0 %vm33043_vm10, %v39803_v6 }
0x1826   : > { %29067 = vmatmul.mubr.f32.vlgmr.msra.gmra.mrb[148].mxu0 %v38665_v38 }
0x1827   : > { %29094 = vmatpush3.msra.mxu0 %v38719_v31  ;;  %29069 = vmatprep.mubr.msk.f32.mxu0 %vm33043_vm10, %v39803_v6 }
0x1828   : > { %29122 = vmatprep.subr.mxu0 %v39803_v6 }
0x182a   : > { %v23880_v40 = vpop.xlane.xlu1 %23879  ;;  %29070 = vmatmul.mubr.f32.gmra.mrb[150].mxu0 %v38674_v45 }
0x182b   : > { %v23882_v28 = vmul.f32 0.11111111, %v23880_v40  ;;  %29072 = vmatprep.mubr.msk.f32.mxu0 %vm33043_vm10, %v39803_v6 }
0x182d   : > { %v23884_v25 = vadd.f32 1e-05, %v23882_v28 }
0x182e   : > { %29073 = vmatmul.mubr.f32.gmra.mrb[152].mxu0 %v38684_v63 }
0x182f   : > { %32987 = vrsqrt.f32 %v23884_v25  ;;  %29075 = vmatprep.mubr.msk.f32.mxu0 %vm33043_vm10, %v39803_v6  ;;  %v24799_v25 = vld [vmem:[%s39586_s11 + $0x20] sm:$0xff] }
0x1832   : > { %29076 = vmatmul.mubr.f32.gmra.mrb[154].mxu0 %v38697_v2 }
0x1833   : > { %29078 = vmatprep.mubr.msk.f32.mxu0 %vm33043_vm10, %v39803_v6 }
0x1836   : > { %29079 = vmatmul.mubr.f32.gmra.mrb[156].mxu0 %v38703_v16 }
0x1837   : > { %29081 = vmatprep.mubr.msk.f32.mxu0 %vm33043_vm10, %v39803_v6 }
0x1839   : > { %v32988_v23 = vpop.eup %32987 }
0x183a   : > { %29082 = vmatmul.mubr.f32.gmra.mrb[158].mxu0 %v38730_v57  ;;  %v23888_v34 = vmul.f32 %v32988_v23, %v38534_v61  ;;  %v24758_v23 = vld [vmem:[%s39585_s10 + $0x40] sm:$0xff] }
0x183b   : > { %29084 = vmatprep.mubr.msk.f32.mxu0 %vm33043_vm10, %v39803_v6 }
0x183c   : > { %23896 = vperm.xlu0 %32975, %v23888_v34  }
0x183e   : > { %29085 = vmatmul.mubr.f32.gmra.mrb[160].mxu0 %v38749_v17 }
0x183f   : > { %29087 = vmatprep.mubr.msk.f32.mxu0 %vm33043_vm10, %v39803_v6 }
0x1840   : > { %32976 = vset.pattern.permute.xlu0 %v39979_v11 }
0x1841   : > { %23906 = vperm.xlu0 %32976, %v38534_v61  }
0x1842   : > { %29088 = vmatmul.mubr.f32.gmra.mrb[162].mxu0 %v38764_v32 }
0x1843   : > { %29090 = vmatprep.mubr.msk.f32.mxu0 %vm33043_vm10, %v39803_v6 }
0x1846   : > { %29091 = vmatmul.mubr.f32.gmra.mrb[164].mxu0 %v38777_v44 }
0x1847   : > { %29095 = vmatprep.mubr.msk.f32.mxu0 %vm33043_vm10, %v39803_v6 }
0x184a   : > { %29096 = vmatmul.mubr.f32.vlgmr.msra.gmra.mrb[148].mxu0 %v38672_v50 }
0x184b   : > { %29123 = vmatpush3.msra.mxu0 %v38712_v21  ;;  %29098 = vmatprep.mubr.msk.f32.mxu0 %vm33043_vm10, %v39803_v6 }
0x184c   : > { %29151 = vmatprep.subr.mxu0 %v39803_v6 }
0x184e   : > { %29099 = vmatmul.mubr.f32.gmra.mrb[150].mxu0 %v38682_v26  ;;  %v24750_v26 = vld [vmem:[%s39585_s10] sm:$0xff] }
0x184f   : > { %29101 = vmatprep.mubr.msk.f32.mxu0 %vm33043_vm10, %v39803_v6 }
0x1852   : > { %29102 = vmatmul.mubr.f32.gmra.mrb[152].mxu0 %v38695_v36 }
0x1853   : > { %29104 = vmatprep.mubr.msk.f32.mxu0 %vm33043_vm10, %v39803_v6 }
0x1856   : > { %29105 = vmatmul.mubr.f32.gmra.mrb[154].mxu0 %v38710_v60 }
0x1857   : > { %29107 = vmatprep.mubr.msk.f32.mxu0 %vm33043_vm10, %v39803_v6 }
0x185a   : > { %29108 = vmatmul.mubr.f32.gmra.mrb[156].mxu0 %v38723_v9 }
0x185b   : > { %29110 = vmatprep.mubr.msk.f32.mxu0 %vm33043_vm10, %v39803_v6 }
0x185e   : > { %29111 = vmatmul.mubr.f32.gmra.mrb[158].mxu0 %v38747_v30 }
0x185f   : > { %29113 = vmatprep.mubr.msk.f32.mxu0 %vm33043_vm10, %v39803_v6 }
0x1862   : > { %29114 = vmatmul.mubr.f32.gmra.mrb[160].mxu0 %v38762_v27 }
0x1863   : > { %29116 = vmatprep.mubr.msk.f32.mxu0 %vm33043_vm10, %v39803_v6 }
0x1866   : > { %29117 = vmatmul.mubr.f32.gmra.mrb[162].mxu0 %v38775_v55 }
0x1867   : > { %29119 = vmatprep.mubr.msk.f32.mxu0 %vm33043_vm10, %v39803_v6 }
0x186a   : > { %29120 = vmatmul.mubr.f32.gmra.mrb[164].mxu0 %v38786_v14  ;;  %v24798_v14 = vld [vmem:[%s39586_s11 + $0x18] sm:$0xff] }
0x186b   : > { %29124 = vmatprep.mubr.msk.f32.mxu0 %vm33043_vm10, %v39803_v6  ;;  %v24823_v28 = vsel %vm23932_vm11, %v24798_v14, 0 }
0x186e   : > { %29125 = vmatmul.mubr.f32.vlgmr.msra.gmra.mrb[148].mxu0 %v24028_v18 }
0x186f   : > { %29152 = vmatpush3.msra.mxu0 %v24119_v62  ;;  %29127 = vmatprep.mubr.msk.f32.mxu0 %vm33043_vm10, %v39803_v6 }
0x1870   : > { %29180 = vmatprep.subr.mxu0 %v39803_v6 }
0x1872   : > { %29128 = vmatmul.mubr.f32.gmra.mrb[150].mxu0 %v24038_v13 }
0x1873   : > { %29130 = vmatprep.mubr.msk.f32.mxu0 %vm33043_vm10, %v39803_v6 }
0x1876   : > { %29131 = vmatmul.mubr.f32.gmra.mrb[152].mxu0 %v24048_v37 }
0x1877   : > { %29133 = vmatprep.mubr.msk.f32.mxu0 %vm33043_vm10, %v39803_v6 }
0x187a   : > { %29134 = vmatmul.mubr.f32.gmra.mrb[154].mxu0 %v24058_v43 }
0x187b   : > { %29136 = vmatprep.mubr.msk.f32.mxu0 %vm33043_vm10, %v39803_v6 }
0x187e   : > { %29137 = vmatmul.mubr.f32.gmra.mrb[156].mxu0 %v24068_v20 }
0x187f   : > { %29139 = vmatprep.mubr.msk.f32.mxu0 %vm33043_vm10, %v39803_v6 }
0x1882   : > { %29140 = vmatmul.mubr.f32.gmra.mrb[158].mxu0 %v24078_v56 }
0x1883   : > { %29142 = vmatprep.mubr.msk.f32.mxu0 %vm33043_vm10, %v39803_v6 }
0x1886   : > { %29143 = vmatmul.mubr.f32.gmra.mrb[160].mxu0 %v24088_v8 }
0x1887   : > { %29145 = vmatprep.mubr.msk.f32.mxu0 %vm33043_vm10, %v39803_v6 }
0x188a   : > { %29146 = vmatmul.mubr.f32.gmra.mrb[162].mxu0 %v24098_v53  ;;  %v24757_v53 = vld [vmem:[%s39585_s10 + $0x38] sm:$0xff] }
0x188b   : > { %29148 = vmatprep.mubr.msk.f32.mxu0 %vm33043_vm10, %v39803_v6 }
0x188e   : > { %29149 = vmatmul.mubr.f32.gmra.mrb[164].mxu0 %v24108_v48 }
0x188f   : > { %29153 = vmatprep.mubr.msk.f32.mxu0 %vm33043_vm10, %v39803_v6 }
0x1892   : > { %29154 = vmatmul.mubr.f32.vlgmr.msra.gmra.mrb[148].mxu0 %v38665_v38 }
0x1893   : > { %29181 = vmatpush3.msra.mxu0 %v38712_v21  ;;  %29156 = vmatprep.mubr.msk.f32.mxu0 %vm33043_vm10, %v39803_v6  ;;  %v24752_v21 = vld [vmem:[%s39585_s10 + $0x10] sm:$0xff] }
0x1894   : > { %29209 = vmatprep.subr.mxu0 %v39803_v6 }
0x1896   : > { %29157 = vmatmul.mubr.f32.gmra.mrb[150].mxu0 %v38674_v45 }
0x1897   : > { %29159 = vmatprep.mubr.msk.f32.mxu0 %vm33043_vm10, %v39803_v6 }
0x189a   : > { %29160 = vmatmul.mubr.f32.gmra.mrb[152].mxu0 %v38684_v63 }
0x189b   : > { %29162 = vmatprep.mubr.msk.f32.mxu0 %vm33043_vm10, %v39803_v6 }
0x189e   : > { %29163 = vmatmul.mubr.f32.gmra.mrb[154].mxu0 %v38697_v2 }
0x189f   : > { %29165 = vmatprep.mubr.msk.f32.mxu0 %vm33043_vm10, %v39803_v6 }
0x18a2   : > { %29166 = vmatmul.mubr.f32.gmra.mrb[156].mxu0 %v38703_v16 }
0x18a3   : > { %29168 = vmatprep.mubr.msk.f32.mxu0 %vm33043_vm10, %v39803_v6 }
0x18a6   : > { %29169 = vmatmul.mubr.f32.gmra.mrb[158].mxu0 %v38730_v57 }
0x18a7   : > { %29171 = vmatprep.mubr.msk.f32.mxu0 %vm33043_vm10, %v39803_v6 }
0x18aa   : > { %29172 = vmatmul.mubr.f32.gmra.mrb[160].mxu0 %v38749_v17 }
0x18ab   : > { %29174 = vmatprep.mubr.msk.f32.mxu0 %vm33043_vm10, %v39803_v6 }
0x18ae   : > { %29175 = vmatmul.mubr.f32.gmra.mrb[162].mxu0 %v38764_v32 }
0x18af   : > { %29177 = vmatprep.mubr.msk.f32.mxu0 %vm33043_vm10, %v39803_v6 }
0x18b2   : > { %29178 = vmatmul.mubr.f32.gmra.mrb[164].mxu0 %v38777_v44 }
0x18b3   : > { %29182 = vmatprep.mubr.msk.f32.mxu0 %vm33043_vm10, %v39803_v6 }
0x18b6   : > { %29183 = vmatmul.mubr.f32.vlgmr.msra.gmra.mrb[148].mxu0 %v38665_v38 }
0x18b7   : > { %29185 = vmatprep.mubr.msk.f32.mxu0 %vm33043_vm10, %v39803_v6 }
0x18ba   : > { %29186 = vmatmul.mubr.f32.gmra.mrb[150].mxu0 %v38674_v45 }
0x18bb   : > { %v23897_v11 = vpop.permute.xlu0 %23896  ;;  %29188 = vmatprep.mubr.msk.f32.mxu0 %vm33043_vm10, %v39803_v6 }
0x18bc   : > { %v23900_v61 = vmul.f32 %v23897_v11, %v38653_v51  ;;  %v24909_v11 = vsub.f32 %v39006_v35, %v24908_v5 }
0x18be   : > { %29189 = vmatmul.mubr.f32.gmra.mrb[152].mxu0 %v38684_v63 }
0x18bf   : > { %29191 = vmatprep.mubr.msk.f32.mxu0 %vm33043_vm10, %v39803_v6 }
0x18c0   : > { %v23907_v50 = vpop.permute.xlu0 %23906 }
0x18c1   : > { %v23910_v18 = vadd.f32 %v23907_v50, %v23900_v61 }
0x18c2   : > { %29192 = vmatmul.mubr.f32.gmra.mrb[154].mxu0 %v38697_v2  ;;  %v24751_v2 = vld [vmem:[%s39585_s10 + $0x8] sm:$0xff] }
0x18c3   : > { %v23912_v38 = vmax.f32 %v23910_v18, 0.0  ;;  %29194 = vmatprep.mubr.msk.f32.mxu0 %vm33043_vm10, %v39803_v6  ;;  %v39037_v18 = vsub.f32 %v24820_v0, %v39022_v7 }
0x18c5   : > { %23914 = vrot.lane.b32.xlu1 %v23912_v38, %s33044_s29 }
0x18c6   : > { %29195 = vmatmul.mubr.f32.gmra.mrb[156].mxu0 %v38703_v16 }
0x18c7   : > { %29197 = vmatprep.mubr.msk.f32.mxu0 %vm33043_vm10, %v39803_v6 }
0x18ca   : > { %29198 = vmatmul.mubr.f32.gmra.mrb[158].mxu0 %v38730_v57 }
0x18cb   : > { %29200 = vmatprep.mubr.msk.f32.mxu0 %vm33043_vm10, %v39803_v6 }
0x18ce   : > { %29201 = vmatmul.mubr.f32.gmra.mrb[160].mxu0 %v38749_v17  ;;  %v24796_v17 = vld [vmem:[%s39586_s11 + $0x8] sm:$0xff] }
0x18cf   : > { %29203 = vmatprep.mubr.msk.f32.mxu0 %vm33043_vm10, %v39803_v6  ;;  %v24817_v1 = vsel %vm23932_vm11, %v24796_v17, 0 }
0x18d0   : > { %v39008_v8 = vand.u32 4294901760, %v24817_v1 }
0x18d2   : > { %29204 = vmatmul.mubr.f32.gmra.mrb[162].mxu0 %v38764_v32  ;;  %v24756_v32 = vld [vmem:[%s39585_s10 + $0x30] sm:$0xff]  ;;  %v39020_v48 = vsub.f32 %v24817_v1, %v39008_v8  ;;  %v24803_v1 = vld [vmem:[%s39586_s11 + $0x40] sm:$0xff] }
0x18d3   : > { %29206 = vmatprep.mubr.msk.f32.mxu0 %vm33043_vm10, %v39803_v6 }
0x18d4   : > { %v24918_v61 = vand.u32 4294901760, %v39020_v48 }
0x18d6   : > { %29207 = vmatmul.mubr.f32.gmra.mrb[164].mxu0 %v38777_v44 }
0x18d7   : > { %29211 = vmatprep.mubr.msk.f32.mxu0 %vm33043_vm10, %v39803_v6 }
0x1937   : > { %v23915_v51 = vpop.permute.xlu1 %23914 }
0x1938   : > { %v38962_v45 = vmax.f32 %v23912_v38, %v23915_v51  ;;  %v39039_v38 = vand.u32 4294901760, %v24823_v28  ;;  %v24826_v51 = vsel %vm23932_vm11, %v24799_v25, 0 }
0x193a   : > { %23919 = vrot.lane.b32.xlu0 %v38962_v45, %s33045_s30 }
0x1989   : > { %v24698_v63 = vpop.f32.mrb[148].mxu0 }
0x198a   : > { %v24759_v13 = vmul.f32 %v24750_v26, %v24698_v63  ;;  %v29184_v36 = vpop.f32.mrb[149].mxu0 }
0x198b   : > { %v24800_v36 = vld [vmem:[%s39586_s11 + $0x28] sm:$0xff] }
0x198c   : > { %v24768_v16 = vsel %vm23861_vm9, %v24759_v13, 0.0 }
0x198d   : > { %v24704_v49 = vpop.f32.mrb[150].mxu0  ;;  %24769 = vadd.xlane.f32.xlu0 %v24768_v16 }
0x198e   : > { %v24760_v37 = vmul.f32 %v24751_v2, %v24704_v49  ;;  %v29187_v60 = vpop.f32.mrb[151].mxu0  ;;  %v39047_v49 = vand.u32 4294901760, %v24826_v51 }
0x198f   : > { %v24919_v60 = vsub.f32 %v39020_v48, %v24918_v61 }
0x1990   : > { %v24771_v33 = vsel %vm23861_vm9, %v24760_v37, 0.0  ;;  %v24910_v37 = vand.u32 4294901760, %v24909_v11 }
0x1991   : > { %v24710_v3 = vpop.f32.mrb[152].mxu0  ;;  %24772 = vadd.xlane.f32.xlu1 %v24771_v33  ;;  %v39054_v33 = vsub.f32 %v24823_v28, %v39039_v38 }
0x1992   : > { %v24761_v31 = vmul.f32 %v24752_v21, %v24710_v3  ;;  %v29190_v9 = vpop.f32.mrb[153].mxu0  ;;  %v24928_v21 = vand.u32 4294901760, %v39037_v18 }
0x1994   : > { %v24774_v22 = vsel %vm23861_vm9, %v24761_v31, 0.0  ;;  %v24829_v31 = vsel %vm23932_vm11, %v24800_v36, 0 }
0x1995   : > { %v24716_v43 = vpop.f32.mrb[154].mxu0  ;;  %24775 = vadd.xlane.f32.xlu0 %v24774_v22  ;;  %v24920_v22 = vand.u32 4294901760, %v24919_v60  ;;  %v24807_v60 = vld [vmem:[%s39587_s12 + $0x18] sm:$0xff] }
0x1996   : > { %v24762_v57 = vmul.f32 %v24753_v52, %v24716_v43  ;;  %v29193_v62 = vpop.f32.mrb[155].mxu0  ;;  %v39067_v52 = vsub.f32 %v24826_v51, %v39047_v49  ;;  %v24929_v43 = vsub.f32 %v39037_v18, %v24928_v21 }
0x1997   : > { %v39074_v62 = vand.u32 4294901760, %v24829_v31 }
0x1998   : > { %v24777_v24 = vsel %vm23861_vm9, %v24762_v57, 0.0  ;;  %v24938_v57 = vand.u32 4294901760, %v39054_v33  ;;  %v24948_v15 = vand.u32 4294901760, %v39067_v52 }
0x1999   : > { %24778 = vadd.xlane.f32.xlu0 %v24777_v24  ;;  %v24722_v20 = vpop.f32.mrb[156].mxu0  ;;  %v24802_v24 = vld [vmem:[%s39586_s11 + $0x38] sm:$0xff]  ;;  %v39091_v17 = vsub.f32 %v24829_v31, %v39074_v62 }
0x199a   : > { %v24763_v4 = vmul.f32 %v24754_v10, %v24722_v20  ;;  %v29196_v30 = vpop.f32.mrb[157].mxu0 }
0x199b   : > { %v24939_v30 = vsub.f32 %v39054_v33, %v24938_v57 }
0x199c   : > { %v24780_v58 = vsel %vm23861_vm9, %v24763_v4, 0.0  ;;  %v24930_v4 = vand.u32 4294901760, %v24929_v43 }
0x199d   : > { %v24728_v46 = vpop.f32.mrb[158].mxu0  ;;  %24781 = vadd.xlane.f32.xlu0 %v24780_v58 }
0x199e   : > { %v24764_v56 = vmul.f32 %v24755_v47, %v24728_v46  ;;  %v29199_v27 = vpop.f32.mrb[159].mxu0  ;;  %v24835_v46 = vsel %vm23932_vm11, %v24802_v24, 0  ;;  %v24809_v24 = vld [vmem:[%s39587_s12 + $0x28] sm:$0xff] }
0x199f   : > { %v24940_v27 = vand.u32 4294901760, %v24939_v30 }
0x19a0   : > { %v24783_v19 = vsel %vm23861_vm9, %v24764_v56, 0.0  ;;  %v24949_v56 = vsub.f32 %v39067_v52, %v24948_v15 }
0x19a1   : > { %24784 = vadd.xlane.f32.xlu1 %v24783_v19  ;;  %v24734_v55 = vpop.f32.mrb[160].mxu0  ;;  %v39108_v19 = vand.u32 4294901760, %v24835_v46 }
0x19a2   : > { %v24765_v44 = vmul.f32 %v24756_v32, %v24734_v55  ;;  %v29202_v59 = vpop.f32.mrb[161].mxu0  ;;  %v24958_v32 = vand.u32 4294901760, %v39091_v17  ;;  %v24838_v55 = vsel %vm23932_vm11, %v24803_v1, 0 }
0x19a3   : > { %v39121_v14 = vand.u32 4294901760, %v24838_v55 }
0x19a4   : > { %v24786_v41 = vsel %vm23861_vm9, %v24765_v44, 0.0  ;;  %v24950_v44 = vand.u32 4294901760, %v24949_v56  ;;  %v24959_v59 = vsub.f32 %v39091_v17, %v24958_v32 }
0x19a5   : > { %v24740_v42 = vpop.f32.mrb[162].mxu0  ;;  %24787 = vadd.xlane.f32.xlu0 %v24786_v41 }
0x19a6   : > { %v24766_v39 = vmul.f32 %v24757_v53, %v24740_v42  ;;  %v29205_v40 = vpop.f32.mrb[163].mxu0  ;;  %v39119_v53 = vsub.f32 %v24835_v46, %v39108_v19  ;;  %v24960_v41 = vand.u32 4294901760, %v24959_v59  ;;  %v24810_v46 = vld [vmem:[%s39587_s12 + $0x30] sm:$0xff] }
0x19a7   : > { %v39130_v40 = vsub.f32 %v24838_v55, %v39121_v14 }
0x19a8   : > { %v24789_v34 = vsel %vm23861_vm9, %v24766_v39, 0.0  ;;  %v24978_v39 = vand.u32 4294901760, %v39119_v53 }
0x19a9   : > { %24790 = vadd.xlane.f32.xlu1 %v24789_v34  ;;  %v24746_v50 = vpop.f32.mrb[164].mxu0 }
0x19aa   : > { %v24767_v26 = vmul.f32 %v24758_v23, %v24746_v50  ;;  %v29208_v63 = vpop.f32.mrb[165].mxu0  ;;  %v24979_v25 = vsub.f32 %v39119_v53, %v24978_v39  ;;  %v24988_v23 = vand.u32 4294901760, %v39130_v40 }
0x19ac   : > { %v23920_v13 = vpop.permute.xlu0 %23919  ;;  %v24792_v2 = vsel %vm23861_vm9, %v24767_v26, 0.0  ;;  %v24980_v34 = vand.u32 4294901760, %v24979_v25  ;;  %v24989_v11 = vsub.f32 %v39130_v40, %v24988_v23 }
0x19ad   : > { %v23922_v16 = vmax.f32 %v38962_v45, %v23920_v13  ;;  %24793 = vadd.xlane.f32.xlu0 %v24792_v2  ;;  %v24801_v45 = vld [vmem:[%s39586_s11 + $0x30] sm:$0xff] }
0x19ae   : > { %v24832_v10 = vsel %vm23932_vm11, %v24801_v45, 0  ;;  %v24990_v50 = vand.u32 4294901760, %v24989_v11  ;;  %v24806_v13 = vld [vmem:[%s39587_s12 + $0x10] sm:$0xff] }
0x19af   : > { %v39056_v3 = vand.u32 4294901760, %v23922_v16  ;;  %v39093_v47 = vand.u32 4294901760, %v24832_v10 }
0x19b1   : > { %v39063_v9 = vsub.f32 %v23922_v16, %v39056_v3  ;;  %29210 = vmatpush3.msra.mxu0 %v39056_v3  ;;  %v39106_v12 = vsub.f32 %v24832_v10, %v39093_v47 }
0x19b2   : > { %29212 = vmatmul.mubr.f32.vlgmr.msra.gmra.mrb[166].mxu0 %v24910_v37  ;;  %29238 = vmatprep.subr.mxu0 %v39803_v6 }
0x19b3   : > { %v24999_v29 = vand.u32 4294901760, %v39063_v9  ;;  %29214 = vmatprep.mubr.msk.f32.mxu0 %vm33043_vm10, %v39803_v6  ;;  %v24968_v0 = vand.u32 4294901760, %v39106_v12 }
0x19b5   : > { %v25000_v20 = vsub.f32 %v39063_v9, %v24999_v29  ;;  %v24969_v42 = vsub.f32 %v39106_v12, %v24968_v0 }
0x19b6   : > { %29215 = vmatmul.mubr.f32.gmra.mrb[168].mxu0 %v24920_v22 }
0x19b7   : > { %29217 = vmatprep.mubr.msk.f32.mxu0 %vm33043_vm10, %v39803_v6  ;;  %v25001_v58 = vand.u32 4294901760, %v25000_v20  ;;  %v24970_v28 = vand.u32 4294901760, %v24969_v42 }
0x19b9   : > { %29239 = vmatpush3.msra.mxu0 %v25001_v58 }
0x19ba   : > { %29218 = vmatmul.mubr.f32.gmra.mrb[170].mxu0 %v24930_v4  ;;  %29267 = vmatprep.subr.mxu0 %v39803_v6 }
0x19bb   : > { %29220 = vmatprep.mubr.msk.f32.mxu0 %vm33043_vm10, %v39803_v6 }
0x19be   : > { %29221 = vmatmul.mubr.f32.gmra.mrb[172].mxu0 %v24940_v27 }
0x19bf   : > { %29223 = vmatprep.mubr.msk.f32.mxu0 %vm33043_vm10, %v39803_v6 }
0x19c2   : > { %29224 = vmatmul.mubr.f32.gmra.mrb[174].mxu0 %v24950_v44  ;;  %v24811_v44 = vld [vmem:[%s39587_s12 + $0x38] sm:$0xff] }
0x19c3   : > { %29226 = vmatprep.mubr.msk.f32.mxu0 %vm33043_vm10, %v39803_v6 }
0x19c6   : > { %29227 = vmatmul.mubr.f32.gmra.mrb[176].mxu0 %v24960_v41 }
0x19c7   : > { %29229 = vmatprep.mubr.msk.f32.mxu0 %vm33043_vm10, %v39803_v6 }
0x19ca   : > { %29230 = vmatmul.mubr.f32.gmra.mrb[178].mxu0 %v24970_v28  ;;  %v24812_v28 = vld [vmem:[%s39587_s12 + $0x40] sm:$0xff] }
0x19cb   : > { %29232 = vmatprep.mubr.msk.f32.mxu0 %vm33043_vm10, %v39803_v6 }
0x19ce   : > { %29233 = vmatmul.mubr.f32.gmra.mrb[180].mxu0 %v24980_v34 }
0x19cf   : > { %29235 = vmatprep.mubr.msk.f32.mxu0 %vm33043_vm10, %v39803_v6 }
0x19d2   : > { %29236 = vmatmul.mubr.f32.gmra.mrb[182].mxu0 %v24990_v50 }
0x19d3   : > { %29240 = vmatprep.mubr.msk.f32.mxu0 %vm33043_vm10, %v39803_v6 }
0x19d6   : > { %29241 = vmatmul.mubr.f32.vlgmr.msra.gmra.mrb[166].mxu0 %v38995_v54 }
0x19d7   : > { %29268 = vmatpush3.msra.mxu0 %v39063_v9  ;;  %29243 = vmatprep.mubr.msk.f32.mxu0 %vm33043_vm10, %v39803_v6  ;;  %v24808_v9 = vld [vmem:[%s39587_s12 + $0x20] sm:$0xff] }
0x19d8   : > { %29296 = vmatprep.subr.mxu0 %v39803_v6 }
0x19da   : > { %29244 = vmatmul.mubr.f32.gmra.mrb[168].mxu0 %v39008_v8 }
0x19db   : > { %29246 = vmatprep.mubr.msk.f32.mxu0 %vm33043_vm10, %v39803_v6 }
0x19de   : > { %29247 = vmatmul.mubr.f32.gmra.mrb[170].mxu0 %v39022_v7 }
0x19df   : > { %29249 = vmatprep.mubr.msk.f32.mxu0 %vm33043_vm10, %v39803_v6 }
0x19e2   : > { %29250 = vmatmul.mubr.f32.gmra.mrb[172].mxu0 %v39039_v38 }
0x19e3   : > { %29252 = vmatprep.mubr.msk.f32.mxu0 %vm33043_vm10, %v39803_v6 }
0x19e6   : > { %29253 = vmatmul.mubr.f32.gmra.mrb[174].mxu0 %v39047_v49 }
0x19e7   : > { %29255 = vmatprep.mubr.msk.f32.mxu0 %vm33043_vm10, %v39803_v6 }
0x19ea   : > { %29256 = vmatmul.mubr.f32.gmra.mrb[176].mxu0 %v39074_v62 }
0x19eb   : > { %29258 = vmatprep.mubr.msk.f32.mxu0 %vm33043_vm10, %v39803_v6 }
0x19ee   : > { %29259 = vmatmul.mubr.f32.gmra.mrb[178].mxu0 %v39093_v47 }
0x19ef   : > { %29261 = vmatprep.mubr.msk.f32.mxu0 %vm33043_vm10, %v39803_v6 }
0x19f2   : > { %29262 = vmatmul.mubr.f32.gmra.mrb[180].mxu0 %v39108_v19 }
0x19f3   : > { %29264 = vmatprep.mubr.msk.f32.mxu0 %vm33043_vm10, %v39803_v6 }
0x19f6   : > { %29265 = vmatmul.mubr.f32.gmra.mrb[182].mxu0 %v39121_v14 }
0x19f7   : > { %29269 = vmatprep.mubr.msk.f32.mxu0 %vm33043_vm10, %v39803_v6 }
0x19fa   : > { %29270 = vmatmul.mubr.f32.vlgmr.msra.gmra.mrb[166].mxu0 %v39006_v35 }
0x19fb   : > { %29297 = vmatpush3.msra.mxu0 %v39056_v3  ;;  %29272 = vmatprep.mubr.msk.f32.mxu0 %vm33043_vm10, %v39803_v6 }
0x19fc   : > { %29325 = vmatprep.subr.mxu0 %v39803_v6 }
0x19fe   : > { %29273 = vmatmul.mubr.f32.gmra.mrb[168].mxu0 %v39020_v48 }
0x19ff   : > { %29275 = vmatprep.mubr.msk.f32.mxu0 %vm33043_vm10, %v39803_v6 }
0x1a02   : > { %29276 = vmatmul.mubr.f32.gmra.mrb[170].mxu0 %v39037_v18 }
0x1a03   : > { %29278 = vmatprep.mubr.msk.f32.mxu0 %vm33043_vm10, %v39803_v6 }
0x1a06   : > { %29279 = vmatmul.mubr.f32.gmra.mrb[172].mxu0 %v39054_v33 }
0x1a07   : > { %29281 = vmatprep.mubr.msk.f32.mxu0 %vm33043_vm10, %v39803_v6 }
0x1a0a   : > { %29282 = vmatmul.mubr.f32.gmra.mrb[174].mxu0 %v39067_v52 }
0x1a0b   : > { %29284 = vmatprep.mubr.msk.f32.mxu0 %vm33043_vm10, %v39803_v6 }
0x1a0e   : > { %29285 = vmatmul.mubr.f32.gmra.mrb[176].mxu0 %v39091_v17 }
0x1a0f   : > { %29287 = vmatprep.mubr.msk.f32.mxu0 %vm33043_vm10, %v39803_v6 }
0x1a12   : > { %29288 = vmatmul.mubr.f32.gmra.mrb[178].mxu0 %v39106_v12 }
0x1a13   : > { %29290 = vmatprep.mubr.msk.f32.mxu0 %vm33043_vm10, %v39803_v6 }
0x1a16   : > { %29291 = vmatmul.mubr.f32.gmra.mrb[180].mxu0 %v39119_v53 }
0x1a17   : > { %29293 = vmatprep.mubr.msk.f32.mxu0 %vm33043_vm10, %v39803_v6 }
0x1a1a   : > { %29294 = vmatmul.mubr.f32.gmra.mrb[182].mxu0 %v39130_v40 }
0x1a1b   : > { %29298 = vmatprep.mubr.msk.f32.mxu0 %vm33043_vm10, %v39803_v6 }
0x1a1e   : > { %29299 = vmatmul.mubr.f32.vlgmr.msra.gmra.mrb[166].mxu0 %v24908_v5  ;;  %v24804_v5 = vld [vmem:[%s39587_s12] sm:$0xff] }
0x1a1f   : > { %29326 = vmatpush3.msra.mxu0 %v24999_v29  ;;  %29301 = vmatprep.mubr.msk.f32.mxu0 %vm33043_vm10, %v39803_v6 }
0x1a20   : > { %29354 = vmatprep.subr.mxu0 %v39803_v6 }
0x1a22   : > { %29302 = vmatmul.mubr.f32.gmra.mrb[168].mxu0 %v24918_v61  ;;  %v24805_v61 = vld [vmem:[%s39587_s12 + $0x8] sm:$0xff] }
0x1a23   : > { %29304 = vmatprep.mubr.msk.f32.mxu0 %vm33043_vm10, %v39803_v6 }
0x1a26   : > { %29305 = vmatmul.mubr.f32.gmra.mrb[170].mxu0 %v24928_v21 }
0x1a27   : > { %29307 = vmatprep.mubr.msk.f32.mxu0 %vm33043_vm10, %v39803_v6 }
0x1a2a   : > { %29308 = vmatmul.mubr.f32.gmra.mrb[172].mxu0 %v24938_v57 }
0x1a2b   : > { %29310 = vmatprep.mubr.msk.f32.mxu0 %vm33043_vm10, %v39803_v6 }
0x1a2e   : > { %29311 = vmatmul.mubr.f32.gmra.mrb[174].mxu0 %v24948_v15 }
0x1a2f   : > { %29313 = vmatprep.mubr.msk.f32.mxu0 %vm33043_vm10, %v39803_v6 }
0x1a32   : > { %29314 = vmatmul.mubr.f32.gmra.mrb[176].mxu0 %v24958_v32 }
0x1a33   : > { %29316 = vmatprep.mubr.msk.f32.mxu0 %vm33043_vm10, %v39803_v6 }
0x1a36   : > { %29317 = vmatmul.mubr.f32.gmra.mrb[178].mxu0 %v24968_v0 }
0x1a37   : > { %29319 = vmatprep.mubr.msk.f32.mxu0 %vm33043_vm10, %v39803_v6 }
0x1a3a   : > { %29320 = vmatmul.mubr.f32.gmra.mrb[180].mxu0 %v24978_v39 }
0x1a3b   : > { %29322 = vmatprep.mubr.msk.f32.mxu0 %vm33043_vm10, %v39803_v6 }
0x1a3e   : > { %29323 = vmatmul.mubr.f32.gmra.mrb[182].mxu0 %v24988_v23 }
0x1a3f   : > { %29327 = vmatprep.mubr.msk.f32.mxu0 %vm33043_vm10, %v39803_v6 }
0x1a42   : > { %29328 = vmatmul.mubr.f32.vlgmr.msra.gmra.mrb[166].mxu0 %v38995_v54 }
0x1a43   : > { %29355 = vmatpush3.msra.mxu0 %v39056_v3  ;;  %29330 = vmatprep.mubr.msk.f32.mxu0 %vm33043_vm10, %v39803_v6 }
0x1a46   : > { %29331 = vmatmul.mubr.f32.gmra.mrb[168].mxu0 %v39008_v8 }
0x1a47   : > { %29333 = vmatprep.mubr.msk.f32.mxu0 %vm33043_vm10, %v39803_v6 }
0x1a4a   : > { %29334 = vmatmul.mubr.f32.gmra.mrb[170].mxu0 %v39022_v7 }
0x1a4b   : > { %29336 = vmatprep.mubr.msk.f32.mxu0 %vm33043_vm10, %v39803_v6 }
0x1a4e   : > { %29337 = vmatmul.mubr.f32.gmra.mrb[172].mxu0 %v39039_v38 }
0x1a4f   : > { %29339 = vmatprep.mubr.msk.f32.mxu0 %vm33043_vm10, %v39803_v6 }
0x1a52   : > { %29340 = vmatmul.mubr.f32.gmra.mrb[174].mxu0 %v39047_v49 }
0x1a53   : > { %29342 = vmatprep.mubr.msk.f32.mxu0 %vm33043_vm10, %v39803_v6 }
0x1a56   : > { %29343 = vmatmul.mubr.f32.gmra.mrb[176].mxu0 %v39074_v62 }
0x1a57   : > { %29345 = vmatprep.mubr.msk.f32.mxu0 %vm33043_vm10, %v39803_v6 }
0x1a5a   : > { %29346 = vmatmul.mubr.f32.gmra.mrb[178].mxu0 %v39093_v47 }
0x1a5b   : > { %29348 = vmatprep.mubr.msk.f32.mxu0 %vm33043_vm10, %v39803_v6 }
0x1a5e   : > { %29349 = vmatmul.mubr.f32.gmra.mrb[180].mxu0 %v39108_v19 }
0x1a5f   : > { %29351 = vmatprep.mubr.msk.f32.mxu0 %vm33043_vm10, %v39803_v6 }
0x1a62   : > { %29352 = vmatmul.mubr.f32.gmra.mrb[182].mxu0 %v39121_v14 }
0x1a63   : > { %29356 = vmatprep.mubr.msk.f32.mxu0 %vm33043_vm10, %v39803_v6 }
0x1a66   : > { %29357 = vmatmul.mubr.f32.vlgmr.msra.gmra.mrb[166].mxu0 %v38995_v54  ;;  %v25686_v54 = vld [vmem:[%s39589_s14] sm:$0xff] }
0x1a67   : > { %29359 = vmatprep.mubr.msk.f32.mxu0 %vm33043_vm10, %v39803_v6  ;;  %v39303_v35 = vsel %vm25688_vm12, %v25686_v54, 0 }
0x1a6a   : > { %29360 = vmatmul.mubr.f32.gmra.mrb[168].mxu0 %v39008_v8  ;;  %v39306_v8 = vand.u32 4294901760, %v39303_v35 }
0x1a6b   : > { %29362 = vmatprep.mubr.msk.f32.mxu0 %vm33043_vm10, %v39803_v6 }
0x1a6c   : > { %29422 = vmatprep.mubr.f32.mxu1 %v39306_v8 }
0x1a6e   : > { %29363 = vmatmul.mubr.f32.gmra.mrb[170].mxu0 %v39022_v7 }
0x1a6f   : > { %29365 = vmatprep.mubr.msk.f32.mxu0 %vm33043_vm10, %v39803_v6 }
0x1a72   : > { %29366 = vmatmul.mubr.f32.gmra.mrb[172].mxu0 %v39039_v38 }
0x1a73   : > { %29368 = vmatprep.mubr.msk.f32.mxu0 %vm33043_vm10, %v39803_v6 }
0x1a76   : > { %29369 = vmatmul.mubr.f32.gmra.mrb[174].mxu0 %v39047_v49 }
0x1a77   : > { %29371 = vmatprep.mubr.msk.f32.mxu0 %vm33043_vm10, %v39803_v6 }
0x1a7a   : > { %29372 = vmatmul.mubr.f32.gmra.mrb[176].mxu0 %v39074_v62 }
0x1a7b   : > { %29374 = vmatprep.mubr.msk.f32.mxu0 %vm33043_vm10, %v39803_v6 }
0x1a7e   : > { %29375 = vmatmul.mubr.f32.gmra.mrb[178].mxu0 %v39093_v47 }
0x1a7f   : > { %29377 = vmatprep.mubr.msk.f32.mxu0 %vm33043_vm10, %v39803_v6 }
0x1a82   : > { %29378 = vmatmul.mubr.f32.gmra.mrb[180].mxu0 %v39108_v19 }
0x1a83   : > { %29380 = vmatprep.mubr.msk.f32.mxu0 %vm33043_vm10, %v39803_v6 }
0x1a86   : > { %29381 = vmatmul.mubr.f32.gmra.mrb[182].mxu0 %v39121_v14 }
0x1b39   : > { %v25578_v6 = vpop.f32.mrb[166].mxu0 }
0x1b3a   : > { %v32307_v48 = vadd.f32 %v25578_v6, %v24804_v5  ;;  %v29358_v7 = vpop.f32.mrb[167].mxu0 }
0x1b3c   : > { %v25630_v18 = vsub.f32 0.0, %v32307_v48 }
0x1b3d   : > { %v25584_v38 = vpop.f32.mrb[168].mxu0 }
0x1b3e   : > { %v25639_v51 = vmul.f32 1.442695, %v25630_v18  ;;  %v32308_v26 = vadd.f32 %v25584_v38, %v24805_v61  ;;  %v29361_v63 = vpop.f32.mrb[169].mxu0 }
0x1b40   : > { %32989 = vpow2.f32 %v25639_v51  ;;  %v25631_v36 = vsub.f32 0.0, %v32308_v26 }
0x1b41   : > { %v25590_v2 = vpop.f32.mrb[170].mxu0 }
0x1b42   : > { %v25641_v16 = vmul.f32 1.442695, %v25631_v36  ;;  %v32309_v49 = vadd.f32 %v25590_v2, %v24806_v13  ;;  %v29364_v37 = vpop.f32.mrb[171].mxu0 }
0x1b44   : > { %32991 = vpow2.f32 %v25641_v16  ;;  %v25632_v21 = vsub.f32 0.0, %v32309_v49 }
0x1b45   : > { %v25596_v33 = vpop.f32.mrb[172].mxu0 }
0x1b46   : > { %v25643_v3 = vmul.f32 1.442695, %v25632_v21  ;;  %v32310_v31 = vadd.f32 %v25596_v33, %v24807_v60  ;;  %v29367_v45 = vpop.f32.mrb[173].mxu0 }
0x1b48   : > { %32993 = vpow2.f32 %v25643_v3  ;;  %v25633_v52 = vsub.f32 0.0, %v32310_v31 }
0x1b49   : > { %v25602_v22 = vpop.f32.mrb[174].mxu0 }
0x1b4a   : > { %v32990_v43 = vpop.eup %32989  ;;  %v25645_v57 = vmul.f32 1.442695, %v25633_v52  ;;  %v32311_v62 = vadd.f32 %v25602_v22, %v24808_v9  ;;  %v29370_v29 = vpop.f32.mrb[175].mxu0 }
0x1b4b   : > { %v25657_v10 = vadd.f32 1.0, %v32990_v43 }
0x1b4c   : > { %32995 = vpow2.f32 %v25645_v57  ;;  %v25634_v20 = vsub.f32 0.0, %v32311_v62 }
0x1b4d   : > { %32997 = vrcp.f32 %v25657_v10  ;;  %v25608_v15 = vpop.f32.mrb[176].mxu0 }
0x1b4e   : > { %v32992_v4 = vpop.eup %32991  ;;  %v25647_v30 = vmul.f32 1.442695, %v25634_v20  ;;  %v32312_v17 = vadd.f32 %v25608_v15, %v24809_v24  ;;  %v29373_v47 = vpop.f32.mrb[177].mxu0 }
0x1b4f   : > { %v25658_v58 = vadd.f32 1.0, %v32992_v4 }
0x1b50   : > { %32999 = vpow2.f32 %v25647_v30  ;;  %v25635_v1 = vsub.f32 0.0, %v32312_v17 }
0x1b51   : > { %33001 = vrcp.f32 %v25658_v58  ;;  %v25614_v56 = vpop.f32.mrb[178].mxu0 }
0x1b52   : > { %v32994_v27 = vpop.eup %32993  ;;  %v25649_v32 = vmul.f32 1.442695, %v25635_v1  ;;  %v32313_v12 = vadd.f32 %v25614_v56, %v24810_v46  ;;  %v29376_v19 = vpop.f32.mrb[179].mxu0 }
0x1b53   : > { %v25659_v55 = vadd.f32 1.0, %v32994_v27 }
0x1b54   : > { %33003 = vpow2.f32 %v25649_v32  ;;  %v25636_v59 = vsub.f32 0.0, %v32313_v12 }
0x1b55   : > { %33005 = vrcp.f32 %v25659_v55  ;;  %v25620_v0 = vpop.f32.mrb[180].mxu0 }
0x1b56   : > { %v32996_v53 = vpop.eup %32995  ;;  %v25651_v14 = vmul.f32 1.442695, %v25636_v59  ;;  %v32314_v41 = vadd.f32 %v25620_v0, %v24811_v44  ;;  %v29379_v42 = vpop.f32.mrb[181].mxu0 }
0x1b57   : > { %v32998_v39 = vpop.eup %32997  ;;  %v25660_v40 = vadd.f32 1.0, %v32996_v53 }
0x1b58   : > { %v25696_v25 = vand.u32 4294901760, %v32998_v39  ;;  %33007 = vpow2.f32 %v25651_v14  ;;  %v25637_v23 = vsub.f32 0.0, %v32314_v41 }
0x1b59   : > { %33009 = vrcp.f32 %v25660_v40  ;;  %v25626_v34 = vpop.f32.mrb[182].mxu0 }
0x1b5a   : > { %v33000_v11 = vpop.eup %32999  ;;  %v25653_v50 = vmul.f32 1.442695, %v25637_v23  ;;  %v32315_v54 = vadd.f32 %v25626_v34, %v24812_v28  ;;  %v29382_v5 = vpop.f32.mrb[183].mxu0  ;;  %v25791_v6 = vsub.f32 %v32998_v39, %v25696_v25 }
0x1b5b   : > { %v33002_v48 = vpop.eup %33001  ;;  %v25661_v7 = vadd.f32 1.0, %v33000_v11 }
0x1b5c   : > { %v25699_v61 = vand.u32 4294901760, %v33002_v48  ;;  %33011 = vpow2.f32 %v25653_v50  ;;  %v25638_v18 = vsub.f32 0.0, %v32315_v54  ;;  %v25792_v38 = vand.u32 4294901760, %v25791_v6 }
0x1b5d   : > { %33013 = vrcp.f32 %v25661_v7 }
0x1b5e   : > { %v33004_v51 = vpop.eup %33003  ;;  %v25655_v26 = vmul.f32 1.442695, %v25638_v18  ;;  %v39336_v63 = vpack.c.bf16 %v25699_v61, %v25696_v25  ;;  %v25798_v13 = vsub.f32 %v33002_v48, %v25699_v61  ;;  %v25793_v49 = vsub.f32 %v25791_v6, %v25792_v38 }
0x1b5f   : > { %v33006_v36 = vpop.eup %33005  ;;  %v25662_v2 = vadd.f32 1.0, %v33004_v51 }
0x1b60   : > { %v25702_v16 = vand.u32 4294901760, %v33006_v36  ;;  %33015 = vpow2.f32 %v25655_v26  ;;  %32102 = vmatprep.subr.bf16.mxu0 %v39336_v63  ;;  %v25799_v37 = vand.u32 4294901760, %v25798_v13  ;;  %v39340_v60 = vpack.c.bf16 %v25798_v13, %v25791_v6 }
0x1b61   : > { %33017 = vrcp.f32 %v25662_v2  ;;  %32104 = vmatpush3.bf16.msra.mxu0 %v39336_v63  ;;  %v25794_v22 = vand.u32 4294901760, %v25793_v49 }
0x1b62   : > { %v33008_v21 = vpop.eup %33007  ;;  %v25800_v33 = vsub.f32 %v25798_v13, %v25799_v37  ;;  %v25805_v3 = vsub.f32 %v33006_v36, %v25702_v16  ;;  %v39342_v31 = vpack.c.bf16 %v25799_v37, %v25792_v38 }
0x1b63   : > { %v33010_v45 = vpop.eup %33009  ;;  %v25663_v9 = vadd.f32 1.0, %v33008_v21  ;;  %v25687_v21 = vld [vmem:[%s39589_s14 + $0x8] sm:$0x3] }
0x1b64   : > { %v25705_v52 = vand.u32 4294901760, %v33010_v45  ;;  %v25801_v43 = vand.u32 4294901760, %v25800_v33  ;;  %v25806_v57 = vand.u32 4294901760, %v25805_v3 }
0x1b65   : > { %33019 = vrcp.f32 %v25663_v9 }
0x1b66   : > { %v33012_v62 = vpop.eup %33011  ;;  %v39344_v29 = vpack.c.bf16 %v25705_v52, %v25702_v16  ;;  %v32117_v10 = vpack.c.bf16 %v25801_v43, %v25794_v22  ;;  %v25812_v24 = vsub.f32 %v33010_v45, %v25705_v52  ;;  %v25807_v30 = vsub.f32 %v25805_v3, %v25806_v57 }
0x1b67   : > { %v33014_v20 = vpop.eup %33013  ;;  %v25664_v15 = vadd.f32 1.0, %v33012_v62  ;;  %v25693_v45 = vsel %vm25688_vm12, %v25687_v21, 0  ;;  %v25770_v22 = vsub.f32 %v39303_v35, %v39306_v8  ;;  %v25684_v62 = vld [vmem:[%s39588_s13] sm:$0xff] }
0x1b68   : > { %v25708_v4 = vand.u32 4294901760, %v33014_v20  ;;  %32106 = vmatprep.subr.bf16.mxu0 %v39344_v29  ;;  %32118 = vmatprep.subr.bf16.mxu1 %v32117_v10  ;;  %v25813_v17 = vand.u32 4294901760, %v25812_v24  ;;  %v39347_v47 = vpack.c.bf16 %v25812_v24, %v25805_v3  ;;  %v25808_v19 = vand.u32 4294901760, %v25807_v30 }
0x1b69   : > { %33021 = vrcp.f32 %v25664_v15  ;;  %32108 = vmatpush3.bf16.msra.mxu0 %v39344_v29  ;;  %32120 = vmatpush3.bf16.msra.mxu1 %v32117_v10  ;;  %v39371_v52 = vand.u32 4294901760, %v25693_v45  ;;  %v25771_v35 = vand.u32 4294901760, %v25770_v22 }
0x1b6a   : > { %v33016_v58 = vpop.eup %33015  ;;  %v25814_v46 = vsub.f32 %v25812_v24, %v25813_v17  ;;  %v25819_v1 = vsub.f32 %v33014_v20, %v25708_v4  ;;  %v39350_v56 = vpack.c.bf16 %v25813_v17, %v25806_v57  ;;  %v26289_v20 = vsel %vm25688_vm12, %v25684_v62, 0 }
0x1b6b   : > { %v33018_v27 = vpop.eup %33017  ;;  %v25665_v32 = vadd.f32 1.0, %v33016_v58  ;;  %v25780_v43 = vsub.f32 %v25693_v45, %v39371_v52  ;;  %v25772_v10 = vsub.f32 %v25770_v22, %v25771_v35  ;;  %v39402_v15 = vand.u32 4294901760, %v26289_v20 }
0x1b6c   : > { %v25711_v12 = vand.u32 4294901760, %v33018_v27  ;;  %v25815_v55 = vand.u32 4294901760, %v25814_v46  ;;  %v25820_v44 = vand.u32 4294901760, %v25819_v1 }
0x1b6d   : > { %33023 = vrcp.f32 %v25665_v32  ;;  %v39410_v30 = vsub.f32 %v26289_v20, %v39402_v15 }
0x1b6e   : > { %v39352_v59 = vpack.c.bf16 %v25711_v12, %v25708_v4  ;;  %v32121_v0 = vpack.c.bf16 %v25815_v55, %v25808_v19  ;;  %v25826_v53 = vsub.f32 %v33018_v27, %v25711_v12  ;;  %v25821_v42 = vsub.f32 %v25819_v1, %v25820_v44  ;;  %v24770_v4 = vpop.xlane.xlu0 %24769 }
0x1b6f   : > { %v33020_v14 = vpop.eup %33019 }
0x1b70   : > { %v25714_v41 = vand.u32 4294901760, %v33020_v14  ;;  %32110 = vmatprep.subr.bf16.mxu0 %v39352_v59  ;;  %32122 = vmatprep.subr.bf16.mxu1 %v32121_v0  ;;  %v25827_v39 = vand.u32 4294901760, %v25826_v53  ;;  %v32141_v40 = vpack.c.bf16 %v25826_v53, %v25819_v1  ;;  %v25822_v50 = vand.u32 4294901760, %v25821_v42 }
0x1b71   : > { %32112 = vmatpush3.bf16.msra.mxu0 %v39352_v59  ;;  %32124 = vmatpush3.bf16.msra.mxu1 %v32121_v0  ;;  %v26295_v1 = vand.u32 4294901760, %v24770_v4 }
0x1b72   : > { %v25828_v28 = vsub.f32 %v25826_v53, %v25827_v39  ;;  %v25833_v25 = vsub.f32 %v33020_v14, %v25714_v41  ;;  %v39356_v23 = vpack.c.bf16 %v25827_v39, %v25820_v44  ;;  %v24776_v17 = vpop.xlane.xlu0 %24775 }
0x1b73   : > { %v33022_v34 = vpop.eup %33021  ;;  %v26301_v27 = vand.u32 4294901760, %v24776_v17  ;;  %v39431_v0 = vsub.f32 %v24770_v4, %v26295_v1 }
0x1b74   : > { %v25717_v11 = vand.u32 4294901760, %v33022_v34  ;;  %v25829_v54 = vand.u32 4294901760, %v25828_v28  ;;  %v25834_v5 = vand.u32 4294901760, %v25833_v25 }
0x1b76   : > { %v39358_v6 = vpack.c.bf16 %v25717_v11, %v25714_v41  ;;  %v32125_v48 = vpack.c.bf16 %v25829_v54, %v25822_v50  ;;  %v25840_v7 = vsub.f32 %v33022_v34, %v25717_v11  ;;  %v25835_v38 = vsub.f32 %v25833_v25, %v25834_v5  ;;  %v24779_v46 = vpop.xlane.xlu0 %24778 }
0x1b77   : > { %v33024_v61 = vpop.eup %33023  ;;  %v26304_v32 = vand.u32 4294901760, %v24779_v46  ;;  %v39439_v41 = vsub.f32 %v24776_v17, %v26301_v27  ;;  %v26391_v34 = vand.u32 4294901760, %v39431_v0 }
0x1b78   : > { %v39360_v18 = vand.u32 4294901760, %v33024_v61  ;;  %32114 = vmatprep.subr.bf16.mxu0 %v39358_v6  ;;  %32126 = vmatprep.subr.bf16.mxu1 %v32125_v48  ;;  %v25841_v51 = vand.u32 4294901760, %v25840_v7  ;;  %v32145_v26 = vpack.c.bf16 %v25840_v7, %v25833_v25  ;;  %v25836_v16 = vand.u32 4294901760, %v25835_v38 }
0x1b79   : > { %32116 = vmatpush3.bf16.msra.mxu0 %v39358_v6  ;;  %32128 = vmatpush3.bf16.msra.mxu1 %v32125_v48  ;;  %v39435_v14 = vpack.c.bf16 %v26304_v32, %v26301_v27  ;;  %v39441_v42 = vsub.f32 %v24779_v46, %v26304_v32  ;;  %v26405_v54 = vand.u32 4294901760, %v39439_v41  ;;  %v26392_v38 = vsub.f32 %v39431_v0, %v26391_v34 }
0x1b7a   : > { %29399 = vmatprep.subr.mxu0 %v39360_v18  ;;  %v25842_v13 = vsub.f32 %v25840_v7, %v25841_v51  ;;  %v25847_v36 = vsub.f32 %v33024_v61, %v39360_v18  ;;  %v32177_v2 = vpack.c.bf16 %v25841_v51, %v25834_v5  ;;  %v24782_v55 = vpop.xlane.xlu0 %24781 }
0x1b7b   : > { %v26307_v39 = vand.u32 4294901760, %v24782_v55  ;;  %v26412_v5 = vand.u32 4294901760, %v39441_v42  ;;  %v26393_v45 = vand.u32 4294901760, %v26392_v38 }
0x1b7c   : > { %v25843_v49 = vand.u32 4294901760, %v25842_v13  ;;  %v25848_v37 = vand.u32 4294901760, %v25847_v36  ;;  %v26406_v13 = vsub.f32 %v39439_v41, %v26405_v54 }
0x1b7d   : > { %29400 = vmatpush3.msra.mxu0 %v39360_v18 }
0x1b7e   : > { %v32129_v33 = vpack.c.bf16 %v25843_v49, %v25836_v16  ;;  %v25849_v3 = vsub.f32 %v25847_v36, %v25848_v37  ;;  %v24788_v25 = vpop.xlane.xlu0 %24787 }
0x1b7f   : > { %v26313_v7 = vand.u32 4294901760, %v24788_v25 }
0x1b80   : > { %32130 = vmatprep.subr.bf16.mxu1 %v32129_v33  ;;  %v25850_v9 = vand.u32 4294901760, %v25849_v3 }
0x1b81   : > { %32132 = vmatpush3.bf16.msra.mxu1 %v32129_v33 }
0x1b82   : > { %29420 = vmatprep.subr.mxu1 %v25850_v9  ;;  %v24794_v16 = vpop.xlane.xlu0 %24793 }
0x1b83   : > { %v39486_v3 = vand.u32 4294901760, %v24794_v16 }
0x1b85   : > { %29421 = vmatpush3.msra.mxu1 %v25850_v9  ;;  %v26446_v17 = vsub.f32 %v24794_v16, %v39486_v3 }
0x1b86   : > { %32134 = vmatprep.subr.bf16.mxu1 %v39340_v60  ;;  %29423 = vmatmul.mubr.f32.vlgmr.msra.gmra.mrb[136].mxu1 %v39371_v52 }
0x1b87   : > { %32136 = vmatpush3.bf16.msra.mxu1 %v39340_v60  ;;  %29443 = vmatprep.mubr.f32.mxu1 %v25770_v22  ;;  %v25781_v60 = vand.u32 4294901760, %v25780_v43  ;;  %v26407_v22 = vand.u32 4294901760, %v26406_v13 }
0x1b88   : > { %32138 = vmatprep.subr.bf16.mxu1 %v39347_v47 }
0x1b89   : > { %v25782_v57 = vsub.f32 %v25780_v43, %v25781_v60 }
0x1b8b   : > { %32140 = vmatpush3.bf16.msra.mxu1 %v39347_v47  ;;  %v25783_v24 = vand.u32 4294901760, %v25782_v57  ;;  %v26370_v47 = vand.u32 4294901760, %v39410_v30 }
0x1b8c   : > { %32142 = vmatprep.subr.bf16.mxu1 %v32141_v40 }
0x1b8d   : > { %v26371_v58 = vsub.f32 %v39410_v30, %v26370_v47 }
0x1b8f   : > { %32144 = vmatpush3.bf16.msra.mxu1 %v32141_v40  ;;  %v26372_v12 = vand.u32 4294901760, %v26371_v58  ;;  %v26447_v58 = vand.u32 4294901760, %v26446_v17 }
0x1b90   : > { %32146 = vmatprep.subr.bf16.mxu1 %v32145_v26 }
0x1b93   : > { %32148 = vmatpush3.bf16.msra.mxu1 %v32145_v26 }
0x1b94   : > { %29441 = vmatprep.subr.mxu1 %v25847_v36 }
0x1b97   : > { %29442 = vmatpush3.msra.mxu1 %v25847_v36  ;;  %v26413_v36 = vsub.f32 %v39441_v42, %v26412_v5 }
0x1b98   : > { %32150 = vmatprep.subr.bf16.mxu1 %v39336_v63  ;;  %29444 = vmatmul.mubr.f32.vlgmr.msra.gmra.mrb[136].mxu1 %v25780_v43 }
0x1b99   : > { %32152 = vmatpush3.bf16.msra.mxu1 %v39336_v63  ;;  %29464 = vmatprep.mubr.f32.mxu1 %v25771_v35  ;;  %v26414_v43 = vand.u32 4294901760, %v26413_v36 }
0x1b9a   : > { %32154 = vmatprep.subr.bf16.mxu1 %v39344_v29 }
0x1b9d   : > { %32156 = vmatpush3.bf16.msra.mxu1 %v39344_v29 }
0x1b9e   : > { %32158 = vmatprep.subr.bf16.mxu1 %v39352_v59 }
0x1ba1   : > { %32160 = vmatpush3.bf16.msra.mxu1 %v39352_v59 }
0x1ba2   : > { %32162 = vmatprep.subr.bf16.mxu1 %v39358_v6 }
0x1ba5   : > { %32164 = vmatpush3.bf16.msra.mxu1 %v39358_v6 }
0x1ba6   : > { %29462 = vmatprep.subr.mxu1 %v39360_v18 }
0x1ba9   : > { %29463 = vmatpush3.msra.mxu1 %v39360_v18 }
0x1baa   : > { %32166 = vmatprep.subr.bf16.mxu1 %v39342_v31  ;;  %29465 = vmatmul.mubr.f32.vlgmr.msra.gmra.mrb[136].mxu1 %v25781_v60 }
0x1bab   : > { %32168 = vmatpush3.bf16.msra.mxu1 %v39342_v31  ;;  %29485 = vmatprep.mubr.f32.mxu1 %v39306_v8  ;;  %v25773_v31 = vand.u32 4294901760, %v25772_v10 }
0x1bac   : > { %32170 = vmatprep.subr.bf16.mxu1 %v39350_v56 }
0x1bad   : > { %29401 = vmatprep.mubr.f32.mxu0 %v25773_v31 }
0x1bae   : > { %29402 = vmatmul.mubr.f32.vlgmr.msra.gmra.mrb[184].mxu0 %v25783_v24  ;;  %v32217_v24 = vpack.c.bf16 %v26414_v43, %v26407_v22 }
0x1baf   : > { %32172 = vmatpush3.bf16.msra.mxu1 %v39350_v56 }
0x1bb0   : > { %32174 = vmatprep.subr.bf16.mxu1 %v39356_v23 }
0x1bb3   : > { %32176 = vmatpush3.bf16.msra.mxu1 %v39356_v23 }
0x1bb4   : > { %32178 = vmatprep.subr.bf16.mxu1 %v32177_v2 }
0x1bb7   : > { %32180 = vmatpush3.bf16.msra.mxu1 %v32177_v2 }
0x1bb8   : > { %29483 = vmatprep.subr.mxu1 %v25848_v37 }
0x1bbb   : > { %29484 = vmatpush3.msra.mxu1 %v25848_v37  ;;  %v39478_v37 = vsub.f32 %v24788_v25, %v26313_v7 }
0x1bbc   : > { %32182 = vmatprep.subr.bf16.mxu1 %v39336_v63  ;;  %29486 = vmatmul.mubr.f32.vlgmr.msra.gmra.mrb[136].mxu1 %v39371_v52 }
0x1bbd   : > { %32184 = vmatpush3.bf16.msra.mxu1 %v39336_v63  ;;  %29506 = vmatprep.mubr.f32.mxu1 %v39306_v8  ;;  %v25685_v8 = vld [vmem:[%s39588_s13 + $0x8] sm:$0x3]  ;;  %v24773_v63 = vpop.xlane.xlu1 %24772  ;;  %v26433_v60 = vand.u32 4294901760, %v39478_v37 }
0x1bbe   : > { %32186 = vmatprep.subr.bf16.mxu1 %v39344_v29  ;;  %v26298_v56 = vand.u32 4294901760, %v24773_v63 }
0x1bbf   : > { %v26434_v20 = vsub.f32 %v39478_v37, %v26433_v60 }
0x1bc0   : > { %v39426_v19 = vpack.c.bf16 %v26298_v56, %v26295_v1  ;;  %v39433_v53 = vsub.f32 %v24773_v63, %v26298_v56  ;;  %v26448_v56 = vsub.f32 %v26446_v17, %v26447_v58 }
0x1bc1   : > { %32188 = vmatpush3.bf16.msra.mxu1 %v39344_v29  ;;  %v26292_v29 = vsel %vm25688_vm12, %v25685_v8, 0 }
0x1bc2   : > { %32190 = vmatprep.subr.bf16.mxu1 %v39352_v59  ;;  %v39428_v44 = vand.u32 4294901760, %v26292_v29  ;;  %v26398_v11 = vand.u32 4294901760, %v39433_v53  ;;  %v26449_v27 = vand.u32 4294901760, %v26448_v56  ;;  %v32229_v32 = vpack.c.bf16 %v39433_v53, %v39431_v0 }
0x1bc4   : > { %v39446_v28 = vsub.f32 %v26292_v29, %v39428_v44  ;;  %v26399_v51 = vsub.f32 %v39433_v53, %v26398_v11  ;;  %v26435_v29 = vand.u32 4294901760, %v26434_v20 }
0x1bc5   : > { %32192 = vmatpush3.bf16.msra.mxu1 %v39352_v59  ;;  %v24785_v59 = vpop.xlane.xlu1 %24784 }
0x1bc6   : > { %32194 = vmatprep.subr.bf16.mxu1 %v39358_v6  ;;  %v26310_v40 = vand.u32 4294901760, %v24785_v59  ;;  %v26400_v9 = vand.u32 4294901760, %v26399_v51 }
0x1bc8   : > { %v39450_v50 = vpack.c.bf16 %v26310_v40, %v26307_v39  ;;  %v39457_v48 = vsub.f32 %v24785_v59, %v26310_v40  ;;  %v32213_v10 = vpack.c.bf16 %v26400_v9, %v26393_v45  ;;  %v26887_v40 = vld [vmem:[%s39590_s15] sm:$0xff] }
0x1bc9   : > { %32196 = vmatpush3.bf16.msra.mxu1 %v39358_v6  ;;  %v24791_v23 = vpop.xlane.xlu1 %24790  ;;  %v39454_v6 = vsub.f32 %v24782_v55, %v26307_v39 }
0x1bca   : > { %29504 = vmatprep.subr.mxu1 %v39360_v18  ;;  %v26316_v61 = vand.u32 4294901760, %v24791_v23  ;;  %v26426_v49 = vand.u32 4294901760, %v39457_v48 }
0x1bcb   : > { %v26419_v2 = vand.u32 4294901760, %v39454_v6  ;;  %v32237_v55 = vpack.c.bf16 %v39457_v48, %v39454_v6 }
0x1bcc   : > { %v39467_v26 = vpack.c.bf16 %v26316_v61, %v26313_v7  ;;  %v39480_v21 = vsub.f32 %v24791_v23, %v26316_v61  ;;  %v26427_v35 = vsub.f32 %v39457_v48, %v26426_v49 }
0x1bcd   : > { %29505 = vmatpush3.msra.mxu1 %v39360_v18  ;;  %v26380_v18 = vand.u32 4294901760, %v39446_v28  ;;  %v32269_v0 = vpack.c.bf16 %v26426_v49, %v26419_v2 }
0x1bce   : > { %32198 = vmatprep.subr.bf16.mxu1 %v39426_v19  ;;  %29507 = vmatmul.mubr.f32.vlgmr.msra.gmra.mrb[136].mxu1 %v39371_v52  ;;  %v26420_v52 = vsub.f32 %v39454_v6, %v26419_v2  ;;  %v26440_v57 = vand.u32 4294901760, %v39480_v21  ;;  %v26428_v8 = vand.u32 4294901760, %v26427_v35  ;;  %v32241_v59 = vpack.c.bf16 %v39480_v21, %v39478_v37 }
0x1bcf   : > { %32200 = vmatpush3.bf16.msra.mxu1 %v39426_v19  ;;  %29527 = vmatprep.mubr.f32.mxu1 %v26372_v12  ;;  %v26381_v33 = vsub.f32 %v39446_v28, %v26380_v18  ;;  %v32233_v12 = vpack.c.bf16 %v39441_v42, %v39439_v41 }
0x1bd0   : > { %32202 = vmatprep.subr.bf16.mxu1 %v39435_v14  ;;  %v26421_v31 = vand.u32 4294901760, %v26420_v52  ;;  %v26441_v4 = vsub.f32 %v39480_v21, %v26440_v57  ;;  %v32273_v53 = vpack.c.bf16 %v26440_v57, %v26433_v60 }
0x1bd1   : > { %v26382_v62 = vand.u32 4294901760, %v26381_v33 }
0x1bd2   : > { %v26442_v63 = vand.u32 4294901760, %v26441_v4  ;;  %v32221_v46 = vpack.c.bf16 %v26428_v8, %v26421_v31 }
0x1bd3   : > { %32204 = vmatpush3.bf16.msra.mxu1 %v39435_v14 }
0x1bd4   : > { %32206 = vmatprep.subr.bf16.mxu1 %v39450_v50  ;;  %v32225_v1 = vpack.c.bf16 %v26442_v63, %v26435_v29 }
0x1bd7   : > { %32208 = vmatpush3.bf16.msra.mxu1 %v39450_v50 }
0x1bd8   : > { %32210 = vmatprep.subr.bf16.mxu1 %v39467_v26 }
0x1bdb   : > { %32212 = vmatpush3.bf16.msra.mxu1 %v39467_v26 }
0x1bdc   : > { %29525 = vmatprep.subr.mxu1 %v39486_v3 }
0x1bdf   : > { %29526 = vmatpush3.msra.mxu1 %v39486_v3 }
0x1be0   : > { %32214 = vmatprep.subr.bf16.mxu1 %v32213_v10  ;;  %29528 = vmatmul.mubr.f32.vlgmr.msra.gmra.mrb[136].mxu1 %v26382_v62 }
0x1be1   : > { %32216 = vmatpush3.bf16.msra.mxu1 %v32213_v10  ;;  %29548 = vmatprep.mubr.f32.mxu1 %v39402_v15 }
0x1be2   : > { %32218 = vmatprep.subr.bf16.mxu1 %v32217_v24 }
0x1be5   : > { %32220 = vmatpush3.bf16.msra.mxu1 %v32217_v24 }
0x1be6   : > { %32222 = vmatprep.subr.bf16.mxu1 %v32221_v46 }
0x1be9   : > { %32224 = vmatpush3.bf16.msra.mxu1 %v32221_v46 }
0x1bea   : > { %32226 = vmatprep.subr.bf16.mxu1 %v32225_v1 }
0x1bed   : > { %32228 = vmatpush3.bf16.msra.mxu1 %v32225_v1 }
0x1bee   : > { %29546 = vmatprep.subr.mxu1 %v26449_v27 }
0x1bf1   : > { %29547 = vmatpush3.msra.mxu1 %v26449_v27 }
0x1bf2   : > { %32230 = vmatprep.subr.bf16.mxu1 %v32229_v32  ;;  %29549 = vmatmul.mubr.f32.vlgmr.msra.gmra.mrb[136].mxu1 %v39428_v44 }
0x1bf3   : > { %32232 = vmatpush3.bf16.msra.mxu1 %v32229_v32  ;;  %29569 = vmatprep.mubr.f32.mxu1 %v39410_v30  ;;  %v32261_v30 = vpack.c.bf16 %v26398_v11, %v26391_v34 }
0x1bf4   : > { %32234 = vmatprep.subr.bf16.mxu1 %v32233_v12 }
0x1bf7   : > { %32236 = vmatpush3.bf16.msra.mxu1 %v32233_v12 }
0x1bf8   : > { %32238 = vmatprep.subr.bf16.mxu1 %v32237_v55 }
0x1bfb   : > { %32240 = vmatpush3.bf16.msra.mxu1 %v32237_v55 }
0x1bfc   : > { %32242 = vmatprep.subr.bf16.mxu1 %v32241_v59 }
0x1bff   : > { %32244 = vmatpush3.bf16.msra.mxu1 %v32241_v59 }
0x1c00   : > { %29567 = vmatprep.subr.mxu1 %v26446_v17 }
0x1c03   : > { %29568 = vmatpush3.msra.mxu1 %v26446_v17 }
0x1c04   : > { %32246 = vmatprep.subr.bf16.mxu1 %v39426_v19  ;;  %29570 = vmatmul.mubr.f32.vlgmr.msra.gmra.mrb[136].mxu1 %v39446_v28 }
0x1c05   : > { %32248 = vmatpush3.bf16.msra.mxu1 %v39426_v19  ;;  %29590 = vmatprep.mubr.f32.mxu1 %v26370_v47  ;;  %v32265_v47 = vpack.c.bf16 %v26412_v5, %v26405_v54 }
0x1c06   : > { %32250 = vmatprep.subr.bf16.mxu1 %v39435_v14 }
0x1c09   : > { %32252 = vmatpush3.bf16.msra.mxu1 %v39435_v14 }
0x1c0a   : > { %32254 = vmatprep.subr.bf16.mxu1 %v39450_v50 }
0x1c0d   : > { %32256 = vmatpush3.bf16.msra.mxu1 %v39450_v50 }
0x1c0e   : > { %32258 = vmatprep.subr.bf16.mxu1 %v39467_v26 }
0x1c11   : > { %32260 = vmatpush3.bf16.msra.mxu1 %v39467_v26 }
0x1c12   : > { %29588 = vmatprep.subr.mxu1 %v39486_v3 }
0x1c15   : > { %29589 = vmatpush3.msra.mxu1 %v39486_v3 }
0x1c16   : > { %32262 = vmatprep.subr.bf16.mxu1 %v32261_v30  ;;  %29591 = vmatmul.mubr.f32.vlgmr.msra.gmra.mrb[136].mxu1 %v26380_v18 }
0x1c17   : > { %32264 = vmatpush3.bf16.msra.mxu1 %v32261_v30  ;;  %29611 = vmatprep.mubr.f32.mxu1 %v39402_v15 }
0x1c18   : > { %32266 = vmatprep.subr.bf16.mxu1 %v32265_v47 }
0x1c1b   : > { %32268 = vmatpush3.bf16.msra.mxu1 %v32265_v47 }
0x1c1c   : > { %32270 = vmatprep.subr.bf16.mxu1 %v32269_v0 }
0x1c1f   : > { %32272 = vmatpush3.bf16.msra.mxu1 %v32269_v0 }
0x1c20   : > { %32274 = vmatprep.subr.bf16.mxu1 %v32273_v53 }
0x1c23   : > { %32276 = vmatpush3.bf16.msra.mxu1 %v32273_v53 }
0x1c24   : > { %29609 = vmatprep.subr.mxu1 %v26447_v58 }
0x1c27   : > { %29610 = vmatpush3.msra.mxu1 %v26447_v58 }
0x1c28   : > { %32278 = vmatprep.subr.bf16.mxu1 %v39426_v19  ;;  %29612 = vmatmul.mubr.f32.vlgmr.msra.gmra.mrb[136].mxu1 %v39428_v44 }
0x1c29   : > { %32280 = vmatpush3.bf16.msra.mxu1 %v39426_v19  ;;  %29632 = vmatprep.mubr.f32.mxu1 %v39402_v15 }
0x1c2a   : > { %32282 = vmatprep.subr.bf16.mxu1 %v39435_v14 }
0x1c2d   : > { %32284 = vmatpush3.bf16.msra.mxu1 %v39435_v14  ;;  %v26888_v14 = vld [vmem:[%s39590_s15 + $0x8] sm:$0x3] }
0x1c2e   : > { %32286 = vmatprep.subr.bf16.mxu1 %v39450_v50 }
0x1c31   : > { %32288 = vmatpush3.bf16.msra.mxu1 %v39450_v50 }
0x1c32   : > { %32290 = vmatprep.subr.bf16.mxu1 %v39467_v26 }
0x1c35   : > { %32292 = vmatpush3.bf16.msra.mxu1 %v39467_v26 }
0x1c36   : > { %29630 = vmatprep.subr.mxu1 %v39486_v3 }
0x1c39   : > { %29631 = vmatpush3.msra.mxu1 %v39486_v3 }
0x1c3a   : > { %29633 = vmatmul.mubr.f32.vlgmr.msra.gmra.mrb[136].mxu1 %v39428_v44 }
0x1c81   : > { %v29403_v19 = vpop.f32.mrb[184].mxu0 }
0x1c82   : > { %v25775_v15 = vpop.f32.mrb[185].mxu0 }
0x1d0d   : > { %v29634_v41 = vpop.f32.mrb[136].mxu1 }
0x1d0e   : > { %v32316_v42 = vadd.f32 %v29634_v41, %v29403_v19  ;;  %v26877_v39 = vpop.f32.mrb[137].mxu1 }
0x1d0f   : > { %v32317_v44 = vadd.f32 %v26877_v39, %v25775_v15 }
0x1d10   : > { %v26890_v28 = vadd.f32 %v32316_v42, %v26888_v14 }
0x1d11   : > { %v26889_v25 = vadd.f32 %v32317_v44, %v26887_v40 }
0x1d12   : > { %26894 = vst.msk [vmem:[%s521_s20 + $0x8] sm:$0x3] %vm26893_vm13, %v26890_v28 }
0x1d13   : > { %26892 = vst.msk [vmem:[%s521_s20] sm:$0xff] %vm26891_vm14, %v26889_v25 }
0x1d14 PF: > { %s26_s21 = sadd.s32 1, %s33032_s21  }
0x1d15   : > { %p23_p4 = scmp.ge.s32.totalorder %s26_s21, 4  }
0x1d17   :  { %25 = sbr.rel (!%p23_p4) target bundleno = 2 (0x2), region = 146 }

</bundles_post_ra>
